<compile_context>
chip_gen: v6e
topology: v6e:2x2x1
jax: 0.10.0
libtpu: 0.0.40
codegen_flags: <defaults>
</compile_context>

<pallas_src>
import jax
import jax.numpy as jnp
from jax import lax
from jax.experimental import pallas as pl
from jax.experimental.pallas import tpu as pltpu

IN_DIM = 784          # 28*28 MNIST
H0 = 200              # hidden_dims[0]
H1 = 400              # hidden_dims[1] == self.hidden
K = 10                # number of codebook entries (k)
EMB = 10              # emb_size
J = H1 // EMB         # 40 latent positions per sample


# ---------------------------------------------------------------------------
# Fused kernel
# ---------------------------------------------------------------------------
def _vqvae_fused_kernel(x_ref, w1_ref, b1_ref, w2_ref, b2_ref,
                        s_ref, en_ref, t_ref,
                        w3_ref, b3_ref, w4_ref, b4_ref,
                        recon_ref, ze_ref, zq_ref):
    f32 = jnp.float32
    bf16 = jnp.bfloat16
    tb = x_ref.shape[0]                                   # static batch-tile size

    # ---- encoder (bf16 MXU operands, f32 accumulation) ---------------------
    x = x_ref[...]                                        # (tb, 784) bf16
    h1 = jnp.dot(x, w1_ref[...], preferred_element_type=f32) + b1_ref[...]
    h1 = jnp.maximum(h1, 0.0)
    ze = jnp.dot(h1.astype(bf16), w2_ref[...],
                 preferred_element_type=f32) + b2_ref[...]
    ze_ref[...] = ze                                      # (tb, 400) lane-dense, f32

    # ---- nearest-embed quantization (lane-dense, f32) ----------------------
    # dist[b, k*J+j] = -2 * sum_e ze[b, e*J+j] * cb[e,k]  +  ||cb[:,k]||^2
    # (the ||z||^2 term is constant in k, so dropping it does not change the
    #  argmin and avoids a second reduction).
    dist = jnp.dot(ze, s_ref[...], preferred_element_type=f32) + en_ref[...]
    best_d = dist[:, 0:J]                                 # (tb, 40) code 0
    best_k = jnp.zeros((tb, J), dtype=jnp.int32)
    for k in range(1, K):                                 # K-1 compares on (tb,40)
        d_k = dist[:, k * J:(k + 1) * J]
        take = d_k < best_d                               # strict <  => first argmin
        best_d = jnp.where(take, d_k, best_d)
        best_k = jnp.where(take, k, best_k)
    # one-hot in the same k*J+j layout, then select codes with one tiny f32
    # MXU matmul:  zq[b, e*J+j] = cb[e, best_k(b,j)]
    onehot = jnp.concatenate(
        [(best_k == k).astype(f32) for k in range(K)], axis=1)   # (tb, K*J)
    zq = jnp.dot(onehot, t_ref[...], preferred_element_type=f32)  # (tb, 400)
    zq_ref[...] = zq

    # ---- decoder ------------------------------------------------------------
    h3 = jnp.dot(zq.astype(bf16), w3_ref[...],
                 preferred_element_type=f32) + b3_ref[...]
    h3 = jnp.maximum(h3, 0.0)
    recon_ref[...] = jnp.tanh(
        jnp.dot(h3.astype(bf16), w4_ref[...],
                preferred_element_type=f32) + b4_ref[...])


# ---------------------------------------------------------------------------
# Host-side helpers
# ---------------------------------------------------------------------------
def _round_up(n, m):
    return ((n + m - 1) // m) * m


def _tile_config(batch):
    """Generation-aware (batch_tile, vmem_limit_bytes)."""
    kind = ""
    try:
        kind = jax.devices()[0].device_kind.lower()
    except Exception:
        pass
    if "v6" in kind:                       # 128 MiB VMEM: big tiles amortize grid overhead
        tb_max, vmem_bytes = 1024, 64 * 1024 * 1024
    else:                                  # v5e (16 MiB scoped default) / v7x (64 MiB phys) / unknown
        tb_max, vmem_bytes = 512, 32 * 1024 * 1024
    if batch <= 8:
        tb = batch                         # single step; nothing to shard
    else:
        # >= 2 grid steps so the "parallel" batch axis can shard across the
        # two v7x TensorCores; rows rounded to the sublane multiple of 8.
        tb = min(tb_max, _round_up(pl.cdiv(batch, 2), 8))
    return tb, vmem_bytes


def prepare_kernel_params(p):
    """bf16 weights + precomputed lane-dense quantization matrices."""
    bf16, f32 = jnp.bfloat16, jnp.float32
    cb = p["codebook"].astype(f32)                           # (EMB, K)
    eye_j = jnp.eye(J, dtype=f32)                            # (J, J)
    # S[e*J+j', k*J+j] = -2*cb[e,k] * (j'==j)    -> cross-term matmul matrix
    S = ((-2.0 * cb)[:, None, :, None] * eye_j[None, :, None, :]).reshape(H1, K * J)
    # en[0, k*J+j] = ||cb[:,k]||^2
    en = jnp.repeat(jnp.sum(cb * cb, axis=0), J)[None, :]    # (1, K*J)
    # T[k*J+j', e*J+j] = cb[e,k] * (j'==j)       -> code-selection matmul matrix
    T = (cb.T[:, None, :, None] * eye_j[None, :, None, :]).reshape(K * J, H1)
    return dict(
        w1=p["w1"].astype(bf16), b1=p["b1"], w2=p["w2"].astype(bf16), b2=p["b2"],
        w3=p["w3"].astype(bf16), b3=p["b3"], w4=p["w4"].astype(bf16), b4=p["b4"],
        S=S, en=en, T=T)


# ---------------------------------------------------------------------------
# Wrapper
# ---------------------------------------------------------------------------
def vq_vae_forward(x, p):
    """forward(x) -> (recon, z_e, emb), matching the PyTorch module semantics."""
    B = x.shape[0]
    x_flat = x.reshape(B, IN_DIM).astype(jnp.bfloat16)       # bf16 MXU operand
    kpar = prepare_kernel_params(p)

    tb, vmem_limit = _tile_config(B)
    grid = (pl.cdiv(B, tb),)

    def batch_spec(cols):                                    # tiled along batch
        return pl.BlockSpec((tb, cols), lambda i: (i, 0))

    def const_spec(shape, pm):                               # VMEM-resident constants
        imap = lambda i: (0,) * len(shape)
        if pm is None:
            return pl.BlockSpec(shape, imap)
        return pl.BlockSpec(shape, imap, pipeline_mode=pm)

    flops = 2 * B * (IN_DIM * H0 + H0 * H1 + H1 * H0 + H0 * IN_DIM   # fc1..fc4
                     + 2 * H1 * K * J)                               # dist + select matmuls
    bytes_accessed = (2 * B * IN_DIM + 4 * B * IN_DIM + 2 * 4 * B * H1   # x, recon, ze, zq
                      + 2 * 2 * (IN_DIM * H0 + H0 * H1)                  # bf16 weights
                      + 4 * (2 * K * J * H1 + K * J)                     # S, T, en (f32)
                      + 4 * (H0 + H1 + H0 + IN_DIM))                     # biases
    cost = pl.CostEstimate(flops=flops, transcendentals=B * IN_DIM,
                           bytes_accessed=bytes_accessed)

    def run(const_pm):
        return pl.pallas_call(
            _vqvae_fused_kernel,
            out_shape=(jax.ShapeDtypeStruct((B, IN_DIM), jnp.float32),
                       jax.ShapeDtypeStruct((B, H1), jnp.float32),
                       jax.ShapeDtypeStruct((B, H1), jnp.float32)),
            grid=grid,
            in_specs=[batch_spec(IN_DIM),
                      const_spec(kpar["w1"].shape, const_pm),
                      const_spec(kpar["b1"].shape, const_pm),
                      const_spec(kpar["w2"].shape, const_pm),
                      const_spec(kpar["b2"].shape, const_pm),
                      const_spec(kpar["S"].shape, const_pm),
                      const_spec(kpar["en"].shape, const_pm),
                      const_spec(kpar["T"].shape, const_pm),
                      const_spec(kpar["w3"].shape, const_pm),
                      const_spec(kpar["b3"].shape, const_pm),
                      const_spec(kpar["w4"].shape, const_pm),
                      const_spec(kpar["b4"].shape, const_pm)],
            out_specs=(batch_spec(IN_DIM), batch_spec(H1), batch_spec(H1)),
            compiler_params=pltpu.CompilerParams(
                dimension_semantics=("parallel",),           # megacore sharding on v7x
                vmem_limit_bytes=vmem_limit),
            cost_estimate=cost,
        )(x_flat, kpar["w1"], kpar["b1"], kpar["w2"], kpar["b2"],
          kpar["S"], kpar["en"], kpar["T"],
          kpar["w3"], kpar["b3"], kpar["w4"], kpar["b4"])

    try:
        # Single-buffer the constant-index blocks (their block index never changes).
        recon, ze_flat, zq_flat = run(pl.Buffered(1))
    except Exception:
        # Fallback for jax versions that reject single-buffered const blocks.
        recon, ze_flat, zq_flat = run(None)

    z_e = ze_flat.reshape(B, EMB, J)    # contiguous reshape: free, no HBM copy
    emb = zq_flat.reshape(B, EMB, J)    # z_q and emb share forward values
    return recon, z_e, emb


# ---------------------------------------------------------------------------
# Deterministic parameter init (PyTorch Linear default: U(-1/sqrt(in), 1/sqrt(in)))
# ---------------------------------------------------------------------------
def init_params(key):
    ks = jax.random.split(key, 9)

    def linear(kw, kb, fan_in, fan_out):
        bound = 1.0 / jnp.sqrt(fan_in)
        w = jax.random.uniform(kw, (fan_in, fan_out), jnp.float32, -bound, bound)
        b = jax.random.uniform(kb, (1, fan_out), jnp.float32, -bound, bound)
        return w, b

    w1, b1 = linear(ks[0], ks[1], IN_DIM, H0)   # fc1: 784 -> 200
    w2, b2 = linear(ks[2], ks[3], H0, H1)       # fc2: 200 -> 400
    w3, b3 = linear(ks[4], ks[5], H1, H0)       # fc3: 400 -> 200
    w4, b4 = linear(ks[6], ks[7], H0, IN_DIM)   # fc4: 200 -> 784
    codebook = jax.random.uniform(ks[8], (EMB, K), jnp.float32)   # NearestEmbed weight
    return dict(w1=w1, b1=b1, w2=w2, b2=b2, w3=w3, b3=b3, w4=w4, b4=b4,
                codebook=codebook)


# ---------------------------------------------------------------------------
# Pure-JAX reference (mirrors the kernel's bf16-operand / f32-accumulate policy
# so the tolerance check is meaningful; quantization uses the direct L2 argmin).
# ---------------------------------------------------------------------------
def reference_forward(x, p):
    bf16 = jnp.bfloat16
    B = x.shape[0]
    xf = x.reshape(B, IN_DIM)
    h1 = jnp.maximum(jnp.dot(xf.astype(bf16), p["w1"].astype(bf16),
                             preferred_element_type=jnp.float32) + p["b1"], 0.0)
    ze_flat = jnp.dot(h1.astype(bf16), p["w2"].astype(bf16),
                      preferred_element_type=jnp.float32) + p["b2"]
    z_e = ze_flat.reshape(B, EMB, J)
    e = p["codebook"]                                               # (EMB, K)
    d = jnp.sum((z_e[:, :, :, None] - e[None, :, None, :]) ** 2, axis=1)  # (B, J, K)
    idx = jnp.argmin(d, axis=-1)                                    # (B, J)
    z_q = jnp.transpose(e[:, idx], (1, 0, 2))                       # (B, EMB, J)
    h3 = jnp.maximum(jnp.dot(z_q.reshape(B, H1).astype(bf16), p["w3"].astype(bf16),
                             preferred_element_type=jnp.float32) + p["b3"], 0.0)
    recon = jnp.tanh(jnp.dot(h3.astype(bf16), p["w4"].astype(bf16),
                             preferred_element_type=jnp.float32) + p["b4"])
    return recon, z_e, z_q


if __name__ == "__main__":
    key = jax.random.PRNGKey(0)
    k_param, k_x = jax.random.split(key)
    params = init_params(k_param)

    # NCHW MNIST-like input; the module flattens it to (B, 784).
    x = jax.random.uniform(k_x, (4, 1, 28, 28), jnp.float32)

    recon, z_e, emb = jax.block_until_ready(vq_vae_forward(x, params))

    # sanity check vs pure-JAX reference (same bf16 matmul-operand policy)
    r_recon, r_ze, r_emb = reference_forward(x, params)
    assert recon.shape == (4, IN_DIM) and z_e.shape == (4, EMB, J) and emb.shape == (4, EMB, J)
    assert jnp.allclose(recon, r_recon, atol=1e-4, rtol=1e-4)
    assert jnp.allclose(z_e, r_ze, atol=1e-4, rtol=1e-4)
    assert jnp.allclose(emb, r_emb, atol=1e-4, rtol=1e-4)

    # TODO(synk): gradient routing (weight_sg / detach in NearestEmbed), the
    # loss_function and sample() are training-time concerns not represented in
    # this forward-only kernel.
    print("KERNEL_OK")
</pallas_src>

<mosaic_0001>
module attributes {stable_mosaic.version = 11 : i64} {
  func.func @_vqvae_fused_kernel(%arg0: i32, %arg1: memref<4x784xbf16, #tpu.memory_space<vmem>>, %arg2: memref<784x200xbf16, #tpu.memory_space<vmem>>, %arg3: memref<1x200xf32, #tpu.memory_space<vmem>>, %arg4: memref<200x400xbf16, #tpu.memory_space<vmem>>, %arg5: memref<1x400xf32, #tpu.memory_space<vmem>>, %arg6: memref<400x400xf32, #tpu.memory_space<vmem>>, %arg7: memref<1x400xf32, #tpu.memory_space<vmem>>, %arg8: memref<400x400xf32, #tpu.memory_space<vmem>>, %arg9: memref<400x200xbf16, #tpu.memory_space<vmem>>, %arg10: memref<1x200xf32, #tpu.memory_space<vmem>>, %arg11: memref<200x784xbf16, #tpu.memory_space<vmem>>, %arg12: memref<1x784xf32, #tpu.memory_space<vmem>>, %arg13: memref<4x784xf32, #tpu.memory_space<vmem>>, %arg14: memref<4x400xf32, #tpu.memory_space<vmem>>, %arg15: memref<4x400xf32, #tpu.memory_space<vmem>>) attributes {dimension_semantics = [#tpu.dimension_semantics<parallel>], iteration_bounds = array<i64: 1>, scalar_prefetch = 0 : i64, scratch_operands = 0 : i64, tpu.core_type = #tpu.core_type<tc>, window_params = [{transform_indices = @transform_0, window_bounds = array<i64: 4, 784>}, {pipeline_mode = #tpu.pipeline_mode<synchronous>, transform_indices = @transform_1, window_bounds = array<i64: 784, 200>}, {pipeline_mode = #tpu.pipeline_mode<synchronous>, transform_indices = @transform_2, window_bounds = array<i64: 1, 200>}, {pipeline_mode = #tpu.pipeline_mode<synchronous>, transform_indices = @transform_3, window_bounds = array<i64: 200, 400>}, {pipeline_mode = #tpu.pipeline_mode<synchronous>, transform_indices = @transform_4, window_bounds = array<i64: 1, 400>}, {pipeline_mode = #tpu.pipeline_mode<synchronous>, transform_indices = @transform_5, window_bounds = array<i64: 400, 400>}, {pipeline_mode = #tpu.pipeline_mode<synchronous>, transform_indices = @transform_6, window_bounds = array<i64: 1, 400>}, {pipeline_mode = #tpu.pipeline_mode<synchronous>, transform_indices = @transform_7, window_bounds = array<i64: 400, 400>}, {pipeline_mode = #tpu.pipeline_mode<synchronous>, transform_indices = @transform_8, window_bounds = array<i64: 400, 200>}, {pipeline_mode = #tpu.pipeline_mode<synchronous>, transform_indices = @transform_9, window_bounds = array<i64: 1, 200>}, {pipeline_mode = #tpu.pipeline_mode<synchronous>, transform_indices = @transform_10, window_bounds = array<i64: 200, 784>}, {pipeline_mode = #tpu.pipeline_mode<synchronous>, transform_indices = @transform_11, window_bounds = array<i64: 1, 784>}, {transform_indices = @transform_12, window_bounds = array<i64: 4, 784>}, {transform_indices = @transform_13, window_bounds = array<i64: 4, 400>}, {transform_indices = @transform_14, window_bounds = array<i64: 4, 400>}]} {
    %c0 = arith.constant 0 : index
    %c0_0 = arith.constant 0 : index
    %0 = vector.load %arg1[%c0, %c0_0] : memref<4x784xbf16, #tpu.memory_space<vmem>>, vector<4x784xbf16>
    %c0_1 = arith.constant 0 : index
    %c0_2 = arith.constant 0 : index
    %1 = vector.load %arg2[%c0_1, %c0_2] : memref<784x200xbf16, #tpu.memory_space<vmem>>, vector<784x200xbf16>
    %cst = arith.constant dense<0.000000e+00> : vector<4x200xf32>
    %2 = tpu.matmul %0, %1, %cst {dimension_numbers = #tpu.dot_dimension_numbers<[1], [0], [0], [1], [0, 0, 1, 1], [], []>} : vector<4x784xbf16>, vector<784x200xbf16>, vector<4x200xf32> -> vector<4x200xf32>
    %c0_3 = arith.constant 0 : index
    %c0_4 = arith.constant 0 : index
    %3 = vector.load %arg3[%c0_3, %c0_4] : memref<1x200xf32, #tpu.memory_space<vmem>>, vector<1x200xf32>
    %4 = vector.broadcast %3 : vector<1x200xf32> to vector<4x200xf32>
    %5 = arith.addf %2, %4 : vector<4x200xf32>
    %cst_5 = arith.constant 0.000000e+00 : f32
    %6 = vector.broadcast %cst_5 : f32 to vector<4x200xf32>
    %7 = arith.maximumf %5, %6 : vector<4x200xf32>
    %8 = arith.truncf %7 : vector<4x200xf32> to vector<4x200xbf16>
    %c0_6 = arith.constant 0 : index
    %c0_7 = arith.constant 0 : index
    %9 = vector.load %arg4[%c0_6, %c0_7] : memref<200x400xbf16, #tpu.memory_space<vmem>>, vector<200x400xbf16>
    %cst_8 = arith.constant dense<0.000000e+00> : vector<4x400xf32>
    %10 = tpu.matmul %8, %9, %cst_8 {dimension_numbers = #tpu.dot_dimension_numbers<[1], [0], [0], [1], [0, 0, 1, 1], [], []>} : vector<4x200xbf16>, vector<200x400xbf16>, vector<4x400xf32> -> vector<4x400xf32>
    %c0_9 = arith.constant 0 : index
    %c0_10 = arith.constant 0 : index
    %11 = vector.load %arg5[%c0_9, %c0_10] : memref<1x400xf32, #tpu.memory_space<vmem>>, vector<1x400xf32>
    %12 = vector.broadcast %11 : vector<1x400xf32> to vector<4x400xf32>
    %13 = arith.addf %10, %12 : vector<4x400xf32>
    %c0_11 = arith.constant 0 : index
    %c0_12 = arith.constant 0 : index
    %14 = vector.load %arg14[%c0_11, %c0_12] : memref<4x400xf32, #tpu.memory_space<vmem>>, vector<4x400xf32>
    tpu.vector_store %arg14[%c0_11, %c0_12], %13 {strides = array<i32>} : memref<4x400xf32, #tpu.memory_space<vmem>>, vector<4x400xf32>,
    %c0_13 = arith.constant 0 : index
    %c0_14 = arith.constant 0 : index
    %15 = vector.load %arg6[%c0_13, %c0_14] : memref<400x400xf32, #tpu.memory_space<vmem>>, vector<400x400xf32>
    %cst_15 = arith.constant dense<0.000000e+00> : vector<4x400xf32>
    %16 = tpu.matmul %13, %15, %cst_15 {dimension_numbers = #tpu.dot_dimension_numbers<[1], [0], [0], [1], [0, 0, 1, 1], [], []>} : vector<4x400xf32>, vector<400x400xf32>, vector<4x400xf32> -> vector<4x400xf32>
    %c0_16 = arith.constant 0 : index
    %c0_17 = arith.constant 0 : index
    %17 = vector.load %arg7[%c0_16, %c0_17] : memref<1x400xf32, #tpu.memory_space<vmem>>, vector<1x400xf32>
    %18 = vector.broadcast %17 : vector<1x400xf32> to vector<4x400xf32>
    %19 = arith.addf %16, %18 : vector<4x400xf32>
    %20 = vector.extract_strided_slice %19 {offsets = [0, 0], sizes = [4, 40], strides = [1, 1]} : vector<4x400xf32> to vector<4x40xf32>
    %c0_i32 = arith.constant 0 : i32
    %21 = vector.broadcast %c0_i32 : i32 to vector<4x40xi32>
    %22 = vector.extract_strided_slice %19 {offsets = [0, 40], sizes = [4, 40], strides = [1, 1]} : vector<4x400xf32> to vector<4x40xf32>
    %23 = arith.cmpf olt, %22, %20 : vector<4x40xf32>
    %24 = arith.select %23, %22, %20 : vector<4x40xi1>, vector<4x40xf32>
    %c1_i32 = arith.constant 1 : i32
    %25 = vector.broadcast %c1_i32 : i32 to vector<4x40xi32>
    %26 = arith.select %23, %25, %21 : vector<4x40xi1>, vector<4x40xi32>
    %27 = vector.extract_strided_slice %19 {offsets = [0, 80], sizes = [4, 40], strides = [1, 1]} : vector<4x400xf32> to vector<4x40xf32>
    %28 = arith.cmpf olt, %27, %24 : vector<4x40xf32>
    %29 = arith.select %28, %27, %24 : vector<4x40xi1>, vector<4x40xf32>
    %c2_i32 = arith.constant 2 : i32
    %30 = vector.broadcast %c2_i32 : i32 to vector<4x40xi32>
    %31 = arith.select %28, %30, %26 : vector<4x40xi1>, vector<4x40xi32>
    %32 = vector.extract_strided_slice %19 {offsets = [0, 120], sizes = [4, 40], strides = [1, 1]} : vector<4x400xf32> to vector<4x40xf32>
    %33 = arith.cmpf olt, %32, %29 : vector<4x40xf32>
    %34 = arith.select %33, %32, %29 : vector<4x40xi1>, vector<4x40xf32>
    %c3_i32 = arith.constant 3 : i32
    %35 = vector.broadcast %c3_i32 : i32 to vector<4x40xi32>
    %36 = arith.select %33, %35, %31 : vector<4x40xi1>, vector<4x40xi32>
    %37 = vector.extract_strided_slice %19 {offsets = [0, 160], sizes = [4, 40], strides = [1, 1]} : vector<4x400xf32> to vector<4x40xf32>
    %38 = arith.cmpf olt, %37, %34 : vector<4x40xf32>
    %39 = arith.select %38, %37, %34 : vector<4x40xi1>, vector<4x40xf32>
    %c4_i32 = arith.constant 4 : i32
    %40 = vector.broadcast %c4_i32 : i32 to vector<4x40xi32>
    %41 = arith.select %38, %40, %36 : vector<4x40xi1>, vector<4x40xi32>
    %42 = vector.extract_strided_slice %19 {offsets = [0, 200], sizes = [4, 40], strides = [1, 1]} : vector<4x400xf32> to vector<4x40xf32>
    %43 = arith.cmpf olt, %42, %39 : vector<4x40xf32>
    %44 = arith.select %43, %42, %39 : vector<4x40xi1>, vector<4x40xf32>
    %c5_i32 = arith.constant 5 : i32
    %45 = vector.broadcast %c5_i32 : i32 to vector<4x40xi32>
    %46 = arith.select %43, %45, %41 : vector<4x40xi1>, vector<4x40xi32>
    %47 = vector.extract_strided_slice %19 {offsets = [0, 240], sizes = [4, 40], strides = [1, 1]} : vector<4x400xf32> to vector<4x40xf32>
    %48 = arith.cmpf olt, %47, %44 : vector<4x40xf32>
    %49 = arith.select %48, %47, %44 : vector<4x40xi1>, vector<4x40xf32>
    %c6_i32 = arith.constant 6 : i32
    %50 = vector.broadcast %c6_i32 : i32 to vector<4x40xi32>
    %51 = arith.select %48, %50, %46 : vector<4x40xi1>, vector<4x40xi32>
    %52 = vector.extract_strided_slice %19 {offsets = [0, 280], sizes = [4, 40], strides = [1, 1]} : vector<4x400xf32> to vector<4x40xf32>
    %53 = arith.cmpf olt, %52, %49 : vector<4x40xf32>
    %54 = arith.select %53, %52, %49 : vector<4x40xi1>, vector<4x40xf32>
    %c7_i32 = arith.constant 7 : i32
    %55 = vector.broadcast %c7_i32 : i32 to vector<4x40xi32>
    %56 = arith.select %53, %55, %51 : vector<4x40xi1>, vector<4x40xi32>
    %57 = vector.extract_strided_slice %19 {offsets = [0, 320], sizes = [4, 40], strides = [1, 1]} : vector<4x400xf32> to vector<4x40xf32>
    %58 = arith.cmpf olt, %57, %54 : vector<4x40xf32>
    %59 = arith.select %58, %57, %54 : vector<4x40xi1>, vector<4x40xf32>
    %c8_i32 = arith.constant 8 : i32
    %60 = vector.broadcast %c8_i32 : i32 to vector<4x40xi32>
    %61 = arith.select %58, %60, %56 : vector<4x40xi1>, vector<4x40xi32>
    %62 = vector.extract_strided_slice %19 {offsets = [0, 360], sizes = [4, 40], strides = [1, 1]} : vector<4x400xf32> to vector<4x40xf32>
    %63 = arith.cmpf olt, %62, %59 : vector<4x40xf32>
    %c9_i32 = arith.constant 9 : i32
    %64 = vector.broadcast %c9_i32 : i32 to vector<4x40xi32>
    %65 = arith.select %63, %64, %61 : vector<4x40xi1>, vector<4x40xi32>
    %c0_i32_18 = arith.constant 0 : i32
    %66 = vector.broadcast %c0_i32_18 : i32 to vector<4x40xi32>
    %67 = arith.cmpi eq, %65, %66 : vector<4x40xi32>
    %68 = arith.extui %67 : vector<4x40xi1> to vector<4x40xi32>
    %69 = arith.sitofp %68 : vector<4x40xi32> to vector<4x40xf32>
    %c1_i32_19 = arith.constant 1 : i32
    %70 = vector.broadcast %c1_i32_19 : i32 to vector<4x40xi32>
    %71 = arith.cmpi eq, %65, %70 : vector<4x40xi32>
    %72 = arith.extui %71 : vector<4x40xi1> to vector<4x40xi32>
    %73 = arith.sitofp %72 : vector<4x40xi32> to vector<4x40xf32>
    %c2_i32_20 = arith.constant 2 : i32
    %74 = vector.broadcast %c2_i32_20 : i32 to vector<4x40xi32>
    %75 = arith.cmpi eq, %65, %74 : vector<4x40xi32>
    %76 = arith.extui %75 : vector<4x40xi1> to vector<4x40xi32>
    %77 = arith.sitofp %76 : vector<4x40xi32> to vector<4x40xf32>
    %c3_i32_21 = arith.constant 3 : i32
    %78 = vector.broadcast %c3_i32_21 : i32 to vector<4x40xi32>
    %79 = arith.cmpi eq, %65, %78 : vector<4x40xi32>
    %80 = arith.extui %79 : vector<4x40xi1> to vector<4x40xi32>
    %81 = arith.sitofp %80 : vector<4x40xi32> to vector<4x40xf32>
    %c4_i32_22 = arith.constant 4 : i32
    %82 = vector.broadcast %c4_i32_22 : i32 to vector<4x40xi32>
    %83 = arith.cmpi eq, %65, %82 : vector<4x40xi32>
    %84 = arith.extui %83 : vector<4x40xi1> to vector<4x40xi32>
    %85 = arith.sitofp %84 : vector<4x40xi32> to vector<4x40xf32>
    %c5_i32_23 = arith.constant 5 : i32
    %86 = vector.broadcast %c5_i32_23 : i32 to vector<4x40xi32>
    %87 = arith.cmpi eq, %65, %86 : vector<4x40xi32>
    %88 = arith.extui %87 : vector<4x40xi1> to vector<4x40xi32>
    %89 = arith.sitofp %88 : vector<4x40xi32> to vector<4x40xf32>
    %c6_i32_24 = arith.constant 6 : i32
    %90 = vector.broadcast %c6_i32_24 : i32 to vector<4x40xi32>
    %91 = arith.cmpi eq, %65, %90 : vector<4x40xi32>
    %92 = arith.extui %91 : vector<4x40xi1> to vector<4x40xi32>
    %93 = arith.sitofp %92 : vector<4x40xi32> to vector<4x40xf32>
    %c7_i32_25 = arith.constant 7 : i32
    %94 = vector.broadcast %c7_i32_25 : i32 to vector<4x40xi32>
    %95 = arith.cmpi eq, %65, %94 : vector<4x40xi32>
    %96 = arith.extui %95 : vector<4x40xi1> to vector<4x40xi32>
    %97 = arith.sitofp %96 : vector<4x40xi32> to vector<4x40xf32>
    %c8_i32_26 = arith.constant 8 : i32
    %98 = vector.broadcast %c8_i32_26 : i32 to vector<4x40xi32>
    %99 = arith.cmpi eq, %65, %98 : vector<4x40xi32>
    %100 = arith.extui %99 : vector<4x40xi1> to vector<4x40xi32>
    %101 = arith.sitofp %100 : vector<4x40xi32> to vector<4x40xf32>
    %c9_i32_27 = arith.constant 9 : i32
    %102 = vector.broadcast %c9_i32_27 : i32 to vector<4x40xi32>
    %103 = arith.cmpi eq, %65, %102 : vector<4x40xi32>
    %104 = arith.extui %103 : vector<4x40xi1> to vector<4x40xi32>
    %105 = arith.sitofp %104 : vector<4x40xi32> to vector<4x40xf32>
    %106 = tpu.concatenate %69, %73, %77, %81, %85, %89, %93, %97, %101, %105 in 1 : vector<4x40xf32>, vector<4x40xf32>, vector<4x40xf32>, vector<4x40xf32>, vector<4x40xf32>, vector<4x40xf32>, vector<4x40xf32>, vector<4x40xf32>, vector<4x40xf32>, vector<4x40xf32> -> vector<4x400xf32>
    %c0_28 = arith.constant 0 : index
    %c0_29 = arith.constant 0 : index
    %107 = vector.load %arg8[%c0_28, %c0_29] : memref<400x400xf32, #tpu.memory_space<vmem>>, vector<400x400xf32>
    %cst_30 = arith.constant dense<0.000000e+00> : vector<4x400xf32>
    %108 = tpu.matmul %106, %107, %cst_30 {dimension_numbers = #tpu.dot_dimension_numbers<[1], [0], [0], [1], [0, 0, 1, 1], [], []>} : vector<4x400xf32>, vector<400x400xf32>, vector<4x400xf32> -> vector<4x400xf32>
    %c0_31 = arith.constant 0 : index
    %c0_32 = arith.constant 0 : index
    %109 = vector.load %arg15[%c0_31, %c0_32] : memref<4x400xf32, #tpu.memory_space<vmem>>, vector<4x400xf32>
    tpu.vector_store %arg15[%c0_31, %c0_32], %108 {strides = array<i32>} : memref<4x400xf32, #tpu.memory_space<vmem>>, vector<4x400xf32>,
    %110 = arith.truncf %108 : vector<4x400xf32> to vector<4x400xbf16>
    %c0_33 = arith.constant 0 : index
    %c0_34 = arith.constant 0 : index
    %111 = vector.load %arg9[%c0_33, %c0_34] : memref<400x200xbf16, #tpu.memory_space<vmem>>, vector<400x200xbf16>
    %cst_35 = arith.constant dense<0.000000e+00> : vector<4x200xf32>
    %112 = tpu.matmul %110, %111, %cst_35 {dimension_numbers = #tpu.dot_dimension_numbers<[1], [0], [0], [1], [0, 0, 1, 1], [], []>} : vector<4x400xbf16>, vector<400x200xbf16>, vector<4x200xf32> -> vector<4x200xf32>
    %c0_36 = arith.constant 0 : index
    %c0_37 = arith.constant 0 : index
    %113 = vector.load %arg10[%c0_36, %c0_37] : memref<1x200xf32, #tpu.memory_space<vmem>>, vector<1x200xf32>
    %114 = vector.broadcast %113 : vector<1x200xf32> to vector<4x200xf32>
    %115 = arith.addf %112, %114 : vector<4x200xf32>
    %cst_38 = arith.constant 0.000000e+00 : f32
    %116 = vector.broadcast %cst_38 : f32 to vector<4x200xf32>
    %117 = arith.maximumf %115, %116 : vector<4x200xf32>
    %118 = arith.truncf %117 : vector<4x200xf32> to vector<4x200xbf16>
    %c0_39 = arith.constant 0 : index
    %c0_40 = arith.constant 0 : index
    %119 = vector.load %arg11[%c0_39, %c0_40] : memref<200x784xbf16, #tpu.memory_space<vmem>>, vector<200x784xbf16>
    %cst_41 = arith.constant dense<0.000000e+00> : vector<4x784xf32>
    %120 = tpu.matmul %118, %119, %cst_41 {dimension_numbers = #tpu.dot_dimension_numbers<[1], [0], [0], [1], [0, 0, 1, 1], [], []>} : vector<4x200xbf16>, vector<200x784xbf16>, vector<4x784xf32> -> vector<4x784xf32>
    %c0_42 = arith.constant 0 : index
    %c0_43 = arith.constant 0 : index
    %121 = vector.load %arg12[%c0_42, %c0_43] : memref<1x784xf32, #tpu.memory_space<vmem>>, vector<1x784xf32>
    %122 = vector.broadcast %121 : vector<1x784xf32> to vector<4x784xf32>
    %123 = arith.addf %120, %122 : vector<4x784xf32>
    %124 = math.tanh %123 : vector<4x784xf32>
    %c0_44 = arith.constant 0 : index
    %c0_45 = arith.constant 0 : index
    %125 = vector.load %arg13[%c0_44, %c0_45] : memref<4x784xf32, #tpu.memory_space<vmem>>, vector<4x784xf32>
    tpu.vector_store %arg13[%c0_44, %c0_45], %124 {strides = array<i32>} : memref<4x784xf32, #tpu.memory_space<vmem>>, vector<4x784xf32>,
    return
  }
  func.func @transform_0(%arg0: i32) -> (i32, i32) {
    %c0_i32 = arith.constant 0 : i32
    %c0_i32_0 = arith.constant 0 : i32
    return %arg0, %c0_i32 : i32, i32
  }
  func.func @transform_1(%arg0: i32) -> (i32, i32) {
    %c0_i32 = arith.constant 0 : i32
    %c0_i32_0 = arith.constant 0 : i32
    %c0_i32_1 = arith.constant 0 : i32
    return %c0_i32, %c0_i32_0 : i32, i32
  }
  func.func @transform_2(%arg0: i32) -> (i32, i32) {
    %c0_i32 = arith.constant 0 : i32
    %c0_i32_0 = arith.constant 0 : i32
    %c0_i32_1 = arith.constant 0 : i32
    return %c0_i32, %c0_i32_0 : i32, i32
  }
  func.func @transform_3(%arg0: i32) -> (i32, i32) {
    %c0_i32 = arith.constant 0 : i32
    %c0_i32_0 = arith.constant 0 : i32
    %c0_i32_1 = arith.constant 0 : i32
    return %c0_i32, %c0_i32_0 : i32, i32
  }
  func.func @transform_4(%arg0: i32) -> (i32, i32) {
    %c0_i32 = arith.constant 0 : i32
    %c0_i32_0 = arith.constant 0 : i32
    %c0_i32_1 = arith.constant 0 : i32
    return %c0_i32, %c0_i32_0 : i32, i32
  }
  func.func @transform_5(%arg0: i32) -> (i32, i32) {
    %c0_i32 = arith.constant 0 : i32
    %c0_i32_0 = arith.constant 0 : i32
    %c0_i32_1 = arith.constant 0 : i32
    return %c0_i32, %c0_i32_0 : i32, i32
  }
  func.func @transform_6(%arg0: i32) -> (i32, i32) {
    %c0_i32 = arith.constant 0 : i32
    %c0_i32_0 = arith.constant 0 : i32
    %c0_i32_1 = arith.constant 0 : i32
    return %c0_i32, %c0_i32_0 : i32, i32
  }
  func.func @transform_7(%arg0: i32) -> (i32, i32) {
    %c0_i32 = arith.constant 0 : i32
    %c0_i32_0 = arith.constant 0 : i32
    %c0_i32_1 = arith.constant 0 : i32
    return %c0_i32, %c0_i32_0 : i32, i32
  }
  func.func @transform_8(%arg0: i32) -> (i32, i32) {
    %c0_i32 = arith.constant 0 : i32
    %c0_i32_0 = arith.constant 0 : i32
    %c0_i32_1 = arith.constant 0 : i32
    return %c0_i32, %c0_i32_0 : i32, i32
  }
  func.func @transform_9(%arg0: i32) -> (i32, i32) {
    %c0_i32 = arith.constant 0 : i32
    %c0_i32_0 = arith.constant 0 : i32
    %c0_i32_1 = arith.constant 0 : i32
    return %c0_i32, %c0_i32_0 : i32, i32
  }
  func.func @transform_10(%arg0: i32) -> (i32, i32) {
    %c0_i32 = arith.constant 0 : i32
    %c0_i32_0 = arith.constant 0 : i32
    %c0_i32_1 = arith.constant 0 : i32
    return %c0_i32, %c0_i32_0 : i32, i32
  }
  func.func @transform_11(%arg0: i32) -> (i32, i32) {
    %c0_i32 = arith.constant 0 : i32
    %c0_i32_0 = arith.constant 0 : i32
    %c0_i32_1 = arith.constant 0 : i32
    return %c0_i32, %c0_i32_0 : i32, i32
  }
  func.func @transform_12(%arg0: i32) -> (i32, i32) {
    %c0_i32 = arith.constant 0 : i32
    %c0_i32_0 = arith.constant 0 : i32
    return %arg0, %c0_i32 : i32, i32
  }
  func.func @transform_13(%arg0: i32) -> (i32, i32) {
    %c0_i32 = arith.constant 0 : i32
    %c0_i32_0 = arith.constant 0 : i32
    return %arg0, %c0_i32 : i32, i32
  }
  func.func @transform_14(%arg0: i32) -> (i32, i32) {
    %c0_i32 = arith.constant 0 : i32
    %c0_i32_0 = arith.constant 0 : i32
    return %arg0, %c0_i32 : i32, i32
  }
}

module attributes {stable_mosaic.version = 11 : i64} {
  func.func @_vqvae_fused_kernel(%arg0: i32, %arg1: memref<4x784xbf16, #tpu.memory_space<vmem>>, %arg2: memref<784x200xbf16, #tpu.memory_space<vmem>>, %arg3: memref<1x200xf32, #tpu.memory_space<vmem>>, %arg4: memref<200x400xbf16, #tpu.memory_space<vmem>>, %arg5: memref<1x400xf32, #tpu.memory_space<vmem>>, %arg6: memref<400x400xf32, #tpu.memory_space<vmem>>, %arg7: memref<1x400xf32, #tpu.memory_space<vmem>>, %arg8: memref<400x400xf32, #tpu.memory_space<vmem>>, %arg9: memref<400x200xbf16, #tpu.memory_space<vmem>>, %arg10: memref<1x200xf32, #tpu.memory_space<vmem>>, %arg11: memref<200x784xbf16, #tpu.memory_space<vmem>>, %arg12: memref<1x784xf32, #tpu.memory_space<vmem>>, %arg13: memref<4x784xf32, #tpu.memory_space<vmem>>, %arg14: memref<4x400xf32, #tpu.memory_space<vmem>>, %arg15: memref<4x400xf32, #tpu.memory_space<vmem>>) attributes {dimension_semantics = [#tpu.dimension_semantics<parallel>], iteration_bounds = array<i64: 1>, scalar_prefetch = 0 : i64, scratch_operands = 0 : i64, tpu.core_type = #tpu.core_type<tc>, window_params = [{transform_indices = @transform_0, window_bounds = array<i64: 4, 784>}, {pipeline_mode = #tpu.pipeline_mode<synchronous>, transform_indices = @transform_1, window_bounds = array<i64: 784, 200>}, {pipeline_mode = #tpu.pipeline_mode<synchronous>, transform_indices = @transform_2, window_bounds = array<i64: 1, 200>}, {pipeline_mode = #tpu.pipeline_mode<synchronous>, transform_indices = @transform_3, window_bounds = array<i64: 200, 400>}, {pipeline_mode = #tpu.pipeline_mode<synchronous>, transform_indices = @transform_4, window_bounds = array<i64: 1, 400>}, {pipeline_mode = #tpu.pipeline_mode<synchronous>, transform_indices = @transform_5, window_bounds = array<i64: 400, 400>}, {pipeline_mode = #tpu.pipeline_mode<synchronous>, transform_indices = @transform_6, window_bounds = array<i64: 1, 400>}, {pipeline_mode = #tpu.pipeline_mode<synchronous>, transform_indices = @transform_7, window_bounds = array<i64: 400, 400>}, {pipeline_mode = #tpu.pipeline_mode<synchronous>, transform_indices = @transform_8, window_bounds = array<i64: 400, 200>}, {pipeline_mode = #tpu.pipeline_mode<synchronous>, transform_indices = @transform_9, window_bounds = array<i64: 1, 200>}, {pipeline_mode = #tpu.pipeline_mode<synchronous>, transform_indices = @transform_10, window_bounds = array<i64: 200, 784>}, {pipeline_mode = #tpu.pipeline_mode<synchronous>, transform_indices = @transform_11, window_bounds = array<i64: 1, 784>}, {transform_indices = @transform_12, window_bounds = array<i64: 4, 784>}, {transform_indices = @transform_13, window_bounds = array<i64: 4, 400>}, {transform_indices = @transform_14, window_bounds = array<i64: 4, 400>}]} {
    %c0 = arith.constant 0 : index
    %c0_0 = arith.constant 0 : index
    %0 = vector.load %arg1[%c0, %c0_0] : memref<4x784xbf16, #tpu.memory_space<vmem>>, vector<4x784xbf16>
    %c0_1 = arith.constant 0 : index
    %c0_2 = arith.constant 0 : index
    %1 = vector.load %arg2[%c0_1, %c0_2] : memref<784x200xbf16, #tpu.memory_space<vmem>>, vector<784x200xbf16>
    %cst = arith.constant dense<0.000000e+00> : vector<4x200xf32>
    %2 = tpu.matmul %0, %1, %cst {dimension_numbers = #tpu.dot_dimension_numbers<[1], [0], [0], [1], [0, 0, 1, 1], [], []>} : vector<4x784xbf16>, vector<784x200xbf16>, vector<4x200xf32> -> vector<4x200xf32>
    %c0_3 = arith.constant 0 : index
    %c0_4 = arith.constant 0 : index
    %3 = vector.load %arg3[%c0_3, %c0_4] : memref<1x200xf32, #tpu.memory_space<vmem>>, vector<1x200xf32>
    %4 = vector.broadcast %3 : vector<1x200xf32> to vector<4x200xf32>
    %5 = arith.addf %2, %4 : vector<4x200xf32>
    %cst_5 = arith.constant 0.000000e+00 : f32
    %6 = vector.broadcast %cst_5 : f32 to vector<4x200xf32>
    %7 = arith.maximumf %5, %6 : vector<4x200xf32>
    %8 = arith.truncf %7 : vector<4x200xf32> to vector<4x200xbf16>
    %c0_6 = arith.constant 0 : index
    %c0_7 = arith.constant 0 : index
    %9 = vector.load %arg4[%c0_6, %c0_7] : memref<200x400xbf16, #tpu.memory_space<vmem>>, vector<200x400xbf16>
    %cst_8 = arith.constant dense<0.000000e+00> : vector<4x400xf32>
    %10 = tpu.matmul %8, %9, %cst_8 {dimension_numbers = #tpu.dot_dimension_numbers<[1], [0], [0], [1], [0, 0, 1, 1], [], []>} : vector<4x200xbf16>, vector<200x400xbf16>, vector<4x400xf32> -> vector<4x400xf32>
    %c0_9 = arith.constant 0 : index
    %c0_10 = arith.constant 0 : index
    %11 = vector.load %arg5[%c0_9, %c0_10] : memref<1x400xf32, #tpu.memory_space<vmem>>, vector<1x400xf32>
    %12 = vector.broadcast %11 : vector<1x400xf32> to vector<4x400xf32>
    %13 = arith.addf %10, %12 : vector<4x400xf32>
    %c0_11 = arith.constant 0 : index
    %c0_12 = arith.constant 0 : index
    %14 = vector.load %arg14[%c0_11, %c0_12] : memref<4x400xf32, #tpu.memory_space<vmem>>, vector<4x400xf32>
    tpu.vector_store %arg14[%c0_11, %c0_12], %13 {strides = array<i32>} : memref<4x400xf32, #tpu.memory_space<vmem>>, vector<4x400xf32>,
    %c0_13 = arith.constant 0 : index
    %c0_14 = arith.constant 0 : index
    %15 = vector.load %arg6[%c0_13, %c0_14] : memref<400x400xf32, #tpu.memory_space<vmem>>, vector<400x400xf32>
    %cst_15 = arith.constant dense<0.000000e+00> : vector<4x400xf32>
    %16 = tpu.matmul %13, %15, %cst_15 {dimension_numbers = #tpu.dot_dimension_numbers<[1], [0], [0], [1], [0, 0, 1, 1], [], []>} : vector<4x400xf32>, vector<400x400xf32>, vector<4x400xf32> -> vector<4x400xf32>
    %c0_16 = arith.constant 0 : index
    %c0_17 = arith.constant 0 : index
    %17 = vector.load %arg7[%c0_16, %c0_17] : memref<1x400xf32, #tpu.memory_space<vmem>>, vector<1x400xf32>
    %18 = vector.broadcast %17 : vector<1x400xf32> to vector<4x400xf32>
    %19 = arith.addf %16, %18 : vector<4x400xf32>
    %20 = vector.extract_strided_slice %19 {offsets = [0, 0], sizes = [4, 40], strides = [1, 1]} : vector<4x400xf32> to vector<4x40xf32>
    %c0_i32 = arith.constant 0 : i32
    %21 = vector.broadcast %c0_i32 : i32 to vector<4x40xi32>
    %22 = vector.extract_strided_slice %19 {offsets = [0, 40], sizes = [4, 40], strides = [1, 1]} : vector<4x400xf32> to vector<4x40xf32>
    %23 = arith.cmpf olt, %22, %20 : vector<4x40xf32>
    %24 = arith.select %23, %22, %20 : vector<4x40xi1>, vector<4x40xf32>
    %c1_i32 = arith.constant 1 : i32
    %25 = vector.broadcast %c1_i32 : i32 to vector<4x40xi32>
    %26 = arith.select %23, %25, %21 : vector<4x40xi1>, vector<4x40xi32>
    %27 = vector.extract_strided_slice %19 {offsets = [0, 80], sizes = [4, 40], strides = [1, 1]} : vector<4x400xf32> to vector<4x40xf32>
    %28 = arith.cmpf olt, %27, %24 : vector<4x40xf32>
    %29 = arith.select %28, %27, %24 : vector<4x40xi1>, vector<4x40xf32>
    %c2_i32 = arith.constant 2 : i32
    %30 = vector.broadcast %c2_i32 : i32 to vector<4x40xi32>
    %31 = arith.select %28, %30, %26 : vector<4x40xi1>, vector<4x40xi32>
    %32 = vector.extract_strided_slice %19 {offsets = [0, 120], sizes = [4, 40], strides = [1, 1]} : vector<4x400xf32> to vector<4x40xf32>
    %33 = arith.cmpf olt, %32, %29 : vector<4x40xf32>
    %34 = arith.select %33, %32, %29 : vector<4x40xi1>, vector<4x40xf32>
    %c3_i32 = arith.constant 3 : i32
    %35 = vector.broadcast %c3_i32 : i32 to vector<4x40xi32>
    %36 = arith.select %33, %35, %31 : vector<4x40xi1>, vector<4x40xi32>
    %37 = vector.extract_strided_slice %19 {offsets = [0, 160], sizes = [4, 40], strides = [1, 1]} : vector<4x400xf32> to vector<4x40xf32>
    %38 = arith.cmpf olt, %37, %34 : vector<4x40xf32>
    %39 = arith.select %38, %37, %34 : vector<4x40xi1>, vector<4x40xf32>
    %c4_i32 = arith.constant 4 : i32
    %40 = vector.broadcast %c4_i32 : i32 to vector<4x40xi32>
    %41 = arith.select %38, %40, %36 : vector<4x40xi1>, vector<4x40xi32>
    %42 = vector.extract_strided_slice %19 {offsets = [0, 200], sizes = [4, 40], strides = [1, 1]} : vector<4x400xf32> to vector<4x40xf32>
    %43 = arith.cmpf olt, %42, %39 : vector<4x40xf32>
    %44 = arith.select %43, %42, %39 : vector<4x40xi1>, vector<4x40xf32>
    %c5_i32 = arith.constant 5 : i32
    %45 = vector.broadcast %c5_i32 : i32 to vector<4x40xi32>
    %46 = arith.select %43, %45, %41 : vector<4x40xi1>, vector<4x40xi32>
    %47 = vector.extract_strided_slice %19 {offsets = [0, 240], sizes = [4, 40], strides = [1, 1]} : vector<4x400xf32> to vector<4x40xf32>
    %48 = arith.cmpf olt, %47, %44 : vector<4x40xf32>
    %49 = arith.select %48, %47, %44 : vector<4x40xi1>, vector<4x40xf32>
    %c6_i32 = arith.constant 6 : i32
    %50 = vector.broadcast %c6_i32 : i32 to vector<4x40xi32>
    %51 = arith.select %48, %50, %46 : vector<4x40xi1>, vector<4x40xi32>
    %52 = vector.extract_strided_slice %19 {offsets = [0, 280], sizes = [4, 40], strides = [1, 1]} : vector<4x400xf32> to vector<4x40xf32>
    %53 = arith.cmpf olt, %52, %49 : vector<4x40xf32>
    %54 = arith.select %53, %52, %49 : vector<4x40xi1>, vector<4x40xf32>
    %c7_i32 = arith.constant 7 : i32
    %55 = vector.broadcast %c7_i32 : i32 to vector<4x40xi32>
    %56 = arith.select %53, %55, %51 : vector<4x40xi1>, vector<4x40xi32>
    %57 = vector.extract_strided_slice %19 {offsets = [0, 320], sizes = [4, 40], strides = [1, 1]} : vector<4x400xf32> to vector<4x40xf32>
    %58 = arith.cmpf olt, %57, %54 : vector<4x40xf32>
    %59 = arith.select %58, %57, %54 : vector<4x40xi1>, vector<4x40xf32>
    %c8_i32 = arith.constant 8 : i32
    %60 = vector.broadcast %c8_i32 : i32 to vector<4x40xi32>
    %61 = arith.select %58, %60, %56 : vector<4x40xi1>, vector<4x40xi32>
    %62 = vector.extract_strided_slice %19 {offsets = [0, 360], sizes = [4, 40], strides = [1, 1]} : vector<4x400xf32> to vector<4x40xf32>
    %63 = arith.cmpf olt, %62, %59 : vector<4x40xf32>
    %c9_i32 = arith.constant 9 : i32
    %64 = vector.broadcast %c9_i32 : i32 to vector<4x40xi32>
    %65 = arith.select %63, %64, %61 : vector<4x40xi1>, vector<4x40xi32>
    %c0_i32_18 = arith.constant 0 : i32
    %66 = vector.broadcast %c0_i32_18 : i32 to vector<4x40xi32>
    %67 = arith.cmpi eq, %65, %66 : vector<4x40xi32>
    %68 = arith.extui %67 : vector<4x40xi1> to vector<4x40xi32>
    %69 = arith.sitofp %68 : vector<4x40xi32> to vector<4x40xf32>
    %c1_i32_19 = arith.constant 1 : i32
    %70 = vector.broadcast %c1_i32_19 : i32 to vector<4x40xi32>
    %71 = arith.cmpi eq, %65, %70 : vector<4x40xi32>
    %72 = arith.extui %71 : vector<4x40xi1> to vector<4x40xi32>
    %73 = arith.sitofp %72 : vector<4x40xi32> to vector<4x40xf32>
    %c2_i32_20 = arith.constant 2 : i32
    %74 = vector.broadcast %c2_i32_20 : i32 to vector<4x40xi32>
    %75 = arith.cmpi eq, %65, %74 : vector<4x40xi32>
    %76 = arith.extui %75 : vector<4x40xi1> to vector<4x40xi32>
    %77 = arith.sitofp %76 : vector<4x40xi32> to vector<4x40xf32>
    %c3_i32_21 = arith.constant 3 : i32
    %78 = vector.broadcast %c3_i32_21 : i32 to vector<4x40xi32>
    %79 = arith.cmpi eq, %65, %78 : vector<4x40xi32>
    %80 = arith.extui %79 : vector<4x40xi1> to vector<4x40xi32>
    %81 = arith.sitofp %80 : vector<4x40xi32> to vector<4x40xf32>
    %c4_i32_22 = arith.constant 4 : i32
    %82 = vector.broadcast %c4_i32_22 : i32 to vector<4x40xi32>
    %83 = arith.cmpi eq, %65, %82 : vector<4x40xi32>
    %84 = arith.extui %83 : vector<4x40xi1> to vector<4x40xi32>
    %85 = arith.sitofp %84 : vector<4x40xi32> to vector<4x40xf32>
    %c5_i32_23 = arith.constant 5 : i32
    %86 = vector.broadcast %c5_i32_23 : i32 to vector<4x40xi32>
    %87 = arith.cmpi eq, %65, %86 : vector<4x40xi32>
    %88 = arith.extui %87 : vector<4x40xi1> to vector<4x40xi32>
    %89 = arith.sitofp %88 : vector<4x40xi32> to vector<4x40xf32>
    %c6_i32_24 = arith.constant 6 : i32
    %90 = vector.broadcast %c6_i32_24 : i32 to vector<4x40xi32>
    %91 = arith.cmpi eq, %65, %90 : vector<4x40xi32>
    %92 = arith.extui %91 : vector<4x40xi1> to vector<4x40xi32>
    %93 = arith.sitofp %92 : vector<4x40xi32> to vector<4x40xf32>
    %c7_i32_25 = arith.constant 7 : i32
    %94 = vector.broadcast %c7_i32_25 : i32 to vector<4x40xi32>
    %95 = arith.cmpi eq, %65, %94 : vector<4x40xi32>
    %96 = arith.extui %95 : vector<4x40xi1> to vector<4x40xi32>
    %97 = arith.sitofp %96 : vector<4x40xi32> to vector<4x40xf32>
    %c8_i32_26 = arith.constant 8 : i32
    %98 = vector.broadcast %c8_i32_26 : i32 to vector<4x40xi32>
    %99 = arith.cmpi eq, %65, %98 : vector<4x40xi32>
    %100 = arith.extui %99 : vector<4x40xi1> to vector<4x40xi32>
    %101 = arith.sitofp %100 : vector<4x40xi32> to vector<4x40xf32>
    %c9_i32_27 = arith.constant 9 : i32
    %102 = vector.broadcast %c9_i32_27 : i32 to vector<4x40xi32>
    %103 = arith.cmpi eq, %65, %102 : vector<4x40xi32>
    %104 = arith.extui %103 : vector<4x40xi1> to vector<4x40xi32>
    %105 = arith.sitofp %104 : vector<4x40xi32> to vector<4x40xf32>
    %106 = tpu.concatenate %69, %73, %77, %81, %85, %89, %93, %97, %101, %105 in 1 : vector<4x40xf32>, vector<4x40xf32>, vector<4x40xf32>, vector<4x40xf32>, vector<4x40xf32>, vector<4x40xf32>, vector<4x40xf32>, vector<4x40xf32>, vector<4x40xf32>, vector<4x40xf32> -> vector<4x400xf32>
    %c0_28 = arith.constant 0 : index
    %c0_29 = arith.constant 0 : index
    %107 = vector.load %arg8[%c0_28, %c0_29] : memref<400x400xf32, #tpu.memory_space<vmem>>, vector<400x400xf32>
    %cst_30 = arith.constant dense<0.000000e+00> : vector<4x400xf32>
    %108 = tpu.matmul %106, %107, %cst_30 {dimension_numbers = #tpu.dot_dimension_numbers<[1], [0], [0], [1], [0, 0, 1, 1], [], []>} : vector<4x400xf32>, vector<400x400xf32>, vector<4x400xf32> -> vector<4x400xf32>
    %c0_31 = arith.constant 0 : index
    %c0_32 = arith.constant 0 : index
    %109 = vector.load %arg15[%c0_31, %c0_32] : memref<4x400xf32, #tpu.memory_space<vmem>>, vector<4x400xf32>
    tpu.vector_store %arg15[%c0_31, %c0_32], %108 {strides = array<i32>} : memref<4x400xf32, #tpu.memory_space<vmem>>, vector<4x400xf32>,
    %110 = arith.truncf %108 : vector<4x400xf32> to vector<4x400xbf16>
    %c0_33 = arith.constant 0 : index
    %c0_34 = arith.constant 0 : index
    %111 = vector.load %arg9[%c0_33, %c0_34] : memref<400x200xbf16, #tpu.memory_space<vmem>>, vector<400x200xbf16>
    %cst_35 = arith.constant dense<0.000000e+00> : vector<4x200xf32>
    %112 = tpu.matmul %110, %111, %cst_35 {dimension_numbers = #tpu.dot_dimension_numbers<[1], [0], [0], [1], [0, 0, 1, 1], [], []>} : vector<4x400xbf16>, vector<400x200xbf16>, vector<4x200xf32> -> vector<4x200xf32>
    %c0_36 = arith.constant 0 : index
    %c0_37 = arith.constant 0 : index
    %113 = vector.load %arg10[%c0_36, %c0_37] : memref<1x200xf32, #tpu.memory_space<vmem>>, vector<1x200xf32>
    %114 = vector.broadcast %113 : vector<1x200xf32> to vector<4x200xf32>
    %115 = arith.addf %112, %114 : vector<4x200xf32>
    %cst_38 = arith.constant 0.000000e+00 : f32
    %116 = vector.broadcast %cst_38 : f32 to vector<4x200xf32>
    %117 = arith.maximumf %115, %116 : vector<4x200xf32>
    %118 = arith.truncf %117 : vector<4x200xf32> to vector<4x200xbf16>
    %c0_39 = arith.constant 0 : index
    %c0_40 = arith.constant 0 : index
    %119 = vector.load %arg11[%c0_39, %c0_40] : memref<200x784xbf16, #tpu.memory_space<vmem>>, vector<200x784xbf16>
    %cst_41 = arith.constant dense<0.000000e+00> : vector<4x784xf32>
    %120 = tpu.matmul %118, %119, %cst_41 {dimension_numbers = #tpu.dot_dimension_numbers<[1], [0], [0], [1], [0, 0, 1, 1], [], []>} : vector<4x200xbf16>, vector<200x784xbf16>, vector<4x784xf32> -> vector<4x784xf32>
    %c0_42 = arith.constant 0 : index
    %c0_43 = arith.constant 0 : index
    %121 = vector.load %arg12[%c0_42, %c0_43] : memref<1x784xf32, #tpu.memory_space<vmem>>, vector<1x784xf32>
    %122 = vector.broadcast %121 : vector<1x784xf32> to vector<4x784xf32>
    %123 = arith.addf %120, %122 : vector<4x784xf32>
    %124 = math.tanh %123 : vector<4x784xf32>
    %c0_44 = arith.constant 0 : index
    %c0_45 = arith.constant 0 : index
    %125 = vector.load %arg13[%c0_44, %c0_45] : memref<4x784xf32, #tpu.memory_space<vmem>>, vector<4x784xf32>
    tpu.vector_store %arg13[%c0_44, %c0_45], %124 {strides = array<i32>} : memref<4x784xf32, #tpu.memory_space<vmem>>, vector<4x784xf32>,
    return
  }
  func.func @transform_0(%arg0: i32) -> (i32, i32) {
    %c0_i32 = arith.constant 0 : i32
    %c0_i32_0 = arith.constant 0 : i32
    return %arg0, %c0_i32 : i32, i32
  }
  func.func @transform_1(%arg0: i32) -> (i32, i32) {
    %c0_i32 = arith.constant 0 : i32
    %c0_i32_0 = arith.constant 0 : i32
    %c0_i32_1 = arith.constant 0 : i32
    return %c0_i32, %c0_i32_0 : i32, i32
  }
  func.func @transform_2(%arg0: i32) -> (i32, i32) {
    %c0_i32 = arith.constant 0 : i32
    %c0_i32_0 = arith.constant 0 : i32
    %c0_i32_1 = arith.constant 0 : i32
    return %c0_i32, %c0_i32_0 : i32, i32
  }
  func.func @transform_3(%arg0: i32) -> (i32, i32) {
    %c0_i32 = arith.constant 0 : i32
    %c0_i32_0 = arith.constant 0 : i32
    %c0_i32_1 = arith.constant 0 : i32
    return %c0_i32, %c0_i32_0 : i32, i32
  }
  func.func @transform_4(%arg0: i32) -> (i32, i32) {
    %c0_i32 = arith.constant 0 : i32
    %c0_i32_0 = arith.constant 0 : i32
    %c0_i32_1 = arith.constant 0 : i32
    return %c0_i32, %c0_i32_0 : i32, i32
  }
  func.func @transform_5(%arg0: i32) -> (i32, i32) {
    %c0_i32 = arith.constant 0 : i32
    %c0_i32_0 = arith.constant 0 : i32
    %c0_i32_1 = arith.constant 0 : i32
    return %c0_i32, %c0_i32_0 : i32, i32
  }
  func.func @transform_6(%arg0: i32) -> (i32, i32) {
    %c0_i32 = arith.constant 0 : i32
    %c0_i32_0 = arith.constant 0 : i32
    %c0_i32_1 = arith.constant 0 : i32
    return %c0_i32, %c0_i32_0 : i32, i32
  }
  func.func @transform_7(%arg0: i32) -> (i32, i32) {
    %c0_i32 = arith.constant 0 : i32
    %c0_i32_0 = arith.constant 0 : i32
    %c0_i32_1 = arith.constant 0 : i32
    return %c0_i32, %c0_i32_0 : i32, i32
  }
  func.func @transform_8(%arg0: i32) -> (i32, i32) {
    %c0_i32 = arith.constant 0 : i32
    %c0_i32_0 = arith.constant 0 : i32
    %c0_i32_1 = arith.constant 0 : i32
    return %c0_i32, %c0_i32_0 : i32, i32
  }
  func.func @transform_9(%arg0: i32) -> (i32, i32) {
    %c0_i32 = arith.constant 0 : i32
    %c0_i32_0 = arith.constant 0 : i32
    %c0_i32_1 = arith.constant 0 : i32
    return %c0_i32, %c0_i32_0 : i32, i32
  }
  func.func @transform_10(%arg0: i32) -> (i32, i32) {
    %c0_i32 = arith.constant 0 : i32
    %c0_i32_0 = arith.constant 0 : i32
    %c0_i32_1 = arith.constant 0 : i32
    return %c0_i32, %c0_i32_0 : i32, i32
  }
  func.func @transform_11(%arg0: i32) -> (i32, i32) {
    %c0_i32 = arith.constant 0 : i32
    %c0_i32_0 = arith.constant 0 : i32
    %c0_i32_1 = arith.constant 0 : i32
    return %c0_i32, %c0_i32_0 : i32, i32
  }
  func.func @transform_12(%arg0: i32) -> (i32, i32) {
    %c0_i32 = arith.constant 0 : i32
    %c0_i32_0 = arith.constant 0 : i32
    return %arg0, %c0_i32 : i32, i32
  }
  func.func @transform_13(%arg0: i32) -> (i32, i32) {
    %c0_i32 = arith.constant 0 : i32
    %c0_i32_0 = arith.constant 0 : i32
    return %arg0, %c0_i32 : i32, i32
  }
  func.func @transform_14(%arg0: i32) -> (i32, i32) {
    %c0_i32 = arith.constant 0 : i32
    %c0_i32_0 = arith.constant 0 : i32
    return %arg0, %c0_i32 : i32, i32
  }
}

</mosaic_0001>

<bundles_post_ra>
// kernel: tpu_custom_call.1
= control target key start
LH: loop header
LB: loop body
LE: loop exit
PB: predicated region body
PF: predicated region fallthrough
CT: control target
= control target key end

     0   :  { %20 = vsyncpa [#allocation3], 0  ;;  %s5895_s0 = inlined_call_operand.vmem [shape: bf16[4,784], index: 0, kind: input, shape index: {}]   ;;  %s5896_s1 = inlined_call_operand.vmem [shape: bf16[784,200], index: 1, kind: input, shape index: {}]   ;;  %s5897_s2 = inlined_call_operand.vmem [shape: f32[1,200], index: 2, kind: input, shape index: {}]   ;;  %s5898_s3 = inlined_call_operand.vmem [shape: bf16[200,400], index: 3, kind: input, shape index: {}]   ;;  %s5899_s4 = inlined_call_operand.vmem [shape: f32[1,400], index: 4, kind: input, shape index: {}]   ;;  %s5900_s5 = inlined_call_operand.hbm [shape: f32[400,400], index: 5, kind: input, shape index: {}]   ;;  %s5901_s6 = inlined_call_operand.vmem [shape: f32[1,400], index: 6, kind: input, shape index: {}]   ;;  %s5902_s7 = inlined_call_operand.hbm [shape: f32[400,400], index: 7, kind: input, shape index: {}]   ;;  %s5903_s8 = inlined_call_operand.hbm [shape: bf16[400,200], index: 8, kind: input, shape index: {}]   ;;  %s5904_s9 = inlined_call_operand.vmem [shape: f32[1,200], index: 9, kind: input, shape index: {}]   ;;  %s5905_s10 = inlined_call_operand.vmem [shape: bf16[200,784], index: 10, kind: input, shape index: {}]   ;;  %s5906_s11 = inlined_call_operand.vmem [shape: f32[1,784], index: 11, kind: input, shape index: {}]   ;;  %s5907_s12 = inlined_call_operand.hbm [shape: f32[4,784], index: 12, kind: output, shape index: {0}]   ;;  %s5908_s13 = inlined_call_operand.hbm [shape: f32[4,400], index: 13, kind: output, shape index: {1}]   ;;  %s5909_s14 = inlined_call_operand.hbm [shape: f32[4,400], index: 14, kind: output, shape index: {2}]  }
   0x1   :  { %21 = vsyncpa [#allocation6], 0 }
   0x2   :  { %22 = vsyncpa [#allocation4], 0 }
   0x3   :  { %23 = vsyncpa [#allocation10], 0  ;;  %s4807_s29 = smov [#allocation5]   ;;  %s4808_s15 = smov [#allocation2]  }
   0x4   :  { %s53_s30 = sshll.u32 %s4807_s29, 4  ;;  %s39_s16 = sshll.u32 %s4808_s15, 4  ;;  %s54_s30 = int_to_ptr.vmem [resolvable:$true] %s53_s30  ;;  %s40_s16 = int_to_ptr.vmem [resolvable:$true] %s39_s16 }
   0x5   :  { %s4687_s17 = scalar_lea.vmem %s54_s30, 25600  ;;  %p4692_p1 = scmp.lt.s32.totalorder %s54_s30, %s54_s30 }
   0x6   :  { %p4688_p0 = scmp.ne.s32.totalorder %s54_s30, %s4687_s17  ;;  %p4693_p2 = scmp.lt.s32.totalorder %s4687_s17, %s4687_s17 }
   0x8   :  { %p4694_p3 = por %p4693_p2, %p4692_p1 }
   0xa   :  { %p4695_p4 = pnand %p4694_p3, %p4688_p0 }
   0xc   :  { %4698 = shalt.err (!%p4695_p4)
}
   0xd   :  { %s4809_s18 = smov 512   ;;  %s4810_s19 = smov 32  }
   0xe   :  { %59 = dma.hbm_to_vmem [thread:$0]  %s5902_s7, 25600, %s54_s30, [#allocation6], %s4809_s18, %s4809_s18, %s4810_s19  }
   0xf   :  { %s4707_s22 = scalar_lea.vmem %s40_s16, 25600  ;;  %p4712_p6 = scmp.lt.s32.totalorder %s40_s16, %s40_s16 }
  0x10   :  { %p4708_p5 = scmp.ne.s32.totalorder %s40_s16, %s4707_s22  ;;  %p4713_p7 = scmp.lt.s32.totalorder %s4707_s22, %s4707_s22 }
  0x12   :  { %p4714_p8 = por %p4713_p7, %p4712_p6 }
  0x14   :  { %p4715_p9 = pnand %p4714_p8, %p4708_p5 }
  0x16   :  { %4718 = shalt.err (!%p4715_p9)
}
  0x17   :  { %45 = dma.hbm_to_vmem [thread:$0]  %s5900_s5, 25600, %s40_s16, [#allocation3], %s4809_s18, %s4809_s18, %s4810_s19  }
  0x18   :  { %s4811_s25 = smov [#allocation7]  }
  0x19   :  { %s65_s26 = sshll.u32 %s4811_s25, 4  ;;  %s66_s26 = int_to_ptr.vmem [resolvable:$true] %s65_s26 }
  0x1a   :  { %s4727_s27 = scalar_lea.vmem %s66_s26, 6400  ;;  %p4732_p11 = scmp.lt.s32.totalorder %s66_s26, %s66_s26 }
  0x1b   :  { %p4728_p10 = scmp.ne.s32.totalorder %s66_s26, %s4727_s27  ;;  %p4733_p12 = scmp.lt.s32.totalorder %s4727_s27, %s4727_s27 }
  0x1d   :  { %p4734_p13 = por %p4733_p12, %p4732_p11 }
  0x1f   :  { %p4735_p0 = pnand %p4734_p13, %p4728_p10 }
  0x21   :  { %4738 = shalt.err (!%p4735_p0)
}
  0x22   :  { %s4812_s7 = smov 128   ;;  %s4813_s28 = smov 8  }
  0x23   :  { %71 = dma.hbm_to_vmem [thread:$0]  %s5903_s8, 6400, %s66_s26, [#allocation6], %s4812_s7, %s4812_s7, %s4813_s28  }
  0x24   :  { %4799 = dma.done.wait [#allocation3], 25600  }
  0x25   :  { %4800 = vsyncadd [#allocation3], 4294941696 }
  0x26   :  { %4801 = dma.done.wait [#allocation6], 32000  }
  0x27   :  { %4802 = vsyncadd [#allocation6], 4294935296  ;;  %v4238_v0 = vld [vmem:[%s5896_s1 + $0x74] ss:$8 sps:$4 sm:$0xff]   ;;  %v4240_v1 = vld [vmem:[%s5896_s1 + $0x70] ss:$8 sps:$4 sm:$0xff]   ;;  %v190_v35 = vlaneseq }
  0x28   :  { %735 = vmatprep.subr.bf16.mxu0 %v4238_v0  ;;  %v4241_v2 = vld [vmem:[%s5896_s1 + $0x174] ss:$8 sps:$4 sm:$0xff]   ;;  %v4243_v3 = vld [vmem:[%s5896_s1 + $0x170] ss:$8 sps:$4 sm:$0xff]   ;;  %v4244_v4 = vld [vmem:[%s5896_s1 + $0x64] ss:$8 sps:$4 sm:$0xff]  }
  0x29   :  { %736 = vmatpush1.bf16.msra.mxu0 %v4240_v1  ;;  %v4246_v5 = vld [vmem:[%s5896_s1 + $0x60] ss:$8 sps:$4 sm:$0xff]   ;;  %776 = vmatprep.subr.bf16.mxu1 %v4241_v2  ;;  %v4247_v6 = vld [vmem:[%s5896_s1 + $0x164] ss:$8 sps:$4 sm:$0xff]   ;;  %v4250_v8 = vld [vmem:[%s5896_s1 + $0x54] ss:$8 sps:$4 sm:$0xff]  }
  0x2a   :  { %777 = vmatpush1.bf16.msra.mxu1 %v4243_v3  ;;  %737 = vmatprep.subr.bf16.mxu0 %v4244_v4  ;;  %v4249_v7 = vld [vmem:[%s5896_s1 + $0x160] ss:$8 sps:$4 sm:$0xff]   ;;  %v4252_v9 = vld [vmem:[%s5896_s1 + $0x50] ss:$8 sps:$4 sm:$0xff]   ;;  %v4253_v10 = vld [vmem:[%s5896_s1 + $0x154] ss:$8 sps:$4 sm:$0xff]  }
  0x2b   :  { %778 = vmatprep.subr.bf16.mxu1 %v4247_v6  ;;  %v4256_v11 = vld [vmem:[%s5896_s1 + $0x44] ss:$8 sps:$4 sm:$0xff]   ;;  %v4255_v12 = vld [vmem:[%s5896_s1 + $0x150] ss:$8 sps:$4 sm:$0xff]   ;;  %v4258_v14 = vld [vmem:[%s5896_s1 + $0x40] ss:$8 sps:$4 sm:$0xff]  }
  0x2c   :  { %v4259_v13 = vld [vmem:[%s5896_s1 + $0x144] ss:$8 sps:$4 sm:$0xff]   ;;  %v4262_v15 = vld [vmem:[%s5896_s1 + $0x34] ss:$8 sps:$4 sm:$0xff]   ;;  %v4261_v16 = vld [vmem:[%s5896_s1 + $0x140] ss:$8 sps:$4 sm:$0xff]  }
  0x2d   :  { %738 = vmatpush1.bf16.msra.mxu0 %v4246_v5  ;;  %v4265_v17 = vld [vmem:[%s5896_s1 + $0x134] ss:$8 sps:$4 sm:$0xff]   ;;  %v4264_v18 = vld [vmem:[%s5896_s1 + $0x30] ss:$8 sps:$4 sm:$0xff]   ;;  %v4268_v19 = vld [vmem:[%s5896_s1 + $0x24] ss:$8 sps:$4 sm:$0xff]  }
  0x2e   :  { %739 = vmatprep.subr.bf16.mxu0 %v4250_v8  ;;  %779 = vmatpush1.bf16.msra.mxu1 %v4249_v7  ;;  %v4267_v20 = vld [vmem:[%s5896_s1 + $0x130] ss:$8 sps:$4 sm:$0xff]   ;;  %v4271_v21 = vld [vmem:[%s5896_s1 + $0x124] ss:$8 sps:$4 sm:$0xff]   ;;  %v4270_v22 = vld [vmem:[%s5896_s1 + $0x20] ss:$8 sps:$4 sm:$0xff]  }
  0x2f   :  { %780 = vmatprep.subr.bf16.mxu1 %v4253_v10  ;;  %v4274_v23 = vld [vmem:[%s5896_s1 + $0x14] ss:$8 sps:$4 sm:$0xff]   ;;  %v4273_v24 = vld [vmem:[%s5896_s1 + $0x120] ss:$8 sps:$4 sm:$0xff]   ;;  %v4276_v26 = vld [vmem:[%s5896_s1 + $0x10] ss:$8 sps:$4 sm:$0xff]  }
  0x30   :  { %v4277_v25 = vld [vmem:[%s5896_s1 + $0x114] ss:$8 sps:$4 sm:$0xff]   ;;  %v4280_v27 = vld [vmem:[%s5896_s1 + $0x4] ss:$8 sps:$4 sm:$0xff]   ;;  %v4279_v28 = vld [vmem:[%s5896_s1 + $0x110] ss:$8 sps:$4 sm:$0xff]  }
  0x31   :  { %740 = vmatpush1.bf16.msra.mxu0 %v4252_v9  ;;  %v4283_v29 = vld [vmem:[%s5896_s1 + $0x104] ss:$8 sps:$4 sm:$0xff]   ;;  %v4282_v30 = vld [vmem:[%s5896_s1] ss:$8 sps:$4 sm:$0xff]   ;;  %v4286_v31 = vld [vmem:[%s5896_s1 + $0xf4] ss:$8 sps:$4 sm:$0xff]  }
  0x32   :  { %741 = vmatprep.subr.bf16.mxu0 %v4256_v11  ;;  %781 = vmatpush1.bf16.msra.mxu1 %v4255_v12  ;;  %v4285_v32 = vld [vmem:[%s5896_s1 + $0x100] ss:$8 sps:$4 sm:$0xff]   ;;  %v4289_v33 = vld [vmem:[%s5896_s1 + $0x1f4] ss:$8 sps:$4 sm:$0xff]   ;;  %v4288_v34 = vld [vmem:[%s5896_s1 + $0xf0] ss:$8 sps:$4 sm:$0xff]  }
  0x33   :  { %782 = vmatprep.subr.bf16.mxu1 %v4259_v13  ;;  %v4814_v36 = vmov 1983009808   ;;  %v4292_v38 = vld [vmem:[%s5896_s1 + $0xe4] ss:$8 sps:$4 sm:$0xff]   ;;  %v4291_v39 = vld [vmem:[%s5896_s1 + $0x1f0] ss:$8 sps:$4 sm:$0xff]  }
  0x34   :  { %v204_v37 = vunpack.c.l.s4 %v4814_v36  ;;  %v4295_v40 = vld [vmem:[%s5896_s1 + $0x1e4] ss:$8 sps:$4 sm:$0xff]   ;;  %v4294_v41 = vld [vmem:[%s5896_s1 + $0xe0] ss:$8 sps:$4 sm:$0xff]   ;;  %v5031_v42 = vshrl.u32 %v190_v35, 7  ;;  %vm731_vm0 = vcmask 130048  }
  0x35   :  { %742 = vmatpush1.bf16.msra.mxu0 %v4258_v14  ;;  %v4298_v44 = vld [vmem:[%s5896_s1 + $0xd4] ss:$8 sps:$4 sm:$0xff]   ;;  %v4297_v45 = vld [vmem:[%s5896_s1 + $0x1e0] ss:$8 sps:$4 sm:$0xff]   ;;  %v4300_v47 = vld [vmem:[%s5896_s1 + $0xd0] ss:$8 sps:$4 sm:$0xff]  }
  0x36   :  { %743 = vmatprep.subr.bf16.mxu0 %v4262_v15  ;;  %783 = vmatpush1.bf16.msra.mxu1 %v4261_v16  ;;  %v205_v43 = vunpack.c.0.s8 %v204_v37  ;;  %v4301_v46 = vld [vmem:[%s5896_s1 + $0x1d4] ss:$8 sps:$4 sm:$0xff]   ;;  %v4304_v49 = vld [vmem:[%s5896_s1 + $0xc4] ss:$8 sps:$4 sm:$0xff]   ;;  %v4303_v50 = vld [vmem:[%s5896_s1 + $0x1d0] ss:$8 sps:$4 sm:$0xff]  }
  0x37   :  { %784 = vmatprep.subr.bf16.mxu1 %v4265_v17  ;;  %v4307_v51 = vld [vmem:[%s5896_s1 + $0x1c4] ss:$8 sps:$4 sm:$0xff]   ;;  %v4306_v53 = vld [vmem:[%s5896_s1 + $0xc0] ss:$8 sps:$4 sm:$0xff]   ;;  %v4310_v56 = vld [vmem:[%s5896_s1 + $0xb4] ss:$8 sps:$4 sm:$0xff]  }
  0x38   :  { %v5046_v48 = vsub.s32 %v205_v43, %v5031_v42  ;;  %v88_v52 = vld [vmem:[%s5895_s0] sm:$0xff]  ;;  %v4313_v60 = vld [vmem:[%s5896_s1 + $0x1b4] ss:$8 sps:$4 sm:$0xff]   ;;  %v4312_v61 = vld [vmem:[%s5896_s1 + $0xb0] ss:$8 sps:$4 sm:$0xff]   ;;  %vm1229_vm1 = vcmask 1043456  }
  0x39   :  { %744 = vmatpush1.bf16.msra.mxu0 %v4264_v18  ;;  %v202_v55 = vcombine.high %v88_v52, %v88_v52  ;;  %v4309_v57 = vld [vmem:[%s5896_s1 + $0x1c0] ss:$8 sps:$4 sm:$0xff]   ;;  %v4316_v63 = vld [vmem:[%s5896_s1 + $0xa4] ss:$8 sps:$4 sm:$0xff]   ;;  %v4315_v0 = vld [vmem:[%s5896_s1 + $0x1b0] ss:$8 sps:$4 sm:$0xff]  }
  0x3a   :  { %745 = vmatprep.subr.bf16.mxu0 %v4268_v19  ;;  %785 = vmatpush1.bf16.msra.mxu1 %v4267_v20  ;;  %v209_v54 = vrot.slane %v88_v52, %v5046_v48  ;;  %v4319_v1 = vld [vmem:[%s5896_s1 + $0x1a4] ss:$8 sps:$4 sm:$0xff]   ;;  %v4318_v2 = vld [vmem:[%s5896_s1 + $0xa0] ss:$8 sps:$4 sm:$0xff]   ;;  %v4322_v3 = vld [vmem:[%s5896_s1 + $0x94] ss:$8 sps:$4 sm:$0xff]  }
  0x3b   :  { %786 = vmatprep.subr.bf16.mxu1 %v4271_v21  ;;  %v216_v59 = vrot.slane %v202_v55, %v5046_v48  ;;  %v4321_v4 = vld [vmem:[%s5896_s1 + $0x1a0] ss:$8 sps:$4 sm:$0xff]   ;;  %v4325_v5 = vld [vmem:[%s5896_s1 + $0x194] ss:$8 sps:$4 sm:$0xff]   ;;  %v4324_v6 = vld [vmem:[%s5896_s1 + $0x90] ss:$8 sps:$4 sm:$0xff]  }
  0x3c   :  { %v217_v58 = vcombine.high %v209_v54, %v209_v54  ;;  %v4328_v7 = vld [vmem:[%s5896_s1 + $0x84] ss:$8 sps:$4 sm:$0xff]   ;;  %v4327_v8 = vld [vmem:[%s5896_s1 + $0x190] ss:$8 sps:$4 sm:$0xff]   ;;  %v4330_v10 = vld [vmem:[%s5896_s1 + $0x80] ss:$8 sps:$4 sm:$0xff]  }
  0x3d   :  { %746 = vmatpush1.bf16.msra.mxu0 %v4270_v22  ;;  %v218_v62 = vcombine.high %v216_v59, %v216_v59  ;;  %v4331_v9 = vld [vmem:[%s5896_s1 + $0x184] ss:$8 sps:$4 sm:$0xff]   ;;  %v4336_v11 = vld [vmem:[%s5896_s1 + $0x274] ss:$8 sps:$4 sm:$0xff]   ;;  %v4333_v12 = vld [vmem:[%s5896_s1 + $0x180] ss:$8 sps:$4 sm:$0xff]  }
  0x3e   :  { %747 = vmatprep.subr.bf16.mxu0 %v4274_v23  ;;  %787 = vmatpush1.bf16.msra.mxu1 %v4273_v24  ;;  %v4334_v13 = vld [vmem:[%s5896_s1 + $0x270] ss:$8 sps:$4 sm:$0xff]   ;;  %v4340_v14 = vld [vmem:[%s5896_s1 + $0x264] ss:$8 sps:$4 sm:$0xff]   ;;  %v4338_v16 = vld [vmem:[%s5896_s1 + $0x260] ss:$8 sps:$4 sm:$0xff]  }
  0x3f   :  { %788 = vmatprep.subr.bf16.mxu1 %v4277_v25  ;;  %767 = vmatprep.mubr.bf16.mxu0 %v217_v58  ;;  %v89_v15 = vld [vmem:[%s5895_s0 + $0x8] sm:$0x3f]  ;;  %v4343_v19 = vld [vmem:[%s5896_s1 + $0x254] ss:$8 sps:$4 sm:$0xff]   ;;  %v4341_v22 = vld [vmem:[%s5896_s1 + $0x250] ss:$8 sps:$4 sm:$0xff]  }
  0x40   :  { %808 = vmatprep.mubr.bf16.mxu1 %v218_v62  ;;  %v219_v17 = vcombine.high %v89_v15, %v89_v15  ;;  %v5132_v18 = vrot.slane %v89_v15, %v5046_v48  ;;  %v4346_v23 = vld [vmem:[%s5896_s1 + $0x244] ss:$8 sps:$4 sm:$0xff]   ;;  %v4344_v24 = vld [vmem:[%s5896_s1 + $0x240] ss:$8 sps:$4 sm:$0xff]   ;;  %v4349_v25 = vld [vmem:[%s5896_s1 + $0x234] ss:$8 sps:$4 sm:$0xff]  }
  0x41   :  { %748 = vmatpush1.bf16.msra.mxu0 %v4276_v26  ;;  %v4347_v26 = vld [vmem:[%s5896_s1 + $0x230] ss:$8 sps:$4 sm:$0xff]   ;;  %v4364_v35 = vld [vmem:[%s5896_s1 + $0x2e4] ss:$8 sps:$4 sm:$0xff]   ;;  %v4362_v36 = vld [vmem:[%s5896_s1 + $0x2e0] ss:$8 sps:$4 sm:$0xff]  }
  0x42   :  { %749 = vmatprep.subr.bf16.mxu0 %v4280_v27  ;;  %789 = vmatpush1.bf16.msra.mxu1 %v4279_v28  ;;  %v5138_v20 = vrot.slane %v219_v17, %v5046_v48  ;;  %v234_v21 = vcombine.high %v5132_v18, %v5132_v18  ;;  %v4352_v27 = vld [vmem:[%s5896_s1 + $0x224] ss:$8 sps:$4 sm:$0xff]   ;;  %v4350_v28 = vld [vmem:[%s5896_s1 + $0x220] ss:$8 sps:$4 sm:$0xff]   ;;  %v4367_v37 = vld [vmem:[%s5896_s1 + $0x2d4] ss:$8 sps:$4 sm:$0xff]  }
  0x43   :  { %790 = vmatprep.subr.bf16.mxu1 %v4283_v29  ;;  %v4355_v29 = vld [vmem:[%s5896_s1 + $0x214] ss:$8 sps:$4 sm:$0xff]   ;;  %v4371_v43 = vld [vmem:[%s5896_s1 + $0x2b0] ss:$8 sps:$4 sm:$0xff]   ;;  %v4382_v48 = vld [vmem:[%s5896_s1 + $0x284] ss:$8 sps:$4 sm:$0xff]  }
  0x44   :  { %v4815_v52 = vmov 0   ;;  %v4392_v55 = vld [vmem:[%s5898_s3 + $0xc4] ss:$16 sps:$4 sm:$0xff]   ;;  %v4393_v58 = vld [vmem:[%s5898_s3 + $0xa0] ss:$16 sps:$4 sm:$0xff]   ;;  %vm1225_vm2 = vcmask 588800  }
  0x45   :  { %750 = vmatpush1.bf16.msra.mxu0 %v4282_v30  ;;  %v4353_v30 = vld [vmem:[%s5896_s1 + $0x210] ss:$8 sps:$4 sm:$0xff]   ;;  %v4424_v15 = vld [vmem:[%s5898_s3 + $0x104] ss:$16 sps:$4 sm:$0xff]   ;;  %v4427_v17 = vld [vmem:[%s5898_s3 + $0xec] ss:$16 sps:$4 sm:$0xff]  }
  0x46   :  { %751 = vmatprep.subr.bf16.mxu0 %v4286_v31  ;;  %791 = vmatpush1.bf16.msra.mxu1 %v4285_v32  ;;  %v4358_v31 = vld [vmem:[%s5896_s1 + $0x204] ss:$8 sps:$4 sm:$0xff]   ;;  %v4356_v32 = vld [vmem:[%s5896_s1 + $0x200] ss:$8 sps:$4 sm:$0xff]   ;;  %vm1333_vm3 = vcmask 130052   ;;  %s4816_s30 = smov 40  }
  0x47   :  { %792 = vmatprep.subr.bf16.mxu1 %v4289_v33  ;;  %v4361_v33 = vld [vmem:[%s5896_s1 + $0x2f4] ss:$8 sps:$4 sm:$0xff]   ;;  %v4399_v62 = vld [vmem:[%s5898_s3 + $0x60] ss:$16 sps:$4 sm:$0xff]   ;;  %vm5432_vm4 = vmor %vm1333_vm3, %vm1229_vm1  ;;  %vm1878_vm9 = vcmask 326656   ;;  %s4820_s5 = smov 88  }
  0x48   :  { %s4821_s15 = smov 24   ;;  %s4822_s16 = smov 56  }
  0x49   :  { %752 = vmatpush2.bf16.msra.mxu0 %v4288_v34  ;;  %v4359_v34 = vld [vmem:[%s5896_s1 + $0x2f0] ss:$8 sps:$4 sm:$0xff]   ;;  %s4823_s17 = smov 96   ;;  %s4825_s18 = smov 104  }
  0x4a   :  { %753 = vmatprep.subr.bf16.mxu0 %v4292_v38  ;;  %793 = vmatpush2.bf16.msra.mxu1 %v4291_v39  ;;  %v4365_v38 = vld [vmem:[%s5896_s1 + $0x2d0] ss:$8 sps:$4 sm:$0xff]   ;;  %v4370_v39 = vld [vmem:[%s5896_s1 + $0x2c4] ss:$8 sps:$4 sm:$0xff]   ;;  %s4826_s19 = smov [#allocation9]  }
  0x4b   :  { %794 = vmatprep.subr.bf16.mxu1 %v4295_v40  ;;  %v4368_v40 = vld [vmem:[%s5896_s1 + $0x2c0] ss:$8 sps:$4 sm:$0xff]   ;;  %s3816_s20 = sshll.u32 %s4826_s19, 4  ;;  %s3817_s20 = int_to_ptr.vmem [resolvable:$true] %s3816_s20 }
  0x4c   :  { %s4739_s21 = scalar_lea.vmem %s3817_s20, 256  ;;  %p4744_p2 = scmp.lt.s32.totalorder %s3817_s20, %s3817_s20 }
  0x4d   :  { %754 = vmatpush2.bf16.msra.mxu0 %v4294_v41  ;;  %v4373_v41 = vld [vmem:[%s5896_s1 + $0x2b4] ss:$8 sps:$4 sm:$0xff]   ;;  %p4740_p1 = scmp.ne.s32.totalorder %s3817_s20, %s4739_s21  ;;  %p4745_p3 = scmp.lt.s32.totalorder %s4739_s21, %s4739_s21 }
  0x4e   :  { %755 = vmatprep.subr.bf16.mxu0 %v4298_v44  ;;  %795 = vmatpush2.bf16.msra.mxu1 %v4297_v45  ;;  %v4376_v44 = vld [vmem:[%s5896_s1 + $0x2a4] ss:$8 sps:$4 sm:$0xff]   ;;  %v4374_v45 = vld [vmem:[%s5896_s1 + $0x2a0] ss:$8 sps:$4 sm:$0xff]  }
  0x4f   :  { %796 = vmatprep.subr.bf16.mxu1 %v4301_v46  ;;  %v4379_v46 = vld [vmem:[%s5896_s1 + $0x294] ss:$8 sps:$4 sm:$0xff]   ;;  %p4746_p4 = por %p4745_p3, %p4744_p2 }
  0x51   :  { %756 = vmatpush2.bf16.msra.mxu0 %v4300_v47  ;;  %v4377_v47 = vld [vmem:[%s5896_s1 + $0x290] ss:$8 sps:$4 sm:$0xff]   ;;  %p4747_p5 = pnand %p4746_p4, %p4740_p1 }
  0x52   :  { %757 = vmatprep.subr.bf16.mxu0 %v4304_v49  ;;  %797 = vmatpush2.bf16.msra.mxu1 %v4303_v50  ;;  %v4380_v49 = vld [vmem:[%s5896_s1 + $0x280] ss:$8 sps:$4 sm:$0xff]   ;;  %v4386_v50 = vld [vmem:[%s5896_s1 + $0x304] ss:$8 sps:$4 sm:$0xff]  }
  0x53   :  { %798 = vmatprep.subr.bf16.mxu1 %v4307_v51  ;;  %v4384_v51 = vld [vmem:[%s5896_s1 + $0x300] ss:$8 sps:$4 sm:$0xff]   ;;  %s4824_s1 = smov 64  }
  0x55   :  { %758 = vmatpush2.bf16.msra.mxu0 %v4306_v53  ;;  %v4387_v53 = vld [vmem:[%s5898_s3 + $0xe0] ss:$16 sps:$4 sm:$0xff]  }
  0x56   :  { %759 = vmatprep.subr.bf16.mxu0 %v4310_v56  ;;  %799 = vmatpush2.bf16.msra.mxu1 %v4309_v57  ;;  %v4390_v56 = vld [vmem:[%s5898_s3 + $0xc0] ss:$16 sps:$4 sm:$0xff]   ;;  %v4395_v57 = vld [vmem:[%s5898_s3 + $0xa4] ss:$16 sps:$4 sm:$0xff]  }
  0x57   :  { %800 = vmatprep.subr.bf16.mxu1 %v4313_v60  ;;  %v4396_v60 = vld [vmem:[%s5898_s3 + $0x80] ss:$16 sps:$4 sm:$0xff]  }
  0x59   :  { %760 = vmatpush2.bf16.msra.mxu0 %v4312_v61  ;;  %v4401_v61 = vld [vmem:[%s5898_s3 + $0x64] ss:$16 sps:$4 sm:$0xff]  }
  0x5a   :  { %761 = vmatprep.subr.bf16.mxu0 %v4316_v63  ;;  %801 = vmatpush2.bf16.msra.mxu1 %v4315_v0  ;;  %v4404_v63 = vld [vmem:[%s5898_s3 + $0x44] ss:$16 sps:$4 sm:$0xff]   ;;  %v4402_v0 = vld [vmem:[%s5898_s3 + $0x40] ss:$16 sps:$4 sm:$0xff]  }
  0x5b   :  { %802 = vmatprep.subr.bf16.mxu1 %v4319_v1  ;;  %v4407_v1 = vld [vmem:[%s5898_s3 + $0x24] ss:$16 sps:$4 sm:$0xff]  }
  0x5d   :  { %762 = vmatpush2.bf16.msra.mxu0 %v4318_v2  ;;  %v4405_v2 = vld [vmem:[%s5898_s3 + $0x20] ss:$16 sps:$4 sm:$0xff]  }
  0x5e   :  { %763 = vmatprep.subr.bf16.mxu0 %v4322_v3  ;;  %803 = vmatpush2.bf16.msra.mxu1 %v4321_v4  ;;  %v4410_v3 = vld [vmem:[%s5898_s3 + $0x4] ss:$16 sps:$4 sm:$0xff]  }
  0x5f   :  { %804 = vmatprep.subr.bf16.mxu1 %v4325_v5  ;;  %v951_v4 = vld [vmem:[%s5898_s3 + $0x180] sm:$0xff] }
  0x60   :  { %v4408_v5 = vld [vmem:[%s5898_s3] ss:$16 sps:$4 sm:$0xff]  }
  0x61   :  { %764 = vmatpush2.bf16.msra.mxu0 %v4324_v6  ;;  %v3991_v6 = vcombine.high %v951_v4, %v951_v4 }
  0x62   :  { %765 = vmatprep.subr.bf16.mxu0 %v4328_v7  ;;  %805 = vmatpush2.bf16.msra.mxu1 %v4327_v8  ;;  %v3990_v7 = vcombine.low %v951_v4, %v951_v4  ;;  %v1336_v4 = vld [vmem:[#allocation2] sm:$0xff] }
  0x63   :  { %806 = vmatprep.subr.bf16.mxu1 %v4331_v9  ;;  %v4415_v9 = vld [vmem:[%s5898_s3 + $0x164] ss:$16 sps:$4 sm:$0xff]  }
  0x64   :  { %v1231_v8 = vsel %vm1229_vm1, %v3990_v7, 0  ;;  %v1457_v7 = vld [vmem:[#allocation2 + $0x3c8] sm:$0xff] }
  0x65   :  { %766 = vmatpush2.bf16.msra.mxu0 %v4330_v10  ;;  %v4413_v10 = vld [vmem:[%s5898_s3 + $0x160] ss:$16 sps:$4 sm:$0xff]  }
  0x66   :  { %817 = vmatprep.subr.bf16.mxu0 %v4336_v11  ;;  %807 = vmatpush2.bf16.msra.mxu1 %v4333_v12  ;;  %v4418_v11 = vld [vmem:[%s5898_s3 + $0x144] ss:$16 sps:$4 sm:$0xff]   ;;  %v4416_v12 = vld [vmem:[%s5898_s3 + $0x140] ss:$16 sps:$4 sm:$0xff]  }
  0x68   :  { %768 = vmatmul.mubr.bf16.vlgmr.msra.gmra.mxu0 %v209_v54  ;;  %v4389_v54 = vld [vmem:[%s5898_s3 + $0xe4] ss:$16 sps:$4 sm:$0xff]  }
  0x69   :  { %818 = vmatpush1.bf16.msra.mxu0 %v4334_v13  ;;  %809 = vmatmul.mubr.bf16.vlgmr.msra.gmra.mxu1 %v216_v59  ;;  %v4398_v59 = vld [vmem:[%s5898_s3 + $0x84] ss:$16 sps:$4 sm:$0xff]  }
  0x6a   :  { %819 = vmatprep.subr.bf16.mxu0 %v4340_v14  ;;  %849 = vmatprep.mubr.bf16.mxu0 %v234_v21  ;;  %v4421_v13 = vld [vmem:[%s5898_s3 + $0x124] ss:$16 sps:$4 sm:$0xff]   ;;  %v4419_v14 = vld [vmem:[%s5898_s3 + $0x120] ss:$16 sps:$4 sm:$0xff]  }
  0x6b   :  { %1242 = vmatprep.subr.bf16.mxu1 %v4389_v54  ;;  %v1364_v54 = vld [vmem:[#allocation2 + $0xe0] sm:$0xff] }
  0x6c   :  { %1243 = vmatpush1.bf16.msra.mxu1 %v4387_v53  ;;  %v1365_v53 = vld [vmem:[#allocation2 + $0xe8] sm:$0xff] }
  0x6d   :  { %820 = vmatpush1.bf16.msra.mxu0 %v4338_v16  ;;  %1244 = vmatprep.subr.bf16.mxu1 %v4392_v55  ;;  %v4422_v16 = vld [vmem:[%s5898_s3 + $0x100] ss:$16 sps:$4 sm:$0xff]   ;;  %v1361_v55 = vld [vmem:[#allocation2 + $0xc8] sm:$0xff] }
  0x6e   :  { %821 = vmatprep.subr.bf16.mxu0 %v4343_v19  ;;  %v188_v19 = vld [vmem:[%s5897_s2] sm:$0x3] }
  0x70   :  { %1245 = vmatpush1.bf16.msra.mxu1 %v4390_v56  ;;  %v1360_v56 = vld [vmem:[#allocation2 + $0xc0] sm:$0xff] }
  0x71   :  { %822 = vmatpush1.bf16.msra.mxu0 %v4341_v22  ;;  %1246 = vmatprep.subr.bf16.mxu1 %v4395_v57  ;;  %v1357_v57 = vld [vmem:[#allocation2 + $0xa8] sm:$0xff] }
  0x72   :  { %823 = vmatprep.subr.bf16.mxu0 %v4346_v23 }
  0x74   :  { %1247 = vmatpush1.bf16.msra.mxu1 %v4393_v58  ;;  %v1356_v58 = vld [vmem:[#allocation2 + $0xa0] sm:$0xff] }
  0x75   :  { %824 = vmatpush1.bf16.msra.mxu0 %v4344_v24  ;;  %1248 = vmatprep.subr.bf16.mxu1 %v4398_v59  ;;  %v1353_v59 = vld [vmem:[#allocation2 + $0x88] sm:$0xff] }
  0x76   :  { %825 = vmatprep.subr.bf16.mxu0 %v4349_v25 }
  0x78   :  { %1249 = vmatpush1.bf16.msra.mxu1 %v4396_v60  ;;  %v1352_v60 = vld [vmem:[#allocation2 + $0x80] sm:$0xff] }
  0x79   :  { %826 = vmatpush1.bf16.msra.mxu0 %v4347_v26  ;;  %1250 = vmatprep.subr.bf16.mxu1 %v4401_v61  ;;  %v1349_v61 = vld [vmem:[#allocation2 + $0x68] sm:$0xff] }
  0x7a   :  { %827 = vmatprep.subr.bf16.mxu0 %v4352_v27 }
  0x7c   :  { %1251 = vmatpush1.bf16.msra.mxu1 %v4399_v62  ;;  %v1348_v62 = vld [vmem:[#allocation2 + $0x60] sm:$0xff] }
  0x7d   :  { %828 = vmatpush1.bf16.msra.mxu0 %v4350_v28  ;;  %1252 = vmatprep.subr.bf16.mxu1 %v4404_v63  ;;  %v1345_v63 = vld [vmem:[#allocation2 + $0x48] sm:$0xff] }
  0x7e   :  { %829 = vmatprep.subr.bf16.mxu0 %v4355_v29 }
  0x80   :  { %1253 = vmatpush1.bf16.msra.mxu1 %v4402_v0  ;;  %v1344_v0 = vld [vmem:[#allocation2 + $0x40] sm:$0xff] }
  0x81   :  { %830 = vmatpush1.bf16.msra.mxu0 %v4353_v30  ;;  %1254 = vmatprep.subr.bf16.mxu1 %v4407_v1  ;;  %v1341_v1 = vld [vmem:[#allocation2 + $0x28] sm:$0xff] }
  0x82   :  { %831 = vmatprep.subr.bf16.mxu0 %v4358_v31 }
  0x84   :  { %1255 = vmatpush1.bf16.msra.mxu1 %v4405_v2  ;;  %v1340_v2 = vld [vmem:[#allocation2 + $0x20] sm:$0xff] }
  0x85   :  { %832 = vmatpush1.bf16.msra.mxu0 %v4356_v32  ;;  %1256 = vmatprep.subr.bf16.mxu1 %v4410_v3  ;;  %v1337_v3 = vld [vmem:[#allocation2 + $0x8] sm:$0xff] }
  0x86   :  { %833 = vmatprep.subr.bf16.mxu0 %v4361_v33 }
  0x88   :  { %1257 = vmatpush1.bf16.msra.mxu1 %v4408_v5  ;;  %v1461_v5 = vld [vmem:[#allocation2 + $0x3e8] sm:$0xff] }
  0x89   :  { %834 = vmatpush2.bf16.msra.mxu0 %v4359_v34  ;;  %3994 = vmatprep.subr.msk.bf16.mxu1 %vm1229_vm1, %v3991_v6  ;;  %v1397_v34 = vld [vmem:[#allocation2 + $0x1e8] sm:$0xff]  ;;  %v1460_v6 = vld [vmem:[#allocation2 + $0x3e0] sm:$0xff] }
  0x8a   :  { %835 = vmatprep.subr.bf16.mxu0 %v4364_v35  ;;  %v1396_v35 = vld [vmem:[#allocation2 + $0x1e0] sm:$0xff] }
  0x8c   :  { %1265 = vmatpush2.bf16.msra.mxu1 %v1231_v8  ;;  %v1456_v8 = vld [vmem:[#allocation2 + $0x3c0] sm:$0xff] }
  0x8d   :  { %836 = vmatpush2.bf16.msra.mxu0 %v4362_v36  ;;  %1266 = vmatprep.subr.bf16.mxu1 %v4415_v9  ;;  %v1393_v36 = vld [vmem:[#allocation2 + $0x1c8] sm:$0xff] }
  0x8e   :  { %837 = vmatprep.subr.bf16.mxu0 %v4367_v37  ;;  %v1392_v37 = vld [vmem:[#allocation2 + $0x1c0] sm:$0xff]  ;;  %v1453_v9 = vld [vmem:[#allocation2 + $0x3a8] sm:$0xff] }
  0x90   :  { %1267 = vmatpush2.bf16.msra.mxu1 %v4413_v10  ;;  %v1452_v10 = vld [vmem:[#allocation2 + $0x3a0] sm:$0xff] }
  0x91   :  { %838 = vmatpush2.bf16.msra.mxu0 %v4365_v38  ;;  %1268 = vmatprep.subr.bf16.mxu1 %v4418_v11  ;;  %v1449_v11 = vld [vmem:[#allocation2 + $0x388] sm:$0xff] }
  0x92   :  { %839 = vmatprep.subr.bf16.mxu0 %v4370_v39  ;;  %v1389_v39 = vld [vmem:[#allocation2 + $0x1a8] sm:$0xff] }
  0x94   :  { %1269 = vmatpush2.bf16.msra.mxu1 %v4416_v12  ;;  %v1448_v12 = vld [vmem:[#allocation2 + $0x380] sm:$0xff] }
  0x95   :  { %840 = vmatpush2.bf16.msra.mxu0 %v4368_v40  ;;  %1270 = vmatprep.subr.bf16.mxu1 %v4421_v13  ;;  %v1388_v40 = vld [vmem:[#allocation2 + $0x1a0] sm:$0xff]  ;;  %v1445_v13 = vld [vmem:[#allocation2 + $0x368] sm:$0xff] }
  0x96   :  { %841 = vmatprep.subr.bf16.mxu0 %v4373_v41  ;;  %v1385_v41 = vld [vmem:[#allocation2 + $0x188] sm:$0xff] }
  0x98   :  { %1271 = vmatpush2.bf16.msra.mxu1 %v4419_v14  ;;  %v1444_v14 = vld [vmem:[#allocation2 + $0x360] sm:$0xff] }
  0x99   :  { %842 = vmatpush2.bf16.msra.mxu0 %v4371_v43  ;;  %1272 = vmatprep.subr.bf16.mxu1 %v4424_v15  ;;  %v1384_v43 = vld [vmem:[#allocation2 + $0x180] sm:$0xff]  ;;  %v1441_v15 = vld [vmem:[#allocation2 + $0x348] sm:$0xff] }
  0x9a   :  { %843 = vmatprep.subr.bf16.mxu0 %v4376_v44  ;;  %v1381_v44 = vld [vmem:[#allocation2 + $0x168] sm:$0xff] }
  0x9c   :  { %1273 = vmatpush2.bf16.msra.mxu1 %v4422_v16  ;;  %v1440_v16 = vld [vmem:[#allocation2 + $0x340] sm:$0xff] }
  0x9d   :  { %844 = vmatpush2.bf16.msra.mxu0 %v4374_v45  ;;  %1283 = vmatprep.subr.bf16.mxu1 %v4427_v17  ;;  %v1380_v45 = vld [vmem:[#allocation2 + $0x160] sm:$0xff]  ;;  %v1437_v17 = vld [vmem:[#allocation2 + $0x328] sm:$0xff] }
  0x9e   :  { %845 = vmatprep.subr.bf16.mxu0 %v4379_v46  ;;  %v1377_v46 = vld [vmem:[#allocation2 + $0x148] sm:$0xff] }
  0xa1   :  { %846 = vmatpush2.bf16.msra.mxu0 %v4377_v47  ;;  %v1376_v47 = vld [vmem:[#allocation2 + $0x140] sm:$0xff] }
  0xa2   :  { %847 = vmatprep.subr.bf16.mxu0 %v4382_v48  ;;  %v1373_v48 = vld [vmem:[#allocation2 + $0x128] sm:$0xff] }
  0xa5   :  { %848 = vmatpush2.bf16.msra.mxu0 %v4380_v49  ;;  %v1372_v49 = vld [vmem:[#allocation2 + $0x120] sm:$0xff] }
  0xa6   :  { %872 = vmatprep.subr.bf16.mxu0 %v4386_v50  ;;  %v1369_v50 = vld [vmem:[#allocation2 + $0x108] sm:$0xff] }
  0xa8   :  { %850 = vmatmul.mubr.bf16.vlgmr.msra.gmra.mxu0 %v5132_v18  ;;  %v5314_v18 = vsub.s32 0, %v5031_v42 }
  0xa9   :  { %873 = vmatpush1.bf16.msra.mxu0 %v4384_v51  ;;  %890 = vmatprep.mubr.bf16.mxu0 %v4815_v52  ;;  %v1368_v51 = vld [vmem:[#allocation2 + $0x100] sm:$0xff] }
  0xaa   :  { %v193_v21 = vrot.slane %v188_v19, %v5314_v18  ;;  %1560 = vmatprep.subr.mxu0 %v1397_v34  ;;  %v1412_v34 = vld [vmem:[#allocation2 + $0x260] sm:$0xff] }
  0xb0   :  { %3941 = vmatmul.mubr.msk.bf16.vlgmr.msra.gmra.mxu0 %vm731_vm0, %v5138_v20  ;;  %v5320_v20 = vsub.s32 1, %v5031_v42 }
  0xb1   :  { %1561 = vmatpush1.msra.mxu0 %v1396_v35  ;;  %v1409_v35 = vld [vmem:[#allocation2 + $0x248] sm:$0xff] }
  0xb2   :  { %v197_v22 = vrot.slane %v188_v19, %v5320_v20  ;;  %1562 = vmatprep.subr.mxu0 %v1393_v36  ;;  %v1436_v19 = vld [vmem:[#allocation2 + $0x320] sm:$0xff] }
  0xb3   :  { %1563 = vmatpush1.msra.mxu0 %v1392_v37 }
  0xb4   :  { %1564 = vmatprep.subr.mxu0 %v1389_v39 }
  0xb5   :  { %1565 = vmatpush1.msra.mxu0 %v1388_v40 }
  0xb6   :  { %1566 = vmatprep.subr.mxu0 %v1385_v41 }
  0xb7   :  { %1567 = vmatpush1.msra.mxu0 %v1384_v43 }
  0xb8   :  { %1568 = vmatprep.subr.mxu0 %v1381_v44 }
  0xb9   :  { %1569 = vmatpush1.msra.mxu0 %v1380_v45 }
  0xba   :  { %1570 = vmatprep.subr.mxu0 %v1377_v46 }
  0xbb   :  { %1571 = vmatpush1.msra.mxu0 %v1376_v47 }
  0xbc   :  { %1572 = vmatprep.subr.mxu0 %v1373_v48 }
  0xbd   :  { %1573 = vmatpush1.msra.mxu0 %v1372_v49 }
  0xbe   :  { %1574 = vmatprep.subr.mxu0 %v1369_v50 }
  0xbf   :  { %1575 = vmatpush1.msra.mxu0 %v1368_v51 }
  0xc0   :  { %1576 = vmatprep.subr.mxu0 %v1365_v53  ;;  %v4425_v53 = vld [vmem:[%s5898_s3 + $0xe8] ss:$16 sps:$4 sm:$0xff]  }
  0xc1   :  { %1577 = vmatpush1.msra.mxu0 %v1364_v54 }
  0xc2   :  { %1578 = vmatprep.subr.mxu0 %v1361_v55  ;;  %v4433_v55 = vld [vmem:[%s5898_s3 + $0xac] ss:$16 sps:$4 sm:$0xff]  }
  0xc3   :  { %1579 = vmatpush1.msra.mxu0 %v1360_v56  ;;  %v4431_v56 = vld [vmem:[%s5898_s3 + $0xa8] ss:$16 sps:$4 sm:$0xff]  }
  0xc4   :  { %1580 = vmatprep.subr.mxu0 %v1357_v57  ;;  %v4436_v57 = vld [vmem:[%s5898_s3 + $0x8c] ss:$16 sps:$4 sm:$0xff]  }
  0xc5   :  { %1581 = vmatpush1.msra.mxu0 %v1356_v58  ;;  %v4434_v58 = vld [vmem:[%s5898_s3 + $0x88] ss:$16 sps:$4 sm:$0xff]  }
  0xc6   :  { %1582 = vmatprep.subr.mxu0 %v1353_v59  ;;  %v4439_v59 = vld [vmem:[%s5898_s3 + $0x6c] ss:$16 sps:$4 sm:$0xff]  }
  0xc7   :  { %1583 = vmatpush1.msra.mxu0 %v1352_v60  ;;  %v4437_v60 = vld [vmem:[%s5898_s3 + $0x68] ss:$16 sps:$4 sm:$0xff]  }
  0xc8   :  { %1584 = vmatprep.subr.mxu0 %v1349_v61  ;;  %v4442_v61 = vld [vmem:[%s5898_s3 + $0x4c] ss:$16 sps:$4 sm:$0xff]  }
  0xc9   :  { %1585 = vmatpush1.msra.mxu0 %v1348_v62  ;;  %v4440_v62 = vld [vmem:[%s5898_s3 + $0x48] ss:$16 sps:$4 sm:$0xff]  }
  0xca   :  { %1586 = vmatprep.subr.mxu0 %v1345_v63  ;;  %v4445_v63 = vld [vmem:[%s5898_s3 + $0x2c] ss:$16 sps:$4 sm:$0xff]  }
  0xcb   :  { %1587 = vmatpush1.msra.mxu0 %v1344_v0  ;;  %v4443_v0 = vld [vmem:[%s5898_s3 + $0x28] ss:$16 sps:$4 sm:$0xff]  }
  0xcc   :  { %1588 = vmatprep.subr.mxu0 %v1341_v1  ;;  %v4448_v1 = vld [vmem:[%s5898_s3 + $0xc] ss:$16 sps:$4 sm:$0xff]  }
  0xcd   :  { %1589 = vmatpush1.msra.mxu0 %v1340_v2  ;;  %v952_v2 = vld [vmem:[%s5898_s3 + $0x188] sm:$0xff] }
  0xce   :  { %1590 = vmatprep.subr.mxu0 %v1337_v3  ;;  %v4446_v3 = vld [vmem:[%s5898_s3 + $0x8] ss:$16 sps:$4 sm:$0xff]  }
  0xcf   :  { %1591 = vmatpush1.msra.mxu0 %v1336_v4  ;;  %v3993_v4 = vcombine.high %v952_v2, %v952_v2 }
  0xd0   :  { %1592 = vmatprep.subr.mxu0 %v1461_v5  ;;  %v3992_v5 = vcombine.low %v952_v2, %v952_v2 }
  0xd1   :  { %1593 = vmatpush2.msra.mxu0 %v1460_v6 }
  0xd2   :  { %1594 = vmatprep.subr.mxu0 %v1457_v7  ;;  %v1237_v6 = vsel %vm1229_vm1, %v3992_v5, 0  ;;  %v4453_v7 = vld [vmem:[%s5898_s3 + $0x16c] ss:$16 sps:$4 sm:$0xff]  }
  0xd3   :  { %1595 = vmatpush2.msra.mxu0 %v1456_v8  ;;  %v4451_v8 = vld [vmem:[%s5898_s3 + $0x168] ss:$16 sps:$4 sm:$0xff]  }
  0xd4   :  { %1596 = vmatprep.subr.mxu0 %v1453_v9  ;;  %v4456_v9 = vld [vmem:[%s5898_s3 + $0x14c] ss:$16 sps:$4 sm:$0xff]  }
  0xd5   :  { %1597 = vmatpush2.msra.mxu0 %v1452_v10  ;;  %v4454_v10 = vld [vmem:[%s5898_s3 + $0x148] ss:$16 sps:$4 sm:$0xff]  }
  0xd6   :  { %1598 = vmatprep.subr.mxu0 %v1449_v11  ;;  %v4459_v11 = vld [vmem:[%s5898_s3 + $0x12c] ss:$16 sps:$4 sm:$0xff]  }
  0xd7   :  { %1599 = vmatpush2.msra.mxu0 %v1448_v12  ;;  %v4457_v12 = vld [vmem:[%s5898_s3 + $0x128] ss:$16 sps:$4 sm:$0xff]  }
  0xd8   :  { %1600 = vmatprep.subr.mxu0 %v1445_v13  ;;  %v4462_v13 = vld [vmem:[%s5898_s3 + $0x10c] ss:$16 sps:$4 sm:$0xff]  }
  0xd9   :  { %1601 = vmatpush2.msra.mxu0 %v1444_v14  ;;  %v4460_v14 = vld [vmem:[%s5898_s3 + $0x108] ss:$16 sps:$4 sm:$0xff]  }
  0xda   :  { %1602 = vmatprep.subr.mxu0 %v1441_v15  ;;  %v1408_v15 = vld [vmem:[#allocation2 + $0x240] sm:$0xff] }
  0xdb   :  { %1603 = vmatpush2.msra.mxu0 %v1440_v16  ;;  %v1405_v16 = vld [vmem:[#allocation2 + $0x228] sm:$0xff] }
  0xdc   :  { %1604 = vmatprep.subr.mxu0 %v1437_v17  ;;  %v1404_v17 = vld [vmem:[#allocation2 + $0x220] sm:$0xff] }
  0xdd   :  { %1605 = vmatpush2.msra.mxu0 %v1436_v19  ;;  %v1401_v19 = vld [vmem:[#allocation2 + $0x208] sm:$0xff] }
 0x128   :  { %v769_v23 = vpop.f32.mrf.mxu0 }
 0x129   :  { %v770_v24 = vadd.f32 %v769_v23, %v193_v21  ;;  %v810_v26 = vpop.f32.mrf.mxu1  ;;  %v1433_v21 = vld [vmem:[#allocation2 + $0x308] sm:$0xff] }
 0x12a   :  { %v771_v25 = vpop.f32.mrf.mxu0  ;;  %v1429_v23 = vld [vmem:[#allocation2 + $0x2e8] sm:$0xff]  ;;  %1606 = vmatprep.subr.mxu0 %v1433_v21  ;;  %v1400_v21 = vld [vmem:[#allocation2 + $0x200] sm:$0xff] }
 0x12b   :  { %v772_v27 = vadd.f32 %v771_v25, %v197_v22  ;;  %v5324_v28 = vadd.f32 %v810_v26, %v770_v24  ;;  %v812_v30 = vpop.f32.mrf.mxu1  ;;  %v1432_v22 = vld [vmem:[#allocation2 + $0x300] sm:$0xff]  ;;  %v1425_v25 = vld [vmem:[#allocation2 + $0x2c8] sm:$0xff] }
 0x12c   :  { %v773_v29 = vpop.f32.mrf.mxu0  ;;  %v1428_v24 = vld [vmem:[#allocation2 + $0x2e0] sm:$0xff]  ;;  %1607 = vmatpush2.msra.mxu0 %v1432_v22  ;;  %v1399_v22 = vld [vmem:[#allocation2 + $0x1f8] sm:$0xff] }
 0x12d   :  { %v5326_v31 = vadd.f32 %v812_v30, %v772_v27  ;;  %v814_v33 = vpop.f32.mrf.mxu1  ;;  %1608 = vmatprep.subr.mxu0 %v1429_v23  ;;  %v1424_v26 = vld [vmem:[#allocation2 + $0x2c0] sm:$0xff]  ;;  %v1421_v27 = vld [vmem:[#allocation2 + $0x2a8] sm:$0xff] }
 0x12e   :  { %v774_v32 = vpop.f32.mrf.mxu0  ;;  %1609 = vmatpush2.msra.mxu0 %v1428_v24  ;;  %v1420_v29 = vld [vmem:[#allocation2 + $0x2a0] sm:$0xff]  ;;  %v1417_v30 = vld [vmem:[#allocation2 + $0x288] sm:$0xff] }
 0x12f   :  { %v815_v38 = vpop.f32.mrf.mxu1  ;;  %1610 = vmatprep.subr.mxu0 %v1425_v25  ;;  %v1416_v32 = vld [vmem:[#allocation2 + $0x280] sm:$0xff]  ;;  %v1413_v33 = vld [vmem:[#allocation2 + $0x268] sm:$0xff] }
 0x130   :  { %1611 = vmatpush2.msra.mxu0 %v1424_v26  ;;  %v1525_v23 = vld [vmem:[#allocation2 + $0x5e8] sm:$0xff]  ;;  %v1524_v24 = vld [vmem:[#allocation2 + $0x5e0] sm:$0xff] }
 0x131   :  { %1612 = vmatprep.subr.mxu0 %v1421_v27  ;;  %v1521_v25 = vld [vmem:[#allocation2 + $0x5c8] sm:$0xff]  ;;  %v1520_v26 = vld [vmem:[#allocation2 + $0x5c0] sm:$0xff] }
 0x132   :  { %1613 = vmatpush2.msra.mxu0 %v1420_v29  ;;  %v1517_v27 = vld [vmem:[#allocation2 + $0x5a8] sm:$0xff]  ;;  %v1516_v29 = vld [vmem:[#allocation2 + $0x5a0] sm:$0xff] }
 0x133   :  { %1614 = vmatprep.subr.mxu0 %v1417_v30  ;;  %v1513_v30 = vld [vmem:[#allocation2 + $0x588] sm:$0xff] }
 0x134   :  { %1615 = vmatpush2.msra.mxu0 %v1416_v32  ;;  %v1512_v32 = vld [vmem:[#allocation2 + $0x580] sm:$0xff] }
 0x135   :  { %1616 = vmatprep.subr.mxu0 %v1413_v33  ;;  %v1509_v33 = vld [vmem:[#allocation2 + $0x568] sm:$0xff] }
 0x136   :  { %1617 = vmatpush2.msra.mxu0 %v1412_v34  ;;  %v1508_v34 = vld [vmem:[#allocation2 + $0x560] sm:$0xff] }
 0x137   :  { %1618 = vmatprep.subr.mxu0 %v1409_v35  ;;  %v1505_v35 = vld [vmem:[#allocation2 + $0x548] sm:$0xff] }
 0x138   :  { %1619 = vmatpush2.msra.mxu0 %v1408_v15  ;;  %v1383_v15 = vld [vmem:[#allocation2 + $0x178] sm:$0xff] }
 0x139   :  { %1620 = vmatprep.subr.mxu0 %v1405_v16  ;;  %v1382_v16 = vld [vmem:[#allocation2 + $0x170] sm:$0xff] }
 0x13a   :  { %1621 = vmatpush2.msra.mxu0 %v1404_v17  ;;  %v1379_v17 = vld [vmem:[#allocation2 + $0x158] sm:$0xff] }
 0x13b   :  { %1622 = vmatprep.subr.mxu0 %v1401_v19  ;;  %v1378_v19 = vld [vmem:[#allocation2 + $0x150] sm:$0xff] }
 0x13c   :  { %1623 = vmatpush2.msra.mxu0 %v1400_v21  ;;  %v1375_v21 = vld [vmem:[#allocation2 + $0x138] sm:$0xff] }
 0x13d   :  { %1702 = vmatprep.subr.mxu0 %v1399_v22  ;;  %v1374_v22 = vld [vmem:[#allocation2 + $0x130] sm:$0xff] }
 0x168   :  { %v851_v36 = vpop.f32.mrf.mxu0 }
 0x169   :  { %v852_v40 = vadd.f32 %v851_v36, %v5324_v28  ;;  %v4430_v28 = vld [vmem:[%s5898_s3 + $0xcc] ss:$16 sps:$4 sm:$0xff]   ;;  %v1504_v36 = vld [vmem:[#allocation2 + $0x540] sm:$0xff] }
 0x16a   :  { %v853_v37 = vpop.f32.mrf.mxu0 }
 0x16b   :  { %v854_v43 = vadd.f32 %v853_v37, %v5326_v31  ;;  %v4428_v31 = vld [vmem:[%s5898_s3 + $0xc8] ss:$16 sps:$4 sm:$0xff]  }
 0x16c   :  { %v855_v38 = vpop.f32.mrf.mxu0  ;;  %v1501_v37 = vld [vmem:[#allocation2 + $0x528] sm:$0xff] }
 0x16d   :  { %v1500_v38 = vld [vmem:[#allocation2 + $0x520] sm:$0xff] }
 0x16e   :  { %v856_v39 = vpop.f32.mrf.mxu0 }
 0x16f   :  { %v1497_v39 = vld [vmem:[#allocation2 + $0x508] sm:$0xff] }
 0x170   :  { %v892_v41 = vpop.f32.mrf.mxu0 }
 0x171   :  { %v893_v44 = vadd.f32 %v892_v41, %v852_v40  ;;  %v1496_v40 = vld [vmem:[#allocation2 + $0x500] sm:$0xff]  ;;  %v1493_v41 = vld [vmem:[#allocation2 + $0x4e8] sm:$0xff] }
 0x172   :  { %v894_v45 = vpop.f32.mrf.mxu0 }
 0x173   :  { %v895_v46 = vadd.f32 %v894_v45, %v854_v43  ;;  %v899_v47 = vmax.f32 %v893_v44, 0.0  ;;  %v1492_v43 = vld [vmem:[#allocation2 + $0x4e0] sm:$0xff]  ;;  %v1489_v44 = vld [vmem:[#allocation2 + $0x4c8] sm:$0xff] }
 0x174   :  { %v896_v48 = vpop.f32.mrf.mxu0  ;;  %v1488_v45 = vld [vmem:[#allocation2 + $0x4c0] sm:$0xff] }
 0x175   :  { %v900_v49 = vmax.f32 %v895_v46, 0.0  ;;  %v901_v54 = vpack.c.bf16 %v899_v47, %v899_v47  ;;  %v1485_v46 = vld [vmem:[#allocation2 + $0x4a8] sm:$0xff]  ;;  %v1484_v47 = vld [vmem:[#allocation2 + $0x4a0] sm:$0xff] }
 0x176   :  { %v897_v50 = vpop.f32.mrf.mxu0  ;;  %v1481_v48 = vld [vmem:[#allocation2 + $0x488] sm:$0xff] }
 0x177   :  { %v902_v51 = vpack.c.bf16 %v900_v49, %v900_v49  ;;  %v1480_v49 = vld [vmem:[#allocation2 + $0x480] sm:$0xff]  ;;  %v1477_v50 = vld [vmem:[#allocation2 + $0x468] sm:$0xff] }
 0x179   :  { %3995 = vmatprep.mubr.msk.bf16.mxu1 %vm1225_vm2, %v902_v51 }
 0x17a   :  { %1275 = vmatmul.mubr.bf16.vlgmr.msra.gmra.mxu1 %v901_v54 }
 0x17b   :  { %1284 = vmatpush1.bf16.msra.mxu1 %v4425_v53  ;;  %3997 = vmatprep.mubr.msk.bf16.mxu1 %vm1225_vm2, %v902_v51  ;;  %v1476_v51 = vld [vmem:[#allocation2 + $0x460] sm:$0xff]  ;;  %v1473_v53 = vld [vmem:[#allocation2 + $0x448] sm:$0xff] }
 0x17c   :  { %1285 = vmatprep.subr.bf16.mxu1 %v4430_v28  ;;  %v1469_v28 = vld [vmem:[#allocation2 + $0x428] sm:$0xff] }
 0x17f   :  { %1286 = vmatpush1.bf16.msra.mxu1 %v4428_v31  ;;  %v1468_v31 = vld [vmem:[#allocation2 + $0x420] sm:$0xff] }
 0x180   :  { %1287 = vmatprep.subr.bf16.mxu1 %v4433_v55  ;;  %v1465_v55 = vld [vmem:[#allocation2 + $0x408] sm:$0xff] }
 0x183   :  { %1288 = vmatpush1.bf16.msra.mxu1 %v4431_v56  ;;  %v1464_v56 = vld [vmem:[#allocation2 + $0x400] sm:$0xff] }
 0x184   :  { %1289 = vmatprep.subr.bf16.mxu1 %v4436_v57  ;;  %v1533_v57 = vld [vmem:[#allocation2 + $0x628] sm:$0xff] }
 0x187   :  { %1290 = vmatpush1.bf16.msra.mxu1 %v4434_v58  ;;  %v1532_v58 = vld [vmem:[#allocation2 + $0x620] sm:$0xff] }
 0x188   :  { %1291 = vmatprep.subr.bf16.mxu1 %v4439_v59  ;;  %v1529_v59 = vld [vmem:[#allocation2 + $0x608] sm:$0xff] }
 0x18b   :  { %1292 = vmatpush1.bf16.msra.mxu1 %v4437_v60  ;;  %v1528_v60 = vld [vmem:[#allocation2 + $0x600] sm:$0xff] }
 0x18c   :  { %1293 = vmatprep.subr.bf16.mxu1 %v4442_v61  ;;  %v1527_v61 = vld [vmem:[#allocation2 + $0x5f8] sm:$0xff] }
 0x18f   :  { %1294 = vmatpush1.bf16.msra.mxu1 %v4440_v62  ;;  %v5409_v62 = vld [vmem:[%s5899_s4] sm:$0xf] }
 0x190   :  { %1295 = vmatprep.subr.bf16.mxu1 %v4445_v63  ;;  %v958_v63 = vrot.slane %v5409_v62, %v5314_v18 }
 0x193   :  { %1296 = vmatpush1.bf16.msra.mxu1 %v4443_v0  ;;  %v962_v0 = vrot.slane %v5409_v62, %v5320_v20 }
 0x194   :  { %1297 = vmatprep.subr.bf16.mxu1 %v4448_v1 }
 0x197   :  { %1298 = vmatpush1.bf16.msra.mxu1 %v4446_v3 }
 0x198   :  { %3996 = vmatprep.subr.msk.bf16.mxu1 %vm1229_vm1, %v3993_v4 }
 0x19b   :  { %1306 = vmatpush2.bf16.msra.mxu1 %v1237_v6  ;;  %v1398_v6 = vld [vmem:[#allocation2 + $0x1f0] sm:$0xff] }
 0x19c   :  { %1307 = vmatprep.subr.bf16.mxu1 %v4453_v7 }
 0x19f   :  { %1308 = vmatpush2.bf16.msra.mxu1 %v4451_v8  ;;  %v1395_v8 = vld [vmem:[#allocation2 + $0x1d8] sm:$0xff] }
 0x1a0   :  { %1309 = vmatprep.subr.bf16.mxu1 %v4456_v9 }
 0x1a3   :  { %1310 = vmatpush2.bf16.msra.mxu1 %v4454_v10  ;;  %v1394_v10 = vld [vmem:[#allocation2 + $0x1d0] sm:$0xff] }
 0x1a4   :  { %1311 = vmatprep.subr.bf16.mxu1 %v4459_v11  ;;  %v1391_v11 = vld [vmem:[#allocation2 + $0x1b8] sm:$0xff] }
 0x1a7   :  { %1312 = vmatpush2.bf16.msra.mxu1 %v4457_v12  ;;  %v1390_v12 = vld [vmem:[#allocation2 + $0x1b0] sm:$0xff] }
 0x1a8   :  { %1313 = vmatprep.subr.bf16.mxu1 %v4462_v13  ;;  %v1387_v13 = vld [vmem:[#allocation2 + $0x198] sm:$0xff] }
 0x1ab   :  { %1314 = vmatpush2.bf16.msra.mxu1 %v4460_v14  ;;  %v1386_v14 = vld [vmem:[#allocation2 + $0x190] sm:$0xff] }
 0x1ac   :  { %1631 = vmatprep.subr.mxu1 %v1525_v23  ;;  %v1371_v23 = vld [vmem:[#allocation2 + $0x118] sm:$0xff] }
 0x1ae   :  { %1316 = vmatmul.mubr.bf16.vlgmr.msra.gmra.mxu1 %v901_v54  ;;  %v1472_v54 = vld [vmem:[#allocation2 + $0x440] sm:$0xff] }
 0x1af   :  { %1632 = vmatpush1.msra.mxu1 %v1524_v24  ;;  %v1370_v24 = vld [vmem:[#allocation2 + $0x110] sm:$0xff] }
 0x1b0   :  { %1633 = vmatprep.subr.mxu1 %v1521_v25  ;;  %v1367_v25 = vld [vmem:[#allocation2 + $0xf8] sm:$0xff] }
 0x1b1   :  { %1634 = vmatpush1.msra.mxu1 %v1520_v26  ;;  %v1366_v26 = vld [vmem:[#allocation2 + $0xf0] sm:$0xff] }
 0x1b2   :  { %1635 = vmatprep.subr.mxu1 %v1517_v27  ;;  %v1363_v27 = vld [vmem:[#allocation2 + $0xd8] sm:$0xff] }
 0x1b3   :  { %1636 = vmatpush1.msra.mxu1 %v1516_v29  ;;  %v1362_v29 = vld [vmem:[#allocation2 + $0xd0] sm:$0xff] }
 0x1b4   :  { %1637 = vmatprep.subr.mxu1 %v1513_v30  ;;  %v1359_v30 = vld [vmem:[#allocation2 + $0xb8] sm:$0xff] }
 0x1b5   :  { %1638 = vmatpush1.msra.mxu1 %v1512_v32  ;;  %v1358_v32 = vld [vmem:[#allocation2 + $0xb0] sm:$0xff] }
 0x1b6   :  { %1639 = vmatprep.subr.mxu1 %v1509_v33  ;;  %v1355_v33 = vld [vmem:[#allocation2 + $0x98] sm:$0xff] }
 0x1b7   :  { %1640 = vmatpush1.msra.mxu1 %v1508_v34  ;;  %v1354_v34 = vld [vmem:[#allocation2 + $0x90] sm:$0xff] }
 0x1b8   :  { %1641 = vmatprep.subr.mxu1 %v1505_v35  ;;  %v1351_v35 = vld [vmem:[#allocation2 + $0x78] sm:$0xff] }
 0x1b9   :  { %1642 = vmatpush1.msra.mxu1 %v1504_v36  ;;  %v1350_v36 = vld [vmem:[#allocation2 + $0x70] sm:$0xff] }
 0x1ba   :  { %1643 = vmatprep.subr.mxu1 %v1501_v37  ;;  %v1347_v37 = vld [vmem:[#allocation2 + $0x58] sm:$0xff] }
 0x1bb   :  { %1644 = vmatpush1.msra.mxu1 %v1500_v38  ;;  %v1346_v38 = vld [vmem:[#allocation2 + $0x50] sm:$0xff] }
 0x1bc   :  { %1645 = vmatprep.subr.mxu1 %v1497_v39  ;;  %v1343_v39 = vld [vmem:[#allocation2 + $0x38] sm:$0xff] }
 0x1bd   :  { %1646 = vmatpush1.msra.mxu1 %v1496_v40  ;;  %v1342_v40 = vld [vmem:[#allocation2 + $0x30] sm:$0xff] }
 0x1be   :  { %1647 = vmatprep.subr.mxu1 %v1493_v41  ;;  %v1339_v41 = vld [vmem:[#allocation2 + $0x18] sm:$0xff] }
 0x1bf   :  { %1648 = vmatpush1.msra.mxu1 %v1492_v43  ;;  %v1338_v43 = vld [vmem:[#allocation2 + $0x10] sm:$0xff] }
 0x1c0   :  { %1649 = vmatprep.subr.mxu1 %v1489_v44  ;;  %v1463_v44 = vld [vmem:[#allocation2 + $0x3f8] sm:$0xff] }
 0x1c1   :  { %1650 = vmatpush1.msra.mxu1 %v1488_v45  ;;  %v1462_v45 = vld [vmem:[#allocation2 + $0x3f0] sm:$0xff] }
 0x1c2   :  { %1651 = vmatprep.subr.mxu1 %v1485_v46  ;;  %v1459_v46 = vld [vmem:[#allocation2 + $0x3d8] sm:$0xff] }
 0x1c3   :  { %1652 = vmatpush1.msra.mxu1 %v1484_v47  ;;  %v1458_v47 = vld [vmem:[#allocation2 + $0x3d0] sm:$0xff] }
 0x1c4   :  { %1653 = vmatprep.subr.mxu1 %v1481_v48  ;;  %v1455_v48 = vld [vmem:[#allocation2 + $0x3b8] sm:$0xff] }
 0x1c5   :  { %1654 = vmatpush1.msra.mxu1 %v1480_v49  ;;  %v1454_v49 = vld [vmem:[#allocation2 + $0x3b0] sm:$0xff] }
 0x1c6   :  { %1655 = vmatprep.subr.mxu1 %v1477_v50  ;;  %v1451_v50 = vld [vmem:[#allocation2 + $0x398] sm:$0xff] }
 0x1c7   :  { %1656 = vmatpush1.msra.mxu1 %v1476_v51  ;;  %v1450_v51 = vld [vmem:[#allocation2 + $0x390] sm:$0xff] }
 0x1c8   :  { %1657 = vmatprep.subr.mxu1 %v1473_v53  ;;  %v1447_v53 = vld [vmem:[#allocation2 + $0x378] sm:$0xff] }
 0x1c9   :  { %1658 = vmatpush1.msra.mxu1 %v1472_v54  ;;  %v1446_v54 = vld [vmem:[#allocation2 + $0x370] sm:$0xff] }
 0x1ca   :  { %1659 = vmatprep.subr.mxu1 %v1469_v28  ;;  %v1443_v28 = vld [vmem:[#allocation2 + $0x358] sm:$0xff] }
 0x1cb   :  { %1660 = vmatpush1.msra.mxu1 %v1468_v31  ;;  %v1442_v31 = vld [vmem:[#allocation2 + $0x350] sm:$0xff] }
 0x1cc   :  { %1661 = vmatprep.subr.mxu1 %v1465_v55  ;;  %v1439_v55 = vld [vmem:[#allocation2 + $0x338] sm:$0xff] }
 0x1cd   :  { %1662 = vmatpush1.msra.mxu1 %v1464_v56  ;;  %v5420_v56 = vsub.s32 2, %v5031_v42 }
 0x1ce   :  { %1691 = vmatprep.subr.mxu1 %v1533_v57  ;;  %v5423_v57 = vsub.s32 3, %v5031_v42 }
 0x1cf   :  { %1692 = vmatpush2.msra.mxu1 %v1532_v58  ;;  %v1438_v58 = vld [vmem:[#allocation2 + $0x330] sm:$0xff] }
 0x1d0   :  { %1693 = vmatprep.subr.mxu1 %v1529_v59  ;;  %v1435_v59 = vld [vmem:[#allocation2 + $0x318] sm:$0xff] }
 0x1d1   :  { %1694 = vmatpush2.msra.mxu1 %v1528_v60  ;;  %v1434_v60 = vld [vmem:[#allocation2 + $0x310] sm:$0xff] }
 0x1d2   :  { %1773 = vmatprep.subr.mxu1 %v1527_v61  ;;  %v966_v61 = vrot.slane %v5409_v62, %v5420_v56 }
 0x23a   :  { %v1276_v1 = vpop.f32.mrf.mxu1 }
 0x23b   :  { %v5415_v3 = vadd.f32 %v1276_v1, %v958_v63  ;;  %v970_v63 = vrot.slane %v5409_v62, %v5423_v57  ;;  %v4546_v62 = vld [vmem:[%s5905_s10 + $0x154] ss:$28 sps:$4 sm:$0xff]  }
 0x23c   :  { %v1278_v2 = vpop.f32.mrf.mxu1 }
 0x23d   :  { %v1279_v4 = vadd.f32 %v1278_v2, %v962_v0  ;;  %v1431_v0 = vld [vmem:[#allocation2 + $0x2f8] sm:$0xff]  ;;  %v1430_v2 = vld [vmem:[#allocation2 + $0x2f0] sm:$0xff] }
 0x23e   :  { %v1280_v5 = vpop.f32.mrf.mxu1 }
 0x23f   :  { %v1328_v7 = vcombine.low %v5415_v3, %v1279_v4  ;;  %1624 = vmatprep.mubr.f32.mxu0 %v1279_v4 }
 0x240   :  { %v1281_v9 = vpop.f32.mrf.mxu1  ;;  %1625 = vmatmul.mubr.f32.vlgmr.msra.gmra.mxu0 %v5415_v3 }
 0x241   :  { %1332 = vst [vmem:[#allocation9] sm:$0xff] %v1328_v7  ;;  %1703 = vmatpush1.msra.mxu0 %v1398_v6  ;;  %1766 = vmatprep.mubr.f32.mxu0 %v1279_v4  ;;  %v1427_v4 = vld [vmem:[#allocation2 + $0x2d8] sm:$0xff]  ;;  %v1426_v6 = vld [vmem:[#allocation2 + $0x2d0] sm:$0xff] }
 0x242   :  { %1704 = vmatprep.subr.mxu0 %v1395_v8  ;;  %v1423_v9 = vld [vmem:[#allocation2 + $0x2b8] sm:$0xff] }
 0x243   :  { %1705 = vmatpush1.msra.mxu0 %v1394_v10 }
 0x244   :  { %1706 = vmatprep.subr.mxu0 %v1391_v11  ;;  %v1526_v11 = vld [vmem:[#allocation2 + $0x5f0] sm:$0xff] }
 0x245   :  { %1707 = vmatpush1.msra.mxu0 %v1390_v12  ;;  %v1422_v12 = vld [vmem:[#allocation2 + $0x2b0] sm:$0xff] }
 0x246   :  { %1708 = vmatprep.subr.mxu0 %v1387_v13 }
 0x247   :  { %1709 = vmatpush1.msra.mxu0 %v1386_v14  ;;  %v1523_v14 = vld [vmem:[#allocation2 + $0x5d8] sm:$0xff] }
 0x248   :  { %1710 = vmatprep.subr.mxu0 %v1383_v15 }
 0x249   :  { %1711 = vmatpush1.msra.mxu0 %v1382_v16  ;;  %v1419_v16 = vld [vmem:[#allocation2 + $0x298] sm:$0xff] }
 0x24a   :  { %1712 = vmatprep.subr.mxu0 %v1379_v17  ;;  %v1522_v17 = vld [vmem:[#allocation2 + $0x5d0] sm:$0xff] }
 0x24b   :  { %1713 = vmatpush1.msra.mxu0 %v1378_v19  ;;  %v1418_v19 = vld [vmem:[#allocation2 + $0x290] sm:$0xff] }
 0x24c   :  { %1714 = vmatprep.subr.mxu0 %v1375_v21  ;;  %v1519_v21 = vld [vmem:[#allocation2 + $0x5b8] sm:$0xff] }
 0x24d   :  { %1715 = vmatpush1.msra.mxu0 %v1374_v22  ;;  %v1415_v22 = vld [vmem:[#allocation2 + $0x278] sm:$0xff] }
 0x24e   :  { %1716 = vmatprep.subr.mxu0 %v1371_v23  ;;  %v1518_v23 = vld [vmem:[#allocation2 + $0x5b0] sm:$0xff] }
 0x24f   :  { %1717 = vmatpush1.msra.mxu0 %v1370_v24  ;;  %v1414_v24 = vld [vmem:[#allocation2 + $0x270] sm:$0xff] }
 0x250   :  { %1718 = vmatprep.subr.mxu0 %v1367_v25  ;;  %v1515_v25 = vld [vmem:[#allocation2 + $0x598] sm:$0xff] }
 0x251   :  { %1719 = vmatpush1.msra.mxu0 %v1366_v26  ;;  %v1411_v26 = vld [vmem:[#allocation2 + $0x258] sm:$0xff] }
 0x252   :  { %1720 = vmatprep.subr.mxu0 %v1363_v27  ;;  %v1514_v27 = vld [vmem:[#allocation2 + $0x590] sm:$0xff] }
 0x253   :  { %1721 = vmatpush1.msra.mxu0 %v1362_v29  ;;  %v1410_v29 = vld [vmem:[#allocation2 + $0x250] sm:$0xff] }
 0x254   :  { %1722 = vmatprep.subr.mxu0 %v1359_v30  ;;  %v1511_v30 = vld [vmem:[#allocation2 + $0x578] sm:$0xff] }
 0x255   :  { %1723 = vmatpush1.msra.mxu0 %v1358_v32  ;;  %v1407_v32 = vld [vmem:[#allocation2 + $0x238] sm:$0xff] }
 0x256   :  { %1724 = vmatprep.subr.mxu0 %v1355_v33  ;;  %v1510_v33 = vld [vmem:[#allocation2 + $0x570] sm:$0xff] }
 0x257   :  { %1725 = vmatpush1.msra.mxu0 %v1354_v34  ;;  %v1406_v34 = vld [vmem:[#allocation2 + $0x230] sm:$0xff] }
 0x258   :  { %1726 = vmatprep.subr.mxu0 %v1351_v35  ;;  %v1507_v35 = vld [vmem:[#allocation2 + $0x558] sm:$0xff] }
 0x259   :  { %1727 = vmatpush1.msra.mxu0 %v1350_v36  ;;  %v1403_v36 = vld [vmem:[#allocation2 + $0x218] sm:$0xff] }
 0x25a   :  { %1728 = vmatprep.subr.mxu0 %v1347_v37  ;;  %v1506_v37 = vld [vmem:[#allocation2 + $0x550] sm:$0xff] }
 0x25b   :  { %1729 = vmatpush1.msra.mxu0 %v1346_v38  ;;  %v1402_v38 = vld [vmem:[#allocation2 + $0x210] sm:$0xff] }
 0x25c   :  { %1730 = vmatprep.subr.mxu0 %v1343_v39  ;;  %v1503_v39 = vld [vmem:[#allocation2 + $0x538] sm:$0xff] }
 0x25d   :  { %1731 = vmatpush1.msra.mxu0 %v1342_v40  ;;  %v1502_v40 = vld [vmem:[#allocation2 + $0x530] sm:$0xff] }
 0x25e   :  { %1732 = vmatprep.subr.mxu0 %v1339_v41  ;;  %v1499_v41 = vld [vmem:[#allocation2 + $0x518] sm:$0xff] }
 0x25f   :  { %1733 = vmatpush1.msra.mxu0 %v1338_v43  ;;  %v1498_v43 = vld [vmem:[#allocation2 + $0x510] sm:$0xff] }
 0x260   :  { %1734 = vmatprep.subr.mxu0 %v1463_v44  ;;  %v1495_v44 = vld [vmem:[#allocation2 + $0x4f8] sm:$0xff] }
 0x261   :  { %1735 = vmatpush2.msra.mxu0 %v1462_v45  ;;  %v1494_v45 = vld [vmem:[#allocation2 + $0x4f0] sm:$0xff] }
 0x262   :  { %1736 = vmatprep.subr.mxu0 %v1459_v46  ;;  %v1491_v46 = vld [vmem:[#allocation2 + $0x4d8] sm:$0xff] }
 0x263   :  { %1737 = vmatpush2.msra.mxu0 %v1458_v47  ;;  %v1490_v47 = vld [vmem:[#allocation2 + $0x4d0] sm:$0xff] }
 0x264   :  { %1738 = vmatprep.subr.mxu0 %v1455_v48  ;;  %v1487_v48 = vld [vmem:[#allocation2 + $0x4b8] sm:$0xff] }
 0x265   :  { %1739 = vmatpush2.msra.mxu0 %v1454_v49  ;;  %v1486_v49 = vld [vmem:[#allocation2 + $0x4b0] sm:$0xff] }
 0x266   :  { %1740 = vmatprep.subr.mxu0 %v1451_v50  ;;  %v1483_v50 = vld [vmem:[#allocation2 + $0x498] sm:$0xff] }
 0x267   :  { %1741 = vmatpush2.msra.mxu0 %v1450_v51  ;;  %v1482_v51 = vld [vmem:[#allocation2 + $0x490] sm:$0xff] }
 0x268   :  { %1742 = vmatprep.subr.mxu0 %v1447_v53  ;;  %v1479_v53 = vld [vmem:[#allocation2 + $0x478] sm:$0xff] }
 0x269   :  { %1743 = vmatpush2.msra.mxu0 %v1446_v54  ;;  %v1475_v54 = vld [vmem:[#allocation2 + $0x458] sm:$0xff] }
 0x26a   :  { %1744 = vmatprep.subr.mxu0 %v1443_v28  ;;  %v1474_v28 = vld [vmem:[#allocation2 + $0x450] sm:$0xff] }
 0x26b   :  { %1745 = vmatpush2.msra.mxu0 %v1442_v31  ;;  %v1471_v31 = vld [vmem:[#allocation2 + $0x438] sm:$0xff] }
 0x26c   :  { %1746 = vmatprep.subr.mxu0 %v1439_v55  ;;  %v1470_v55 = vld [vmem:[#allocation2 + $0x430] sm:$0xff] }
 0x26d   :  { %1747 = vmatpush2.msra.mxu0 %v1438_v58  ;;  %v1467_v58 = vld [vmem:[#allocation2 + $0x418] sm:$0xff] }
 0x26e   :  { %v1317_v1 = vpop.f32.mrf.mxu1  ;;  %1748 = vmatprep.subr.mxu0 %v1435_v59  ;;  %v1466_v59 = vld [vmem:[#allocation2 + $0x410] sm:$0xff] }
 0x26f   :  { %1749 = vmatpush2.msra.mxu0 %v1434_v60  ;;  %v5429_v7 = vadd.f32 %v1317_v1, %v966_v61  ;;  %v1535_v60 = vld [vmem:[#allocation2 + $0x638] sm:$0xff]  ;;  %v1534_v61 = vld [vmem:[#allocation2 + $0x630] sm:$0xff]  ;;  %v5447_v1 = vld [vmem:[%s5901_s6] sm:$0xf]  ;;  %s4818_s6 = smov 48  }
 0x270   :  { %v1319_v5 = vpop.f32.mrf.mxu1  ;;  %1750 = vmatprep.subr.mxu0 %v1431_v0  ;;  %v1530_v0 = vld [vmem:[#allocation2 + $0x610] sm:$0xff] }
 0x271   :  { %v1320_v8 = vadd.f32 %v1319_v5, %v970_v63  ;;  %1751 = vmatpush2.msra.mxu0 %v1430_v2  ;;  %v1531_v63 = vld [vmem:[#allocation2 + $0x618] sm:$0xff]  ;;  %v1541_v2 = vrot.slane %v5447_v1, %v5314_v18 }
 0x272   :  { %v1321_v10 = vpop.f32.mrf.mxu1  ;;  %1752 = vmatprep.subr.mxu0 %v1427_v4 }
 0x273   :  { %v1329_v13 = vcombine.low %v5429_v7, %v1320_v8  ;;  %3998 = vmatprep.mubr.msk.f32.mxu1 %vm731_vm0, %v1320_v8  ;;  %1753 = vmatpush2.msra.mxu0 %v1426_v6 }
 0x274   :  { %v1322_v15 = vpop.f32.mrf.mxu1  ;;  %1696 = vmatmul.mubr.f32.vlgmr.msra.gmra.mxu1 %v5429_v7  ;;  %1754 = vmatprep.subr.mxu0 %v1423_v9 }
 0x275   :  { %1774 = vmatpush1.msra.mxu1 %v1526_v11  ;;  %1755 = vmatpush2.msra.mxu0 %v1422_v12  ;;  %1335 = vst.msk [vmem:[#allocation9 + $0x8] sm:$0xff] %vm5432_vm4, %v1329_v13  ;;  %v1545_v15 = vrot.slane %v5447_v1, %v5320_v20 }
 0x276   :  { %1775 = vmatprep.subr.mxu1 %v1523_v14  ;;  %3999 = vmatprep.mubr.msk.f32.mxu1 %vm731_vm0, %v1320_v8 }
 0x277   :  { %1756 = vmatprep.subr.mxu0 %v1419_v16  ;;  %1776 = vmatpush1.msra.mxu1 %v1522_v17 }
 0x278   :  { %1757 = vmatpush2.msra.mxu0 %v1418_v19  ;;  %1777 = vmatprep.subr.mxu1 %v1519_v21 }
 0x279   :  { %1758 = vmatprep.subr.mxu0 %v1415_v22  ;;  %1778 = vmatpush1.msra.mxu1 %v1518_v23 }
 0x27a   :  { %1759 = vmatpush2.msra.mxu0 %v1414_v24  ;;  %1779 = vmatprep.subr.mxu1 %v1515_v25 }
 0x27b   :  { %1760 = vmatprep.subr.mxu0 %v1411_v26  ;;  %1780 = vmatpush1.msra.mxu1 %v1514_v27 }
 0x27c   :  { %1761 = vmatpush2.msra.mxu0 %v1410_v29  ;;  %1781 = vmatprep.subr.mxu1 %v1511_v30 }
 0x27d   :  { %1762 = vmatprep.subr.mxu0 %v1407_v32  ;;  %1782 = vmatpush1.msra.mxu1 %v1510_v33 }
 0x27e   :  { %1763 = vmatpush2.msra.mxu0 %v1406_v34  ;;  %1783 = vmatprep.subr.mxu1 %v1507_v35 }
 0x27f   :  { %1764 = vmatprep.subr.mxu0 %v1403_v36  ;;  %1784 = vmatpush1.msra.mxu1 %v1506_v37 }
 0x280   :  { %1765 = vmatpush2.msra.mxu0 %v1402_v38  ;;  %1785 = vmatprep.subr.mxu1 %v1503_v39 }
 0x281   :  { %1767 = vmatmul.mubr.f32.vlgmr.msra.gmra.mxu0 %v5415_v3  ;;  %1786 = vmatpush1.msra.mxu1 %v1502_v40  ;;  %v1478_v3 = vld [vmem:[#allocation2 + $0x470] sm:$0xff] }
 0x282   :  { %1787 = vmatprep.subr.mxu1 %v1499_v41 }
 0x283   :  { %1788 = vmatpush1.msra.mxu1 %v1498_v43  ;;  %v1549_v43 = vrot.slane %v5447_v1, %v5420_v56 }
 0x284   :  { %1789 = vmatprep.subr.mxu1 %v1495_v44 }
 0x285   :  { %1790 = vmatpush1.msra.mxu1 %v1494_v45 }
 0x286   :  { %1791 = vmatprep.subr.mxu1 %v1491_v46 }
 0x287   :  { %1792 = vmatpush1.msra.mxu1 %v1490_v47 }
 0x288   :  { %1793 = vmatprep.subr.mxu1 %v1487_v48 }
 0x289   :  { %1794 = vmatpush1.msra.mxu1 %v1486_v49 }
 0x28a   :  { %1795 = vmatprep.subr.mxu1 %v1483_v50 }
 0x28b   :  { %1796 = vmatpush1.msra.mxu1 %v1482_v51 }
 0x28c   :  { %1797 = vmatprep.subr.mxu1 %v1479_v53 }
 0x28d   :  { %1798 = vmatpush1.msra.mxu1 %v1478_v3 }
 0x28e   :  { %1799 = vmatprep.subr.mxu1 %v1475_v54 }
 0x28f   :  { %1800 = vmatpush1.msra.mxu1 %v1474_v28 }
 0x290   :  { %1801 = vmatprep.subr.mxu1 %v1471_v31 }
 0x291   :  { %1802 = vmatpush1.msra.mxu1 %v1470_v55 }
 0x292   :  { %1803 = vmatprep.subr.mxu1 %v1467_v58 }
 0x293   :  { %1804 = vmatpush1.msra.mxu1 %v1466_v59 }
 0x294   :  { %1833 = vmatprep.subr.mxu1 %v1535_v60 }
 0x295   :  { %1834 = vmatpush2.msra.mxu1 %v1534_v61 }
 0x296   :  { %1835 = vmatprep.subr.mxu1 %v1531_v63 }
 0x297   :  { %1836 = vmatpush2.msra.mxu1 %v1530_v0 }
 0x298   :  { %1838 = vmatmul.mubr.f32.vlgmr.msra.gmra.mxu1 %v5429_v7 }
 0x300   :  { %v1626_v4 = vpop.f32.mrf.mxu0 }
 0x301   :  { %v1627_v5 = vadd.f32 %v1626_v4, %v1541_v2 }
 0x302   :  { %v1628_v16 = vpop.f32.mrf.mxu0 }
 0x303   :  { %v1629_v19 = vadd.f32 %v1628_v16, %v1545_v15  ;;  %v2288_v15 = vld [vmem:[#allocation5 + $0x5e0] sm:$0xff] }
 0x304   :  { %v2144_v16 = vld [vmem:[#allocation5 + $0x160] sm:$0xff] }
 0x334   :  { %v1697_v6 = vpop.f32.mrf.mxu1 }
 0x335   :  { %v1698_v8 = vadd.f32 %v1697_v6, %v1627_v5  ;;  %v2161_v5 = vld [vmem:[#allocation5 + $0x1e8] sm:$0xff]  ;;  %v2160_v6 = vld [vmem:[#allocation5 + $0x1e0] sm:$0xff] }
 0x336   :  { %v1699_v17 = vpop.f32.mrf.mxu1  ;;  %2303 = vmatprep.subr.mxu1 %v2161_v5  ;;  %v2101_v5 = vld [vmem:[#allocation5 + $0x8] sm:$0xff] }
 0x337   :  { %1845 = vrot.lane.b32.xlu0 %v1698_v8, %s4816_s30  ;;  %v1700_v21 = vadd.f32 %v1699_v17, %v1629_v19  ;;  %2304 = vmatpush1.msra.mxu1 %v2160_v6  ;;  %v2285_v17 = vld [vmem:[#allocation5 + $0x5c8] sm:$0xff]  ;;  %v2284_v19 = vld [vmem:[#allocation5 + $0x5c0] sm:$0xff] }
 0x338   :  { %v2240_v6 = vld [vmem:[#allocation5 + $0x460] sm:$0xff] }
 0x341   :  { %v1768_v44 = vpop.f32.mrf.mxu0 }
 0x342   :  { %v1769_v46 = vadd.f32 %v1768_v44, %v1549_v43  ;;  %v2124_v43 = vld [vmem:[#allocation5 + $0xc0] sm:$0xff]  ;;  %v2261_v44 = vld [vmem:[#allocation5 + $0x508] sm:$0xff] }
 0x358   :  { %v1839_v45 = vpop.f32.mrf.mxu1 }
 0x359   :  { %v5471_v47 = vadd.f32 %v1839_v45, %v1769_v46  ;;  %v2121_v45 = vld [vmem:[#allocation5 + $0xa8] sm:$0xff]  ;;  %v2260_v46 = vld [vmem:[#allocation5 + $0x500] sm:$0xff] }
 0x3a9   :  { %v1846_v9 = vpop.permute.xlu0 %1845 }
 0x3aa   :  { %vm1848_vm5 = vcmp.lt.f32.partialorder %v1698_v8, %v1846_v9 }
 0x3ab   :  { %v1850_v10 = vsel %vm1848_vm5, 1, %v4815_v52  ;;  %v1849_v7 = vsel %vm1848_vm5, %v1698_v8, %v1846_v9  ;;  %v2156_v9 = vld [vmem:[#allocation5 + $0x1c0] sm:$0xff] }
 0x3ac   :  { %1857 = vrot.lane.b32.xlu1 %v1850_v10, %s4816_s30  ;;  %1852 = vrot.lane.b32.xlu0 %v1849_v7, %s4816_s30  ;;  %v2153_v10 = vld [vmem:[#allocation5 + $0x1a8] sm:$0xff]  ;;  %v2152_v7 = vld [vmem:[#allocation5 + $0x1a0] sm:$0xff] }
 0x41e   :  { %v1858_v11 = vpop.permute.xlu1 %1857  ;;  %v1853_v12 = vpop.permute.xlu0 %1852 }
 0x41f   :  { %vm1855_vm6 = vcmp.lt.f32.partialorder %v1698_v8, %v1853_v12 }
 0x420   :  { %v1859_v13 = vsel %vm1855_vm6, 2, %v1858_v11  ;;  %v1856_v14 = vsel %vm1855_vm6, %v1698_v8, %v1853_v12  ;;  %v2149_v11 = vld [vmem:[#allocation5 + $0x188] sm:$0xff]  ;;  %v2148_v12 = vld [vmem:[#allocation5 + $0x180] sm:$0xff] }
 0x421   :  { %1868 = vrot.lane.b32.xlu0 %v1859_v13, %s4816_s30  ;;  %1861 = vrot.lane.b32.xlu1 %v1856_v14, %s4816_s30  ;;  %v2289_v13 = vld [vmem:[#allocation5 + $0x5e8] sm:$0xff] }
 0x422   :  { %v2145_v14 = vld [vmem:[#allocation5 + $0x168] sm:$0xff]  ;;  %2374 = vmatprep.subr.mxu0 %v2289_v13  ;;  %v2220_v13 = vld [vmem:[#allocation5 + $0x3c0] sm:$0xff] }
 0x423   :  { %2375 = vmatpush1.msra.mxu0 %v2288_v15  ;;  %v2216_v15 = vld [vmem:[#allocation5 + $0x3a0] sm:$0xff] }
 0x424   :  { %2376 = vmatprep.subr.mxu0 %v2285_v17  ;;  %v2212_v17 = vld [vmem:[#allocation5 + $0x380] sm:$0xff] }
 0x425   :  { %2377 = vmatpush1.msra.mxu0 %v2284_v19  ;;  %v2209_v19 = vld [vmem:[#allocation5 + $0x368] sm:$0xff] }
 0x493   :  { %v1862_v22 = vpop.permute.xlu1 %1861  ;;  %v1869_v25 = vpop.permute.xlu0 %1868 }
 0x494   :  { %vm1865_vm7 = vcmp.lt.f32.partialorder %v1700_v21, %v1862_v22  ;;  %vm1864_vm8 = vcmp.lt.f32.partialorder %v1698_v8, %v1862_v22 }
 0x495   :  { %v1867_v23 = vsel %vm1865_vm7, %v1700_v21, %v1862_v22  ;;  %v1866_v24 = vsel %vm1864_vm8, %v1698_v8, %v1862_v22  ;;  %v1871_v26 = vsel %vm1865_vm7, 3, %v1869_v25  ;;  %v1870_v27 = vsel %vm1864_vm8, 3, %v1869_v25  ;;  %v2157_v8 = vld [vmem:[#allocation5 + $0x1c8] sm:$0xff] }
 0x496   :  { %1876 = vrot.lane.b32.xlu0 %v1867_v23, %s4816_s30  ;;  %1874 = vrot.lane.b32.xlu1 %v1866_v24, %s4816_s30  ;;  %v2281_v22 = vld [vmem:[#allocation5 + $0x5a8] sm:$0xff]  ;;  %v2140_v23 = vld [vmem:[#allocation5 + $0x140] sm:$0xff] }
 0x497   :  { %2305 = vmatprep.subr.mxu1 %v2157_v8  ;;  %v2280_v24 = vld [vmem:[#allocation5 + $0x5a0] sm:$0xff]  ;;  %v2277_v25 = vld [vmem:[#allocation5 + $0x588] sm:$0xff]  ;;  %2378 = vmatprep.subr.mxu0 %v2281_v22 }
 0x498   :  { %2306 = vmatpush1.msra.mxu1 %v2156_v9  ;;  %2379 = vmatpush1.msra.mxu0 %v2280_v24  ;;  %v2100_v8 = vld [vmem:[#allocation5] sm:$0xff]  ;;  %v2237_v9 = vld [vmem:[#allocation5 + $0x448] sm:$0xff]  ;;  %v1553_v24 = vrot.slane %v5447_v1, %v5423_v57 }
 0x499   :  { %2307 = vmatprep.subr.mxu1 %v2153_v10  ;;  %2380 = vmatprep.subr.mxu0 %v2277_v25  ;;  %v2225_v10 = vld [vmem:[#allocation5 + $0x3e8] sm:$0xff]  ;;  %v1770_v25 = vpop.f32.mrf.mxu0 }
 0x49a   :  { %1885 = vrot.lane.b32.xlu0 %v1871_v26, %s4816_s30  ;;  %1883 = vrot.lane.b32.xlu1 %v1870_v27, %s4816_s30  ;;  %v2137_v26 = vld [vmem:[#allocation5 + $0x128] sm:$0xff]  ;;  %v2276_v27 = vld [vmem:[#allocation5 + $0x580] sm:$0xff] }
 0x49b   :  { %2308 = vmatpush1.msra.mxu1 %v2152_v7  ;;  %2381 = vmatpush1.msra.mxu0 %v2276_v27  ;;  %v2236_v7 = vld [vmem:[#allocation5 + $0x440] sm:$0xff]  ;;  %v2205_v22 = vld [vmem:[#allocation5 + $0x348] sm:$0xff]  ;;  %v1771_v27 = vadd.f32 %v1770_v25, %v1553_v24 }
 0x49c   :  { %2309 = vmatprep.subr.mxu1 %v2149_v11  ;;  %v2224_v11 = vld [vmem:[#allocation5 + $0x3e0] sm:$0xff]  ;;  %v2165_v25 = vld [vmem:[#allocation5 + $0x208] sm:$0xff] }
 0x49d   :  { %2310 = vmatpush1.msra.mxu1 %v2148_v12  ;;  %v2221_v12 = vld [vmem:[#allocation5 + $0x3c8] sm:$0xff] }
 0x49e   :  { %2311 = vmatprep.subr.mxu1 %v2145_v14  ;;  %v2217_v14 = vld [vmem:[#allocation5 + $0x3a8] sm:$0xff] }
 0x49f   :  { %2312 = vmatpush1.msra.mxu1 %v2144_v16  ;;  %v2213_v16 = vld [vmem:[#allocation5 + $0x388] sm:$0xff] }
 0x508   :  { %v1877_v29 = vpop.permute.xlu0 %1876  ;;  %v1875_v30 = vpop.permute.xlu1 %1874 }
 0x509   :  { %v1879_v32 = vsel %vm1878_vm9, %v1875_v30, %v1877_v29  ;;  %v2136_v29 = vld [vmem:[#allocation5 + $0x120] sm:$0xff]  ;;  %v2273_v30 = vld [vmem:[#allocation5 + $0x568] sm:$0xff] }
 0x50a   :  { %vm1881_vm10 = vcmp.lt.f32.partialorder %v1700_v21, %v1879_v32  ;;  %2382 = vmatprep.subr.mxu0 %v2273_v30  ;;  %v2233_v30 = vld [vmem:[#allocation5 + $0x428] sm:$0xff] }
 0x50b   :  { %v1882_v33 = vsel %vm1881_vm10, %v1700_v21, %v1879_v32  ;;  %v2133_v32 = vld [vmem:[#allocation5 + $0x108] sm:$0xff] }
 0x50c   :  { %v1886_v34 = vpop.permute.xlu0 %1885  ;;  %1890 = vrot.lane.b32.xlu1 %v1882_v33, %s4816_s30  ;;  %v1884_v35 = vpop.permute.xlu1 %1883  ;;  %v2272_v33 = vld [vmem:[#allocation5 + $0x560] sm:$0xff] }
 0x50d   :  { %v1887_v36 = vsel %vm1878_vm9, %v1884_v35, %v1886_v34  ;;  %v2132_v34 = vld [vmem:[#allocation5 + $0x100] sm:$0xff]  ;;  %v2269_v35 = vld [vmem:[#allocation5 + $0x548] sm:$0xff]  ;;  %2383 = vmatpush1.msra.mxu0 %v2272_v33 }
 0x50e   :  { %v1888_v37 = vsel %vm1881_vm10, 4, %v1887_v36  ;;  %v2129_v36 = vld [vmem:[#allocation5 + $0xe8] sm:$0xff]  ;;  %2384 = vmatprep.subr.mxu0 %v2269_v35 }
 0x50f   :  { %1895 = vrot.lane.b32.xlu0 %v1888_v37, %s4816_s30  ;;  %v2268_v37 = vld [vmem:[#allocation5 + $0x540] sm:$0xff]  ;;  %v2197_v35 = vld [vmem:[#allocation5 + $0x308] sm:$0xff] }
 0x510   :  { %2385 = vmatpush1.msra.mxu0 %v2268_v37 }
 0x57e   :  { %v1891_v38 = vpop.permute.xlu1 %1890 }
 0x57f   :  { %vm1893_vm11 = vcmp.lt.f32.partialorder %v1700_v21, %v1891_v38 }
 0x580   :  { %v1894_v39 = vsel %vm1893_vm11, %v1700_v21, %v1891_v38  ;;  %v2128_v38 = vld [vmem:[#allocation5 + $0xe0] sm:$0xff] }
 0x581   :  { %v1896_v40 = vpop.permute.xlu0 %1895  ;;  %1899 = vrot.lane.b32.xlu1 %v1894_v39, %s4816_s30  ;;  %v2265_v39 = vld [vmem:[#allocation5 + $0x528] sm:$0xff] }
 0x582   :  { %v1897_v41 = vsel %vm1893_vm11, 5, %v1896_v40  ;;  %v2125_v40 = vld [vmem:[#allocation5 + $0xc8] sm:$0xff]  ;;  %2386 = vmatprep.subr.mxu0 %v2265_v39  ;;  %v2228_v39 = vld [vmem:[#allocation5 + $0x400] sm:$0xff] }
 0x583   :  { %1906 = vrot.lane.b32.xlu0 %v1897_v41, %s4816_s30  ;;  %v2264_v41 = vld [vmem:[#allocation5 + $0x520] sm:$0xff] }
 0x584   :  { %2387 = vmatpush1.msra.mxu0 %v2264_v41  ;;  %v2297_v41 = vld [vmem:[#allocation5 + $0x628] sm:$0xff] }
 0x585   :  { %2388 = vmatprep.subr.mxu0 %v2261_v44 }
 0x586   :  { %2389 = vmatpush1.msra.mxu0 %v2260_v46  ;;  %v2296_v46 = vld [vmem:[#allocation5 + $0x620] sm:$0xff] }
 0x5f3   :  { %v1900_v48 = vpop.permute.xlu1 %1899 }
 0x5f4   :  { %vm1903_vm12 = vcmp.lt.f32.partialorder %v5471_v47, %v1900_v48  ;;  %vm1902_vm13 = vcmp.lt.f32.partialorder %v1700_v21, %v1900_v48 }
 0x5f5   :  { %v1905_v49 = vsel %vm1903_vm12, %v5471_v47, %v1900_v48  ;;  %v1904_v50 = vsel %vm1902_vm13, %v1700_v21, %v1900_v48  ;;  %v1907_v51 = vpop.permute.xlu0 %1906  ;;  %v2141_v21 = vld [vmem:[#allocation5 + $0x148] sm:$0xff]  ;;  %v2120_v48 = vld [vmem:[#allocation5 + $0xa0] sm:$0xff] }
 0x5f6   :  { %1914 = vrot.lane.b32.xlu0 %v1905_v49, %s4816_s30  ;;  %1912 = vrot.lane.b32.xlu1 %v1904_v50, %s4816_s30  ;;  %v1909_v53 = vsel %vm1903_vm12, 6, %v1907_v51  ;;  %v1908_v3 = vsel %vm1902_vm13, 6, %v1907_v51  ;;  %v2257_v49 = vld [vmem:[#allocation5 + $0x4e8] sm:$0xff]  ;;  %v2256_v51 = vld [vmem:[#allocation5 + $0x4e0] sm:$0xff] }
 0x5f7   :  { %2313 = vmatprep.subr.mxu1 %v2141_v21  ;;  %v2117_v50 = vld [vmem:[#allocation5 + $0x88] sm:$0xff]  ;;  %2390 = vmatprep.subr.mxu0 %v2257_v49  ;;  %v2208_v21 = vld [vmem:[#allocation5 + $0x360] sm:$0xff] }
 0x5f8   :  { %2314 = vmatpush1.msra.mxu1 %v2140_v23  ;;  %2391 = vmatpush1.msra.mxu0 %v2256_v51  ;;  %v2204_v23 = vld [vmem:[#allocation5 + $0x340] sm:$0xff]  ;;  %v2293_v49 = vld [vmem:[#allocation5 + $0x608] sm:$0xff]  ;;  %v4817_v51 = vmov 0.0  }
 0x5f9   :  { %2315 = vmatprep.subr.mxu1 %v2137_v26  ;;  %v1841_v26 = vpop.f32.mrf.mxu1 }
 0x5fa   :  { %1922 = vrot.lane.b32.xlu0 %v1909_v53, %s4816_s30  ;;  %1920 = vrot.lane.b32.xlu1 %v1908_v3, %s4816_s30  ;;  %v2116_v53 = vld [vmem:[#allocation5 + $0x80] sm:$0xff]  ;;  %v2253_v3 = vld [vmem:[#allocation5 + $0x4c8] sm:$0xff]  ;;  %v1842_v33 = vadd.f32 %v1841_v26, %v1771_v27 }
 0x5fb   :  { %2316 = vmatpush1.msra.mxu1 %v2136_v29  ;;  %2392 = vmatprep.subr.mxu0 %v2253_v3  ;;  %v2201_v29 = vld [vmem:[#allocation5 + $0x328] sm:$0xff] }
 0x5fc   :  { %2317 = vmatprep.subr.mxu1 %v2133_v32  ;;  %v2200_v32 = vld [vmem:[#allocation5 + $0x320] sm:$0xff] }
 0x5fd   :  { %2318 = vmatpush1.msra.mxu1 %v2132_v34  ;;  %v2232_v34 = vld [vmem:[#allocation5 + $0x420] sm:$0xff] }
 0x5fe   :  { %2319 = vmatprep.subr.mxu1 %v2129_v36  ;;  %v2229_v36 = vld [vmem:[#allocation5 + $0x408] sm:$0xff] }
 0x5ff   :  { %2320 = vmatpush1.msra.mxu1 %v2128_v38  ;;  %v2196_v38 = vld [vmem:[#allocation5 + $0x300] sm:$0xff] }
 0x600   :  { %2321 = vmatprep.subr.mxu1 %v2125_v40  ;;  %v2193_v40 = vld [vmem:[#allocation5 + $0x2e8] sm:$0xff] }
 0x601   :  { %2322 = vmatpush1.msra.mxu1 %v2124_v43  ;;  %v2192_v43 = vld [vmem:[#allocation5 + $0x2e0] sm:$0xff] }
 0x602   :  { %2323 = vmatprep.subr.mxu1 %v2121_v45 }
 0x603   :  { %2324 = vmatpush1.msra.mxu1 %v2120_v48  ;;  %v2189_v48 = vld [vmem:[#allocation5 + $0x2c8] sm:$0xff] }
 0x604   :  { %2325 = vmatprep.subr.mxu1 %v2117_v50  ;;  %v2292_v50 = vld [vmem:[#allocation5 + $0x600] sm:$0xff] }
 0x605   :  { %2326 = vmatpush1.msra.mxu1 %v2116_v53 }
 0x668   :  { %v1915_v54 = vpop.permute.xlu0 %1914  ;;  %v1913_v28 = vpop.permute.xlu1 %1912 }
 0x669   :  { %v1916_v31 = vsel %vm1878_vm9, %v1913_v28, %v1915_v54  ;;  %v2113_v54 = vld [vmem:[#allocation5 + $0x68] sm:$0xff]  ;;  %v2252_v28 = vld [vmem:[#allocation5 + $0x4c0] sm:$0xff] }
 0x66a   :  { %vm1918_vm14 = vcmp.lt.f32.partialorder %v5471_v47, %v1916_v31  ;;  %2327 = vmatprep.subr.mxu1 %v2113_v54  ;;  %2393 = vmatpush1.msra.mxu0 %v2252_v28 }
 0x66b   :  { %v1919_v55 = vsel %vm1918_vm14, %v5471_v47, %v1916_v31  ;;  %v2112_v31 = vld [vmem:[#allocation5 + $0x60] sm:$0xff] }
 0x66c   :  { %v1923_v58 = vpop.permute.xlu0 %1922  ;;  %1927 = vrot.lane.b32.xlu1 %v1919_v55, %s4816_s30  ;;  %v1921_v59 = vpop.permute.xlu1 %1920  ;;  %v2249_v55 = vld [vmem:[#allocation5 + $0x4a8] sm:$0xff]  ;;  %2328 = vmatpush1.msra.mxu1 %v2112_v31 }
 0x66d   :  { %v1924_v60 = vsel %vm1878_vm9, %v1921_v59, %v1923_v58  ;;  %v2109_v58 = vld [vmem:[#allocation5 + $0x48] sm:$0xff]  ;;  %v2248_v59 = vld [vmem:[#allocation5 + $0x4a0] sm:$0xff]  ;;  %2394 = vmatprep.subr.mxu0 %v2249_v55 }
 0x66e   :  { %v1925_v61 = vsel %vm1918_vm14, 7, %v1924_v60  ;;  %v2108_v60 = vld [vmem:[#allocation5 + $0x40] sm:$0xff]  ;;  %2329 = vmatprep.subr.mxu1 %v2109_v58  ;;  %2395 = vmatpush1.msra.mxu0 %v2248_v59  ;;  %v2185_v58 = vld [vmem:[#allocation5 + $0x2a8] sm:$0xff]  ;;  %v2163_v59 = vld [vmem:[#allocation5 + $0x1f8] sm:$0xff] }
 0x66f   :  { %1932 = vrot.lane.b32.xlu0 %v1925_v61, %s4816_s30  ;;  %v2245_v61 = vld [vmem:[#allocation5 + $0x488] sm:$0xff]  ;;  %2330 = vmatpush1.msra.mxu1 %v2108_v60  ;;  %v2184_v60 = vld [vmem:[#allocation5 + $0x2a0] sm:$0xff] }
 0x670   :  { %2396 = vmatprep.subr.mxu0 %v2245_v61 }
 0x6de   :  { %v1928_v63 = vpop.permute.xlu1 %1927 }
 0x6df   :  { %vm1930_vm15 = vcmp.lt.f32.partialorder %v5471_v47, %v1928_v63 }
 0x6e0   :  { %v1931_v0 = vsel %vm1930_vm15, %v5471_v47, %v1928_v63  ;;  %v2105_v63 = vld [vmem:[#allocation5 + $0x28] sm:$0xff] }
 0x6e1   :  { %v1933_v2 = vpop.permute.xlu0 %1932  ;;  %1936 = vrot.lane.b32.xlu1 %v1931_v0, %s4816_s30  ;;  %v2244_v0 = vld [vmem:[#allocation5 + $0x480] sm:$0xff]  ;;  %2331 = vmatprep.subr.mxu1 %v2105_v63  ;;  %v2181_v63 = vld [vmem:[#allocation5 + $0x288] sm:$0xff] }
 0x6e2   :  { %v1934_v4 = vsel %vm1930_vm15, 8, %v1933_v2  ;;  %v2104_v2 = vld [vmem:[#allocation5 + $0x20] sm:$0xff]  ;;  %2397 = vmatpush1.msra.mxu0 %v2244_v0 }
 0x6e3   :  { %1941 = vrot.lane.b32.xlu0 %v1934_v4, %s4816_s30  ;;  %v2241_v4 = vld [vmem:[#allocation5 + $0x468] sm:$0xff]  ;;  %2332 = vmatpush1.msra.mxu1 %v2104_v2 }
 0x6e4   :  { %2398 = vmatprep.subr.mxu0 %v2241_v4  ;;  %2333 = vmatprep.subr.mxu1 %v2101_v5  ;;  %v2180_v5 = vld [vmem:[#allocation5 + $0x280] sm:$0xff] }
 0x6e5   :  { %2399 = vmatpush1.msra.mxu0 %v2240_v6  ;;  %2334 = vmatpush1.msra.mxu1 %v2100_v8 }
 0x6e6   :  { %2400 = vmatprep.subr.mxu0 %v2237_v9  ;;  %2335 = vmatprep.subr.mxu1 %v2225_v10  ;;  %v2177_v9 = vld [vmem:[#allocation5 + $0x268] sm:$0xff]  ;;  %v2176_v10 = vld [vmem:[#allocation5 + $0x260] sm:$0xff] }
 0x6e7   :  { %2401 = vmatpush1.msra.mxu0 %v2236_v7  ;;  %2336 = vmatpush2.msra.mxu1 %v2224_v11 }
 0x6e8   :  { %2337 = vmatprep.subr.mxu1 %v2221_v12  ;;  %2402 = vmatprep.subr.mxu0 %v2233_v30  ;;  %v2164_v30 = vld [vmem:[#allocation5 + $0x200] sm:$0xff] }
 0x6e9   :  { %2338 = vmatpush2.msra.mxu1 %v2220_v13  ;;  %2403 = vmatpush1.msra.mxu0 %v2232_v34  ;;  %v2173_v13 = vld [vmem:[#allocation5 + $0x248] sm:$0xff] }
 0x6ea   :  { %2339 = vmatprep.subr.mxu1 %v2217_v14  ;;  %2404 = vmatprep.subr.mxu0 %v2229_v36 }
 0x6eb   :  { %2340 = vmatpush2.msra.mxu1 %v2216_v15  ;;  %2405 = vmatpush1.msra.mxu0 %v2228_v39 }
 0x6ec   :  { %2341 = vmatprep.subr.mxu1 %v2213_v16  ;;  %2434 = vmatprep.subr.mxu0 %v2297_v41  ;;  %v2172_v16 = vld [vmem:[#allocation5 + $0x240] sm:$0xff] }
 0x6ed   :  { %2342 = vmatpush2.msra.mxu1 %v2212_v17  ;;  %2435 = vmatpush2.msra.mxu0 %v2296_v46 }
 0x6ee   :  { %2343 = vmatprep.subr.mxu1 %v2209_v19  ;;  %2436 = vmatprep.subr.mxu0 %v2293_v49  ;;  %v2169_v19 = vld [vmem:[#allocation5 + $0x228] sm:$0xff] }
 0x6ef   :  { %2344 = vmatpush2.msra.mxu1 %v2208_v21  ;;  %2437 = vmatpush2.msra.mxu0 %v2292_v50  ;;  %v2168_v21 = vld [vmem:[#allocation5 + $0x220] sm:$0xff] }
 0x6f0   :  { %2345 = vmatprep.subr.mxu1 %v2205_v22  ;;  %2445 = vmatprep.subr.mxu0 %v2163_v59 }
 0x6f1   :  { %2346 = vmatpush2.msra.mxu1 %v2204_v23 }
 0x6f2   :  { %2347 = vmatprep.subr.mxu1 %v2201_v29 }
 0x6f3   :  { %2348 = vmatpush2.msra.mxu1 %v2200_v32  ;;  %v2291_v32 = vld [vmem:[#allocation5 + $0x5f8] sm:$0xff] }
 0x6f4   :  { %2349 = vmatprep.subr.mxu1 %v2197_v35 }
 0x6f5   :  { %2350 = vmatpush2.msra.mxu1 %v2196_v38 }
 0x6f6   :  { %2351 = vmatprep.subr.mxu1 %v2193_v40 }
 0x6f7   :  { %2352 = vmatpush2.msra.mxu1 %v2192_v43 }
 0x6f8   :  { %2353 = vmatprep.subr.mxu1 %v2189_v48 }
 0x753   :  { %v1937_v37 = vpop.permute.xlu1 %1936 }
 0x754   :  { %vm1939_vm3 = vcmp.lt.f32.partialorder %v5471_v47, %v1937_v37  ;;  %vm1940_vm5 = vcmp.lt.f32.partialorder %v1842_v33, %v1937_v37  ;;  %v2188_v47 = vld [vmem:[#allocation5 + $0x2c0] sm:$0xff] }
 0x755   :  { %v1942_v1 = vpop.permute.xlu0 %1941  ;;  %2354 = vmatpush2.msra.mxu1 %v2188_v47 }
 0x756   :  { %v5492_v44 = vsel %vm1939_vm3, 9, %v1942_v1  ;;  %v5494_v45 = vsel %vm1940_vm5, 9, %v1942_v1  ;;  %2355 = vmatprep.subr.mxu1 %v2185_v58 }
 0x757   :  { %vm2000_vm6 = vcmp.eq.s32.totalorder %v5494_v45, 9  ;;  %vm1987_vm7 = vcmp.eq.s32.totalorder %v5492_v44, 7  ;;  %vm1988_vm8 = vcmp.eq.s32.totalorder %v5494_v45, 7  ;;  %vm1981_vm10 = vcmp.eq.s32.totalorder %v5492_v44, 6  ;;  %2356 = vmatpush2.msra.mxu1 %v2184_v60 }
 0x758   :  { %v5501_v53 = vsel %vm2000_vm6, 1.0, %v4817_v51  ;;  %v4014_v3 = vsel %vm1987_vm7, 1.0, %v4817_v51  ;;  %v4015_v54 = vsel %vm1988_vm8, 1.0, %v4817_v51  ;;  %vm1982_vm11 = vcmp.eq.s32.totalorder %v5494_v45, 6  ;;  %2357 = vmatprep.subr.mxu1 %v2181_v63  ;;  %v2159_v63 = vld [vmem:[#allocation5 + $0x1d8] sm:$0xff] }
 0x759   :  { %4020 = vmatprep.mubr.msk.f32.mxu0 %vm731_vm0, %v5501_v53  ;;  %v4198_v28 = vpack.i.bf16 %v4015_v54, %v4014_v3  ;;  %v4012_v31 = vsel %vm1981_vm10, 1.0, %v4817_v51  ;;  %v4013_v55 = vsel %vm1982_vm11, 1.0, %v4817_v51  ;;  %vm1993_vm12 = vcmp.eq.s32.totalorder %v5492_v44, 8  ;;  %2358 = vmatpush2.msra.mxu1 %v2180_v5  ;;  %v2155_v5 = vld [vmem:[#allocation5 + $0x1b8] sm:$0xff] }
 0x75a   :  { %v4193_v61 = vpack.i.bf16 %v4013_v55, %v4012_v31  ;;  %vm1994_vm13 = vcmp.eq.s32.totalorder %v5494_v45, 8  ;;  %vm1963_vm14 = vcmp.eq.s32.totalorder %v5492_v44, 3  ;;  %v4016_v0 = vsel %vm1993_vm12, 1.0, %v4817_v51  ;;  %2359 = vmatprep.subr.mxu1 %v2177_v9  ;;  %v2162_v55 = vld [vmem:[#allocation5 + $0x1f0] sm:$0xff] }
 0x75b   :  { %4199 = vrot.lane.b32.xlu0 %v4198_v28, %s4818_s6  ;;  %v4017_v2 = vsel %vm1994_vm13, 1.0, %v4817_v51  ;;  %vm1964_vm15 = vcmp.eq.s32.totalorder %v5494_v45, 3  ;;  %v4006_v4 = vsel %vm1963_vm14, 1.0, %v4817_v51  ;;  %vm1969_vm3 = vcmp.eq.s32.totalorder %v5492_v44, 4  ;;  %2360 = vmatpush2.msra.mxu1 %v2176_v10  ;;  %v2154_v10 = vld [vmem:[#allocation5 + $0x1b0] sm:$0xff] }
 0x75c   :  { %4194 = vrot.lane.b32.xlu1 %v4193_v61, %s4813_s28  ;;  %v4007_v6 = vsel %vm1964_vm15, 1.0, %v4817_v51  ;;  %vm1970_vm5 = vcmp.eq.s32.totalorder %v5494_v45, 4  ;;  %vm1945_vm6 = vcmp.eq.s32.totalorder %v5492_v44, 0  ;;  %vm1946_vm7 = vcmp.eq.s32.totalorder %v5494_v45, 0  ;;  %s4819_s28 = smov 16   ;;  %2361 = vmatprep.subr.mxu1 %v2173_v13  ;;  %v2151_v13 = vld [vmem:[#allocation5 + $0x198] sm:$0xff] }
 0x75d   :  { %v4208_v8 = vpack.i.bf16 %v4007_v6, %v4006_v4  ;;  %v4203_v7 = vpack.i.bf16 %v4017_v2, %v4016_v0  ;;  %v4000_v11 = vsel %vm1945_vm6, 1.0, %v4817_v51  ;;  %v4001_v12 = vsel %vm1946_vm7, 1.0, %v4817_v51  ;;  %2362 = vmatpush2.msra.mxu1 %v2172_v16  ;;  %v2158_v0 = vld [vmem:[#allocation5 + $0x1d0] sm:$0xff] }
 0x75e   :  { %v4008_v14 = vsel %vm1969_vm3, 1.0, %v4817_v51  ;;  %v4009_v15 = vsel %vm1970_vm5, 1.0, %v4817_v51  ;;  %vm1975_vm8 = vcmp.eq.s32.totalorder %v5492_v44, 5  ;;  %vm1951_vm10 = vcmp.eq.s32.totalorder %v5492_v44, 1  ;;  %2363 = vmatprep.subr.mxu1 %v2169_v19 }
 0x75f   :  { %4209 = vrot.lane.b32.xlu0 %v4208_v8, %s4819_s28  ;;  %vm1952_vm11 = vcmp.eq.s32.totalorder %v5494_v45, 1  ;;  %vm1976_vm12 = vcmp.eq.s32.totalorder %v5494_v45, 5  ;;  %v4218_v17 = vpack.i.bf16 %v4001_v12, %v4000_v11  ;;  %v4213_v22 = vpack.i.bf16 %v4009_v15, %v4008_v14  ;;  %2364 = vmatpush2.msra.mxu1 %v2168_v21  ;;  %v2147_v21 = vld [vmem:[#allocation5 + $0x178] sm:$0xff] }
 0x760   :  { %4204 = vrot.lane.b32.xlu1 %v4203_v7, %s4820_s5  ;;  %v4010_v23 = vsel %vm1975_vm8, 1.0, %v4817_v51  ;;  %v4011_v24 = vsel %vm1976_vm12, 1.0, %v4817_v51  ;;  %vm1999_vm13 = vcmp.eq.s32.totalorder %v5492_v44, 9  ;;  %v4002_v26 = vsel %vm1951_vm10, 1.0, %v4817_v51  ;;  %2365 = vmatprep.subr.mxu1 %v2165_v25 }
 0x761   :  { %v4003_v27 = vsel %vm1952_vm11, 1.0, %v4817_v51  ;;  %v4018_v29 = vsel %vm1999_vm13, 1.0, %v4817_v51  ;;  %vm1957_vm14 = vcmp.eq.s32.totalorder %v5492_v44, 2  ;;  %vm1958_vm15 = vcmp.eq.s32.totalorder %v5494_v45, 2  ;;  %2366 = vmatpush2.msra.mxu1 %v2164_v30  ;;  %v2143_v30 = vld [vmem:[#allocation5 + $0x158] sm:$0xff] }
 0x762   :  { %v4228_v33 = vpack.i.bf16 %v4011_v24, %v4010_v23  ;;  %v4223_v34 = vpack.i.bf16 %v4003_v27, %v4002_v26  ;;  %v4004_v35 = vsel %vm1957_vm14, 1.0, %v4817_v51  ;;  %v4005_v36 = vsel %vm1958_vm15, 1.0, %v4817_v51  ;;  %2516 = vmatprep.subr.mxu1 %v2291_v32  ;;  %v2146_v26 = vld [vmem:[#allocation5 + $0x170] sm:$0xff] }
 0x763   :  { %4219 = vrot.lane.b32.xlu0 %v4218_v17, %s4821_s15  ;;  %v4233_v37 = vpack.i.bf16 %v4005_v36, %v4004_v35  ;;  %vm2075_vm3 = vcmask 392192   ;;  %vm2065_vm5 = vcmask 64512   ;;  %vm2084_vm6 = vcmask 719872   ;;  %v2150_v17 = vld [vmem:[#allocation5 + $0x190] sm:$0xff]  ;;  %v2139_v35 = vld [vmem:[#allocation5 + $0x138] sm:$0xff] }
 0x764   :  { %4214 = vrot.lane.b32.xlu1 %v4213_v22, %s4822_s16  ;;  %vm2011_vm7 = vcmask 195584   ;;  %vm2020_vm8 = vcmask 523264   ;;  %vm2029_vm10 = vcmask 850944   ;;  %vm2047_vm11 = vcmask 457728  }
 0x765   :  { %vm2056_vm12 = vcmask 785408   ;;  %vm2092_vm13 = vcmask 261120   ;;  %vm2095_vm14 = vcmask 916480   ;;  %vm2088_vm15 = vcmask 654336  }
 0x767   :  { %4229 = vrot.lane.b32.xlu0 %v4228_v33, %s4823_s17  ;;  %v2142_v33 = vld [vmem:[#allocation5 + $0x150] sm:$0xff] }
 0x768   :  { %4224 = vrot.lane.b32.xlu1 %v4223_v34, %s4824_s1 }
 0x76c   :  { %4234 = vrot.lane.b32.xlu1 %v4233_v37, %s4825_s18 }
 0x7cd   :  { %v4200_v38 = vpop.permute.xlu0 %4199 }
 0x7ce   :  { %v4202_v39 = vunpack.i.h.bf16 %v4200_v38  ;;  %v4201_v1 = vunpack.i.l.bf16 %v4200_v38  ;;  %v4195_v40 = vpop.permute.xlu1 %4194  ;;  %v2138_v38 = vld [vmem:[#allocation5 + $0x130] sm:$0xff] }
 0x7cf   :  { %v4197_v41 = vunpack.i.h.bf16 %v4195_v40  ;;  %v4196_v43 = vunpack.i.l.bf16 %v4195_v40  ;;  %v2135_v40 = vld [vmem:[#allocation5 + $0x118] sm:$0xff] }
 0x7d0   :  { %v2076_v45 = vsel %vm2075_vm3, %v4201_v1, %v4202_v39  ;;  %vm2090_vm3 = vcmask 982016   ;;  %v2290_v39 = vld [vmem:[#allocation5 + $0x5f0] sm:$0xff] }
 0x7d1   :  { %v5549_v44 = vpop.permute.xlu0 %4209  ;;  %v2066_v46 = vsel %vm2065_vm5, %v4196_v43, %v4197_v41  ;;  %v2287_v41 = vld [vmem:[#allocation5 + $0x5d8] sm:$0xff] }
 0x7d2   :  { %v4205_v48 = vpop.permute.xlu1 %4204  ;;  %v2097_v3 = vsel %vm2011_vm7, %v2066_v46, %v2076_v45  ;;  %v4212_v54 = vunpack.i.h.bf16 %v5549_v44  ;;  %v4211_v58 = vunpack.i.l.bf16 %v5549_v44  ;;  %v2286_v44 = vld [vmem:[#allocation5 + $0x5d0] sm:$0xff]  ;;  %v2131_v45 = vld [vmem:[#allocation5 + $0xf8] sm:$0xff] }
 0x7d3   :  { %v4207_v49 = vunpack.i.h.bf16 %v4205_v48  ;;  %v4206_v47 = vunpack.i.l.bf16 %v4205_v48  ;;  %v2283_v46 = vld [vmem:[#allocation5 + $0x5b8] sm:$0xff]  ;;  %v2130_v48 = vld [vmem:[#allocation5 + $0xf0] sm:$0xff] }
 0x7d4   :  { %v2038_v7 = vsel %vm731_vm0, %v4211_v58, %v4212_v54  ;;  %v2123_v54 = vld [vmem:[#allocation5 + $0xb8] sm:$0xff] }
 0x7d5   :  { %v2085_v50 = vsel %vm2084_vm6, %v4206_v47, %v4207_v49  ;;  %v4220_v51 = vpop.permute.xlu0 %4219  ;;  %v2282_v49 = vld [vmem:[#allocation5 + $0x5b0] sm:$0xff]  ;;  %v2127_v47 = vld [vmem:[#allocation5 + $0xd8] sm:$0xff] }
 0x7d6   :  { %v4215_v28 = vpop.permute.xlu1 %4214  ;;  %v2098_v31 = vsel %vm2020_vm8, %v2097_v3, %v2085_v50  ;;  %v4222_v14 = vunpack.i.h.bf16 %v4220_v51  ;;  %v4221_v15 = vunpack.i.l.bf16 %v4220_v51  ;;  %v2279_v50 = vld [vmem:[#allocation5 + $0x598] sm:$0xff]  ;;  %v2126_v51 = vld [vmem:[#allocation5 + $0xd0] sm:$0xff] }
 0x7d7   :  { %v4217_v59 = vunpack.i.h.bf16 %v4215_v28  ;;  %v4216_v60 = vunpack.i.l.bf16 %v4215_v28  ;;  %v5556_v61 = vsel %vm2029_vm10, %v2098_v31, %v4018_v29  ;;  %v2278_v3 = vld [vmem:[#allocation5 + $0x590] sm:$0xff]  ;;  %v2275_v28 = vld [vmem:[#allocation5 + $0x578] sm:$0xff] }
 0x7d8   :  { %2439 = vmatmul.mubr.f32.vlgmr.msra.gmra.mxu0 %v5556_v61  ;;  %v2012_v32 = vsel %vm2011_vm7, %v4221_v15, %v4222_v14  ;;  %v2122_v31 = vld [vmem:[#allocation5 + $0xb0] sm:$0xff]  ;;  %v2255_v14 = vld [vmem:[#allocation5 + $0x4d8] sm:$0xff] }
 0x7d9   :  { %v2048_v2 = vsel %vm2047_vm11, %v4216_v60, %v4217_v59  ;;  %2446 = vmatpush1.msra.mxu0 %v2162_v55  ;;  %v4230_v4 = vpop.permute.xlu0 %4229  ;;  %v2274_v55 = vld [vmem:[#allocation5 + $0x570] sm:$0xff] }
 0x7da   :  { %2447 = vmatprep.subr.mxu0 %v2159_v63  ;;  %v4225_v6 = vpop.permute.xlu1 %4224  ;;  %v4232_v8 = vunpack.i.h.bf16 %v4230_v4  ;;  %v4231_v9 = vunpack.i.l.bf16 %v4230_v4  ;;  %v2093_v19 = vsel %vm2092_vm13, %v2038_v7, %v2048_v2  ;;  %v2118_v59 = vld [vmem:[#allocation5 + $0x90] sm:$0xff]  ;;  %v2115_v63 = vld [vmem:[#allocation5 + $0x78] sm:$0xff] }
 0x7db   :  { %2448 = vmatpush1.msra.mxu0 %v2158_v0  ;;  %v4227_v11 = vunpack.i.h.bf16 %v4225_v6  ;;  %v4226_v12 = vunpack.i.l.bf16 %v4225_v6  ;;  %v2270_v60 = vld [vmem:[#allocation5 + $0x550] sm:$0xff]  ;;  %v2267_v0 = vld [vmem:[#allocation5 + $0x538] sm:$0xff] }
 0x7dc   :  { %v2057_v16 = vsel %vm2056_vm12, %v4231_v9, %v4232_v8  ;;  %2449 = vmatprep.subr.mxu0 %v2155_v5  ;;  %v2114_v2 = vld [vmem:[#allocation5 + $0x70] sm:$0xff]  ;;  %v2111_v5 = vld [vmem:[#allocation5 + $0x58] sm:$0xff] }
 0x7dd   :  { %2450 = vmatpush1.msra.mxu0 %v2154_v10  ;;  %v2094_v22 = vsel %vm1225_vm2, %v2093_v19, %v2057_v16  ;;  %v2021_v23 = vsel %vm2020_vm8, %v4226_v12, %v4227_v11  ;;  %v2266_v4 = vld [vmem:[#allocation5 + $0x530] sm:$0xff]  ;;  %v2263_v6 = vld [vmem:[#allocation5 + $0x518] sm:$0xff] }
 0x7de   :  { %2451 = vmatprep.subr.mxu0 %v2151_v13  ;;  %v4235_v24 = vpop.permute.xlu1 %4234  ;;  %v2096_v25 = vsel %vm2095_vm14, %v2094_v22, %v4196_v43  ;;  %v2087_v36 = vsel %vm1878_vm9, %v2012_v32, %v2021_v23  ;;  %v2134_v43 = vld [vmem:[#allocation5 + $0x110] sm:$0xff]  ;;  %v2107_v10 = vld [vmem:[#allocation5 + $0x38] sm:$0xff] }
 0x7df   :  { %2452 = vmatpush1.msra.mxu0 %v2150_v17  ;;  %v4237_v27 = vunpack.i.h.bf16 %v4235_v24  ;;  %v4236_v29 = vunpack.i.l.bf16 %v4235_v24  ;;  %2367 = vmatprep.mubr.f32.mxu1 %v2096_v25  ;;  %v2110_v8 = vld [vmem:[#allocation5 + $0x50] sm:$0xff]  ;;  %v2259_v7 = vld [vmem:[#allocation5 + $0x4f8] sm:$0xff] }
 0x7e0   :  { %2453 = vmatprep.subr.mxu0 %v2147_v21  ;;  %2509 = vmatprep.mubr.f32.mxu0 %v2096_v25  ;;  %v2262_v9 = vld [vmem:[#allocation5 + $0x510] sm:$0xff]  ;;  %v2103_v13 = vld [vmem:[#allocation5 + $0x18] sm:$0xff] }
 0x7e1   :  { %v2030_v34 = vsel %vm2029_vm10, %v4236_v29, %v4237_v27  ;;  %2454 = vmatpush1.msra.mxu0 %v2146_v26  ;;  %v2106_v11 = vld [vmem:[#allocation5 + $0x30] sm:$0xff]  ;;  %v2227_v17 = vld [vmem:[#allocation5 + $0x3f8] sm:$0xff] }
 0x7e2   :  { %2455 = vmatprep.subr.mxu0 %v2143_v30  ;;  %v2089_v37 = vsel %vm2088_vm15, %v2087_v36, %v2030_v34  ;;  %v2258_v12 = vld [vmem:[#allocation5 + $0x4f0] sm:$0xff]  ;;  %v2251_v19 = vld [vmem:[#allocation5 + $0x4b8] sm:$0xff] }
 0x7e3   :  { %2456 = vmatpush1.msra.mxu0 %v2142_v33  ;;  %v5567_v1 = vsel %vm2090_vm3, %v2089_v37, %v4211_v58  ;;  %v2119_v58 = vld [vmem:[#allocation5 + $0x98] sm:$0xff]  ;;  %v2102_v15 = vld [vmem:[#allocation5 + $0x10] sm:$0xff] }
 0x7e4   :  { %2457 = vmatprep.subr.mxu0 %v2139_v35  ;;  %2368 = vmatmul.mubr.f32.vlgmr.msra.gmra.mxu1 %v5567_v1  ;;  %v2254_v16 = vld [vmem:[#allocation5 + $0x4d0] sm:$0xff]  ;;  %v2223_v23 = vld [vmem:[#allocation5 + $0x3d8] sm:$0xff] }
 0x7e5   :  { %2458 = vmatpush1.msra.mxu0 %v2138_v38  ;;  %2517 = vmatpush1.msra.mxu1 %v2290_v39  ;;  %v2226_v21 = vld [vmem:[#allocation5 + $0x3f0] sm:$0xff]  ;;  %v2247_v24 = vld [vmem:[#allocation5 + $0x498] sm:$0xff] }
 0x7e6   :  { %2459 = vmatprep.subr.mxu0 %v2135_v40  ;;  %2518 = vmatprep.subr.mxu1 %v2287_v41  ;;  %v2250_v22 = vld [vmem:[#allocation5 + $0x4b0] sm:$0xff]  ;;  %v2219_v27 = vld [vmem:[#allocation5 + $0x3b8] sm:$0xff] }
 0x7e7   :  { %4021 = vmatprep.mubr.msk.f32.mxu1 %vm731_vm0, %v5501_v53  ;;  %2460 = vmatpush1.msra.mxu0 %v2134_v43  ;;  %v2271_v53 = vld [vmem:[#allocation5 + $0x558] sm:$0xff]  ;;  %v2222_v25 = vld [vmem:[#allocation5 + $0x3d0] sm:$0xff] }
 0x7e8   :  { %2519 = vmatpush1.msra.mxu1 %v2286_v44  ;;  %2461 = vmatprep.subr.mxu0 %v2131_v45  ;;  %v2246_v26 = vld [vmem:[#allocation5 + $0x490] sm:$0xff]  ;;  %v2243_v29 = vld [vmem:[#allocation5 + $0x478] sm:$0xff] }
 0x7e9   :  { %2520 = vmatprep.subr.mxu1 %v2283_v46  ;;  %2462 = vmatpush1.msra.mxu0 %v2130_v48  ;;  %v2218_v30 = vld [vmem:[#allocation5 + $0x3b0] sm:$0xff]  ;;  %v2215_v33 = vld [vmem:[#allocation5 + $0x398] sm:$0xff] }
 0x7ea   :  { %2521 = vmatpush1.msra.mxu1 %v2282_v49  ;;  %2463 = vmatprep.subr.mxu0 %v2127_v47  ;;  %v2242_v32 = vld [vmem:[#allocation5 + $0x470] sm:$0xff]  ;;  %v2239_v34 = vld [vmem:[#allocation5 + $0x458] sm:$0xff] }
 0x7eb   :  { %2522 = vmatprep.subr.mxu1 %v2279_v50  ;;  %2464 = vmatpush1.msra.mxu0 %v2126_v51  ;;  %v2214_v35 = vld [vmem:[#allocation5 + $0x390] sm:$0xff]  ;;  %v2211_v37 = vld [vmem:[#allocation5 + $0x378] sm:$0xff] }
 0x7ec   :  { %2523 = vmatpush1.msra.mxu1 %v2278_v3  ;;  %2465 = vmatprep.subr.mxu0 %v2123_v54  ;;  %v2238_v36 = vld [vmem:[#allocation5 + $0x450] sm:$0xff]  ;;  %v2235_v38 = vld [vmem:[#allocation5 + $0x438] sm:$0xff] }
 0x7ed   :  { %2524 = vmatprep.subr.mxu1 %v2275_v28  ;;  %2466 = vmatpush1.msra.mxu0 %v2122_v31  ;;  %v2210_v39 = vld [vmem:[#allocation5 + $0x370] sm:$0xff]  ;;  %v2207_v41 = vld [vmem:[#allocation5 + $0x358] sm:$0xff] }
 0x7ee   :  { %2525 = vmatpush1.msra.mxu1 %v2274_v55  ;;  %2467 = vmatprep.subr.mxu0 %v2119_v58  ;;  %v2234_v40 = vld [vmem:[#allocation5 + $0x430] sm:$0xff]  ;;  %v2231_v43 = vld [vmem:[#allocation5 + $0x418] sm:$0xff] }
 0x7ef   :  { %2526 = vmatprep.subr.mxu1 %v2271_v53  ;;  %2468 = vmatpush1.msra.mxu0 %v2118_v59  ;;  %v2206_v44 = vld [vmem:[#allocation5 + $0x350] sm:$0xff]  ;;  %v2203_v46 = vld [vmem:[#allocation5 + $0x338] sm:$0xff] }
 0x7f0   :  { %2527 = vmatpush1.msra.mxu1 %v2270_v60  ;;  %2469 = vmatprep.subr.mxu0 %v2115_v63  ;;  %v2230_v45 = vld [vmem:[#allocation5 + $0x410] sm:$0xff]  ;;  %v2299_v48 = vld [vmem:[#allocation5 + $0x638] sm:$0xff]  ;;  %v4468_v60 = vld [vmem:[#allocation7 + $0x64] ss:$8 sps:$4 sm:$0xff]  }
 0x7f1   :  { %2528 = vmatprep.subr.mxu1 %v2267_v0  ;;  %2470 = vmatpush1.msra.mxu0 %v2114_v2  ;;  %v2202_v49 = vld [vmem:[#allocation5 + $0x330] sm:$0xff]  ;;  %v2199_v50 = vld [vmem:[#allocation5 + $0x318] sm:$0xff] }
 0x7f2   :  { %2529 = vmatpush1.msra.mxu1 %v2266_v4  ;;  %2471 = vmatprep.subr.mxu0 %v2111_v5  ;;  %v2298_v47 = vld [vmem:[#allocation5 + $0x630] sm:$0xff]  ;;  %v2295_v51 = vld [vmem:[#allocation5 + $0x618] sm:$0xff]  ;;  %v4466_v4 = vld [vmem:[#allocation7 + $0x60] ss:$8 sps:$4 sm:$0xff]  }
 0x7f3   :  { %2530 = vmatprep.subr.mxu1 %v2263_v6  ;;  %2472 = vmatpush1.msra.mxu0 %v2110_v8  ;;  %v2198_v3 = vld [vmem:[#allocation5 + $0x310] sm:$0xff]  ;;  %v2195_v28 = vld [vmem:[#allocation5 + $0x2f8] sm:$0xff] }
 0x7f4   :  { %2531 = vmatpush1.msra.mxu1 %v2262_v9  ;;  %2473 = vmatprep.subr.mxu0 %v2107_v10  ;;  %v2294_v54 = vld [vmem:[#allocation5 + $0x610] sm:$0xff]  ;;  %v2191_v58 = vld [vmem:[#allocation5 + $0x2d8] sm:$0xff] }
 0x7f5   :  { %2532 = vmatprep.subr.mxu1 %v2259_v7  ;;  %2474 = vmatpush1.msra.mxu0 %v2106_v11  ;;  %v2194_v31 = vld [vmem:[#allocation5 + $0x2f0] sm:$0xff]  ;;  %v2187_v63 = vld [vmem:[#allocation5 + $0x2b8] sm:$0xff]  ;;  %v4474_v11 = vld [vmem:[#allocation7 + $0x44] ss:$8 sps:$4 sm:$0xff]  }
 0x7f6   :  { %2533 = vmatpush1.msra.mxu1 %v2258_v12  ;;  %2475 = vmatprep.subr.mxu0 %v2103_v13  ;;  %v4465_v55 = vld [vmem:[#allocation7 + $0x74] ss:$8 sps:$4 sm:$0xff]   ;;  %v4463_v53 = vld [vmem:[#allocation7 + $0x70] ss:$8 sps:$4 sm:$0xff]  }
 0x7f7   :  { %2534 = vmatprep.subr.mxu1 %v2255_v14  ;;  %2476 = vmatpush1.msra.mxu0 %v2102_v15  ;;  %v2190_v59 = vld [vmem:[#allocation5 + $0x2d0] sm:$0xff]  ;;  %v2183_v2 = vld [vmem:[#allocation5 + $0x298] sm:$0xff]  ;;  %v4472_v15 = vld [vmem:[#allocation7 + $0x40] ss:$8 sps:$4 sm:$0xff]  }
 0x7f8   :  { %2535 = vmatpush1.msra.mxu1 %v2254_v16  ;;  %2477 = vmatprep.subr.mxu0 %v2227_v17  ;;  %v2186_v0 = vld [vmem:[#allocation5 + $0x2b0] sm:$0xff]  ;;  %v2179_v8 = vld [vmem:[#allocation5 + $0x278] sm:$0xff] }
 0x7f9   :  { %2536 = vmatprep.subr.mxu1 %v2251_v19  ;;  %2478 = vmatpush2.msra.mxu0 %v2226_v21  ;;  %v2182_v5 = vld [vmem:[#allocation5 + $0x290] sm:$0xff]  ;;  %v2175_v10 = vld [vmem:[#allocation5 + $0x258] sm:$0xff]  ;;  %v4480_v21 = vld [vmem:[#allocation7 + $0x24] ss:$8 sps:$4 sm:$0xff]  }
 0x7fa   :  { %2537 = vmatpush1.msra.mxu1 %v2250_v22  ;;  %2479 = vmatprep.subr.mxu0 %v2223_v23  ;;  %v4471_v6 = vld [vmem:[#allocation7 + $0x54] ss:$8 sps:$4 sm:$0xff]   ;;  %v4475_v19 = vld [vmem:[#allocation7 + $0x30] ss:$8 sps:$4 sm:$0xff]   ;;  %v4478_v22 = vld [vmem:[#allocation7 + $0x20] ss:$8 sps:$4 sm:$0xff]  }
 0x7fb   :  { %2538 = vmatprep.subr.mxu1 %v2247_v24  ;;  %2480 = vmatpush2.msra.mxu0 %v2222_v25  ;;  %v2178_v9 = vld [vmem:[#allocation5 + $0x270] sm:$0xff]  ;;  %v2171_v12 = vld [vmem:[#allocation5 + $0x238] sm:$0xff]  ;;  %v4486_v25 = vld [vmem:[#allocation7 + $0x4] ss:$8 sps:$4 sm:$0xff]  }
 0x7fc   :  { %2539 = vmatpush1.msra.mxu1 %v2246_v26  ;;  %2481 = vmatprep.subr.mxu0 %v2219_v27  ;;  %v2174_v7 = vld [vmem:[#allocation5 + $0x250] sm:$0xff]  ;;  %v2167_v14 = vld [vmem:[#allocation5 + $0x218] sm:$0xff]  ;;  %v4484_v26 = vld [vmem:[#allocation7] ss:$8 sps:$4 sm:$0xff]  }
 0x7fd   :  { %2540 = vmatprep.subr.mxu1 %v2243_v29  ;;  %2482 = vmatpush2.msra.mxu0 %v2218_v30  ;;  %v2170_v13 = vld [vmem:[#allocation5 + $0x230] sm:$0xff]  ;;  %v4492_v30 = vld [vmem:[#allocation7 + $0xe4] ss:$8 sps:$4 sm:$0xff]  }
 0x7fe   :  { %2541 = vmatpush1.msra.mxu1 %v2242_v32  ;;  %2483 = vmatprep.subr.mxu0 %v2215_v33  ;;  %v2166_v16 = vld [vmem:[#allocation5 + $0x210] sm:$0xff] }
 0x7ff   :  { %2542 = vmatprep.subr.mxu1 %v2239_v34  ;;  %2484 = vmatpush2.msra.mxu0 %v2214_v35  ;;  %v4477_v17 = vld [vmem:[#allocation7 + $0x34] ss:$8 sps:$4 sm:$0xff]   ;;  %v4481_v24 = vld [vmem:[#allocation7 + $0x10] ss:$8 sps:$4 sm:$0xff]   ;;  %v4516_v35 = vld [vmem:[#allocation7 + $0x164] ss:$8 sps:$4 sm:$0xff]  }
 0x800   :  { %2543 = vmatpush1.msra.mxu1 %v2238_v36  ;;  %2485 = vmatprep.subr.mxu0 %v2211_v37  ;;  %v4483_v23 = vld [vmem:[#allocation7 + $0x14] ss:$8 sps:$4 sm:$0xff]   ;;  %v4487_v29 = vld [vmem:[#allocation7 + $0xf0] ss:$8 sps:$4 sm:$0xff]   ;;  %v4514_v37 = vld [vmem:[#allocation7 + $0x160] ss:$8 sps:$4 sm:$0xff]  }
 0x801   :  { %2544 = vmatprep.subr.mxu1 %v2235_v38  ;;  %2486 = vmatpush2.msra.mxu0 %v2210_v39  ;;  %v4489_v27 = vld [vmem:[#allocation7 + $0xf4] ss:$8 sps:$4 sm:$0xff]   ;;  %v4511_v33 = vld [vmem:[#allocation7 + $0x170] ss:$8 sps:$4 sm:$0xff]   ;;  %v4498_v38 = vld [vmem:[#allocation7 + $0xc4] ss:$8 sps:$4 sm:$0xff]  }
 0x802   :  { %2545 = vmatpush1.msra.mxu1 %v2234_v40  ;;  %2487 = vmatprep.subr.mxu0 %v2207_v41  ;;  %v4495_v32 = vld [vmem:[#allocation7 + $0xd4] ss:$8 sps:$4 sm:$0xff]   ;;  %v4493_v36 = vld [vmem:[#allocation7 + $0xd0] ss:$8 sps:$4 sm:$0xff]   ;;  %v4496_v40 = vld [vmem:[#allocation7 + $0xc0] ss:$8 sps:$4 sm:$0xff]  }
 0x803   :  { %2546 = vmatprep.subr.mxu1 %v2231_v43  ;;  %2488 = vmatpush2.msra.mxu0 %v2206_v44  ;;  %v4513_v34 = vld [vmem:[#allocation7 + $0x174] ss:$8 sps:$4 sm:$0xff]   ;;  %v4517_v41 = vld [vmem:[#allocation7 + $0x150] ss:$8 sps:$4 sm:$0xff]  }
 0x804   :  { %2547 = vmatpush1.msra.mxu1 %v2230_v45  ;;  %2489 = vmatprep.subr.mxu0 %v2203_v46  ;;  %v4519_v39 = vld [vmem:[#allocation7 + $0x154] ss:$8 sps:$4 sm:$0xff]   ;;  %v4499_v44 = vld [vmem:[#allocation7 + $0xb0] ss:$8 sps:$4 sm:$0xff]   ;;  %v4504_v45 = vld [vmem:[#allocation7 + $0xa4] ss:$8 sps:$4 sm:$0xff]  }
 0x805   :  { %2576 = vmatprep.subr.mxu1 %v2299_v48  ;;  %2490 = vmatpush2.msra.mxu0 %v2202_v49  ;;  %v4501_v43 = vld [vmem:[#allocation7 + $0xb4] ss:$8 sps:$4 sm:$0xff]   ;;  %v4502_v46 = vld [vmem:[#allocation7 + $0xa0] ss:$8 sps:$4 sm:$0xff]   ;;  %v4505_v49 = vld [vmem:[#allocation7 + $0x90] ss:$8 sps:$4 sm:$0xff]  }
 0x806   :  { %2577 = vmatpush2.msra.mxu1 %v2298_v47  ;;  %2491 = vmatprep.subr.mxu0 %v2199_v50  ;;  %v4507_v48 = vld [vmem:[#allocation7 + $0x94] ss:$8 sps:$4 sm:$0xff]   ;;  %v4510_v47 = vld [vmem:[#allocation7 + $0x84] ss:$8 sps:$4 sm:$0xff]   ;;  %v4508_v50 = vld [vmem:[#allocation7 + $0x80] ss:$8 sps:$4 sm:$0xff]  }
 0x807   :  { %2578 = vmatprep.subr.mxu1 %v2295_v51  ;;  %2492 = vmatpush2.msra.mxu0 %v2198_v3  ;;  %v4520_v51 = vld [vmem:[#allocation7 + $0x140] ss:$8 sps:$4 sm:$0xff]   ;;  %v4522_v3 = vld [vmem:[#allocation7 + $0x144] ss:$8 sps:$4 sm:$0xff]  }
 0x808   :  { %2579 = vmatpush2.msra.mxu1 %v2294_v54  ;;  %2493 = vmatprep.subr.mxu0 %v2195_v28  ;;  %v4525_v54 = vld [vmem:[#allocation7 + $0x134] ss:$8 sps:$4 sm:$0xff]   ;;  %v4523_v28 = vld [vmem:[#allocation7 + $0x130] ss:$8 sps:$4 sm:$0xff]  }
 0x809   :  { %2581 = vmatmul.mubr.f32.vlgmr.msra.gmra.mxu1 %v5556_v61  ;;  %2494 = vmatpush2.msra.mxu0 %v2194_v31  ;;  %v4469_v61 = vld [vmem:[#allocation7 + $0x50] ss:$8 sps:$4 sm:$0xff]   ;;  %v4528_v31 = vld [vmem:[#allocation7 + $0x124] ss:$8 sps:$4 sm:$0xff]  }
 0x80a   :  { %2495 = vmatprep.subr.mxu0 %v2191_v58  ;;  %2916 = vmatprep.subr.bf16.mxu1 %v4465_v55  ;;  %v4526_v55 = vld [vmem:[#allocation7 + $0x120] ss:$8 sps:$4 sm:$0xff]   ;;  %v4531_v58 = vld [vmem:[#allocation7 + $0x114] ss:$8 sps:$4 sm:$0xff]  }
 0x80b   :  { %2496 = vmatpush2.msra.mxu0 %v2190_v59  ;;  %2917 = vmatpush1.bf16.msra.mxu1 %v4463_v53  ;;  %v4529_v53 = vld [vmem:[#allocation7 + $0x110] ss:$8 sps:$4 sm:$0xff]   ;;  %v4532_v59 = vld [vmem:[#allocation7 + $0x100] ss:$8 sps:$4 sm:$0xff]  }
 0x80c   :  { %2497 = vmatprep.subr.mxu0 %v2187_v63  ;;  %2918 = vmatprep.subr.bf16.mxu1 %v4468_v60  ;;  %v4534_v60 = vld [vmem:[#allocation7 + $0x104] ss:$8 sps:$4 sm:$0xff]  }
 0x80d   :  { %2498 = vmatpush2.msra.mxu0 %v2186_v0  ;;  %v4537_v63 = vld [vmem:[#allocation7 + $0x184] ss:$8 sps:$4 sm:$0xff]   ;;  %v4535_v0 = vld [vmem:[#allocation7 + $0x180] ss:$8 sps:$4 sm:$0xff]  }
 0x80e   :  { %2499 = vmatprep.subr.mxu0 %v2183_v2 }
 0x80f   :  { %2500 = vmatpush2.msra.mxu0 %v2182_v5  ;;  %2919 = vmatpush1.bf16.msra.mxu1 %v4466_v4 }
 0x810   :  { %2501 = vmatprep.subr.mxu0 %v2179_v8  ;;  %2920 = vmatprep.subr.bf16.mxu1 %v4471_v6 }
 0x811   :  { %2502 = vmatpush2.msra.mxu0 %v2178_v9 }
 0x812   :  { %2503 = vmatprep.subr.mxu0 %v2175_v10 }
 0x813   :  { %2504 = vmatpush2.msra.mxu0 %v2174_v7  ;;  %2921 = vmatpush1.bf16.msra.mxu1 %v4469_v61 }
 0x814   :  { %2505 = vmatprep.subr.mxu0 %v2171_v12  ;;  %2922 = vmatprep.subr.bf16.mxu1 %v4474_v11 }
 0x815   :  { %2506 = vmatpush2.msra.mxu0 %v2170_v13 }
 0x816   :  { %2507 = vmatprep.subr.mxu0 %v2167_v14 }
 0x817   :  { %2508 = vmatpush2.msra.mxu0 %v2166_v16  ;;  %2923 = vmatpush1.bf16.msra.mxu1 %v4472_v15 }
 0x818   :  { %2510 = vmatmul.mubr.f32.vlgmr.msra.gmra.mxu0 %v5567_v1  ;;  %2924 = vmatprep.subr.bf16.mxu1 %v4477_v17  ;;  %v4490_v1 = vld [vmem:[#allocation7 + $0xe0] ss:$8 sps:$4 sm:$0xff]  }
 0x819   :  { %2957 = vmatprep.subr.bf16.mxu0 %v4513_v34  ;;  %v4558_v34 = vld [vmem:[%s5905_s10 + $0xe4] ss:$28 sps:$4 sm:$0xff]  }
 0x81a   :  { %2958 = vmatpush1.bf16.msra.mxu0 %v4511_v33  ;;  %v4553_v33 = vld [vmem:[%s5905_s10 + $0x120] ss:$28 sps:$4 sm:$0xff]  }
 0x81b   :  { %2925 = vmatpush1.bf16.msra.mxu1 %v4475_v19  ;;  %2959 = vmatprep.subr.bf16.mxu0 %v4516_v35  ;;  %v4561_v35 = vld [vmem:[%s5905_s10 + $0xec] ss:$28 sps:$4 sm:$0xff]  }
 0x81c   :  { %2926 = vmatprep.subr.bf16.mxu1 %v4480_v21 }
 0x81e   :  { %2960 = vmatpush1.bf16.msra.mxu0 %v4514_v37  ;;  %v4559_v37 = vld [vmem:[%s5905_s10 + $0xe8] ss:$28 sps:$4 sm:$0xff]  }
 0x81f   :  { %2927 = vmatpush1.bf16.msra.mxu1 %v4478_v22  ;;  %2961 = vmatprep.subr.bf16.mxu0 %v4519_v39  ;;  %v4538_v22 = vld [vmem:[%s5905_s10 + $0x188] ss:$28 sps:$4 sm:$0xff]   ;;  %v4567_v39 = vld [vmem:[%s5905_s10 + $0xb4] ss:$28 sps:$4 sm:$0xff]  }
 0x820   :  { %2928 = vmatprep.subr.bf16.mxu1 %v4483_v23  ;;  %v4540_v23 = vld [vmem:[%s5905_s10 + $0x18c] ss:$28 sps:$4 sm:$0xff]  }
 0x822   :  { %2962 = vmatpush1.bf16.msra.mxu0 %v4517_v41  ;;  %v4565_v41 = vld [vmem:[%s5905_s10 + $0xb0] ss:$28 sps:$4 sm:$0xff]  }
 0x823   :  { %2929 = vmatpush1.bf16.msra.mxu1 %v4481_v24  ;;  %2963 = vmatprep.subr.bf16.mxu0 %v4522_v3  ;;  %v4541_v24 = vld [vmem:[%s5905_s10 + $0x190] ss:$28 sps:$4 sm:$0xff]  }
 0x824   :  { %2930 = vmatprep.subr.bf16.mxu1 %v4486_v25  ;;  %v4543_v25 = vld [vmem:[%s5905_s10 + $0x194] ss:$28 sps:$4 sm:$0xff]   ;;  %v4585_v3 = vld [vmem:[%s5905_s10 + $0xc] ss:$28 sps:$4 sm:$0xff]  }
 0x826   :  { %2964 = vmatpush1.bf16.msra.mxu0 %v4520_v51  ;;  %v4582_v51 = vld [vmem:[%s5905_s10 + $0x4] ss:$28 sps:$4 sm:$0xff]  }
 0x827   :  { %2931 = vmatpush1.bf16.msra.mxu1 %v4484_v26  ;;  %2965 = vmatprep.subr.bf16.mxu0 %v4525_v54  ;;  %v4549_v26 = vld [vmem:[%s5905_s10 + $0x15c] ss:$28 sps:$4 sm:$0xff]   ;;  %v3098_v54 = vld [vmem:[%s5905_s10 + $0x2a0] sm:$0xff] }
 0x828   :  { %2932 = vmatprep.subr.bf16.mxu1 %v4489_v27  ;;  %v4544_v27 = vld [vmem:[%s5905_s10 + $0x150] ss:$28 sps:$4 sm:$0xff]  }
 0x82a   :  { %2966 = vmatpush1.bf16.msra.mxu0 %v4523_v28  ;;  %v3099_v28 = vld [vmem:[%s5905_s10 + $0x2a8] sm:$0xff] }
 0x82b   :  { %2933 = vmatpush2.bf16.msra.mxu1 %v4487_v29  ;;  %2967 = vmatprep.subr.bf16.mxu0 %v4528_v31  ;;  %v4547_v29 = vld [vmem:[%s5905_s10 + $0x158] ss:$28 sps:$4 sm:$0xff]   ;;  %v4580_v31 = vld [vmem:[%s5905_s10] ss:$28 sps:$4 sm:$0xff]  }
 0x82c   :  { %2934 = vmatprep.subr.bf16.mxu1 %v4492_v30  ;;  %v4552_v30 = vld [vmem:[%s5905_s10 + $0x11c] ss:$28 sps:$4 sm:$0xff]  }
 0x82e   :  { %2968 = vmatpush1.bf16.msra.mxu0 %v4526_v55  ;;  %v4583_v55 = vld [vmem:[%s5905_s10 + $0x8] ss:$28 sps:$4 sm:$0xff]  }
 0x82f   :  { %2935 = vmatpush2.bf16.msra.mxu1 %v4490_v1  ;;  %2969 = vmatprep.subr.bf16.mxu0 %v4531_v58  ;;  %v4555_v1 = vld [vmem:[%s5905_s10 + $0x124] ss:$28 sps:$4 sm:$0xff]   ;;  %v4158_v58 = vcombine.high %v3098_v54, %v3098_v54 }
 0x830   :  { %2936 = vmatprep.subr.bf16.mxu1 %v4495_v32  ;;  %v4550_v32 = vld [vmem:[%s5905_s10 + $0x118] ss:$28 sps:$4 sm:$0xff]  }
 0x832   :  { %2970 = vmatpush1.bf16.msra.mxu0 %v4529_v53  ;;  %v4157_v53 = vcombine.low %v3098_v54, %v3098_v54  ;;  %v4630_v54 = vld [vmem:[%s5905_s10 + $0xb8] ss:$28 sps:$4 sm:$0xff]  }
 0x833   :  { %2937 = vmatpush2.bf16.msra.mxu1 %v4493_v36  ;;  %2971 = vmatprep.subr.bf16.mxu0 %v4534_v60  ;;  %v4556_v36 = vld [vmem:[%s5905_s10 + $0xe0] ss:$28 sps:$4 sm:$0xff]   ;;  %v4159_v60 = vcombine.low %v3099_v28, %v3099_v28 }
 0x834   :  { %2938 = vmatprep.subr.bf16.mxu1 %v4498_v38  ;;  %v4564_v38 = vld [vmem:[%s5905_s10 + $0xac] ss:$28 sps:$4 sm:$0xff]  }
 0x836   :  { %2972 = vmatpush1.bf16.msra.mxu0 %v4532_v59  ;;  %v4160_v59 = vcombine.high %v3099_v28, %v3099_v28  ;;  %v4633_v28 = vld [vmem:[%s5905_s10 + $0xc0] ss:$28 sps:$4 sm:$0xff]  }
 0x837   :  { %2939 = vmatpush2.bf16.msra.mxu1 %v4496_v40  ;;  %2987 = vmatprep.subr.bf16.mxu0 %v4537_v63  ;;  %v4562_v40 = vld [vmem:[%s5905_s10 + $0xa8] ss:$28 sps:$4 sm:$0xff]   ;;  %v3593_v63 = vsel %vm1229_vm1, %v4157_v53, 0 }
 0x838   :  { %2940 = vmatprep.subr.bf16.mxu1 %v4501_v43  ;;  %v4570_v43 = vld [vmem:[%s5905_s10 + $0x74] ss:$28 sps:$4 sm:$0xff]   ;;  %v4640_v53 = vld [vmem:[%s5905_s10 + $0x4c] ss:$28 sps:$4 sm:$0xff]  }
 0x83a   :  { %2988 = vmatpush2.bf16.msra.mxu0 %v4535_v0  ;;  %v4592_v0 = vld [vmem:[%s5905_s10 + $0x26c] ss:$28 sps:$4 sm:$0xff]  }
 0x83b   :  { %2941 = vmatpush2.bf16.msra.mxu1 %v4499_v44  ;;  %3613 = vmatprep.subr.bf16.mxu0 %v4540_v23  ;;  %v4573_v44 = vld [vmem:[%s5905_s10 + $0x7c] ss:$28 sps:$4 sm:$0xff]  }
 0x83c   :  { %2942 = vmatprep.subr.bf16.mxu1 %v4504_v45  ;;  %v4568_v45 = vld [vmem:[%s5905_s10 + $0x70] ss:$28 sps:$4 sm:$0xff]  }
 0x83f   :  { %2943 = vmatpush2.bf16.msra.mxu1 %v4502_v46  ;;  %v4571_v46 = vld [vmem:[%s5905_s10 + $0x78] ss:$28 sps:$4 sm:$0xff]  }
 0x840   :  { %2944 = vmatprep.subr.bf16.mxu1 %v4507_v48  ;;  %v4576_v48 = vld [vmem:[%s5905_s10 + $0x3c] ss:$28 sps:$4 sm:$0xff]  }
 0x843   :  { %2945 = vmatpush2.bf16.msra.mxu1 %v4505_v49  ;;  %v4579_v49 = vld [vmem:[%s5905_s10 + $0x44] ss:$28 sps:$4 sm:$0xff]  }
 0x844   :  { %2946 = vmatprep.subr.bf16.mxu1 %v4510_v47  ;;  %v4574_v47 = vld [vmem:[%s5905_s10 + $0x38] ss:$28 sps:$4 sm:$0xff]  }
 0x847   :  { %2947 = vmatpush2.bf16.msra.mxu1 %v4508_v50  ;;  %v4577_v50 = vld [vmem:[%s5905_s10 + $0x40] ss:$28 sps:$4 sm:$0xff]  }
 0x848   :  { %3654 = vmatprep.subr.bf16.mxu1 %v4543_v25  ;;  %v2651_v25 = vld [vmem:[%s5904_s9] sm:$0x3] }
 0x898   :  { %v2440_v2 = vpop.f32.mrf.mxu0 }
 0x89a   :  { %v2442_v5 = vpop.f32.mrf.mxu0 }
 0x8a4   :  { %v2369_v4 = vpop.f32.mrf.mxu1 }
 0x8a5   :  { %v2441_v6 = vadd.f32 %v2440_v2, %v2369_v4  ;;  %v3599_v2 = vsel %vm1229_vm1, %v4159_v60, 0  ;;  %v4595_v4 = vld [vmem:[%s5905_s10 + $0x274] ss:$28 sps:$4 sm:$0xff]  }
 0x8a6   :  { %v2371_v8 = vpop.f32.mrf.mxu1  ;;  %v4641_v60 = vld [vmem:[%s5905_s10 + $0x50] ss:$28 sps:$4 sm:$0xff]  }
 0x8a7   :  { %v2443_v9 = vadd.f32 %v2442_v5, %v2371_v8  ;;  %v2597_v7 = vpack.c.bf16 %v2441_v6, %v2441_v6  ;;  %v4590_v5 = vld [vmem:[%s5905_s10 + $0x268] ss:$28 sps:$4 sm:$0xff]   ;;  %v4598_v8 = vld [vmem:[%s5905_s10 + $0x234] ss:$28 sps:$4 sm:$0xff]  }
 0x8a9   :  { %v2591_v10 = vcombine.low %v2441_v6, %v2443_v9  ;;  %v2598_v61 = vpack.c.bf16 %v2443_v9, %v2443_v9  ;;  %v4593_v6 = vld [vmem:[%s5905_s10 + $0x270] ss:$28 sps:$4 sm:$0xff]   ;;  %v4601_v9 = vld [vmem:[%s5905_s10 + $0x23c] ss:$28 sps:$4 sm:$0xff]  }
 0x8ab   :  { %2595 = vst [vmem:[#allocation11] sm:$0xff] %v2591_v10  ;;  %2948 = vmatprep.mubr.bf16.mxu1 %v2598_v61  ;;  %v4596_v10 = vld [vmem:[%s5905_s10 + $0x230] ss:$28 sps:$4 sm:$0xff]   ;;  %v4599_v61 = vld [vmem:[%s5905_s10 + $0x238] ss:$28 sps:$4 sm:$0xff]  }
 0x8ac   :  { %2949 = vmatmul.mubr.bf16.vlgmr.msra.gmra.mxu1 %v2597_v7  ;;  %v4602_v7 = vld [vmem:[%s5905_s10 + $0x1f8] ss:$28 sps:$4 sm:$0xff]  }
 0x8ad   :  { %3655 = vmatpush1.bf16.msra.mxu1 %v4541_v24 }
 0x8ae   :  { %3656 = vmatprep.subr.bf16.mxu1 %v4549_v26  ;;  %v2660_v26 = vrot.slane %v2651_v25, %v5320_v20 }
 0x8b1   :  { %3657 = vmatpush1.bf16.msra.mxu1 %v4547_v29 }
 0x8b2   :  { %3658 = vmatprep.subr.bf16.mxu1 %v4555_v1 }
 0x8b5   :  { %3659 = vmatpush1.bf16.msra.mxu1 %v4553_v33 }
 0x8b6   :  { %3660 = vmatprep.subr.bf16.mxu1 %v4561_v35 }
 0x8b9   :  { %3661 = vmatpush1.bf16.msra.mxu1 %v4559_v37 }
 0x8ba   :  { %3662 = vmatprep.subr.bf16.mxu1 %v4567_v39  ;;  %v4614_v39 = vld [vmem:[%s5905_s10 + $0x198] ss:$28 sps:$4 sm:$0xff]  }
 0x8bd   :  { %3663 = vmatpush1.bf16.msra.mxu1 %v4565_v41 }
 0x8be   :  { %3664 = vmatprep.subr.bf16.mxu1 %v4573_v44  ;;  %v4618_v44 = vld [vmem:[%s5905_s10 + $0x160] ss:$28 sps:$4 sm:$0xff]  }
 0x8c1   :  { %3665 = vmatpush1.bf16.msra.mxu1 %v4571_v46  ;;  %v4624_v46 = vld [vmem:[%s5905_s10 + $0x12c] ss:$28 sps:$4 sm:$0xff]  }
 0x8c2   :  { %3666 = vmatprep.subr.bf16.mxu1 %v4579_v49  ;;  %v4625_v49 = vld [vmem:[%s5905_s10 + $0x130] ss:$28 sps:$4 sm:$0xff]  }
 0x8c5   :  { %3667 = vmatpush1.bf16.msra.mxu1 %v4577_v50  ;;  %v4626_v50 = vld [vmem:[%s5905_s10 + $0xf0] ss:$28 sps:$4 sm:$0xff]  }
 0x8c6   :  { %3668 = vmatprep.subr.bf16.mxu1 %v4585_v3  ;;  %v4632_v3 = vld [vmem:[%s5905_s10 + $0xbc] ss:$28 sps:$4 sm:$0xff]  }
 0x8c9   :  { %v2582_v11 = vpop.f32.mrf.mxu1  ;;  %3669 = vmatpush1.bf16.msra.mxu1 %v4583_v55  ;;  %v4634_v55 = vld [vmem:[%s5905_s10 + $0x80] ss:$28 sps:$4 sm:$0xff]  }
 0x8ca   :  { %4166 = vmatprep.subr.msk.bf16.mxu1 %vm1229_vm1, %v4160_v59  ;;  %v4638_v59 = vld [vmem:[%s5905_s10 + $0x48] ss:$28 sps:$4 sm:$0xff]  }
 0x8cb   :  { %v2584_v13 = vpop.f32.mrf.mxu1 }
 0x8cd   :  { %3677 = vmatpush2.bf16.msra.mxu1 %v3599_v2  ;;  %v4642_v2 = vld [vmem:[%s5905_s10 + $0x10] ss:$28 sps:$4 sm:$0xff]  }
 0x8ce   :  { %3678 = vmatprep.subr.bf16.mxu1 %v4595_v4  ;;  %v4645_v4 = vld [vmem:[%s5905_s10 + $0x18] ss:$28 sps:$4 sm:$0xff]  }
 0x8d1   :  { %3679 = vmatpush2.bf16.msra.mxu1 %v4593_v6 }
 0x8d2   :  { %3680 = vmatprep.subr.bf16.mxu1 %v4601_v9 }
 0x8d5   :  { %3681 = vmatpush2.bf16.msra.mxu1 %v4599_v61  ;;  %v4651_v61 = vld [vmem:[%s5905_s10 + $0x27c] ss:$28 sps:$4 sm:$0xff]  }
 0x8d8   :  { %v2511_v12 = vpop.f32.mrf.mxu0 }
 0x8d9   :  { %v2583_v14 = vadd.f32 %v2582_v11, %v2511_v12  ;;  %v4604_v11 = vld [vmem:[%s5905_s10 + $0x1fc] ss:$28 sps:$4 sm:$0xff]  }
 0x8da   :  { %v2513_v15 = vpop.f32.mrf.mxu0  ;;  %v4605_v12 = vld [vmem:[%s5905_s10 + $0x200] ss:$28 sps:$4 sm:$0xff]  }
 0x8db   :  { %v2585_v16 = vadd.f32 %v2584_v13, %v2513_v15  ;;  %v2599_v21 = vpack.c.bf16 %v2583_v14, %v2583_v14  ;;  %v4607_v13 = vld [vmem:[%s5905_s10 + $0x204] ss:$28 sps:$4 sm:$0xff]  }
 0x8dc   :  { %3682 = vmatprep.subr.bf16.mxu1 %v4607_v13  ;;  %v4608_v15 = vld [vmem:[%s5905_s10 + $0x1c0] ss:$28 sps:$4 sm:$0xff]  }
 0x8dd   :  { %v2592_v17 = vcombine.low %v2583_v14, %v2585_v16  ;;  %v2600_v19 = vpack.c.bf16 %v2585_v16, %v2585_v16  ;;  %v4610_v14 = vld [vmem:[%s5905_s10 + $0x1c4] ss:$28 sps:$4 sm:$0xff]   ;;  %v4613_v16 = vld [vmem:[%s5905_s10 + $0x1cc] ss:$28 sps:$4 sm:$0xff]   ;;  %3683 = vmatpush2.bf16.msra.mxu1 %v4605_v12 }
 0x8de   :  { %3684 = vmatprep.subr.bf16.mxu1 %v4613_v16  ;;  %v4655_v12 = vld [vmem:[%s5905_s10 + $0x244] ss:$28 sps:$4 sm:$0xff]  }
 0x8df   :  { %4072 = vmatprep.mubr.msk.bf16.mxu0 %vm731_vm0, %v2600_v19  ;;  %2596 = vst.msk [vmem:[#allocation11 + $0x8] sm:$0xff] %vm5432_vm4, %v2592_v17  ;;  %v4611_v17 = vld [vmem:[%s5905_s10 + $0x1c8] ss:$28 sps:$4 sm:$0xff]   ;;  %v4616_v19 = vld [vmem:[%s5905_s10 + $0x19c] ss:$28 sps:$4 sm:$0xff]  }
 0x8e0   :  { %2990 = vmatmul.mubr.bf16.vlgmr.msra.gmra.mxu0 %v2599_v21  ;;  %v4653_v13 = vld [vmem:[%s5905_s10 + $0x240] ss:$28 sps:$4 sm:$0xff]   ;;  %v4657_v16 = vld [vmem:[%s5905_s10 + $0x208] ss:$28 sps:$4 sm:$0xff]  }
 0x8e1   :  { %3614 = vmatpush1.bf16.msra.mxu0 %v4538_v22  ;;  %3685 = vmatpush2.bf16.msra.mxu1 %v4611_v17  ;;  %v4660_v17 = vld [vmem:[%s5905_s10 + $0x210] ss:$28 sps:$4 sm:$0xff]  }
 0x8e2   :  { %3615 = vmatprep.subr.bf16.mxu0 %v4546_v62  ;;  %3736 = vmatprep.subr.bf16.mxu1 %v4815_v52  ;;  %v2656_v62 = vrot.slane %v2651_v25, %v5314_v18 }
 0x8e5   :  { %3616 = vmatpush1.bf16.msra.mxu0 %v4544_v27 }
 0x8e6   :  { %3617 = vmatprep.subr.bf16.mxu0 %v4552_v30 }
 0x8e9   :  { %3618 = vmatpush1.bf16.msra.mxu0 %v4550_v32 }
 0x8ea   :  { %3619 = vmatprep.subr.bf16.mxu0 %v4558_v34 }
 0x8ed   :  { %3620 = vmatpush1.bf16.msra.mxu0 %v4556_v36 }
 0x8ee   :  { %3621 = vmatprep.subr.bf16.mxu0 %v4564_v38 }
 0x8f1   :  { %3622 = vmatpush1.bf16.msra.mxu0 %v4562_v40  ;;  %v4617_v40 = vld [vmem:[%s5905_s10 + $0x1a0] ss:$28 sps:$4 sm:$0xff]  }
 0x8f2   :  { %3623 = vmatprep.subr.bf16.mxu0 %v4570_v43  ;;  %v4620_v43 = vld [vmem:[%s5905_s10 + $0x164] ss:$28 sps:$4 sm:$0xff]  }
 0x8f5   :  { %3624 = vmatpush1.bf16.msra.mxu0 %v4568_v45  ;;  %v4621_v45 = vld [vmem:[%s5905_s10 + $0x168] ss:$28 sps:$4 sm:$0xff]  }
 0x8f6   :  { %3625 = vmatprep.subr.bf16.mxu0 %v4576_v48  ;;  %v4622_v48 = vld [vmem:[%s5905_s10 + $0x128] ss:$28 sps:$4 sm:$0xff]  }
 0x8f9   :  { %3626 = vmatpush1.bf16.msra.mxu0 %v4574_v47  ;;  %v4628_v47 = vld [vmem:[%s5905_s10 + $0xf4] ss:$28 sps:$4 sm:$0xff]  }
 0x8fa   :  { %3627 = vmatprep.subr.bf16.mxu0 %v4582_v51  ;;  %v4629_v51 = vld [vmem:[%s5905_s10 + $0xf8] ss:$28 sps:$4 sm:$0xff]  }
 0x8fd   :  { %3628 = vmatpush1.bf16.msra.mxu0 %v4580_v31  ;;  %v4636_v31 = vld [vmem:[%s5905_s10 + $0x84] ss:$28 sps:$4 sm:$0xff]  }
 0x8fe   :  { %4164 = vmatprep.subr.msk.bf16.mxu0 %vm1229_vm1, %v4158_v58  ;;  %v4637_v58 = vld [vmem:[%s5905_s10 + $0x88] ss:$28 sps:$4 sm:$0xff]  }
 0x901   :  { %3636 = vmatpush2.bf16.msra.mxu0 %v3593_v63  ;;  %v4644_v63 = vld [vmem:[%s5905_s10 + $0x14] ss:$28 sps:$4 sm:$0xff]  }
 0x902   :  { %3637 = vmatprep.subr.bf16.mxu0 %v4592_v0  ;;  %v3100_v0 = vld [vmem:[%s5905_s10 + $0x2b0] sm:$0xff] }
 0x903   :  { %v4161_v6 = vcombine.low %v3100_v0, %v3100_v0 }
 0x905   :  { %3638 = vmatpush2.bf16.msra.mxu0 %v4590_v5  ;;  %v4162_v5 = vcombine.high %v3100_v0, %v3100_v0  ;;  %v3605_v9 = vsel %vm1229_vm1, %v4161_v6, 0 }
 0x906   :  { %3639 = vmatprep.subr.bf16.mxu0 %v4598_v8  ;;  %v4648_v8 = vld [vmem:[%s5905_s10 + $0x2b8] ss:$0 sps:$4 sm:$0xff]  }
 0x909   :  { %3640 = vmatpush2.bf16.msra.mxu0 %v4596_v10  ;;  %v3611_v10 = vsel %vm1229_vm1, %v4648_v8, 0 }
 0x90a   :  { %3641 = vmatprep.subr.bf16.mxu0 %v4604_v11  ;;  %v4652_v11 = vld [vmem:[%s5905_s10 + $0x280] ss:$28 sps:$4 sm:$0xff]  }
 0x90d   :  { %3642 = vmatpush2.bf16.msra.mxu0 %v4602_v7  ;;  %v4649_v7 = vld [vmem:[%s5905_s10 + $0x278] ss:$28 sps:$4 sm:$0xff]  }
 0x90e   :  { %3643 = vmatprep.subr.bf16.mxu0 %v4610_v14  ;;  %v4656_v14 = vld [vmem:[%s5905_s10 + $0x248] ss:$28 sps:$4 sm:$0xff]  }
 0x911   :  { %3644 = vmatpush2.bf16.msra.mxu0 %v4608_v15  ;;  %v4659_v15 = vld [vmem:[%s5905_s10 + $0x20c] ss:$28 sps:$4 sm:$0xff]  }
 0x912   :  { %3695 = vmatprep.subr.bf16.mxu0 %v4616_v19  ;;  %v4663_v19 = vld [vmem:[%s5905_s10 + $0x1d4] ss:$28 sps:$4 sm:$0xff]  }
 0x96c   :  { %v2950_v21 = vpop.f32.mrf.mxu1 }
 0x96d   :  { %v2951_v27 = vadd.f32 %v2950_v21, %v2656_v62  ;;  %v4661_v21 = vld [vmem:[%s5905_s10 + $0x1d0] ss:$28 sps:$4 sm:$0xff]  }
 0x96e   :  { %v2952_v22 = vpop.f32.mrf.mxu1 }
 0x96f   :  { %v2953_v30 = vadd.f32 %v2952_v22, %v2660_v26  ;;  %v4664_v22 = vld [vmem:[%s5905_s10 + $0x1d8] ss:$28 sps:$4 sm:$0xff]  }
 0x970   :  { %v2954_v23 = vpop.f32.mrf.mxu1 }
 0x972   :  { %v2955_v24 = vpop.f32.mrf.mxu1 }
 0x9a0   :  { %v2991_v29 = vpop.f32.mrf.mxu0 }
 0x9a1   :  { %v2992_v1 = vadd.f32 %v2991_v29, %v2951_v27 }
 0x9a2   :  { %v2993_v32 = vpop.f32.mrf.mxu0 }
 0x9a3   :  { %v2994_v33 = vadd.f32 %v2993_v32, %v2953_v30  ;;  %v2998_v34 = vmax.f32 %v2992_v1, 0.0 }
 0x9a4   :  { %v2995_v35 = vpop.f32.mrf.mxu0 }
 0x9a5   :  { %v2999_v36 = vmax.f32 %v2994_v33, 0.0  ;;  %v5746_v41 = vpack.c.bf16 %v2998_v34, %v2998_v34 }
 0x9a6   :  { %v2996_v37 = vpop.f32.mrf.mxu0 }
 0x9a7   :  { %v3001_v38 = vpack.c.bf16 %v2999_v36, %v2999_v36 }
 0x9a9   :  { %4165 = vmatprep.mubr.msk.bf16.mxu0 %vm1225_vm2, %v3001_v38  ;;  %4167 = vmatprep.mubr.msk.bf16.mxu1 %vm1225_vm2, %v3001_v38 }
 0x9aa   :  { %3646 = vmatmul.mubr.bf16.vlgmr.msra.gmra.mxu0 %v5746_v41  ;;  %3687 = vmatmul.mubr.bf16.vlgmr.msra.gmra.mxu1 %v5746_v41 }
 0x9ab   :  { %3696 = vmatpush1.bf16.msra.mxu0 %v4614_v39  ;;  %3737 = vmatpush1.bf16.msra.mxu1 %v4617_v40 }
 0x9ac   :  { %4169 = vmatprep.mubr.msk.bf16.mxu0 %vm1225_vm2, %v3001_v38  ;;  %4170 = vmatprep.mubr.msk.bf16.mxu1 %vm1225_vm2, %v3001_v38 }
 0x9ad   :  { %3697 = vmatprep.subr.bf16.mxu0 %v4620_v43  ;;  %3738 = vmatprep.subr.bf16.mxu1 %v4815_v52 }
 0x9af   :  { %3698 = vmatpush1.bf16.msra.mxu0 %v4618_v44  ;;  %3739 = vmatpush1.bf16.msra.mxu1 %v4621_v45 }
 0x9b0   :  { %3699 = vmatprep.subr.bf16.mxu0 %v4624_v46  ;;  %3740 = vmatprep.subr.bf16.mxu1 %v4815_v52 }
 0x9b3   :  { %3700 = vmatpush1.bf16.msra.mxu0 %v4622_v48  ;;  %3741 = vmatpush1.bf16.msra.mxu1 %v4625_v49 }
 0x9b4   :  { %3701 = vmatprep.subr.bf16.mxu0 %v4628_v47  ;;  %3742 = vmatprep.subr.bf16.mxu1 %v4815_v52 }
 0x9b7   :  { %3702 = vmatpush1.bf16.msra.mxu0 %v4626_v50  ;;  %3743 = vmatpush1.bf16.msra.mxu1 %v4629_v51 }
 0x9b8   :  { %3703 = vmatprep.subr.bf16.mxu0 %v4632_v3  ;;  %3744 = vmatprep.subr.bf16.mxu1 %v4815_v52 }
 0x9bb   :  { %3704 = vmatpush1.bf16.msra.mxu0 %v4630_v54  ;;  %3745 = vmatpush1.bf16.msra.mxu1 %v4633_v28 }
 0x9bc   :  { %3705 = vmatprep.subr.bf16.mxu0 %v4636_v31  ;;  %3746 = vmatprep.subr.bf16.mxu1 %v4815_v52 }
 0x9bf   :  { %3706 = vmatpush1.bf16.msra.mxu0 %v4634_v55  ;;  %3747 = vmatpush1.bf16.msra.mxu1 %v4637_v58 }
 0x9c0   :  { %3707 = vmatprep.subr.bf16.mxu0 %v4640_v53  ;;  %3748 = vmatprep.subr.bf16.mxu1 %v4815_v52 }
 0x9c3   :  { %3708 = vmatpush1.bf16.msra.mxu0 %v4638_v59  ;;  %3749 = vmatpush1.bf16.msra.mxu1 %v4641_v60 }
 0x9c4   :  { %3709 = vmatprep.subr.bf16.mxu0 %v4644_v63  ;;  %3750 = vmatprep.subr.bf16.mxu1 %v4815_v52 }
 0x9c7   :  { %3710 = vmatpush1.bf16.msra.mxu0 %v4642_v2  ;;  %3751 = vmatpush1.bf16.msra.mxu1 %v4645_v4 }
 0x9c8   :  { %4168 = vmatprep.subr.msk.bf16.mxu0 %vm1229_vm1, %v4162_v5  ;;  %3758 = vmatprep.subr.bf16.mxu1 %v4815_v52 }
 0x9cb   :  { %3718 = vmatpush2.bf16.msra.mxu0 %v3605_v9  ;;  %3759 = vmatpush2.bf16.msra.mxu1 %v3611_v10 }
 0x9cc   :  { %3719 = vmatprep.subr.bf16.mxu0 %v4651_v61  ;;  %3760 = vmatprep.subr.bf16.mxu1 %v4815_v52 }
 0x9cf   :  { %3720 = vmatpush2.bf16.msra.mxu0 %v4649_v7  ;;  %3761 = vmatpush2.bf16.msra.mxu1 %v4652_v11 }
 0x9d0   :  { %3721 = vmatprep.subr.bf16.mxu0 %v4655_v12  ;;  %3762 = vmatprep.subr.bf16.mxu1 %v4815_v52 }
 0x9d3   :  { %3722 = vmatpush2.bf16.msra.mxu0 %v4653_v13  ;;  %3763 = vmatpush2.bf16.msra.mxu1 %v4656_v14 }
 0x9d4   :  { %3723 = vmatprep.subr.bf16.mxu0 %v4659_v15  ;;  %3764 = vmatprep.subr.bf16.mxu1 %v4815_v52 }
 0x9d7   :  { %3724 = vmatpush2.bf16.msra.mxu0 %v4657_v16  ;;  %3765 = vmatpush2.bf16.msra.mxu1 %v4660_v17 }
 0x9d8   :  { %3725 = vmatprep.subr.bf16.mxu0 %v4663_v19  ;;  %3766 = vmatprep.subr.bf16.mxu1 %v4815_v52 }
 0x9db   :  { %3726 = vmatpush2.bf16.msra.mxu0 %v4661_v21  ;;  %3767 = vmatpush2.bf16.msra.mxu1 %v4664_v22 }
 0x9de   :  { %3728 = vmatmul.mubr.bf16.vlgmr.msra.gmra.mxu0 %v5746_v41  ;;  %3769 = vmatmul.mubr.bf16.vlgmr.msra.gmra.mxu1 %v5746_v41 }
 0x9df   :  { %4750 = shalt.err (!%p4747_p5)
}
 0x9e0   :  { %3819 = dma.vmem_to_hbm [thread:$0]  %s3817_s20, 256, %s5908_s13, [#allocation10]  }
 0x9e1   :  { %s4827_s22 = smov [#allocation11]  }
 0x9e2   :  { %s3826_s23 = sshll.u32 %s4827_s22, 4  ;;  %s3827_s23 = int_to_ptr.vmem [resolvable:$true] %s3826_s23 }
 0x9e3   :  { %s4759_s9 = scalar_lea.vmem %s3827_s23, 256  ;;  %p4764_p7 = scmp.lt.s32.totalorder %s3827_s23, %s3827_s23 }
 0x9e4   :  { %p4760_p6 = scmp.ne.s32.totalorder %s3827_s23, %s4759_s9  ;;  %p4765_p8 = scmp.lt.s32.totalorder %s4759_s9, %s4759_s9 }
 0x9e6   :  { %p4766_p9 = por %p4765_p8, %p4764_p7 }
 0x9e8   :  { %p4767_p10 = pnand %p4766_p9, %p4760_p6 }
 0x9ea   :  { %4770 = shalt.err (!%p4767_p10)
}
 0x9eb   :  { %3829 = dma.vmem_to_hbm [thread:$0]  %s3827_s23, 256, %s5909_s14, [#allocation10]   ;;  %v3102_v52 = vld [vmem:[%s5906_s11] sm:$0x7f]  ;;  %v3122_v41 = vsub.s32 4, %v5031_v42  ;;  %v3130_v43 = vsub.s32 6, %v5031_v42 }
 0x9ec   :  { %v3107_v23 = vrot.slane %v3102_v52, %v5314_v18  ;;  %v3115_v24 = vrot.slane %v3102_v52, %v5420_v56  ;;  %v3111_v25 = vrot.slane %v3102_v52, %v5320_v20  ;;  %v3119_v62 = vrot.slane %v3102_v52, %v5423_v57  ;;  %s4828_s11 = smov [#allocation8]  }
 0x9ed   :  { %v3126_v44 = vsub.s32 5, %v5031_v42  ;;  %v3123_v45 = vrot.slane %v3102_v52, %v3122_v41  ;;  %v3131_v46 = vrot.slane %v3102_v52, %v3130_v43  ;;  %vm3798_vm0 = vcmask 125952   ;;  %s3806_s13 = sshll.u32 %s4828_s11, 4  ;;  %s3807_s13 = int_to_ptr.vmem [resolvable:$true] %s3806_s13 }
 0x9ee   :  { %s4779_s14 = scalar_lea.vmem %s3807_s13, 448  ;;  %p4784_p12 = scmp.lt.s32.totalorder %s3807_s13, %s3807_s13 }
 0x9ef   :  { %v3127_v48 = vrot.slane %v3102_v52, %v3126_v44  ;;  %p4780_p11 = scmp.ne.s32.totalorder %s3807_s13, %s4779_s14  ;;  %p4785_p13 = scmp.lt.s32.totalorder %s4779_s14, %s4779_s14 }
 0x9f1   :  { %p4786_p0 = por %p4785_p13, %p4784_p12 }
 0x9f3   :  { %p4787_p1 = pnand %p4786_p0, %p4780_p11 }
 0xa6a   :  { %v3647_v26 = vpop.f32.mrf.mxu0  ;;  %v3688_v27 = vpop.f32.mrf.mxu1 }
 0xa6b   :  { %v3648_v29 = vadd.f32 %v3647_v26, %v3107_v23  ;;  %v3689_v30 = vadd.f32 %v3688_v27, %v3115_v24 }
 0xa6c   :  { %v3649_v1 = vpop.f32.mrf.mxu0  ;;  %v3690_v32 = vpop.f32.mrf.mxu1 }
 0xa6d   :  { %4665 = vtanh.f32 %v3648_v29  ;;  %v3650_v33 = vadd.f32 %v3649_v1, %v3111_v25  ;;  %v3691_v34 = vadd.f32 %v3690_v32, %v3119_v62 }
 0xa6e   :  { %4667 = vtanh.f32 %v3689_v30  ;;  %v3651_v35 = vpop.f32.mrf.mxu0  ;;  %v3692_v36 = vpop.f32.mrf.mxu1 }
 0xa6f   :  { %4669 = vtanh.f32 %v3650_v33 }
 0xa70   :  { %4671 = vtanh.f32 %v3691_v34  ;;  %v3652_v18 = vpop.f32.mrf.mxu0  ;;  %v3693_v56 = vpop.f32.mrf.mxu1 }
 0xa7a   :  { %v4666_v37 = vpop.eup %4665 }
 0xa7b   :  { %v4668_v20 = vpop.eup %4667 }
 0xa7c   :  { %v4670_v38 = vpop.eup %4669 }
 0xa7d   :  { %v4672_v57 = vpop.eup %4671  ;;  %v3789_v39 = vcombine.low %v4666_v37, %v4670_v38 }
 0xa7e   :  { %v3790_v40 = vcombine.low %v4668_v20, %v4672_v57 }
 0xa7f   :  { %3795 = vst [vmem:[#allocation8] sm:$0xff] %v3789_v39 }
 0xa80   :  { %3796 = vst [vmem:[#allocation8 + $0x8] sm:$0xff] %v3790_v40 }
 0xa9e   :  { %v3729_v49 = vpop.f32.mrf.mxu0  ;;  %v3770_v47 = vpop.f32.mrf.mxu1 }
 0xa9f   :  { %v3730_v50 = vadd.f32 %v3729_v49, %v3123_v45  ;;  %v3771_v51 = vadd.f32 %v3770_v47, %v3131_v46 }
 0xaa0   :  { %v3731_v3 = vpop.f32.mrf.mxu0  ;;  %v3772_v54 = vpop.f32.mrf.mxu1 }
 0xaa1   :  { %4673 = vtanh.f32 %v3730_v50  ;;  %v3732_v28 = vadd.f32 %v3731_v3, %v3127_v48 }
 0xaa2   :  { %4675 = vtanh.f32 %v3771_v51  ;;  %v3733_v31 = vpop.f32.mrf.mxu0  ;;  %v3773_v55 = vpop.f32.mrf.mxu1 }
 0xaa3   :  { %4677 = vtanh.f32 %v3732_v28 }
 0xaa4   :  { %v3734_v58 = vpop.f32.mrf.mxu0  ;;  %v3774_v53 = vpop.f32.mrf.mxu1 }
 0xaae   :  { %v4674_v59 = vpop.eup %4673 }
 0xaaf   :  { %v4676_v42 = vpop.eup %4675 }
 0xab0   :  { %v4678_v60 = vpop.eup %4677  ;;  %3799 = vst.msk [vmem:[#allocation8 + $0x18] sm:$0xf] %vm3798_vm0, %v4676_v42 }
 0xab1   :  { %v3791_v63 = vcombine.low %v4674_v59, %v4678_v60 }
 0xab3   :  { %3797 = vst [vmem:[#allocation8 + $0x10] sm:$0xff] %v3791_v63 }
 0xab4   :  { %4790 = shalt.err (!%p4787_p1)
}
 0xab5   :  { %3809 = dma.vmem_to_hbm [thread:$0]  %s3807_s13, 448, %s5907_s12, [#allocation4]  }
 0xab6   :  { %4803 = dma.done.wait [#allocation4], 448  }
 0xab7   :  { %4804 = vsyncadd [#allocation4], 4294966848 }
 0xab8   :  { %4805 = dma.done.wait [#allocation10], 512  }
 0xab9   :  { %4806 = vsyncadd [#allocation10], 4294966784 }
 0xaba   :  { %3839 = vsyncpa [#allocation3], 1 }
 0xabb   :  { %3840 = vsyncpa [#allocation6], 1 }
 0xabc   :  { %3841 = vsyncpa [#allocation4], 1 }
 0xabd   :  { %3842 = vsyncpa [#allocation10], 1 }

// kernel: tpu_custom_call.1
= control target key start
LH: loop header
LB: loop body
LE: loop exit
PB: predicated region body
PF: predicated region fallthrough
CT: control target
= control target key end

     0   :  { %20 = vsyncpa [#allocation3], 0  ;;  %s5895_s0 = inlined_call_operand.vmem [shape: bf16[4,784], index: 0, kind: input, shape index: {}]   ;;  %s5896_s1 = inlined_call_operand.vmem [shape: bf16[784,200], index: 1, kind: input, shape index: {}]   ;;  %s5897_s2 = inlined_call_operand.vmem [shape: f32[1,200], index: 2, kind: input, shape index: {}]   ;;  %s5898_s3 = inlined_call_operand.vmem [shape: bf16[200,400], index: 3, kind: input, shape index: {}]   ;;  %s5899_s4 = inlined_call_operand.vmem [shape: f32[1,400], index: 4, kind: input, shape index: {}]   ;;  %s5900_s5 = inlined_call_operand.hbm [shape: f32[400,400], index: 5, kind: input, shape index: {}]   ;;  %s5901_s6 = inlined_call_operand.vmem [shape: f32[1,400], index: 6, kind: input, shape index: {}]   ;;  %s5902_s7 = inlined_call_operand.hbm [shape: f32[400,400], index: 7, kind: input, shape index: {}]   ;;  %s5903_s8 = inlined_call_operand.hbm [shape: bf16[400,200], index: 8, kind: input, shape index: {}]   ;;  %s5904_s9 = inlined_call_operand.vmem [shape: f32[1,200], index: 9, kind: input, shape index: {}]   ;;  %s5905_s10 = inlined_call_operand.vmem [shape: bf16[200,784], index: 10, kind: input, shape index: {}]   ;;  %s5906_s11 = inlined_call_operand.vmem [shape: f32[1,784], index: 11, kind: input, shape index: {}]   ;;  %s5907_s12 = inlined_call_operand.hbm [shape: f32[4,784], index: 12, kind: output, shape index: {0}]   ;;  %s5908_s13 = inlined_call_operand.hbm [shape: f32[4,400], index: 13, kind: output, shape index: {1}]   ;;  %s5909_s14 = inlined_call_operand.hbm [shape: f32[4,400], index: 14, kind: output, shape index: {2}]  }
   0x1   :  { %21 = vsyncpa [#allocation6], 0 }
   0x2   :  { %22 = vsyncpa [#allocation4], 0 }
   0x3   :  { %23 = vsyncpa [#allocation10], 0  ;;  %s4807_s29 = smov [#allocation5]   ;;  %s4808_s15 = smov [#allocation2]  }
   0x4   :  { %s53_s30 = sshll.u32 %s4807_s29, 4  ;;  %s39_s16 = sshll.u32 %s4808_s15, 4  ;;  %s54_s30 = int_to_ptr.vmem [resolvable:$true] %s53_s30  ;;  %s40_s16 = int_to_ptr.vmem [resolvable:$true] %s39_s16 }
   0x5   :  { %s4687_s17 = scalar_lea.vmem %s54_s30, 25600  ;;  %p4692_p1 = scmp.lt.s32.totalorder %s54_s30, %s54_s30 }
   0x6   :  { %p4688_p0 = scmp.ne.s32.totalorder %s54_s30, %s4687_s17  ;;  %p4693_p2 = scmp.lt.s32.totalorder %s4687_s17, %s4687_s17 }
   0x8   :  { %p4694_p3 = por %p4693_p2, %p4692_p1 }
   0xa   :  { %p4695_p4 = pnand %p4694_p3, %p4688_p0 }
   0xc   :  { %4698 = shalt.err (!%p4695_p4)
}
   0xd   :  { %s4809_s18 = smov 512   ;;  %s4810_s19 = smov 32  }
   0xe   :  { %59 = dma.hbm_to_vmem [thread:$0]  %s5902_s7, 25600, %s54_s30, [#allocation6], %s4809_s18, %s4809_s18, %s4810_s19  }
   0xf   :  { %s4707_s22 = scalar_lea.vmem %s40_s16, 25600  ;;  %p4712_p6 = scmp.lt.s32.totalorder %s40_s16, %s40_s16 }
  0x10   :  { %p4708_p5 = scmp.ne.s32.totalorder %s40_s16, %s4707_s22  ;;  %p4713_p7 = scmp.lt.s32.totalorder %s4707_s22, %s4707_s22 }
  0x12   :  { %p4714_p8 = por %p4713_p7, %p4712_p6 }
  0x14   :  { %p4715_p9 = pnand %p4714_p8, %p4708_p5 }
  0x16   :  { %4718 = shalt.err (!%p4715_p9)
}
  0x17   :  { %45 = dma.hbm_to_vmem [thread:$0]  %s5900_s5, 25600, %s40_s16, [#allocation3], %s4809_s18, %s4809_s18, %s4810_s19  }
  0x18   :  { %s4811_s25 = smov [#allocation7]  }
  0x19   :  { %s65_s26 = sshll.u32 %s4811_s25, 4  ;;  %s66_s26 = int_to_ptr.vmem [resolvable:$true] %s65_s26 }
  0x1a   :  { %s4727_s27 = scalar_lea.vmem %s66_s26, 6400  ;;  %p4732_p11 = scmp.lt.s32.totalorder %s66_s26, %s66_s26 }
  0x1b   :  { %p4728_p10 = scmp.ne.s32.totalorder %s66_s26, %s4727_s27  ;;  %p4733_p12 = scmp.lt.s32.totalorder %s4727_s27, %s4727_s27 }
  0x1d   :  { %p4734_p13 = por %p4733_p12, %p4732_p11 }
  0x1f   :  { %p4735_p0 = pnand %p4734_p13, %p4728_p10 }
  0x21   :  { %4738 = shalt.err (!%p4735_p0)
}
  0x22   :  { %s4812_s7 = smov 128   ;;  %s4813_s28 = smov 8  }
  0x23   :  { %71 = dma.hbm_to_vmem [thread:$0]  %s5903_s8, 6400, %s66_s26, [#allocation6], %s4812_s7, %s4812_s7, %s4813_s28  }
  0x24   :  { %4799 = dma.done.wait [#allocation3], 25600  }
  0x25   :  { %4800 = vsyncadd [#allocation3], 4294941696 }
  0x26   :  { %4801 = dma.done.wait [#allocation6], 32000  }
  0x27   :  { %4802 = vsyncadd [#allocation6], 4294935296  ;;  %v4238_v0 = vld [vmem:[%s5896_s1 + $0x74] ss:$8 sps:$4 sm:$0xff]   ;;  %v4240_v1 = vld [vmem:[%s5896_s1 + $0x70] ss:$8 sps:$4 sm:$0xff]   ;;  %v190_v35 = vlaneseq }
  0x28   :  { %735 = vmatprep.subr.bf16.mxu0 %v4238_v0  ;;  %v4241_v2 = vld [vmem:[%s5896_s1 + $0x174] ss:$8 sps:$4 sm:$0xff]   ;;  %v4243_v3 = vld [vmem:[%s5896_s1 + $0x170] ss:$8 sps:$4 sm:$0xff]   ;;  %v4244_v4 = vld [vmem:[%s5896_s1 + $0x64] ss:$8 sps:$4 sm:$0xff]  }
  0x29   :  { %736 = vmatpush1.bf16.msra.mxu0 %v4240_v1  ;;  %v4246_v5 = vld [vmem:[%s5896_s1 + $0x60] ss:$8 sps:$4 sm:$0xff]   ;;  %776 = vmatprep.subr.bf16.mxu1 %v4241_v2  ;;  %v4247_v6 = vld [vmem:[%s5896_s1 + $0x164] ss:$8 sps:$4 sm:$0xff]   ;;  %v4250_v8 = vld [vmem:[%s5896_s1 + $0x54] ss:$8 sps:$4 sm:$0xff]  }
  0x2a   :  { %777 = vmatpush1.bf16.msra.mxu1 %v4243_v3  ;;  %737 = vmatprep.subr.bf16.mxu0 %v4244_v4  ;;  %v4249_v7 = vld [vmem:[%s5896_s1 + $0x160] ss:$8 sps:$4 sm:$0xff]   ;;  %v4252_v9 = vld [vmem:[%s5896_s1 + $0x50] ss:$8 sps:$4 sm:$0xff]   ;;  %v4253_v10 = vld [vmem:[%s5896_s1 + $0x154] ss:$8 sps:$4 sm:$0xff]  }
  0x2b   :  { %778 = vmatprep.subr.bf16.mxu1 %v4247_v6  ;;  %v4256_v11 = vld [vmem:[%s5896_s1 + $0x44] ss:$8 sps:$4 sm:$0xff]   ;;  %v4255_v12 = vld [vmem:[%s5896_s1 + $0x150] ss:$8 sps:$4 sm:$0xff]   ;;  %v4258_v14 = vld [vmem:[%s5896_s1 + $0x40] ss:$8 sps:$4 sm:$0xff]  }
  0x2c   :  { %v4259_v13 = vld [vmem:[%s5896_s1 + $0x144] ss:$8 sps:$4 sm:$0xff]   ;;  %v4262_v15 = vld [vmem:[%s5896_s1 + $0x34] ss:$8 sps:$4 sm:$0xff]   ;;  %v4261_v16 = vld [vmem:[%s5896_s1 + $0x140] ss:$8 sps:$4 sm:$0xff]  }
  0x2d   :  { %738 = vmatpush1.bf16.msra.mxu0 %v4246_v5  ;;  %v4265_v17 = vld [vmem:[%s5896_s1 + $0x134] ss:$8 sps:$4 sm:$0xff]   ;;  %v4264_v18 = vld [vmem:[%s5896_s1 + $0x30] ss:$8 sps:$4 sm:$0xff]   ;;  %v4268_v19 = vld [vmem:[%s5896_s1 + $0x24] ss:$8 sps:$4 sm:$0xff]  }
  0x2e   :  { %739 = vmatprep.subr.bf16.mxu0 %v4250_v8  ;;  %779 = vmatpush1.bf16.msra.mxu1 %v4249_v7  ;;  %v4267_v20 = vld [vmem:[%s5896_s1 + $0x130] ss:$8 sps:$4 sm:$0xff]   ;;  %v4271_v21 = vld [vmem:[%s5896_s1 + $0x124] ss:$8 sps:$4 sm:$0xff]   ;;  %v4270_v22 = vld [vmem:[%s5896_s1 + $0x20] ss:$8 sps:$4 sm:$0xff]  }
  0x2f   :  { %780 = vmatprep.subr.bf16.mxu1 %v4253_v10  ;;  %v4274_v23 = vld [vmem:[%s5896_s1 + $0x14] ss:$8 sps:$4 sm:$0xff]   ;;  %v4273_v24 = vld [vmem:[%s5896_s1 + $0x120] ss:$8 sps:$4 sm:$0xff]   ;;  %v4276_v26 = vld [vmem:[%s5896_s1 + $0x10] ss:$8 sps:$4 sm:$0xff]  }
  0x30   :  { %v4277_v25 = vld [vmem:[%s5896_s1 + $0x114] ss:$8 sps:$4 sm:$0xff]   ;;  %v4280_v27 = vld [vmem:[%s5896_s1 + $0x4] ss:$8 sps:$4 sm:$0xff]   ;;  %v4279_v28 = vld [vmem:[%s5896_s1 + $0x110] ss:$8 sps:$4 sm:$0xff]  }
  0x31   :  { %740 = vmatpush1.bf16.msra.mxu0 %v4252_v9  ;;  %v4283_v29 = vld [vmem:[%s5896_s1 + $0x104] ss:$8 sps:$4 sm:$0xff]   ;;  %v4282_v30 = vld [vmem:[%s5896_s1] ss:$8 sps:$4 sm:$0xff]   ;;  %v4286_v31 = vld [vmem:[%s5896_s1 + $0xf4] ss:$8 sps:$4 sm:$0xff]  }
  0x32   :  { %741 = vmatprep.subr.bf16.mxu0 %v4256_v11  ;;  %781 = vmatpush1.bf16.msra.mxu1 %v4255_v12  ;;  %v4285_v32 = vld [vmem:[%s5896_s1 + $0x100] ss:$8 sps:$4 sm:$0xff]   ;;  %v4289_v33 = vld [vmem:[%s5896_s1 + $0x1f4] ss:$8 sps:$4 sm:$0xff]   ;;  %v4288_v34 = vld [vmem:[%s5896_s1 + $0xf0] ss:$8 sps:$4 sm:$0xff]  }
  0x33   :  { %782 = vmatprep.subr.bf16.mxu1 %v4259_v13  ;;  %v4814_v36 = vmov 1983009808   ;;  %v4292_v38 = vld [vmem:[%s5896_s1 + $0xe4] ss:$8 sps:$4 sm:$0xff]   ;;  %v4291_v39 = vld [vmem:[%s5896_s1 + $0x1f0] ss:$8 sps:$4 sm:$0xff]  }
  0x34   :  { %v204_v37 = vunpack.c.l.s4 %v4814_v36  ;;  %v4295_v40 = vld [vmem:[%s5896_s1 + $0x1e4] ss:$8 sps:$4 sm:$0xff]   ;;  %v4294_v41 = vld [vmem:[%s5896_s1 + $0xe0] ss:$8 sps:$4 sm:$0xff]   ;;  %v5031_v42 = vshrl.u32 %v190_v35, 7  ;;  %vm731_vm0 = vcmask 130048  }
  0x35   :  { %742 = vmatpush1.bf16.msra.mxu0 %v4258_v14  ;;  %v4298_v44 = vld [vmem:[%s5896_s1 + $0xd4] ss:$8 sps:$4 sm:$0xff]   ;;  %v4297_v45 = vld [vmem:[%s5896_s1 + $0x1e0] ss:$8 sps:$4 sm:$0xff]   ;;  %v4300_v47 = vld [vmem:[%s5896_s1 + $0xd0] ss:$8 sps:$4 sm:$0xff]  }
  0x36   :  { %743 = vmatprep.subr.bf16.mxu0 %v4262_v15  ;;  %783 = vmatpush1.bf16.msra.mxu1 %v4261_v16  ;;  %v205_v43 = vunpack.c.0.s8 %v204_v37  ;;  %v4301_v46 = vld [vmem:[%s5896_s1 + $0x1d4] ss:$8 sps:$4 sm:$0xff]   ;;  %v4304_v49 = vld [vmem:[%s5896_s1 + $0xc4] ss:$8 sps:$4 sm:$0xff]   ;;  %v4303_v50 = vld [vmem:[%s5896_s1 + $0x1d0] ss:$8 sps:$4 sm:$0xff]  }
  0x37   :  { %784 = vmatprep.subr.bf16.mxu1 %v4265_v17  ;;  %v4307_v51 = vld [vmem:[%s5896_s1 + $0x1c4] ss:$8 sps:$4 sm:$0xff]   ;;  %v4306_v53 = vld [vmem:[%s5896_s1 + $0xc0] ss:$8 sps:$4 sm:$0xff]   ;;  %v4310_v56 = vld [vmem:[%s5896_s1 + $0xb4] ss:$8 sps:$4 sm:$0xff]  }
  0x38   :  { %v5046_v48 = vsub.s32 %v205_v43, %v5031_v42  ;;  %v88_v52 = vld [vmem:[%s5895_s0] sm:$0xff]  ;;  %v4313_v60 = vld [vmem:[%s5896_s1 + $0x1b4] ss:$8 sps:$4 sm:$0xff]   ;;  %v4312_v61 = vld [vmem:[%s5896_s1 + $0xb0] ss:$8 sps:$4 sm:$0xff]   ;;  %vm1229_vm1 = vcmask 1043456  }
  0x39   :  { %744 = vmatpush1.bf16.msra.mxu0 %v4264_v18  ;;  %v202_v55 = vcombine.high %v88_v52, %v88_v52  ;;  %v4309_v57 = vld [vmem:[%s5896_s1 + $0x1c0] ss:$8 sps:$4 sm:$0xff]   ;;  %v4316_v63 = vld [vmem:[%s5896_s1 + $0xa4] ss:$8 sps:$4 sm:$0xff]   ;;  %v4315_v0 = vld [vmem:[%s5896_s1 + $0x1b0] ss:$8 sps:$4 sm:$0xff]  }
  0x3a   :  { %745 = vmatprep.subr.bf16.mxu0 %v4268_v19  ;;  %785 = vmatpush1.bf16.msra.mxu1 %v4267_v20  ;;  %v209_v54 = vrot.slane %v88_v52, %v5046_v48  ;;  %v4319_v1 = vld [vmem:[%s5896_s1 + $0x1a4] ss:$8 sps:$4 sm:$0xff]   ;;  %v4318_v2 = vld [vmem:[%s5896_s1 + $0xa0] ss:$8 sps:$4 sm:$0xff]   ;;  %v4322_v3 = vld [vmem:[%s5896_s1 + $0x94] ss:$8 sps:$4 sm:$0xff]  }
  0x3b   :  { %786 = vmatprep.subr.bf16.mxu1 %v4271_v21  ;;  %v216_v59 = vrot.slane %v202_v55, %v5046_v48  ;;  %v4321_v4 = vld [vmem:[%s5896_s1 + $0x1a0] ss:$8 sps:$4 sm:$0xff]   ;;  %v4325_v5 = vld [vmem:[%s5896_s1 + $0x194] ss:$8 sps:$4 sm:$0xff]   ;;  %v4324_v6 = vld [vmem:[%s5896_s1 + $0x90] ss:$8 sps:$4 sm:$0xff]  }
  0x3c   :  { %v217_v58 = vcombine.high %v209_v54, %v209_v54  ;;  %v4328_v7 = vld [vmem:[%s5896_s1 + $0x84] ss:$8 sps:$4 sm:$0xff]   ;;  %v4327_v8 = vld [vmem:[%s5896_s1 + $0x190] ss:$8 sps:$4 sm:$0xff]   ;;  %v4330_v10 = vld [vmem:[%s5896_s1 + $0x80] ss:$8 sps:$4 sm:$0xff]  }
  0x3d   :  { %746 = vmatpush1.bf16.msra.mxu0 %v4270_v22  ;;  %v218_v62 = vcombine.high %v216_v59, %v216_v59  ;;  %v4331_v9 = vld [vmem:[%s5896_s1 + $0x184] ss:$8 sps:$4 sm:$0xff]   ;;  %v4336_v11 = vld [vmem:[%s5896_s1 + $0x274] ss:$8 sps:$4 sm:$0xff]   ;;  %v4333_v12 = vld [vmem:[%s5896_s1 + $0x180] ss:$8 sps:$4 sm:$0xff]  }
  0x3e   :  { %747 = vmatprep.subr.bf16.mxu0 %v4274_v23  ;;  %787 = vmatpush1.bf16.msra.mxu1 %v4273_v24  ;;  %v4334_v13 = vld [vmem:[%s5896_s1 + $0x270] ss:$8 sps:$4 sm:$0xff]   ;;  %v4340_v14 = vld [vmem:[%s5896_s1 + $0x264] ss:$8 sps:$4 sm:$0xff]   ;;  %v4338_v16 = vld [vmem:[%s5896_s1 + $0x260] ss:$8 sps:$4 sm:$0xff]  }
  0x3f   :  { %788 = vmatprep.subr.bf16.mxu1 %v4277_v25  ;;  %767 = vmatprep.mubr.bf16.mxu0 %v217_v58  ;;  %v89_v15 = vld [vmem:[%s5895_s0 + $0x8] sm:$0x3f]  ;;  %v4343_v19 = vld [vmem:[%s5896_s1 + $0x254] ss:$8 sps:$4 sm:$0xff]   ;;  %v4341_v22 = vld [vmem:[%s5896_s1 + $0x250] ss:$8 sps:$4 sm:$0xff]  }
  0x40   :  { %808 = vmatprep.mubr.bf16.mxu1 %v218_v62  ;;  %v219_v17 = vcombine.high %v89_v15, %v89_v15  ;;  %v5132_v18 = vrot.slane %v89_v15, %v5046_v48  ;;  %v4346_v23 = vld [vmem:[%s5896_s1 + $0x244] ss:$8 sps:$4 sm:$0xff]   ;;  %v4344_v24 = vld [vmem:[%s5896_s1 + $0x240] ss:$8 sps:$4 sm:$0xff]   ;;  %v4349_v25 = vld [vmem:[%s5896_s1 + $0x234] ss:$8 sps:$4 sm:$0xff]  }
  0x41   :  { %748 = vmatpush1.bf16.msra.mxu0 %v4276_v26  ;;  %v4347_v26 = vld [vmem:[%s5896_s1 + $0x230] ss:$8 sps:$4 sm:$0xff]   ;;  %v4364_v35 = vld [vmem:[%s5896_s1 + $0x2e4] ss:$8 sps:$4 sm:$0xff]   ;;  %v4362_v36 = vld [vmem:[%s5896_s1 + $0x2e0] ss:$8 sps:$4 sm:$0xff]  }
  0x42   :  { %749 = vmatprep.subr.bf16.mxu0 %v4280_v27  ;;  %789 = vmatpush1.bf16.msra.mxu1 %v4279_v28  ;;  %v5138_v20 = vrot.slane %v219_v17, %v5046_v48  ;;  %v234_v21 = vcombine.high %v5132_v18, %v5132_v18  ;;  %v4352_v27 = vld [vmem:[%s5896_s1 + $0x224] ss:$8 sps:$4 sm:$0xff]   ;;  %v4350_v28 = vld [vmem:[%s5896_s1 + $0x220] ss:$8 sps:$4 sm:$0xff]   ;;  %v4367_v37 = vld [vmem:[%s5896_s1 + $0x2d4] ss:$8 sps:$4 sm:$0xff]  }
  0x43   :  { %790 = vmatprep.subr.bf16.mxu1 %v4283_v29  ;;  %v4355_v29 = vld [vmem:[%s5896_s1 + $0x214] ss:$8 sps:$4 sm:$0xff]   ;;  %v4371_v43 = vld [vmem:[%s5896_s1 + $0x2b0] ss:$8 sps:$4 sm:$0xff]   ;;  %v4382_v48 = vld [vmem:[%s5896_s1 + $0x284] ss:$8 sps:$4 sm:$0xff]  }
  0x44   :  { %v4815_v52 = vmov 0   ;;  %v4392_v55 = vld [vmem:[%s5898_s3 + $0xc4] ss:$16 sps:$4 sm:$0xff]   ;;  %v4393_v58 = vld [vmem:[%s5898_s3 + $0xa0] ss:$16 sps:$4 sm:$0xff]   ;;  %vm1225_vm2 = vcmask 588800  }
  0x45   :  { %750 = vmatpush1.bf16.msra.mxu0 %v4282_v30  ;;  %v4353_v30 = vld [vmem:[%s5896_s1 + $0x210] ss:$8 sps:$4 sm:$0xff]   ;;  %v4424_v15 = vld [vmem:[%s5898_s3 + $0x104] ss:$16 sps:$4 sm:$0xff]   ;;  %v4427_v17 = vld [vmem:[%s5898_s3 + $0xec] ss:$16 sps:$4 sm:$0xff]  }
  0x46   :  { %751 = vmatprep.subr.bf16.mxu0 %v4286_v31  ;;  %791 = vmatpush1.bf16.msra.mxu1 %v4285_v32  ;;  %v4358_v31 = vld [vmem:[%s5896_s1 + $0x204] ss:$8 sps:$4 sm:$0xff]   ;;  %v4356_v32 = vld [vmem:[%s5896_s1 + $0x200] ss:$8 sps:$4 sm:$0xff]   ;;  %vm1333_vm3 = vcmask 130052   ;;  %s4816_s30 = smov 40  }
  0x47   :  { %792 = vmatprep.subr.bf16.mxu1 %v4289_v33  ;;  %v4361_v33 = vld [vmem:[%s5896_s1 + $0x2f4] ss:$8 sps:$4 sm:$0xff]   ;;  %v4399_v62 = vld [vmem:[%s5898_s3 + $0x60] ss:$16 sps:$4 sm:$0xff]   ;;  %vm5432_vm4 = vmor %vm1333_vm3, %vm1229_vm1  ;;  %vm1878_vm9 = vcmask 326656   ;;  %s4820_s5 = smov 88  }
  0x48   :  { %s4821_s15 = smov 24   ;;  %s4822_s16 = smov 56  }
  0x49   :  { %752 = vmatpush2.bf16.msra.mxu0 %v4288_v34  ;;  %v4359_v34 = vld [vmem:[%s5896_s1 + $0x2f0] ss:$8 sps:$4 sm:$0xff]   ;;  %s4823_s17 = smov 96   ;;  %s4825_s18 = smov 104  }
  0x4a   :  { %753 = vmatprep.subr.bf16.mxu0 %v4292_v38  ;;  %793 = vmatpush2.bf16.msra.mxu1 %v4291_v39  ;;  %v4365_v38 = vld [vmem:[%s5896_s1 + $0x2d0] ss:$8 sps:$4 sm:$0xff]   ;;  %v4370_v39 = vld [vmem:[%s5896_s1 + $0x2c4] ss:$8 sps:$4 sm:$0xff]   ;;  %s4826_s19 = smov [#allocation9]  }
  0x4b   :  { %794 = vmatprep.subr.bf16.mxu1 %v4295_v40  ;;  %v4368_v40 = vld [vmem:[%s5896_s1 + $0x2c0] ss:$8 sps:$4 sm:$0xff]   ;;  %s3816_s20 = sshll.u32 %s4826_s19, 4  ;;  %s3817_s20 = int_to_ptr.vmem [resolvable:$true] %s3816_s20 }
  0x4c   :  { %s4739_s21 = scalar_lea.vmem %s3817_s20, 256  ;;  %p4744_p2 = scmp.lt.s32.totalorder %s3817_s20, %s3817_s20 }
  0x4d   :  { %754 = vmatpush2.bf16.msra.mxu0 %v4294_v41  ;;  %v4373_v41 = vld [vmem:[%s5896_s1 + $0x2b4] ss:$8 sps:$4 sm:$0xff]   ;;  %p4740_p1 = scmp.ne.s32.totalorder %s3817_s20, %s4739_s21  ;;  %p4745_p3 = scmp.lt.s32.totalorder %s4739_s21, %s4739_s21 }
  0x4e   :  { %755 = vmatprep.subr.bf16.mxu0 %v4298_v44  ;;  %795 = vmatpush2.bf16.msra.mxu1 %v4297_v45  ;;  %v4376_v44 = vld [vmem:[%s5896_s1 + $0x2a4] ss:$8 sps:$4 sm:$0xff]   ;;  %v4374_v45 = vld [vmem:[%s5896_s1 + $0x2a0] ss:$8 sps:$4 sm:$0xff]  }
  0x4f   :  { %796 = vmatprep.subr.bf16.mxu1 %v4301_v46  ;;  %v4379_v46 = vld [vmem:[%s5896_s1 + $0x294] ss:$8 sps:$4 sm:$0xff]   ;;  %p4746_p4 = por %p4745_p3, %p4744_p2 }
  0x51   :  { %756 = vmatpush2.bf16.msra.mxu0 %v4300_v47  ;;  %v4377_v47 = vld [vmem:[%s5896_s1 + $0x290] ss:$8 sps:$4 sm:$0xff]   ;;  %p4747_p5 = pnand %p4746_p4, %p4740_p1 }
  0x52   :  { %757 = vmatprep.subr.bf16.mxu0 %v4304_v49  ;;  %797 = vmatpush2.bf16.msra.mxu1 %v4303_v50  ;;  %v4380_v49 = vld [vmem:[%s5896_s1 + $0x280] ss:$8 sps:$4 sm:$0xff]   ;;  %v4386_v50 = vld [vmem:[%s5896_s1 + $0x304] ss:$8 sps:$4 sm:$0xff]  }
  0x53   :  { %798 = vmatprep.subr.bf16.mxu1 %v4307_v51  ;;  %v4384_v51 = vld [vmem:[%s5896_s1 + $0x300] ss:$8 sps:$4 sm:$0xff]   ;;  %s4824_s1 = smov 64  }
  0x55   :  { %758 = vmatpush2.bf16.msra.mxu0 %v4306_v53  ;;  %v4387_v53 = vld [vmem:[%s5898_s3 + $0xe0] ss:$16 sps:$4 sm:$0xff]  }
  0x56   :  { %759 = vmatprep.subr.bf16.mxu0 %v4310_v56  ;;  %799 = vmatpush2.bf16.msra.mxu1 %v4309_v57  ;;  %v4390_v56 = vld [vmem:[%s5898_s3 + $0xc0] ss:$16 sps:$4 sm:$0xff]   ;;  %v4395_v57 = vld [vmem:[%s5898_s3 + $0xa4] ss:$16 sps:$4 sm:$0xff]  }
  0x57   :  { %800 = vmatprep.subr.bf16.mxu1 %v4313_v60  ;;  %v4396_v60 = vld [vmem:[%s5898_s3 + $0x80] ss:$16 sps:$4 sm:$0xff]  }
  0x59   :  { %760 = vmatpush2.bf16.msra.mxu0 %v4312_v61  ;;  %v4401_v61 = vld [vmem:[%s5898_s3 + $0x64] ss:$16 sps:$4 sm:$0xff]  }
  0x5a   :  { %761 = vmatprep.subr.bf16.mxu0 %v4316_v63  ;;  %801 = vmatpush2.bf16.msra.mxu1 %v4315_v0  ;;  %v4404_v63 = vld [vmem:[%s5898_s3 + $0x44] ss:$16 sps:$4 sm:$0xff]   ;;  %v4402_v0 = vld [vmem:[%s5898_s3 + $0x40] ss:$16 sps:$4 sm:$0xff]  }
  0x5b   :  { %802 = vmatprep.subr.bf16.mxu1 %v4319_v1  ;;  %v4407_v1 = vld [vmem:[%s5898_s3 + $0x24] ss:$16 sps:$4 sm:$0xff]  }
  0x5d   :  { %762 = vmatpush2.bf16.msra.mxu0 %v4318_v2  ;;  %v4405_v2 = vld [vmem:[%s5898_s3 + $0x20] ss:$16 sps:$4 sm:$0xff]  }
  0x5e   :  { %763 = vmatprep.subr.bf16.mxu0 %v4322_v3  ;;  %803 = vmatpush2.bf16.msra.mxu1 %v4321_v4  ;;  %v4410_v3 = vld [vmem:[%s5898_s3 + $0x4] ss:$16 sps:$4 sm:$0xff]  }
  0x5f   :  { %804 = vmatprep.subr.bf16.mxu1 %v4325_v5  ;;  %v951_v4 = vld [vmem:[%s5898_s3 + $0x180] sm:$0xff] }
  0x60   :  { %v4408_v5 = vld [vmem:[%s5898_s3] ss:$16 sps:$4 sm:$0xff]  }
  0x61   :  { %764 = vmatpush2.bf16.msra.mxu0 %v4324_v6  ;;  %v3991_v6 = vcombine.high %v951_v4, %v951_v4 }
  0x62   :  { %765 = vmatprep.subr.bf16.mxu0 %v4328_v7  ;;  %805 = vmatpush2.bf16.msra.mxu1 %v4327_v8  ;;  %v3990_v7 = vcombine.low %v951_v4, %v951_v4  ;;  %v1336_v4 = vld [vmem:[#allocation2] sm:$0xff] }
  0x63   :  { %806 = vmatprep.subr.bf16.mxu1 %v4331_v9  ;;  %v4415_v9 = vld [vmem:[%s5898_s3 + $0x164] ss:$16 sps:$4 sm:$0xff]  }
  0x64   :  { %v1231_v8 = vsel %vm1229_vm1, %v3990_v7, 0  ;;  %v1457_v7 = vld [vmem:[#allocation2 + $0x3c8] sm:$0xff] }
  0x65   :  { %766 = vmatpush2.bf16.msra.mxu0 %v4330_v10  ;;  %v4413_v10 = vld [vmem:[%s5898_s3 + $0x160] ss:$16 sps:$4 sm:$0xff]  }
  0x66   :  { %817 = vmatprep.subr.bf16.mxu0 %v4336_v11  ;;  %807 = vmatpush2.bf16.msra.mxu1 %v4333_v12  ;;  %v4418_v11 = vld [vmem:[%s5898_s3 + $0x144] ss:$16 sps:$4 sm:$0xff]   ;;  %v4416_v12 = vld [vmem:[%s5898_s3 + $0x140] ss:$16 sps:$4 sm:$0xff]  }
  0x68   :  { %768 = vmatmul.mubr.bf16.vlgmr.msra.gmra.mxu0 %v209_v54  ;;  %v4389_v54 = vld [vmem:[%s5898_s3 + $0xe4] ss:$16 sps:$4 sm:$0xff]  }
  0x69   :  { %818 = vmatpush1.bf16.msra.mxu0 %v4334_v13  ;;  %809 = vmatmul.mubr.bf16.vlgmr.msra.gmra.mxu1 %v216_v59  ;;  %v4398_v59 = vld [vmem:[%s5898_s3 + $0x84] ss:$16 sps:$4 sm:$0xff]  }
  0x6a   :  { %819 = vmatprep.subr.bf16.mxu0 %v4340_v14  ;;  %849 = vmatprep.mubr.bf16.mxu0 %v234_v21  ;;  %v4421_v13 = vld [vmem:[%s5898_s3 + $0x124] ss:$16 sps:$4 sm:$0xff]   ;;  %v4419_v14 = vld [vmem:[%s5898_s3 + $0x120] ss:$16 sps:$4 sm:$0xff]  }
  0x6b   :  { %1242 = vmatprep.subr.bf16.mxu1 %v4389_v54  ;;  %v1364_v54 = vld [vmem:[#allocation2 + $0xe0] sm:$0xff] }
  0x6c   :  { %1243 = vmatpush1.bf16.msra.mxu1 %v4387_v53  ;;  %v1365_v53 = vld [vmem:[#allocation2 + $0xe8] sm:$0xff] }
  0x6d   :  { %820 = vmatpush1.bf16.msra.mxu0 %v4338_v16  ;;  %1244 = vmatprep.subr.bf16.mxu1 %v4392_v55  ;;  %v4422_v16 = vld [vmem:[%s5898_s3 + $0x100] ss:$16 sps:$4 sm:$0xff]   ;;  %v1361_v55 = vld [vmem:[#allocation2 + $0xc8] sm:$0xff] }
  0x6e   :  { %821 = vmatprep.subr.bf16.mxu0 %v4343_v19  ;;  %v188_v19 = vld [vmem:[%s5897_s2] sm:$0x3] }
  0x70   :  { %1245 = vmatpush1.bf16.msra.mxu1 %v4390_v56  ;;  %v1360_v56 = vld [vmem:[#allocation2 + $0xc0] sm:$0xff] }
  0x71   :  { %822 = vmatpush1.bf16.msra.mxu0 %v4341_v22  ;;  %1246 = vmatprep.subr.bf16.mxu1 %v4395_v57  ;;  %v1357_v57 = vld [vmem:[#allocation2 + $0xa8] sm:$0xff] }
  0x72   :  { %823 = vmatprep.subr.bf16.mxu0 %v4346_v23 }
  0x74   :  { %1247 = vmatpush1.bf16.msra.mxu1 %v4393_v58  ;;  %v1356_v58 = vld [vmem:[#allocation2 + $0xa0] sm:$0xff] }
  0x75   :  { %824 = vmatpush1.bf16.msra.mxu0 %v4344_v24  ;;  %1248 = vmatprep.subr.bf16.mxu1 %v4398_v59  ;;  %v1353_v59 = vld [vmem:[#allocation2 + $0x88] sm:$0xff] }
  0x76   :  { %825 = vmatprep.subr.bf16.mxu0 %v4349_v25 }
  0x78   :  { %1249 = vmatpush1.bf16.msra.mxu1 %v4396_v60  ;;  %v1352_v60 = vld [vmem:[#allocation2 + $0x80] sm:$0xff] }
  0x79   :  { %826 = vmatpush1.bf16.msra.mxu0 %v4347_v26  ;;  %1250 = vmatprep.subr.bf16.mxu1 %v4401_v61  ;;  %v1349_v61 = vld [vmem:[#allocation2 + $0x68] sm:$0xff] }
  0x7a   :  { %827 = vmatprep.subr.bf16.mxu0 %v4352_v27 }
  0x7c   :  { %1251 = vmatpush1.bf16.msra.mxu1 %v4399_v62  ;;  %v1348_v62 = vld [vmem:[#allocation2 + $0x60] sm:$0xff] }
  0x7d   :  { %828 = vmatpush1.bf16.msra.mxu0 %v4350_v28  ;;  %1252 = vmatprep.subr.bf16.mxu1 %v4404_v63  ;;  %v1345_v63 = vld [vmem:[#allocation2 + $0x48] sm:$0xff] }
  0x7e   :  { %829 = vmatprep.subr.bf16.mxu0 %v4355_v29 }
  0x80   :  { %1253 = vmatpush1.bf16.msra.mxu1 %v4402_v0  ;;  %v1344_v0 = vld [vmem:[#allocation2 + $0x40] sm:$0xff] }
  0x81   :  { %830 = vmatpush1.bf16.msra.mxu0 %v4353_v30  ;;  %1254 = vmatprep.subr.bf16.mxu1 %v4407_v1  ;;  %v1341_v1 = vld [vmem:[#allocation2 + $0x28] sm:$0xff] }
  0x82   :  { %831 = vmatprep.subr.bf16.mxu0 %v4358_v31 }
  0x84   :  { %1255 = vmatpush1.bf16.msra.mxu1 %v4405_v2  ;;  %v1340_v2 = vld [vmem:[#allocation2 + $0x20] sm:$0xff] }
  0x85   :  { %832 = vmatpush1.bf16.msra.mxu0 %v4356_v32  ;;  %1256 = vmatprep.subr.bf16.mxu1 %v4410_v3  ;;  %v1337_v3 = vld [vmem:[#allocation2 + $0x8] sm:$0xff] }
  0x86   :  { %833 = vmatprep.subr.bf16.mxu0 %v4361_v33 }
  0x88   :  { %1257 = vmatpush1.bf16.msra.mxu1 %v4408_v5  ;;  %v1461_v5 = vld [vmem:[#allocation2 + $0x3e8] sm:$0xff] }
  0x89   :  { %834 = vmatpush2.bf16.msra.mxu0 %v4359_v34  ;;  %3994 = vmatprep.subr.msk.bf16.mxu1 %vm1229_vm1, %v3991_v6  ;;  %v1397_v34 = vld [vmem:[#allocation2 + $0x1e8] sm:$0xff]  ;;  %v1460_v6 = vld [vmem:[#allocation2 + $0x3e0] sm:$0xff] }
  0x8a   :  { %835 = vmatprep.subr.bf16.mxu0 %v4364_v35  ;;  %v1396_v35 = vld [vmem:[#allocation2 + $0x1e0] sm:$0xff] }
  0x8c   :  { %1265 = vmatpush2.bf16.msra.mxu1 %v1231_v8  ;;  %v1456_v8 = vld [vmem:[#allocation2 + $0x3c0] sm:$0xff] }
  0x8d   :  { %836 = vmatpush2.bf16.msra.mxu0 %v4362_v36  ;;  %1266 = vmatprep.subr.bf16.mxu1 %v4415_v9  ;;  %v1393_v36 = vld [vmem:[#allocation2 + $0x1c8] sm:$0xff] }
  0x8e   :  { %837 = vmatprep.subr.bf16.mxu0 %v4367_v37  ;;  %v1392_v37 = vld [vmem:[#allocation2 + $0x1c0] sm:$0xff]  ;;  %v1453_v9 = vld [vmem:[#allocation2 + $0x3a8] sm:$0xff] }
  0x90   :  { %1267 = vmatpush2.bf16.msra.mxu1 %v4413_v10  ;;  %v1452_v10 = vld [vmem:[#allocation2 + $0x3a0] sm:$0xff] }
  0x91   :  { %838 = vmatpush2.bf16.msra.mxu0 %v4365_v38  ;;  %1268 = vmatprep.subr.bf16.mxu1 %v4418_v11  ;;  %v1449_v11 = vld [vmem:[#allocation2 + $0x388] sm:$0xff] }
  0x92   :  { %839 = vmatprep.subr.bf16.mxu0 %v4370_v39  ;;  %v1389_v39 = vld [vmem:[#allocation2 + $0x1a8] sm:$0xff] }
  0x94   :  { %1269 = vmatpush2.bf16.msra.mxu1 %v4416_v12  ;;  %v1448_v12 = vld [vmem:[#allocation2 + $0x380] sm:$0xff] }
  0x95   :  { %840 = vmatpush2.bf16.msra.mxu0 %v4368_v40  ;;  %1270 = vmatprep.subr.bf16.mxu1 %v4421_v13  ;;  %v1388_v40 = vld [vmem:[#allocation2 + $0x1a0] sm:$0xff]  ;;  %v1445_v13 = vld [vmem:[#allocation2 + $0x368] sm:$0xff] }
  0x96   :  { %841 = vmatprep.subr.bf16.mxu0 %v4373_v41  ;;  %v1385_v41 = vld [vmem:[#allocation2 + $0x188] sm:$0xff] }
  0x98   :  { %1271 = vmatpush2.bf16.msra.mxu1 %v4419_v14  ;;  %v1444_v14 = vld [vmem:[#allocation2 + $0x360] sm:$0xff] }
  0x99   :  { %842 = vmatpush2.bf16.msra.mxu0 %v4371_v43  ;;  %1272 = vmatprep.subr.bf16.mxu1 %v4424_v15  ;;  %v1384_v43 = vld [vmem:[#allocation2 + $0x180] sm:$0xff]  ;;  %v1441_v15 = vld [vmem:[#allocation2 + $0x348] sm:$0xff] }
  0x9a   :  { %843 = vmatprep.subr.bf16.mxu0 %v4376_v44  ;;  %v1381_v44 = vld [vmem:[#allocation2 + $0x168] sm:$0xff] }
  0x9c   :  { %1273 = vmatpush2.bf16.msra.mxu1 %v4422_v16  ;;  %v1440_v16 = vld [vmem:[#allocation2 + $0x340] sm:$0xff] }
  0x9d   :  { %844 = vmatpush2.bf16.msra.mxu0 %v4374_v45  ;;  %1283 = vmatprep.subr.bf16.mxu1 %v4427_v17  ;;  %v1380_v45 = vld [vmem:[#allocation2 + $0x160] sm:$0xff]  ;;  %v1437_v17 = vld [vmem:[#allocation2 + $0x328] sm:$0xff] }
  0x9e   :  { %845 = vmatprep.subr.bf16.mxu0 %v4379_v46  ;;  %v1377_v46 = vld [vmem:[#allocation2 + $0x148] sm:$0xff] }
  0xa1   :  { %846 = vmatpush2.bf16.msra.mxu0 %v4377_v47  ;;  %v1376_v47 = vld [vmem:[#allocation2 + $0x140] sm:$0xff] }
  0xa2   :  { %847 = vmatprep.subr.bf16.mxu0 %v4382_v48  ;;  %v1373_v48 = vld [vmem:[#allocation2 + $0x128] sm:$0xff] }
  0xa5   :  { %848 = vmatpush2.bf16.msra.mxu0 %v4380_v49  ;;  %v1372_v49 = vld [vmem:[#allocation2 + $0x120] sm:$0xff] }
  0xa6   :  { %872 = vmatprep.subr.bf16.mxu0 %v4386_v50  ;;  %v1369_v50 = vld [vmem:[#allocation2 + $0x108] sm:$0xff] }
  0xa8   :  { %850 = vmatmul.mubr.bf16.vlgmr.msra.gmra.mxu0 %v5132_v18  ;;  %v5314_v18 = vsub.s32 0, %v5031_v42 }
  0xa9   :  { %873 = vmatpush1.bf16.msra.mxu0 %v4384_v51  ;;  %890 = vmatprep.mubr.bf16.mxu0 %v4815_v52  ;;  %v1368_v51 = vld [vmem:[#allocation2 + $0x100] sm:$0xff] }
  0xaa   :  { %v193_v21 = vrot.slane %v188_v19, %v5314_v18  ;;  %1560 = vmatprep.subr.mxu0 %v1397_v34  ;;  %v1412_v34 = vld [vmem:[#allocation2 + $0x260] sm:$0xff] }
  0xb0   :  { %3941 = vmatmul.mubr.msk.bf16.vlgmr.msra.gmra.mxu0 %vm731_vm0, %v5138_v20  ;;  %v5320_v20 = vsub.s32 1, %v5031_v42 }
  0xb1   :  { %1561 = vmatpush1.msra.mxu0 %v1396_v35  ;;  %v1409_v35 = vld [vmem:[#allocation2 + $0x248] sm:$0xff] }
  0xb2   :  { %v197_v22 = vrot.slane %v188_v19, %v5320_v20  ;;  %1562 = vmatprep.subr.mxu0 %v1393_v36  ;;  %v1436_v19 = vld [vmem:[#allocation2 + $0x320] sm:$0xff] }
  0xb3   :  { %1563 = vmatpush1.msra.mxu0 %v1392_v37 }
  0xb4   :  { %1564 = vmatprep.subr.mxu0 %v1389_v39 }
  0xb5   :  { %1565 = vmatpush1.msra.mxu0 %v1388_v40 }
  0xb6   :  { %1566 = vmatprep.subr.mxu0 %v1385_v41 }
  0xb7   :  { %1567 = vmatpush1.msra.mxu0 %v1384_v43 }
  0xb8   :  { %1568 = vmatprep.subr.mxu0 %v1381_v44 }
  0xb9   :  { %1569 = vmatpush1.msra.mxu0 %v1380_v45 }
  0xba   :  { %1570 = vmatprep.subr.mxu0 %v1377_v46 }
  0xbb   :  { %1571 = vmatpush1.msra.mxu0 %v1376_v47 }
  0xbc   :  { %1572 = vmatprep.subr.mxu0 %v1373_v48 }
  0xbd   :  { %1573 = vmatpush1.msra.mxu0 %v1372_v49 }
  0xbe   :  { %1574 = vmatprep.subr.mxu0 %v1369_v50 }
  0xbf   :  { %1575 = vmatpush1.msra.mxu0 %v1368_v51 }
  0xc0   :  { %1576 = vmatprep.subr.mxu0 %v1365_v53  ;;  %v4425_v53 = vld [vmem:[%s5898_s3 + $0xe8] ss:$16 sps:$4 sm:$0xff]  }
  0xc1   :  { %1577 = vmatpush1.msra.mxu0 %v1364_v54 }
  0xc2   :  { %1578 = vmatprep.subr.mxu0 %v1361_v55  ;;  %v4433_v55 = vld [vmem:[%s5898_s3 + $0xac] ss:$16 sps:$4 sm:$0xff]  }
  0xc3   :  { %1579 = vmatpush1.msra.mxu0 %v1360_v56  ;;  %v4431_v56 = vld [vmem:[%s5898_s3 + $0xa8] ss:$16 sps:$4 sm:$0xff]  }
  0xc4   :  { %1580 = vmatprep.subr.mxu0 %v1357_v57  ;;  %v4436_v57 = vld [vmem:[%s5898_s3 + $0x8c] ss:$16 sps:$4 sm:$0xff]  }
  0xc5   :  { %1581 = vmatpush1.msra.mxu0 %v1356_v58  ;;  %v4434_v58 = vld [vmem:[%s5898_s3 + $0x88] ss:$16 sps:$4 sm:$0xff]  }
  0xc6   :  { %1582 = vmatprep.subr.mxu0 %v1353_v59  ;;  %v4439_v59 = vld [vmem:[%s5898_s3 + $0x6c] ss:$16 sps:$4 sm:$0xff]  }
  0xc7   :  { %1583 = vmatpush1.msra.mxu0 %v1352_v60  ;;  %v4437_v60 = vld [vmem:[%s5898_s3 + $0x68] ss:$16 sps:$4 sm:$0xff]  }
  0xc8   :  { %1584 = vmatprep.subr.mxu0 %v1349_v61  ;;  %v4442_v61 = vld [vmem:[%s5898_s3 + $0x4c] ss:$16 sps:$4 sm:$0xff]  }
  0xc9   :  { %1585 = vmatpush1.msra.mxu0 %v1348_v62  ;;  %v4440_v62 = vld [vmem:[%s5898_s3 + $0x48] ss:$16 sps:$4 sm:$0xff]  }
  0xca   :  { %1586 = vmatprep.subr.mxu0 %v1345_v63  ;;  %v4445_v63 = vld [vmem:[%s5898_s3 + $0x2c] ss:$16 sps:$4 sm:$0xff]  }
  0xcb   :  { %1587 = vmatpush1.msra.mxu0 %v1344_v0  ;;  %v4443_v0 = vld [vmem:[%s5898_s3 + $0x28] ss:$16 sps:$4 sm:$0xff]  }
  0xcc   :  { %1588 = vmatprep.subr.mxu0 %v1341_v1  ;;  %v4448_v1 = vld [vmem:[%s5898_s3 + $0xc] ss:$16 sps:$4 sm:$0xff]  }
  0xcd   :  { %1589 = vmatpush1.msra.mxu0 %v1340_v2  ;;  %v952_v2 = vld [vmem:[%s5898_s3 + $0x188] sm:$0xff] }
  0xce   :  { %1590 = vmatprep.subr.mxu0 %v1337_v3  ;;  %v4446_v3 = vld [vmem:[%s5898_s3 + $0x8] ss:$16 sps:$4 sm:$0xff]  }
  0xcf   :  { %1591 = vmatpush1.msra.mxu0 %v1336_v4  ;;  %v3993_v4 = vcombine.high %v952_v2, %v952_v2 }
  0xd0   :  { %1592 = vmatprep.subr.mxu0 %v1461_v5  ;;  %v3992_v5 = vcombine.low %v952_v2, %v952_v2 }
  0xd1   :  { %1593 = vmatpush2.msra.mxu0 %v1460_v6 }
  0xd2   :  { %1594 = vmatprep.subr.mxu0 %v1457_v7  ;;  %v1237_v6 = vsel %vm1229_vm1, %v3992_v5, 0  ;;  %v4453_v7 = vld [vmem:[%s5898_s3 + $0x16c] ss:$16 sps:$4 sm:$0xff]  }
  0xd3   :  { %1595 = vmatpush2.msra.mxu0 %v1456_v8  ;;  %v4451_v8 = vld [vmem:[%s5898_s3 + $0x168] ss:$16 sps:$4 sm:$0xff]  }
  0xd4   :  { %1596 = vmatprep.subr.mxu0 %v1453_v9  ;;  %v4456_v9 = vld [vmem:[%s5898_s3 + $0x14c] ss:$16 sps:$4 sm:$0xff]  }
  0xd5   :  { %1597 = vmatpush2.msra.mxu0 %v1452_v10  ;;  %v4454_v10 = vld [vmem:[%s5898_s3 + $0x148] ss:$16 sps:$4 sm:$0xff]  }
  0xd6   :  { %1598 = vmatprep.subr.mxu0 %v1449_v11  ;;  %v4459_v11 = vld [vmem:[%s5898_s3 + $0x12c] ss:$16 sps:$4 sm:$0xff]  }
  0xd7   :  { %1599 = vmatpush2.msra.mxu0 %v1448_v12  ;;  %v4457_v12 = vld [vmem:[%s5898_s3 + $0x128] ss:$16 sps:$4 sm:$0xff]  }
  0xd8   :  { %1600 = vmatprep.subr.mxu0 %v1445_v13  ;;  %v4462_v13 = vld [vmem:[%s5898_s3 + $0x10c] ss:$16 sps:$4 sm:$0xff]  }
  0xd9   :  { %1601 = vmatpush2.msra.mxu0 %v1444_v14  ;;  %v4460_v14 = vld [vmem:[%s5898_s3 + $0x108] ss:$16 sps:$4 sm:$0xff]  }
  0xda   :  { %1602 = vmatprep.subr.mxu0 %v1441_v15  ;;  %v1408_v15 = vld [vmem:[#allocation2 + $0x240] sm:$0xff] }
  0xdb   :  { %1603 = vmatpush2.msra.mxu0 %v1440_v16  ;;  %v1405_v16 = vld [vmem:[#allocation2 + $0x228] sm:$0xff] }
  0xdc   :  { %1604 = vmatprep.subr.mxu0 %v1437_v17  ;;  %v1404_v17 = vld [vmem:[#allocation2 + $0x220] sm:$0xff] }
  0xdd   :  { %1605 = vmatpush2.msra.mxu0 %v1436_v19  ;;  %v1401_v19 = vld [vmem:[#allocation2 + $0x208] sm:$0xff] }
 0x128   :  { %v769_v23 = vpop.f32.mrf.mxu0 }
 0x129   :  { %v770_v24 = vadd.f32 %v769_v23, %v193_v21  ;;  %v810_v26 = vpop.f32.mrf.mxu1  ;;  %v1433_v21 = vld [vmem:[#allocation2 + $0x308] sm:$0xff] }
 0x12a   :  { %v771_v25 = vpop.f32.mrf.mxu0  ;;  %v1429_v23 = vld [vmem:[#allocation2 + $0x2e8] sm:$0xff]  ;;  %1606 = vmatprep.subr.mxu0 %v1433_v21  ;;  %v1400_v21 = vld [vmem:[#allocation2 + $0x200] sm:$0xff] }
 0x12b   :  { %v772_v27 = vadd.f32 %v771_v25, %v197_v22  ;;  %v5324_v28 = vadd.f32 %v810_v26, %v770_v24  ;;  %v812_v30 = vpop.f32.mrf.mxu1  ;;  %v1432_v22 = vld [vmem:[#allocation2 + $0x300] sm:$0xff]  ;;  %v1425_v25 = vld [vmem:[#allocation2 + $0x2c8] sm:$0xff] }
 0x12c   :  { %v773_v29 = vpop.f32.mrf.mxu0  ;;  %v1428_v24 = vld [vmem:[#allocation2 + $0x2e0] sm:$0xff]  ;;  %1607 = vmatpush2.msra.mxu0 %v1432_v22  ;;  %v1399_v22 = vld [vmem:[#allocation2 + $0x1f8] sm:$0xff] }
 0x12d   :  { %v5326_v31 = vadd.f32 %v812_v30, %v772_v27  ;;  %v814_v33 = vpop.f32.mrf.mxu1  ;;  %1608 = vmatprep.subr.mxu0 %v1429_v23  ;;  %v1424_v26 = vld [vmem:[#allocation2 + $0x2c0] sm:$0xff]  ;;  %v1421_v27 = vld [vmem:[#allocation2 + $0x2a8] sm:$0xff] }
 0x12e   :  { %v774_v32 = vpop.f32.mrf.mxu0  ;;  %1609 = vmatpush2.msra.mxu0 %v1428_v24  ;;  %v1420_v29 = vld [vmem:[#allocation2 + $0x2a0] sm:$0xff]  ;;  %v1417_v30 = vld [vmem:[#allocation2 + $0x288] sm:$0xff] }
 0x12f   :  { %v815_v38 = vpop.f32.mrf.mxu1  ;;  %1610 = vmatprep.subr.mxu0 %v1425_v25  ;;  %v1416_v32 = vld [vmem:[#allocation2 + $0x280] sm:$0xff]  ;;  %v1413_v33 = vld [vmem:[#allocation2 + $0x268] sm:$0xff] }
 0x130   :  { %1611 = vmatpush2.msra.mxu0 %v1424_v26  ;;  %v1525_v23 = vld [vmem:[#allocation2 + $0x5e8] sm:$0xff]  ;;  %v1524_v24 = vld [vmem:[#allocation2 + $0x5e0] sm:$0xff] }
 0x131   :  { %1612 = vmatprep.subr.mxu0 %v1421_v27  ;;  %v1521_v25 = vld [vmem:[#allocation2 + $0x5c8] sm:$0xff]  ;;  %v1520_v26 = vld [vmem:[#allocation2 + $0x5c0] sm:$0xff] }
 0x132   :  { %1613 = vmatpush2.msra.mxu0 %v1420_v29  ;;  %v1517_v27 = vld [vmem:[#allocation2 + $0x5a8] sm:$0xff]  ;;  %v1516_v29 = vld [vmem:[#allocation2 + $0x5a0] sm:$0xff] }
 0x133   :  { %1614 = vmatprep.subr.mxu0 %v1417_v30  ;;  %v1513_v30 = vld [vmem:[#allocation2 + $0x588] sm:$0xff] }
 0x134   :  { %1615 = vmatpush2.msra.mxu0 %v1416_v32  ;;  %v1512_v32 = vld [vmem:[#allocation2 + $0x580] sm:$0xff] }
 0x135   :  { %1616 = vmatprep.subr.mxu0 %v1413_v33  ;;  %v1509_v33 = vld [vmem:[#allocation2 + $0x568] sm:$0xff] }
 0x136   :  { %1617 = vmatpush2.msra.mxu0 %v1412_v34  ;;  %v1508_v34 = vld [vmem:[#allocation2 + $0x560] sm:$0xff] }
 0x137   :  { %1618 = vmatprep.subr.mxu0 %v1409_v35  ;;  %v1505_v35 = vld [vmem:[#allocation2 + $0x548] sm:$0xff] }
 0x138   :  { %1619 = vmatpush2.msra.mxu0 %v1408_v15  ;;  %v1383_v15 = vld [vmem:[#allocation2 + $0x178] sm:$0xff] }
 0x139   :  { %1620 = vmatprep.subr.mxu0 %v1405_v16  ;;  %v1382_v16 = vld [vmem:[#allocation2 + $0x170] sm:$0xff] }
 0x13a   :  { %1621 = vmatpush2.msra.mxu0 %v1404_v17  ;;  %v1379_v17 = vld [vmem:[#allocation2 + $0x158] sm:$0xff] }
 0x13b   :  { %1622 = vmatprep.subr.mxu0 %v1401_v19  ;;  %v1378_v19 = vld [vmem:[#allocation2 + $0x150] sm:$0xff] }
 0x13c   :  { %1623 = vmatpush2.msra.mxu0 %v1400_v21  ;;  %v1375_v21 = vld [vmem:[#allocation2 + $0x138] sm:$0xff] }
 0x13d   :  { %1702 = vmatprep.subr.mxu0 %v1399_v22  ;;  %v1374_v22 = vld [vmem:[#allocation2 + $0x130] sm:$0xff] }
 0x168   :  { %v851_v36 = vpop.f32.mrf.mxu0 }
 0x169   :  { %v852_v40 = vadd.f32 %v851_v36, %v5324_v28  ;;  %v4430_v28 = vld [vmem:[%s5898_s3 + $0xcc] ss:$16 sps:$4 sm:$0xff]   ;;  %v1504_v36 = vld [vmem:[#allocation2 + $0x540] sm:$0xff] }
 0x16a   :  { %v853_v37 = vpop.f32.mrf.mxu0 }
 0x16b   :  { %v854_v43 = vadd.f32 %v853_v37, %v5326_v31  ;;  %v4428_v31 = vld [vmem:[%s5898_s3 + $0xc8] ss:$16 sps:$4 sm:$0xff]  }
 0x16c   :  { %v855_v38 = vpop.f32.mrf.mxu0  ;;  %v1501_v37 = vld [vmem:[#allocation2 + $0x528] sm:$0xff] }
 0x16d   :  { %v1500_v38 = vld [vmem:[#allocation2 + $0x520] sm:$0xff] }
 0x16e   :  { %v856_v39 = vpop.f32.mrf.mxu0 }
 0x16f   :  { %v1497_v39 = vld [vmem:[#allocation2 + $0x508] sm:$0xff] }
 0x170   :  { %v892_v41 = vpop.f32.mrf.mxu0 }
 0x171   :  { %v893_v44 = vadd.f32 %v892_v41, %v852_v40  ;;  %v1496_v40 = vld [vmem:[#allocation2 + $0x500] sm:$0xff]  ;;  %v1493_v41 = vld [vmem:[#allocation2 + $0x4e8] sm:$0xff] }
 0x172   :  { %v894_v45 = vpop.f32.mrf.mxu0 }
 0x173   :  { %v895_v46 = vadd.f32 %v894_v45, %v854_v43  ;;  %v899_v47 = vmax.f32 %v893_v44, 0.0  ;;  %v1492_v43 = vld [vmem:[#allocation2 + $0x4e0] sm:$0xff]  ;;  %v1489_v44 = vld [vmem:[#allocation2 + $0x4c8] sm:$0xff] }
 0x174   :  { %v896_v48 = vpop.f32.mrf.mxu0  ;;  %v1488_v45 = vld [vmem:[#allocation2 + $0x4c0] sm:$0xff] }
 0x175   :  { %v900_v49 = vmax.f32 %v895_v46, 0.0  ;;  %v901_v54 = vpack.c.bf16 %v899_v47, %v899_v47  ;;  %v1485_v46 = vld [vmem:[#allocation2 + $0x4a8] sm:$0xff]  ;;  %v1484_v47 = vld [vmem:[#allocation2 + $0x4a0] sm:$0xff] }
 0x176   :  { %v897_v50 = vpop.f32.mrf.mxu0  ;;  %v1481_v48 = vld [vmem:[#allocation2 + $0x488] sm:$0xff] }
 0x177   :  { %v902_v51 = vpack.c.bf16 %v900_v49, %v900_v49  ;;  %v1480_v49 = vld [vmem:[#allocation2 + $0x480] sm:$0xff]  ;;  %v1477_v50 = vld [vmem:[#allocation2 + $0x468] sm:$0xff] }
 0x179   :  { %3995 = vmatprep.mubr.msk.bf16.mxu1 %vm1225_vm2, %v902_v51 }
 0x17a   :  { %1275 = vmatmul.mubr.bf16.vlgmr.msra.gmra.mxu1 %v901_v54 }
 0x17b   :  { %1284 = vmatpush1.bf16.msra.mxu1 %v4425_v53  ;;  %3997 = vmatprep.mubr.msk.bf16.mxu1 %vm1225_vm2, %v902_v51  ;;  %v1476_v51 = vld [vmem:[#allocation2 + $0x460] sm:$0xff]  ;;  %v1473_v53 = vld [vmem:[#allocation2 + $0x448] sm:$0xff] }
 0x17c   :  { %1285 = vmatprep.subr.bf16.mxu1 %v4430_v28  ;;  %v1469_v28 = vld [vmem:[#allocation2 + $0x428] sm:$0xff] }
 0x17f   :  { %1286 = vmatpush1.bf16.msra.mxu1 %v4428_v31  ;;  %v1468_v31 = vld [vmem:[#allocation2 + $0x420] sm:$0xff] }
 0x180   :  { %1287 = vmatprep.subr.bf16.mxu1 %v4433_v55  ;;  %v1465_v55 = vld [vmem:[#allocation2 + $0x408] sm:$0xff] }
 0x183   :  { %1288 = vmatpush1.bf16.msra.mxu1 %v4431_v56  ;;  %v1464_v56 = vld [vmem:[#allocation2 + $0x400] sm:$0xff] }
 0x184   :  { %1289 = vmatprep.subr.bf16.mxu1 %v4436_v57  ;;  %v1533_v57 = vld [vmem:[#allocation2 + $0x628] sm:$0xff] }
 0x187   :  { %1290 = vmatpush1.bf16.msra.mxu1 %v4434_v58  ;;  %v1532_v58 = vld [vmem:[#allocation2 + $0x620] sm:$0xff] }
 0x188   :  { %1291 = vmatprep.subr.bf16.mxu1 %v4439_v59  ;;  %v1529_v59 = vld [vmem:[#allocation2 + $0x608] sm:$0xff] }
 0x18b   :  { %1292 = vmatpush1.bf16.msra.mxu1 %v4437_v60  ;;  %v1528_v60 = vld [vmem:[#allocation2 + $0x600] sm:$0xff] }
 0x18c   :  { %1293 = vmatprep.subr.bf16.mxu1 %v4442_v61  ;;  %v1527_v61 = vld [vmem:[#allocation2 + $0x5f8] sm:$0xff] }
 0x18f   :  { %1294 = vmatpush1.bf16.msra.mxu1 %v4440_v62  ;;  %v5409_v62 = vld [vmem:[%s5899_s4] sm:$0xf] }
 0x190   :  { %1295 = vmatprep.subr.bf16.mxu1 %v4445_v63  ;;  %v958_v63 = vrot.slane %v5409_v62, %v5314_v18 }
 0x193   :  { %1296 = vmatpush1.bf16.msra.mxu1 %v4443_v0  ;;  %v962_v0 = vrot.slane %v5409_v62, %v5320_v20 }
 0x194   :  { %1297 = vmatprep.subr.bf16.mxu1 %v4448_v1 }
 0x197   :  { %1298 = vmatpush1.bf16.msra.mxu1 %v4446_v3 }
 0x198   :  { %3996 = vmatprep.subr.msk.bf16.mxu1 %vm1229_vm1, %v3993_v4 }
 0x19b   :  { %1306 = vmatpush2.bf16.msra.mxu1 %v1237_v6  ;;  %v1398_v6 = vld [vmem:[#allocation2 + $0x1f0] sm:$0xff] }
 0x19c   :  { %1307 = vmatprep.subr.bf16.mxu1 %v4453_v7 }
 0x19f   :  { %1308 = vmatpush2.bf16.msra.mxu1 %v4451_v8  ;;  %v1395_v8 = vld [vmem:[#allocation2 + $0x1d8] sm:$0xff] }
 0x1a0   :  { %1309 = vmatprep.subr.bf16.mxu1 %v4456_v9 }
 0x1a3   :  { %1310 = vmatpush2.bf16.msra.mxu1 %v4454_v10  ;;  %v1394_v10 = vld [vmem:[#allocation2 + $0x1d0] sm:$0xff] }
 0x1a4   :  { %1311 = vmatprep.subr.bf16.mxu1 %v4459_v11  ;;  %v1391_v11 = vld [vmem:[#allocation2 + $0x1b8] sm:$0xff] }
 0x1a7   :  { %1312 = vmatpush2.bf16.msra.mxu1 %v4457_v12  ;;  %v1390_v12 = vld [vmem:[#allocation2 + $0x1b0] sm:$0xff] }
 0x1a8   :  { %1313 = vmatprep.subr.bf16.mxu1 %v4462_v13  ;;  %v1387_v13 = vld [vmem:[#allocation2 + $0x198] sm:$0xff] }
 0x1ab   :  { %1314 = vmatpush2.bf16.msra.mxu1 %v4460_v14  ;;  %v1386_v14 = vld [vmem:[#allocation2 + $0x190] sm:$0xff] }
 0x1ac   :  { %1631 = vmatprep.subr.mxu1 %v1525_v23  ;;  %v1371_v23 = vld [vmem:[#allocation2 + $0x118] sm:$0xff] }
 0x1ae   :  { %1316 = vmatmul.mubr.bf16.vlgmr.msra.gmra.mxu1 %v901_v54  ;;  %v1472_v54 = vld [vmem:[#allocation2 + $0x440] sm:$0xff] }
 0x1af   :  { %1632 = vmatpush1.msra.mxu1 %v1524_v24  ;;  %v1370_v24 = vld [vmem:[#allocation2 + $0x110] sm:$0xff] }
 0x1b0   :  { %1633 = vmatprep.subr.mxu1 %v1521_v25  ;;  %v1367_v25 = vld [vmem:[#allocation2 + $0xf8] sm:$0xff] }
 0x1b1   :  { %1634 = vmatpush1.msra.mxu1 %v1520_v26  ;;  %v1366_v26 = vld [vmem:[#allocation2 + $0xf0] sm:$0xff] }
 0x1b2   :  { %1635 = vmatprep.subr.mxu1 %v1517_v27  ;;  %v1363_v27 = vld [vmem:[#allocation2 + $0xd8] sm:$0xff] }
 0x1b3   :  { %1636 = vmatpush1.msra.mxu1 %v1516_v29  ;;  %v1362_v29 = vld [vmem:[#allocation2 + $0xd0] sm:$0xff] }
 0x1b4   :  { %1637 = vmatprep.subr.mxu1 %v1513_v30  ;;  %v1359_v30 = vld [vmem:[#allocation2 + $0xb8] sm:$0xff] }
 0x1b5   :  { %1638 = vmatpush1.msra.mxu1 %v1512_v32  ;;  %v1358_v32 = vld [vmem:[#allocation2 + $0xb0] sm:$0xff] }
 0x1b6   :  { %1639 = vmatprep.subr.mxu1 %v1509_v33  ;;  %v1355_v33 = vld [vmem:[#allocation2 + $0x98] sm:$0xff] }
 0x1b7   :  { %1640 = vmatpush1.msra.mxu1 %v1508_v34  ;;  %v1354_v34 = vld [vmem:[#allocation2 + $0x90] sm:$0xff] }
 0x1b8   :  { %1641 = vmatprep.subr.mxu1 %v1505_v35  ;;  %v1351_v35 = vld [vmem:[#allocation2 + $0x78] sm:$0xff] }
 0x1b9   :  { %1642 = vmatpush1.msra.mxu1 %v1504_v36  ;;  %v1350_v36 = vld [vmem:[#allocation2 + $0x70] sm:$0xff] }
 0x1ba   :  { %1643 = vmatprep.subr.mxu1 %v1501_v37  ;;  %v1347_v37 = vld [vmem:[#allocation2 + $0x58] sm:$0xff] }
 0x1bb   :  { %1644 = vmatpush1.msra.mxu1 %v1500_v38  ;;  %v1346_v38 = vld [vmem:[#allocation2 + $0x50] sm:$0xff] }
 0x1bc   :  { %1645 = vmatprep.subr.mxu1 %v1497_v39  ;;  %v1343_v39 = vld [vmem:[#allocation2 + $0x38] sm:$0xff] }
 0x1bd   :  { %1646 = vmatpush1.msra.mxu1 %v1496_v40  ;;  %v1342_v40 = vld [vmem:[#allocation2 + $0x30] sm:$0xff] }
 0x1be   :  { %1647 = vmatprep.subr.mxu1 %v1493_v41  ;;  %v1339_v41 = vld [vmem:[#allocation2 + $0x18] sm:$0xff] }
 0x1bf   :  { %1648 = vmatpush1.msra.mxu1 %v1492_v43  ;;  %v1338_v43 = vld [vmem:[#allocation2 + $0x10] sm:$0xff] }
 0x1c0   :  { %1649 = vmatprep.subr.mxu1 %v1489_v44  ;;  %v1463_v44 = vld [vmem:[#allocation2 + $0x3f8] sm:$0xff] }
 0x1c1   :  { %1650 = vmatpush1.msra.mxu1 %v1488_v45  ;;  %v1462_v45 = vld [vmem:[#allocation2 + $0x3f0] sm:$0xff] }
 0x1c2   :  { %1651 = vmatprep.subr.mxu1 %v1485_v46  ;;  %v1459_v46 = vld [vmem:[#allocation2 + $0x3d8] sm:$0xff] }
 0x1c3   :  { %1652 = vmatpush1.msra.mxu1 %v1484_v47  ;;  %v1458_v47 = vld [vmem:[#allocation2 + $0x3d0] sm:$0xff] }
 0x1c4   :  { %1653 = vmatprep.subr.mxu1 %v1481_v48  ;;  %v1455_v48 = vld [vmem:[#allocation2 + $0x3b8] sm:$0xff] }
 0x1c5   :  { %1654 = vmatpush1.msra.mxu1 %v1480_v49  ;;  %v1454_v49 = vld [vmem:[#allocation2 + $0x3b0] sm:$0xff] }
 0x1c6   :  { %1655 = vmatprep.subr.mxu1 %v1477_v50  ;;  %v1451_v50 = vld [vmem:[#allocation2 + $0x398] sm:$0xff] }
 0x1c7   :  { %1656 = vmatpush1.msra.mxu1 %v1476_v51  ;;  %v1450_v51 = vld [vmem:[#allocation2 + $0x390] sm:$0xff] }
 0x1c8   :  { %1657 = vmatprep.subr.mxu1 %v1473_v53  ;;  %v1447_v53 = vld [vmem:[#allocation2 + $0x378] sm:$0xff] }
 0x1c9   :  { %1658 = vmatpush1.msra.mxu1 %v1472_v54  ;;  %v1446_v54 = vld [vmem:[#allocation2 + $0x370] sm:$0xff] }
 0x1ca   :  { %1659 = vmatprep.subr.mxu1 %v1469_v28  ;;  %v1443_v28 = vld [vmem:[#allocation2 + $0x358] sm:$0xff] }
 0x1cb   :  { %1660 = vmatpush1.msra.mxu1 %v1468_v31  ;;  %v1442_v31 = vld [vmem:[#allocation2 + $0x350] sm:$0xff] }
 0x1cc   :  { %1661 = vmatprep.subr.mxu1 %v1465_v55  ;;  %v1439_v55 = vld [vmem:[#allocation2 + $0x338] sm:$0xff] }
 0x1cd   :  { %1662 = vmatpush1.msra.mxu1 %v1464_v56  ;;  %v5420_v56 = vsub.s32 2, %v5031_v42 }
 0x1ce   :  { %1691 = vmatprep.subr.mxu1 %v1533_v57  ;;  %v5423_v57 = vsub.s32 3, %v5031_v42 }
 0x1cf   :  { %1692 = vmatpush2.msra.mxu1 %v1532_v58  ;;  %v1438_v58 = vld [vmem:[#allocation2 + $0x330] sm:$0xff] }
 0x1d0   :  { %1693 = vmatprep.subr.mxu1 %v1529_v59  ;;  %v1435_v59 = vld [vmem:[#allocation2 + $0x318] sm:$0xff] }
 0x1d1   :  { %1694 = vmatpush2.msra.mxu1 %v1528_v60  ;;  %v1434_v60 = vld [vmem:[#allocation2 + $0x310] sm:$0xff] }
 0x1d2   :  { %1773 = vmatprep.subr.mxu1 %v1527_v61  ;;  %v966_v61 = vrot.slane %v5409_v62, %v5420_v56 }
 0x23a   :  { %v1276_v1 = vpop.f32.mrf.mxu1 }
 0x23b   :  { %v5415_v3 = vadd.f32 %v1276_v1, %v958_v63  ;;  %v970_v63 = vrot.slane %v5409_v62, %v5423_v57  ;;  %v4546_v62 = vld [vmem:[%s5905_s10 + $0x154] ss:$28 sps:$4 sm:$0xff]  }
 0x23c   :  { %v1278_v2 = vpop.f32.mrf.mxu1 }
 0x23d   :  { %v1279_v4 = vadd.f32 %v1278_v2, %v962_v0  ;;  %v1431_v0 = vld [vmem:[#allocation2 + $0x2f8] sm:$0xff]  ;;  %v1430_v2 = vld [vmem:[#allocation2 + $0x2f0] sm:$0xff] }
 0x23e   :  { %v1280_v5 = vpop.f32.mrf.mxu1 }
 0x23f   :  { %v1328_v7 = vcombine.low %v5415_v3, %v1279_v4  ;;  %1624 = vmatprep.mubr.f32.mxu0 %v1279_v4 }
 0x240   :  { %v1281_v9 = vpop.f32.mrf.mxu1  ;;  %1625 = vmatmul.mubr.f32.vlgmr.msra.gmra.mxu0 %v5415_v3 }
 0x241   :  { %1332 = vst [vmem:[#allocation9] sm:$0xff] %v1328_v7  ;;  %1703 = vmatpush1.msra.mxu0 %v1398_v6  ;;  %1766 = vmatprep.mubr.f32.mxu0 %v1279_v4  ;;  %v1427_v4 = vld [vmem:[#allocation2 + $0x2d8] sm:$0xff]  ;;  %v1426_v6 = vld [vmem:[#allocation2 + $0x2d0] sm:$0xff] }
 0x242   :  { %1704 = vmatprep.subr.mxu0 %v1395_v8  ;;  %v1423_v9 = vld [vmem:[#allocation2 + $0x2b8] sm:$0xff] }
 0x243   :  { %1705 = vmatpush1.msra.mxu0 %v1394_v10 }
 0x244   :  { %1706 = vmatprep.subr.mxu0 %v1391_v11  ;;  %v1526_v11 = vld [vmem:[#allocation2 + $0x5f0] sm:$0xff] }
 0x245   :  { %1707 = vmatpush1.msra.mxu0 %v1390_v12  ;;  %v1422_v12 = vld [vmem:[#allocation2 + $0x2b0] sm:$0xff] }
 0x246   :  { %1708 = vmatprep.subr.mxu0 %v1387_v13 }
 0x247   :  { %1709 = vmatpush1.msra.mxu0 %v1386_v14  ;;  %v1523_v14 = vld [vmem:[#allocation2 + $0x5d8] sm:$0xff] }
 0x248   :  { %1710 = vmatprep.subr.mxu0 %v1383_v15 }
 0x249   :  { %1711 = vmatpush1.msra.mxu0 %v1382_v16  ;;  %v1419_v16 = vld [vmem:[#allocation2 + $0x298] sm:$0xff] }
 0x24a   :  { %1712 = vmatprep.subr.mxu0 %v1379_v17  ;;  %v1522_v17 = vld [vmem:[#allocation2 + $0x5d0] sm:$0xff] }
 0x24b   :  { %1713 = vmatpush1.msra.mxu0 %v1378_v19  ;;  %v1418_v19 = vld [vmem:[#allocation2 + $0x290] sm:$0xff] }
 0x24c   :  { %1714 = vmatprep.subr.mxu0 %v1375_v21  ;;  %v1519_v21 = vld [vmem:[#allocation2 + $0x5b8] sm:$0xff] }
 0x24d   :  { %1715 = vmatpush1.msra.mxu0 %v1374_v22  ;;  %v1415_v22 = vld [vmem:[#allocation2 + $0x278] sm:$0xff] }
 0x24e   :  { %1716 = vmatprep.subr.mxu0 %v1371_v23  ;;  %v1518_v23 = vld [vmem:[#allocation2 + $0x5b0] sm:$0xff] }
 0x24f   :  { %1717 = vmatpush1.msra.mxu0 %v1370_v24  ;;  %v1414_v24 = vld [vmem:[#allocation2 + $0x270] sm:$0xff] }
 0x250   :  { %1718 = vmatprep.subr.mxu0 %v1367_v25  ;;  %v1515_v25 = vld [vmem:[#allocation2 + $0x598] sm:$0xff] }
 0x251   :  { %1719 = vmatpush1.msra.mxu0 %v1366_v26  ;;  %v1411_v26 = vld [vmem:[#allocation2 + $0x258] sm:$0xff] }
 0x252   :  { %1720 = vmatprep.subr.mxu0 %v1363_v27  ;;  %v1514_v27 = vld [vmem:[#allocation2 + $0x590] sm:$0xff] }
 0x253   :  { %1721 = vmatpush1.msra.mxu0 %v1362_v29  ;;  %v1410_v29 = vld [vmem:[#allocation2 + $0x250] sm:$0xff] }
 0x254   :  { %1722 = vmatprep.subr.mxu0 %v1359_v30  ;;  %v1511_v30 = vld [vmem:[#allocation2 + $0x578] sm:$0xff] }
 0x255   :  { %1723 = vmatpush1.msra.mxu0 %v1358_v32  ;;  %v1407_v32 = vld [vmem:[#allocation2 + $0x238] sm:$0xff] }
 0x256   :  { %1724 = vmatprep.subr.mxu0 %v1355_v33  ;;  %v1510_v33 = vld [vmem:[#allocation2 + $0x570] sm:$0xff] }
 0x257   :  { %1725 = vmatpush1.msra.mxu0 %v1354_v34  ;;  %v1406_v34 = vld [vmem:[#allocation2 + $0x230] sm:$0xff] }
 0x258   :  { %1726 = vmatprep.subr.mxu0 %v1351_v35  ;;  %v1507_v35 = vld [vmem:[#allocation2 + $0x558] sm:$0xff] }
 0x259   :  { %1727 = vmatpush1.msra.mxu0 %v1350_v36  ;;  %v1403_v36 = vld [vmem:[#allocation2 + $0x218] sm:$0xff] }
 0x25a   :  { %1728 = vmatprep.subr.mxu0 %v1347_v37  ;;  %v1506_v37 = vld [vmem:[#allocation2 + $0x550] sm:$0xff] }
 0x25b   :  { %1729 = vmatpush1.msra.mxu0 %v1346_v38  ;;  %v1402_v38 = vld [vmem:[#allocation2 + $0x210] sm:$0xff] }
 0x25c   :  { %1730 = vmatprep.subr.mxu0 %v1343_v39  ;;  %v1503_v39 = vld [vmem:[#allocation2 + $0x538] sm:$0xff] }
 0x25d   :  { %1731 = vmatpush1.msra.mxu0 %v1342_v40  ;;  %v1502_v40 = vld [vmem:[#allocation2 + $0x530] sm:$0xff] }
 0x25e   :  { %1732 = vmatprep.subr.mxu0 %v1339_v41  ;;  %v1499_v41 = vld [vmem:[#allocation2 + $0x518] sm:$0xff] }
 0x25f   :  { %1733 = vmatpush1.msra.mxu0 %v1338_v43  ;;  %v1498_v43 = vld [vmem:[#allocation2 + $0x510] sm:$0xff] }
 0x260   :  { %1734 = vmatprep.subr.mxu0 %v1463_v44  ;;  %v1495_v44 = vld [vmem:[#allocation2 + $0x4f8] sm:$0xff] }
 0x261   :  { %1735 = vmatpush2.msra.mxu0 %v1462_v45  ;;  %v1494_v45 = vld [vmem:[#allocation2 + $0x4f0] sm:$0xff] }
 0x262   :  { %1736 = vmatprep.subr.mxu0 %v1459_v46  ;;  %v1491_v46 = vld [vmem:[#allocation2 + $0x4d8] sm:$0xff] }
 0x263   :  { %1737 = vmatpush2.msra.mxu0 %v1458_v47  ;;  %v1490_v47 = vld [vmem:[#allocation2 + $0x4d0] sm:$0xff] }
 0x264   :  { %1738 = vmatprep.subr.mxu0 %v1455_v48  ;;  %v1487_v48 = vld [vmem:[#allocation2 + $0x4b8] sm:$0xff] }
 0x265   :  { %1739 = vmatpush2.msra.mxu0 %v1454_v49  ;;  %v1486_v49 = vld [vmem:[#allocation2 + $0x4b0] sm:$0xff] }
 0x266   :  { %1740 = vmatprep.subr.mxu0 %v1451_v50  ;;  %v1483_v50 = vld [vmem:[#allocation2 + $0x498] sm:$0xff] }
 0x267   :  { %1741 = vmatpush2.msra.mxu0 %v1450_v51  ;;  %v1482_v51 = vld [vmem:[#allocation2 + $0x490] sm:$0xff] }
 0x268   :  { %1742 = vmatprep.subr.mxu0 %v1447_v53  ;;  %v1479_v53 = vld [vmem:[#allocation2 + $0x478] sm:$0xff] }
 0x269   :  { %1743 = vmatpush2.msra.mxu0 %v1446_v54  ;;  %v1475_v54 = vld [vmem:[#allocation2 + $0x458] sm:$0xff] }
 0x26a   :  { %1744 = vmatprep.subr.mxu0 %v1443_v28  ;;  %v1474_v28 = vld [vmem:[#allocation2 + $0x450] sm:$0xff] }
 0x26b   :  { %1745 = vmatpush2.msra.mxu0 %v1442_v31  ;;  %v1471_v31 = vld [vmem:[#allocation2 + $0x438] sm:$0xff] }
 0x26c   :  { %1746 = vmatprep.subr.mxu0 %v1439_v55  ;;  %v1470_v55 = vld [vmem:[#allocation2 + $0x430] sm:$0xff] }
 0x26d   :  { %1747 = vmatpush2.msra.mxu0 %v1438_v58  ;;  %v1467_v58 = vld [vmem:[#allocation2 + $0x418] sm:$0xff] }
 0x26e   :  { %v1317_v1 = vpop.f32.mrf.mxu1  ;;  %1748 = vmatprep.subr.mxu0 %v1435_v59  ;;  %v1466_v59 = vld [vmem:[#allocation2 + $0x410] sm:$0xff] }
 0x26f   :  { %1749 = vmatpush2.msra.mxu0 %v1434_v60  ;;  %v5429_v7 = vadd.f32 %v1317_v1, %v966_v61  ;;  %v1535_v60 = vld [vmem:[#allocation2 + $0x638] sm:$0xff]  ;;  %v1534_v61 = vld [vmem:[#allocation2 + $0x630] sm:$0xff]  ;;  %v5447_v1 = vld [vmem:[%s5901_s6] sm:$0xf]  ;;  %s4818_s6 = smov 48  }
 0x270   :  { %v1319_v5 = vpop.f32.mrf.mxu1  ;;  %1750 = vmatprep.subr.mxu0 %v1431_v0  ;;  %v1530_v0 = vld [vmem:[#allocation2 + $0x610] sm:$0xff] }
 0x271   :  { %v1320_v8 = vadd.f32 %v1319_v5, %v970_v63  ;;  %1751 = vmatpush2.msra.mxu0 %v1430_v2  ;;  %v1531_v63 = vld [vmem:[#allocation2 + $0x618] sm:$0xff]  ;;  %v1541_v2 = vrot.slane %v5447_v1, %v5314_v18 }
 0x272   :  { %v1321_v10 = vpop.f32.mrf.mxu1  ;;  %1752 = vmatprep.subr.mxu0 %v1427_v4 }
 0x273   :  { %v1329_v13 = vcombine.low %v5429_v7, %v1320_v8  ;;  %3998 = vmatprep.mubr.msk.f32.mxu1 %vm731_vm0, %v1320_v8  ;;  %1753 = vmatpush2.msra.mxu0 %v1426_v6 }
 0x274   :  { %v1322_v15 = vpop.f32.mrf.mxu1  ;;  %1696 = vmatmul.mubr.f32.vlgmr.msra.gmra.mxu1 %v5429_v7  ;;  %1754 = vmatprep.subr.mxu0 %v1423_v9 }
 0x275   :  { %1774 = vmatpush1.msra.mxu1 %v1526_v11  ;;  %1755 = vmatpush2.msra.mxu0 %v1422_v12  ;;  %1335 = vst.msk [vmem:[#allocation9 + $0x8] sm:$0xff] %vm5432_vm4, %v1329_v13  ;;  %v1545_v15 = vrot.slane %v5447_v1, %v5320_v20 }
 0x276   :  { %1775 = vmatprep.subr.mxu1 %v1523_v14  ;;  %3999 = vmatprep.mubr.msk.f32.mxu1 %vm731_vm0, %v1320_v8 }
 0x277   :  { %1756 = vmatprep.subr.mxu0 %v1419_v16  ;;  %1776 = vmatpush1.msra.mxu1 %v1522_v17 }
 0x278   :  { %1757 = vmatpush2.msra.mxu0 %v1418_v19  ;;  %1777 = vmatprep.subr.mxu1 %v1519_v21 }
 0x279   :  { %1758 = vmatprep.subr.mxu0 %v1415_v22  ;;  %1778 = vmatpush1.msra.mxu1 %v1518_v23 }
 0x27a   :  { %1759 = vmatpush2.msra.mxu0 %v1414_v24  ;;  %1779 = vmatprep.subr.mxu1 %v1515_v25 }
 0x27b   :  { %1760 = vmatprep.subr.mxu0 %v1411_v26  ;;  %1780 = vmatpush1.msra.mxu1 %v1514_v27 }
 0x27c   :  { %1761 = vmatpush2.msra.mxu0 %v1410_v29  ;;  %1781 = vmatprep.subr.mxu1 %v1511_v30 }
 0x27d   :  { %1762 = vmatprep.subr.mxu0 %v1407_v32  ;;  %1782 = vmatpush1.msra.mxu1 %v1510_v33 }
 0x27e   :  { %1763 = vmatpush2.msra.mxu0 %v1406_v34  ;;  %1783 = vmatprep.subr.mxu1 %v1507_v35 }
 0x27f   :  { %1764 = vmatprep.subr.mxu0 %v1403_v36  ;;  %1784 = vmatpush1.msra.mxu1 %v1506_v37 }
 0x280   :  { %1765 = vmatpush2.msra.mxu0 %v1402_v38  ;;  %1785 = vmatprep.subr.mxu1 %v1503_v39 }
 0x281   :  { %1767 = vmatmul.mubr.f32.vlgmr.msra.gmra.mxu0 %v5415_v3  ;;  %1786 = vmatpush1.msra.mxu1 %v1502_v40  ;;  %v1478_v3 = vld [vmem:[#allocation2 + $0x470] sm:$0xff] }
 0x282   :  { %1787 = vmatprep.subr.mxu1 %v1499_v41 }
 0x283   :  { %1788 = vmatpush1.msra.mxu1 %v1498_v43  ;;  %v1549_v43 = vrot.slane %v5447_v1, %v5420_v56 }
 0x284   :  { %1789 = vmatprep.subr.mxu1 %v1495_v44 }
 0x285   :  { %1790 = vmatpush1.msra.mxu1 %v1494_v45 }
 0x286   :  { %1791 = vmatprep.subr.mxu1 %v1491_v46 }
 0x287   :  { %1792 = vmatpush1.msra.mxu1 %v1490_v47 }
 0x288   :  { %1793 = vmatprep.subr.mxu1 %v1487_v48 }
 0x289   :  { %1794 = vmatpush1.msra.mxu1 %v1486_v49 }
 0x28a   :  { %1795 = vmatprep.subr.mxu1 %v1483_v50 }
 0x28b   :  { %1796 = vmatpush1.msra.mxu1 %v1482_v51 }
 0x28c   :  { %1797 = vmatprep.subr.mxu1 %v1479_v53 }
 0x28d   :  { %1798 = vmatpush1.msra.mxu1 %v1478_v3 }
 0x28e   :  { %1799 = vmatprep.subr.mxu1 %v1475_v54 }
 0x28f   :  { %1800 = vmatpush1.msra.mxu1 %v1474_v28 }
 0x290   :  { %1801 = vmatprep.subr.mxu1 %v1471_v31 }
 0x291   :  { %1802 = vmatpush1.msra.mxu1 %v1470_v55 }
 0x292   :  { %1803 = vmatprep.subr.mxu1 %v1467_v58 }
 0x293   :  { %1804 = vmatpush1.msra.mxu1 %v1466_v59 }
 0x294   :  { %1833 = vmatprep.subr.mxu1 %v1535_v60 }
 0x295   :  { %1834 = vmatpush2.msra.mxu1 %v1534_v61 }
 0x296   :  { %1835 = vmatprep.subr.mxu1 %v1531_v63 }
 0x297   :  { %1836 = vmatpush2.msra.mxu1 %v1530_v0 }
 0x298   :  { %1838 = vmatmul.mubr.f32.vlgmr.msra.gmra.mxu1 %v5429_v7 }
 0x300   :  { %v1626_v4 = vpop.f32.mrf.mxu0 }
 0x301   :  { %v1627_v5 = vadd.f32 %v1626_v4, %v1541_v2 }
 0x302   :  { %v1628_v16 = vpop.f32.mrf.mxu0 }
 0x303   :  { %v1629_v19 = vadd.f32 %v1628_v16, %v1545_v15  ;;  %v2288_v15 = vld [vmem:[#allocation5 + $0x5e0] sm:$0xff] }
 0x304   :  { %v2144_v16 = vld [vmem:[#allocation5 + $0x160] sm:$0xff] }
 0x334   :  { %v1697_v6 = vpop.f32.mrf.mxu1 }
 0x335   :  { %v1698_v8 = vadd.f32 %v1697_v6, %v1627_v5  ;;  %v2161_v5 = vld [vmem:[#allocation5 + $0x1e8] sm:$0xff]  ;;  %v2160_v6 = vld [vmem:[#allocation5 + $0x1e0] sm:$0xff] }
 0x336   :  { %v1699_v17 = vpop.f32.mrf.mxu1  ;;  %2303 = vmatprep.subr.mxu1 %v2161_v5  ;;  %v2101_v5 = vld [vmem:[#allocation5 + $0x8] sm:$0xff] }
 0x337   :  { %1845 = vrot.lane.b32.xlu0 %v1698_v8, %s4816_s30  ;;  %v1700_v21 = vadd.f32 %v1699_v17, %v1629_v19  ;;  %2304 = vmatpush1.msra.mxu1 %v2160_v6  ;;  %v2285_v17 = vld [vmem:[#allocation5 + $0x5c8] sm:$0xff]  ;;  %v2284_v19 = vld [vmem:[#allocation5 + $0x5c0] sm:$0xff] }
 0x338   :  { %v2240_v6 = vld [vmem:[#allocation5 + $0x460] sm:$0xff] }
 0x341   :  { %v1768_v44 = vpop.f32.mrf.mxu0 }
 0x342   :  { %v1769_v46 = vadd.f32 %v1768_v44, %v1549_v43  ;;  %v2124_v43 = vld [vmem:[#allocation5 + $0xc0] sm:$0xff]  ;;  %v2261_v44 = vld [vmem:[#allocation5 + $0x508] sm:$0xff] }
 0x358   :  { %v1839_v45 = vpop.f32.mrf.mxu1 }
 0x359   :  { %v5471_v47 = vadd.f32 %v1839_v45, %v1769_v46  ;;  %v2121_v45 = vld [vmem:[#allocation5 + $0xa8] sm:$0xff]  ;;  %v2260_v46 = vld [vmem:[#allocation5 + $0x500] sm:$0xff] }
 0x3a9   :  { %v1846_v9 = vpop.permute.xlu0 %1845 }
 0x3aa   :  { %vm1848_vm5 = vcmp.lt.f32.partialorder %v1698_v8, %v1846_v9 }
 0x3ab   :  { %v1850_v10 = vsel %vm1848_vm5, 1, %v4815_v52  ;;  %v1849_v7 = vsel %vm1848_vm5, %v1698_v8, %v1846_v9  ;;  %v2156_v9 = vld [vmem:[#allocation5 + $0x1c0] sm:$0xff] }
 0x3ac   :  { %1857 = vrot.lane.b32.xlu1 %v1850_v10, %s4816_s30  ;;  %1852 = vrot.lane.b32.xlu0 %v1849_v7, %s4816_s30  ;;  %v2153_v10 = vld [vmem:[#allocation5 + $0x1a8] sm:$0xff]  ;;  %v2152_v7 = vld [vmem:[#allocation5 + $0x1a0] sm:$0xff] }
 0x41e   :  { %v1858_v11 = vpop.permute.xlu1 %1857  ;;  %v1853_v12 = vpop.permute.xlu0 %1852 }
 0x41f   :  { %vm1855_vm6 = vcmp.lt.f32.partialorder %v1698_v8, %v1853_v12 }
 0x420   :  { %v1859_v13 = vsel %vm1855_vm6, 2, %v1858_v11  ;;  %v1856_v14 = vsel %vm1855_vm6, %v1698_v8, %v1853_v12  ;;  %v2149_v11 = vld [vmem:[#allocation5 + $0x188] sm:$0xff]  ;;  %v2148_v12 = vld [vmem:[#allocation5 + $0x180] sm:$0xff] }
 0x421   :  { %1868 = vrot.lane.b32.xlu0 %v1859_v13, %s4816_s30  ;;  %1861 = vrot.lane.b32.xlu1 %v1856_v14, %s4816_s30  ;;  %v2289_v13 = vld [vmem:[#allocation5 + $0x5e8] sm:$0xff] }
 0x422   :  { %v2145_v14 = vld [vmem:[#allocation5 + $0x168] sm:$0xff]  ;;  %2374 = vmatprep.subr.mxu0 %v2289_v13  ;;  %v2220_v13 = vld [vmem:[#allocation5 + $0x3c0] sm:$0xff] }
 0x423   :  { %2375 = vmatpush1.msra.mxu0 %v2288_v15  ;;  %v2216_v15 = vld [vmem:[#allocation5 + $0x3a0] sm:$0xff] }
 0x424   :  { %2376 = vmatprep.subr.mxu0 %v2285_v17  ;;  %v2212_v17 = vld [vmem:[#allocation5 + $0x380] sm:$0xff] }
 0x425   :  { %2377 = vmatpush1.msra.mxu0 %v2284_v19  ;;  %v2209_v19 = vld [vmem:[#allocation5 + $0x368] sm:$0xff] }
 0x493   :  { %v1862_v22 = vpop.permute.xlu1 %1861  ;;  %v1869_v25 = vpop.permute.xlu0 %1868 }
 0x494   :  { %vm1865_vm7 = vcmp.lt.f32.partialorder %v1700_v21, %v1862_v22  ;;  %vm1864_vm8 = vcmp.lt.f32.partialorder %v1698_v8, %v1862_v22 }
 0x495   :  { %v1867_v23 = vsel %vm1865_vm7, %v1700_v21, %v1862_v22  ;;  %v1866_v24 = vsel %vm1864_vm8, %v1698_v8, %v1862_v22  ;;  %v1871_v26 = vsel %vm1865_vm7, 3, %v1869_v25  ;;  %v1870_v27 = vsel %vm1864_vm8, 3, %v1869_v25  ;;  %v2157_v8 = vld [vmem:[#allocation5 + $0x1c8] sm:$0xff] }
 0x496   :  { %1876 = vrot.lane.b32.xlu0 %v1867_v23, %s4816_s30  ;;  %1874 = vrot.lane.b32.xlu1 %v1866_v24, %s4816_s30  ;;  %v2281_v22 = vld [vmem:[#allocation5 + $0x5a8] sm:$0xff]  ;;  %v2140_v23 = vld [vmem:[#allocation5 + $0x140] sm:$0xff] }
 0x497   :  { %2305 = vmatprep.subr.mxu1 %v2157_v8  ;;  %v2280_v24 = vld [vmem:[#allocation5 + $0x5a0] sm:$0xff]  ;;  %v2277_v25 = vld [vmem:[#allocation5 + $0x588] sm:$0xff]  ;;  %2378 = vmatprep.subr.mxu0 %v2281_v22 }
 0x498   :  { %2306 = vmatpush1.msra.mxu1 %v2156_v9  ;;  %2379 = vmatpush1.msra.mxu0 %v2280_v24  ;;  %v2100_v8 = vld [vmem:[#allocation5] sm:$0xff]  ;;  %v2237_v9 = vld [vmem:[#allocation5 + $0x448] sm:$0xff]  ;;  %v1553_v24 = vrot.slane %v5447_v1, %v5423_v57 }
 0x499   :  { %2307 = vmatprep.subr.mxu1 %v2153_v10  ;;  %2380 = vmatprep.subr.mxu0 %v2277_v25  ;;  %v2225_v10 = vld [vmem:[#allocation5 + $0x3e8] sm:$0xff]  ;;  %v1770_v25 = vpop.f32.mrf.mxu0 }
 0x49a   :  { %1885 = vrot.lane.b32.xlu0 %v1871_v26, %s4816_s30  ;;  %1883 = vrot.lane.b32.xlu1 %v1870_v27, %s4816_s30  ;;  %v2137_v26 = vld [vmem:[#allocation5 + $0x128] sm:$0xff]  ;;  %v2276_v27 = vld [vmem:[#allocation5 + $0x580] sm:$0xff] }
 0x49b   :  { %2308 = vmatpush1.msra.mxu1 %v2152_v7  ;;  %2381 = vmatpush1.msra.mxu0 %v2276_v27  ;;  %v2236_v7 = vld [vmem:[#allocation5 + $0x440] sm:$0xff]  ;;  %v2205_v22 = vld [vmem:[#allocation5 + $0x348] sm:$0xff]  ;;  %v1771_v27 = vadd.f32 %v1770_v25, %v1553_v24 }
 0x49c   :  { %2309 = vmatprep.subr.mxu1 %v2149_v11  ;;  %v2224_v11 = vld [vmem:[#allocation5 + $0x3e0] sm:$0xff]  ;;  %v2165_v25 = vld [vmem:[#allocation5 + $0x208] sm:$0xff] }
 0x49d   :  { %2310 = vmatpush1.msra.mxu1 %v2148_v12  ;;  %v2221_v12 = vld [vmem:[#allocation5 + $0x3c8] sm:$0xff] }
 0x49e   :  { %2311 = vmatprep.subr.mxu1 %v2145_v14  ;;  %v2217_v14 = vld [vmem:[#allocation5 + $0x3a8] sm:$0xff] }
 0x49f   :  { %2312 = vmatpush1.msra.mxu1 %v2144_v16  ;;  %v2213_v16 = vld [vmem:[#allocation5 + $0x388] sm:$0xff] }
 0x508   :  { %v1877_v29 = vpop.permute.xlu0 %1876  ;;  %v1875_v30 = vpop.permute.xlu1 %1874 }
 0x509   :  { %v1879_v32 = vsel %vm1878_vm9, %v1875_v30, %v1877_v29  ;;  %v2136_v29 = vld [vmem:[#allocation5 + $0x120] sm:$0xff]  ;;  %v2273_v30 = vld [vmem:[#allocation5 + $0x568] sm:$0xff] }
 0x50a   :  { %vm1881_vm10 = vcmp.lt.f32.partialorder %v1700_v21, %v1879_v32  ;;  %2382 = vmatprep.subr.mxu0 %v2273_v30  ;;  %v2233_v30 = vld [vmem:[#allocation5 + $0x428] sm:$0xff] }
 0x50b   :  { %v1882_v33 = vsel %vm1881_vm10, %v1700_v21, %v1879_v32  ;;  %v2133_v32 = vld [vmem:[#allocation5 + $0x108] sm:$0xff] }
 0x50c   :  { %v1886_v34 = vpop.permute.xlu0 %1885  ;;  %1890 = vrot.lane.b32.xlu1 %v1882_v33, %s4816_s30  ;;  %v1884_v35 = vpop.permute.xlu1 %1883  ;;  %v2272_v33 = vld [vmem:[#allocation5 + $0x560] sm:$0xff] }
 0x50d   :  { %v1887_v36 = vsel %vm1878_vm9, %v1884_v35, %v1886_v34  ;;  %v2132_v34 = vld [vmem:[#allocation5 + $0x100] sm:$0xff]  ;;  %v2269_v35 = vld [vmem:[#allocation5 + $0x548] sm:$0xff]  ;;  %2383 = vmatpush1.msra.mxu0 %v2272_v33 }
 0x50e   :  { %v1888_v37 = vsel %vm1881_vm10, 4, %v1887_v36  ;;  %v2129_v36 = vld [vmem:[#allocation5 + $0xe8] sm:$0xff]  ;;  %2384 = vmatprep.subr.mxu0 %v2269_v35 }
 0x50f   :  { %1895 = vrot.lane.b32.xlu0 %v1888_v37, %s4816_s30  ;;  %v2268_v37 = vld [vmem:[#allocation5 + $0x540] sm:$0xff]  ;;  %v2197_v35 = vld [vmem:[#allocation5 + $0x308] sm:$0xff] }
 0x510   :  { %2385 = vmatpush1.msra.mxu0 %v2268_v37 }
 0x57e   :  { %v1891_v38 = vpop.permute.xlu1 %1890 }
 0x57f   :  { %vm1893_vm11 = vcmp.lt.f32.partialorder %v1700_v21, %v1891_v38 }
 0x580   :  { %v1894_v39 = vsel %vm1893_vm11, %v1700_v21, %v1891_v38  ;;  %v2128_v38 = vld [vmem:[#allocation5 + $0xe0] sm:$0xff] }
 0x581   :  { %v1896_v40 = vpop.permute.xlu0 %1895  ;;  %1899 = vrot.lane.b32.xlu1 %v1894_v39, %s4816_s30  ;;  %v2265_v39 = vld [vmem:[#allocation5 + $0x528] sm:$0xff] }
 0x582   :  { %v1897_v41 = vsel %vm1893_vm11, 5, %v1896_v40  ;;  %v2125_v40 = vld [vmem:[#allocation5 + $0xc8] sm:$0xff]  ;;  %2386 = vmatprep.subr.mxu0 %v2265_v39  ;;  %v2228_v39 = vld [vmem:[#allocation5 + $0x400] sm:$0xff] }
 0x583   :  { %1906 = vrot.lane.b32.xlu0 %v1897_v41, %s4816_s30  ;;  %v2264_v41 = vld [vmem:[#allocation5 + $0x520] sm:$0xff] }
 0x584   :  { %2387 = vmatpush1.msra.mxu0 %v2264_v41  ;;  %v2297_v41 = vld [vmem:[#allocation5 + $0x628] sm:$0xff] }
 0x585   :  { %2388 = vmatprep.subr.mxu0 %v2261_v44 }
 0x586   :  { %2389 = vmatpush1.msra.mxu0 %v2260_v46  ;;  %v2296_v46 = vld [vmem:[#allocation5 + $0x620] sm:$0xff] }
 0x5f3   :  { %v1900_v48 = vpop.permute.xlu1 %1899 }
 0x5f4   :  { %vm1903_vm12 = vcmp.lt.f32.partialorder %v5471_v47, %v1900_v48  ;;  %vm1902_vm13 = vcmp.lt.f32.partialorder %v1700_v21, %v1900_v48 }
 0x5f5   :  { %v1905_v49 = vsel %vm1903_vm12, %v5471_v47, %v1900_v48  ;;  %v1904_v50 = vsel %vm1902_vm13, %v1700_v21, %v1900_v48  ;;  %v1907_v51 = vpop.permute.xlu0 %1906  ;;  %v2141_v21 = vld [vmem:[#allocation5 + $0x148] sm:$0xff]  ;;  %v2120_v48 = vld [vmem:[#allocation5 + $0xa0] sm:$0xff] }
 0x5f6   :  { %1914 = vrot.lane.b32.xlu0 %v1905_v49, %s4816_s30  ;;  %1912 = vrot.lane.b32.xlu1 %v1904_v50, %s4816_s30  ;;  %v1909_v53 = vsel %vm1903_vm12, 6, %v1907_v51  ;;  %v1908_v3 = vsel %vm1902_vm13, 6, %v1907_v51  ;;  %v2257_v49 = vld [vmem:[#allocation5 + $0x4e8] sm:$0xff]  ;;  %v2256_v51 = vld [vmem:[#allocation5 + $0x4e0] sm:$0xff] }
 0x5f7   :  { %2313 = vmatprep.subr.mxu1 %v2141_v21  ;;  %v2117_v50 = vld [vmem:[#allocation5 + $0x88] sm:$0xff]  ;;  %2390 = vmatprep.subr.mxu0 %v2257_v49  ;;  %v2208_v21 = vld [vmem:[#allocation5 + $0x360] sm:$0xff] }
 0x5f8   :  { %2314 = vmatpush1.msra.mxu1 %v2140_v23  ;;  %2391 = vmatpush1.msra.mxu0 %v2256_v51  ;;  %v2204_v23 = vld [vmem:[#allocation5 + $0x340] sm:$0xff]  ;;  %v2293_v49 = vld [vmem:[#allocation5 + $0x608] sm:$0xff]  ;;  %v4817_v51 = vmov 0.0  }
 0x5f9   :  { %2315 = vmatprep.subr.mxu1 %v2137_v26  ;;  %v1841_v26 = vpop.f32.mrf.mxu1 }
 0x5fa   :  { %1922 = vrot.lane.b32.xlu0 %v1909_v53, %s4816_s30  ;;  %1920 = vrot.lane.b32.xlu1 %v1908_v3, %s4816_s30  ;;  %v2116_v53 = vld [vmem:[#allocation5 + $0x80] sm:$0xff]  ;;  %v2253_v3 = vld [vmem:[#allocation5 + $0x4c8] sm:$0xff]  ;;  %v1842_v33 = vadd.f32 %v1841_v26, %v1771_v27 }
 0x5fb   :  { %2316 = vmatpush1.msra.mxu1 %v2136_v29  ;;  %2392 = vmatprep.subr.mxu0 %v2253_v3  ;;  %v2201_v29 = vld [vmem:[#allocation5 + $0x328] sm:$0xff] }
 0x5fc   :  { %2317 = vmatprep.subr.mxu1 %v2133_v32  ;;  %v2200_v32 = vld [vmem:[#allocation5 + $0x320] sm:$0xff] }
 0x5fd   :  { %2318 = vmatpush1.msra.mxu1 %v2132_v34  ;;  %v2232_v34 = vld [vmem:[#allocation5 + $0x420] sm:$0xff] }
 0x5fe   :  { %2319 = vmatprep.subr.mxu1 %v2129_v36  ;;  %v2229_v36 = vld [vmem:[#allocation5 + $0x408] sm:$0xff] }
 0x5ff   :  { %2320 = vmatpush1.msra.mxu1 %v2128_v38  ;;  %v2196_v38 = vld [vmem:[#allocation5 + $0x300] sm:$0xff] }
 0x600   :  { %2321 = vmatprep.subr.mxu1 %v2125_v40  ;;  %v2193_v40 = vld [vmem:[#allocation5 + $0x2e8] sm:$0xff] }
 0x601   :  { %2322 = vmatpush1.msra.mxu1 %v2124_v43  ;;  %v2192_v43 = vld [vmem:[#allocation5 + $0x2e0] sm:$0xff] }
 0x602   :  { %2323 = vmatprep.subr.mxu1 %v2121_v45 }
 0x603   :  { %2324 = vmatpush1.msra.mxu1 %v2120_v48  ;;  %v2189_v48 = vld [vmem:[#allocation5 + $0x2c8] sm:$0xff] }
 0x604   :  { %2325 = vmatprep.subr.mxu1 %v2117_v50  ;;  %v2292_v50 = vld [vmem:[#allocation5 + $0x600] sm:$0xff] }
 0x605   :  { %2326 = vmatpush1.msra.mxu1 %v2116_v53 }
 0x668   :  { %v1915_v54 = vpop.permute.xlu0 %1914  ;;  %v1913_v28 = vpop.permute.xlu1 %1912 }
 0x669   :  { %v1916_v31 = vsel %vm1878_vm9, %v1913_v28, %v1915_v54  ;;  %v2113_v54 = vld [vmem:[#allocation5 + $0x68] sm:$0xff]  ;;  %v2252_v28 = vld [vmem:[#allocation5 + $0x4c0] sm:$0xff] }
 0x66a   :  { %vm1918_vm14 = vcmp.lt.f32.partialorder %v5471_v47, %v1916_v31  ;;  %2327 = vmatprep.subr.mxu1 %v2113_v54  ;;  %2393 = vmatpush1.msra.mxu0 %v2252_v28 }
 0x66b   :  { %v1919_v55 = vsel %vm1918_vm14, %v5471_v47, %v1916_v31  ;;  %v2112_v31 = vld [vmem:[#allocation5 + $0x60] sm:$0xff] }
 0x66c   :  { %v1923_v58 = vpop.permute.xlu0 %1922  ;;  %1927 = vrot.lane.b32.xlu1 %v1919_v55, %s4816_s30  ;;  %v1921_v59 = vpop.permute.xlu1 %1920  ;;  %v2249_v55 = vld [vmem:[#allocation5 + $0x4a8] sm:$0xff]  ;;  %2328 = vmatpush1.msra.mxu1 %v2112_v31 }
 0x66d   :  { %v1924_v60 = vsel %vm1878_vm9, %v1921_v59, %v1923_v58  ;;  %v2109_v58 = vld [vmem:[#allocation5 + $0x48] sm:$0xff]  ;;  %v2248_v59 = vld [vmem:[#allocation5 + $0x4a0] sm:$0xff]  ;;  %2394 = vmatprep.subr.mxu0 %v2249_v55 }
 0x66e   :  { %v1925_v61 = vsel %vm1918_vm14, 7, %v1924_v60  ;;  %v2108_v60 = vld [vmem:[#allocation5 + $0x40] sm:$0xff]  ;;  %2329 = vmatprep.subr.mxu1 %v2109_v58  ;;  %2395 = vmatpush1.msra.mxu0 %v2248_v59  ;;  %v2185_v58 = vld [vmem:[#allocation5 + $0x2a8] sm:$0xff]  ;;  %v2163_v59 = vld [vmem:[#allocation5 + $0x1f8] sm:$0xff] }
 0x66f   :  { %1932 = vrot.lane.b32.xlu0 %v1925_v61, %s4816_s30  ;;  %v2245_v61 = vld [vmem:[#allocation5 + $0x488] sm:$0xff]  ;;  %2330 = vmatpush1.msra.mxu1 %v2108_v60  ;;  %v2184_v60 = vld [vmem:[#allocation5 + $0x2a0] sm:$0xff] }
 0x670   :  { %2396 = vmatprep.subr.mxu0 %v2245_v61 }
 0x6de   :  { %v1928_v63 = vpop.permute.xlu1 %1927 }
 0x6df   :  { %vm1930_vm15 = vcmp.lt.f32.partialorder %v5471_v47, %v1928_v63 }
 0x6e0   :  { %v1931_v0 = vsel %vm1930_vm15, %v5471_v47, %v1928_v63  ;;  %v2105_v63 = vld [vmem:[#allocation5 + $0x28] sm:$0xff] }
 0x6e1   :  { %v1933_v2 = vpop.permute.xlu0 %1932  ;;  %1936 = vrot.lane.b32.xlu1 %v1931_v0, %s4816_s30  ;;  %v2244_v0 = vld [vmem:[#allocation5 + $0x480] sm:$0xff]  ;;  %2331 = vmatprep.subr.mxu1 %v2105_v63  ;;  %v2181_v63 = vld [vmem:[#allocation5 + $0x288] sm:$0xff] }
 0x6e2   :  { %v1934_v4 = vsel %vm1930_vm15, 8, %v1933_v2  ;;  %v2104_v2 = vld [vmem:[#allocation5 + $0x20] sm:$0xff]  ;;  %2397 = vmatpush1.msra.mxu0 %v2244_v0 }
 0x6e3   :  { %1941 = vrot.lane.b32.xlu0 %v1934_v4, %s4816_s30  ;;  %v2241_v4 = vld [vmem:[#allocation5 + $0x468] sm:$0xff]  ;;  %2332 = vmatpush1.msra.mxu1 %v2104_v2 }
 0x6e4   :  { %2398 = vmatprep.subr.mxu0 %v2241_v4  ;;  %2333 = vmatprep.subr.mxu1 %v2101_v5  ;;  %v2180_v5 = vld [vmem:[#allocation5 + $0x280] sm:$0xff] }
 0x6e5   :  { %2399 = vmatpush1.msra.mxu0 %v2240_v6  ;;  %2334 = vmatpush1.msra.mxu1 %v2100_v8 }
 0x6e6   :  { %2400 = vmatprep.subr.mxu0 %v2237_v9  ;;  %2335 = vmatprep.subr.mxu1 %v2225_v10  ;;  %v2177_v9 = vld [vmem:[#allocation5 + $0x268] sm:$0xff]  ;;  %v2176_v10 = vld [vmem:[#allocation5 + $0x260] sm:$0xff] }
 0x6e7   :  { %2401 = vmatpush1.msra.mxu0 %v2236_v7  ;;  %2336 = vmatpush2.msra.mxu1 %v2224_v11 }
 0x6e8   :  { %2337 = vmatprep.subr.mxu1 %v2221_v12  ;;  %2402 = vmatprep.subr.mxu0 %v2233_v30  ;;  %v2164_v30 = vld [vmem:[#allocation5 + $0x200] sm:$0xff] }
 0x6e9   :  { %2338 = vmatpush2.msra.mxu1 %v2220_v13  ;;  %2403 = vmatpush1.msra.mxu0 %v2232_v34  ;;  %v2173_v13 = vld [vmem:[#allocation5 + $0x248] sm:$0xff] }
 0x6ea   :  { %2339 = vmatprep.subr.mxu1 %v2217_v14  ;;  %2404 = vmatprep.subr.mxu0 %v2229_v36 }
 0x6eb   :  { %2340 = vmatpush2.msra.mxu1 %v2216_v15  ;;  %2405 = vmatpush1.msra.mxu0 %v2228_v39 }
 0x6ec   :  { %2341 = vmatprep.subr.mxu1 %v2213_v16  ;;  %2434 = vmatprep.subr.mxu0 %v2297_v41  ;;  %v2172_v16 = vld [vmem:[#allocation5 + $0x240] sm:$0xff] }
 0x6ed   :  { %2342 = vmatpush2.msra.mxu1 %v2212_v17  ;;  %2435 = vmatpush2.msra.mxu0 %v2296_v46 }
 0x6ee   :  { %2343 = vmatprep.subr.mxu1 %v2209_v19  ;;  %2436 = vmatprep.subr.mxu0 %v2293_v49  ;;  %v2169_v19 = vld [vmem:[#allocation5 + $0x228] sm:$0xff] }
 0x6ef   :  { %2344 = vmatpush2.msra.mxu1 %v2208_v21  ;;  %2437 = vmatpush2.msra.mxu0 %v2292_v50  ;;  %v2168_v21 = vld [vmem:[#allocation5 + $0x220] sm:$0xff] }
 0x6f0   :  { %2345 = vmatprep.subr.mxu1 %v2205_v22  ;;  %2445 = vmatprep.subr.mxu0 %v2163_v59 }
 0x6f1   :  { %2346 = vmatpush2.msra.mxu1 %v2204_v23 }
 0x6f2   :  { %2347 = vmatprep.subr.mxu1 %v2201_v29 }
 0x6f3   :  { %2348 = vmatpush2.msra.mxu1 %v2200_v32  ;;  %v2291_v32 = vld [vmem:[#allocation5 + $0x5f8] sm:$0xff] }
 0x6f4   :  { %2349 = vmatprep.subr.mxu1 %v2197_v35 }
 0x6f5   :  { %2350 = vmatpush2.msra.mxu1 %v2196_v38 }
 0x6f6   :  { %2351 = vmatprep.subr.mxu1 %v2193_v40 }
 0x6f7   :  { %2352 = vmatpush2.msra.mxu1 %v2192_v43 }
 0x6f8   :  { %2353 = vmatprep.subr.mxu1 %v2189_v48 }
 0x753   :  { %v1937_v37 = vpop.permute.xlu1 %1936 }
 0x754   :  { %vm1939_vm3 = vcmp.lt.f32.partialorder %v5471_v47, %v1937_v37  ;;  %vm1940_vm5 = vcmp.lt.f32.partialorder %v1842_v33, %v1937_v37  ;;  %v2188_v47 = vld [vmem:[#allocation5 + $0x2c0] sm:$0xff] }
 0x755   :  { %v1942_v1 = vpop.permute.xlu0 %1941  ;;  %2354 = vmatpush2.msra.mxu1 %v2188_v47 }
 0x756   :  { %v5492_v44 = vsel %vm1939_vm3, 9, %v1942_v1  ;;  %v5494_v45 = vsel %vm1940_vm5, 9, %v1942_v1  ;;  %2355 = vmatprep.subr.mxu1 %v2185_v58 }
 0x757   :  { %vm2000_vm6 = vcmp.eq.s32.totalorder %v5494_v45, 9  ;;  %vm1987_vm7 = vcmp.eq.s32.totalorder %v5492_v44, 7  ;;  %vm1988_vm8 = vcmp.eq.s32.totalorder %v5494_v45, 7  ;;  %vm1981_vm10 = vcmp.eq.s32.totalorder %v5492_v44, 6  ;;  %2356 = vmatpush2.msra.mxu1 %v2184_v60 }
 0x758   :  { %v5501_v53 = vsel %vm2000_vm6, 1.0, %v4817_v51  ;;  %v4014_v3 = vsel %vm1987_vm7, 1.0, %v4817_v51  ;;  %v4015_v54 = vsel %vm1988_vm8, 1.0, %v4817_v51  ;;  %vm1982_vm11 = vcmp.eq.s32.totalorder %v5494_v45, 6  ;;  %2357 = vmatprep.subr.mxu1 %v2181_v63  ;;  %v2159_v63 = vld [vmem:[#allocation5 + $0x1d8] sm:$0xff] }
 0x759   :  { %4020 = vmatprep.mubr.msk.f32.mxu0 %vm731_vm0, %v5501_v53  ;;  %v4198_v28 = vpack.i.bf16 %v4015_v54, %v4014_v3  ;;  %v4012_v31 = vsel %vm1981_vm10, 1.0, %v4817_v51  ;;  %v4013_v55 = vsel %vm1982_vm11, 1.0, %v4817_v51  ;;  %vm1993_vm12 = vcmp.eq.s32.totalorder %v5492_v44, 8  ;;  %2358 = vmatpush2.msra.mxu1 %v2180_v5  ;;  %v2155_v5 = vld [vmem:[#allocation5 + $0x1b8] sm:$0xff] }
 0x75a   :  { %v4193_v61 = vpack.i.bf16 %v4013_v55, %v4012_v31  ;;  %vm1994_vm13 = vcmp.eq.s32.totalorder %v5494_v45, 8  ;;  %vm1963_vm14 = vcmp.eq.s32.totalorder %v5492_v44, 3  ;;  %v4016_v0 = vsel %vm1993_vm12, 1.0, %v4817_v51  ;;  %2359 = vmatprep.subr.mxu1 %v2177_v9  ;;  %v2162_v55 = vld [vmem:[#allocation5 + $0x1f0] sm:$0xff] }
 0x75b   :  { %4199 = vrot.lane.b32.xlu0 %v4198_v28, %s4818_s6  ;;  %v4017_v2 = vsel %vm1994_vm13, 1.0, %v4817_v51  ;;  %vm1964_vm15 = vcmp.eq.s32.totalorder %v5494_v45, 3  ;;  %v4006_v4 = vsel %vm1963_vm14, 1.0, %v4817_v51  ;;  %vm1969_vm3 = vcmp.eq.s32.totalorder %v5492_v44, 4  ;;  %2360 = vmatpush2.msra.mxu1 %v2176_v10  ;;  %v2154_v10 = vld [vmem:[#allocation5 + $0x1b0] sm:$0xff] }
 0x75c   :  { %4194 = vrot.lane.b32.xlu1 %v4193_v61, %s4813_s28  ;;  %v4007_v6 = vsel %vm1964_vm15, 1.0, %v4817_v51  ;;  %vm1970_vm5 = vcmp.eq.s32.totalorder %v5494_v45, 4  ;;  %vm1945_vm6 = vcmp.eq.s32.totalorder %v5492_v44, 0  ;;  %vm1946_vm7 = vcmp.eq.s32.totalorder %v5494_v45, 0  ;;  %s4819_s28 = smov 16   ;;  %2361 = vmatprep.subr.mxu1 %v2173_v13  ;;  %v2151_v13 = vld [vmem:[#allocation5 + $0x198] sm:$0xff] }
 0x75d   :  { %v4208_v8 = vpack.i.bf16 %v4007_v6, %v4006_v4  ;;  %v4203_v7 = vpack.i.bf16 %v4017_v2, %v4016_v0  ;;  %v4000_v11 = vsel %vm1945_vm6, 1.0, %v4817_v51  ;;  %v4001_v12 = vsel %vm1946_vm7, 1.0, %v4817_v51  ;;  %2362 = vmatpush2.msra.mxu1 %v2172_v16  ;;  %v2158_v0 = vld [vmem:[#allocation5 + $0x1d0] sm:$0xff] }
 0x75e   :  { %v4008_v14 = vsel %vm1969_vm3, 1.0, %v4817_v51  ;;  %v4009_v15 = vsel %vm1970_vm5, 1.0, %v4817_v51  ;;  %vm1975_vm8 = vcmp.eq.s32.totalorder %v5492_v44, 5  ;;  %vm1951_vm10 = vcmp.eq.s32.totalorder %v5492_v44, 1  ;;  %2363 = vmatprep.subr.mxu1 %v2169_v19 }
 0x75f   :  { %4209 = vrot.lane.b32.xlu0 %v4208_v8, %s4819_s28  ;;  %vm1952_vm11 = vcmp.eq.s32.totalorder %v5494_v45, 1  ;;  %vm1976_vm12 = vcmp.eq.s32.totalorder %v5494_v45, 5  ;;  %v4218_v17 = vpack.i.bf16 %v4001_v12, %v4000_v11  ;;  %v4213_v22 = vpack.i.bf16 %v4009_v15, %v4008_v14  ;;  %2364 = vmatpush2.msra.mxu1 %v2168_v21  ;;  %v2147_v21 = vld [vmem:[#allocation5 + $0x178] sm:$0xff] }
 0x760   :  { %4204 = vrot.lane.b32.xlu1 %v4203_v7, %s4820_s5  ;;  %v4010_v23 = vsel %vm1975_vm8, 1.0, %v4817_v51  ;;  %v4011_v24 = vsel %vm1976_vm12, 1.0, %v4817_v51  ;;  %vm1999_vm13 = vcmp.eq.s32.totalorder %v5492_v44, 9  ;;  %v4002_v26 = vsel %vm1951_vm10, 1.0, %v4817_v51  ;;  %2365 = vmatprep.subr.mxu1 %v2165_v25 }
 0x761   :  { %v4003_v27 = vsel %vm1952_vm11, 1.0, %v4817_v51  ;;  %v4018_v29 = vsel %vm1999_vm13, 1.0, %v4817_v51  ;;  %vm1957_vm14 = vcmp.eq.s32.totalorder %v5492_v44, 2  ;;  %vm1958_vm15 = vcmp.eq.s32.totalorder %v5494_v45, 2  ;;  %2366 = vmatpush2.msra.mxu1 %v2164_v30  ;;  %v2143_v30 = vld [vmem:[#allocation5 + $0x158] sm:$0xff] }
 0x762   :  { %v4228_v33 = vpack.i.bf16 %v4011_v24, %v4010_v23  ;;  %v4223_v34 = vpack.i.bf16 %v4003_v27, %v4002_v26  ;;  %v4004_v35 = vsel %vm1957_vm14, 1.0, %v4817_v51  ;;  %v4005_v36 = vsel %vm1958_vm15, 1.0, %v4817_v51  ;;  %2516 = vmatprep.subr.mxu1 %v2291_v32  ;;  %v2146_v26 = vld [vmem:[#allocation5 + $0x170] sm:$0xff] }
 0x763   :  { %4219 = vrot.lane.b32.xlu0 %v4218_v17, %s4821_s15  ;;  %v4233_v37 = vpack.i.bf16 %v4005_v36, %v4004_v35  ;;  %vm2075_vm3 = vcmask 392192   ;;  %vm2065_vm5 = vcmask 64512   ;;  %vm2084_vm6 = vcmask 719872   ;;  %v2150_v17 = vld [vmem:[#allocation5 + $0x190] sm:$0xff]  ;;  %v2139_v35 = vld [vmem:[#allocation5 + $0x138] sm:$0xff] }
 0x764   :  { %4214 = vrot.lane.b32.xlu1 %v4213_v22, %s4822_s16  ;;  %vm2011_vm7 = vcmask 195584   ;;  %vm2020_vm8 = vcmask 523264   ;;  %vm2029_vm10 = vcmask 850944   ;;  %vm2047_vm11 = vcmask 457728  }
 0x765   :  { %vm2056_vm12 = vcmask 785408   ;;  %vm2092_vm13 = vcmask 261120   ;;  %vm2095_vm14 = vcmask 916480   ;;  %vm2088_vm15 = vcmask 654336  }
 0x767   :  { %4229 = vrot.lane.b32.xlu0 %v4228_v33, %s4823_s17  ;;  %v2142_v33 = vld [vmem:[#allocation5 + $0x150] sm:$0xff] }
 0x768   :  { %4224 = vrot.lane.b32.xlu1 %v4223_v34, %s4824_s1 }
 0x76c   :  { %4234 = vrot.lane.b32.xlu1 %v4233_v37, %s4825_s18 }
 0x7cd   :  { %v4200_v38 = vpop.permute.xlu0 %4199 }
 0x7ce   :  { %v4202_v39 = vunpack.i.h.bf16 %v4200_v38  ;;  %v4201_v1 = vunpack.i.l.bf16 %v4200_v38  ;;  %v4195_v40 = vpop.permute.xlu1 %4194  ;;  %v2138_v38 = vld [vmem:[#allocation5 + $0x130] sm:$0xff] }
 0x7cf   :  { %v4197_v41 = vunpack.i.h.bf16 %v4195_v40  ;;  %v4196_v43 = vunpack.i.l.bf16 %v4195_v40  ;;  %v2135_v40 = vld [vmem:[#allocation5 + $0x118] sm:$0xff] }
 0x7d0   :  { %v2076_v45 = vsel %vm2075_vm3, %v4201_v1, %v4202_v39  ;;  %vm2090_vm3 = vcmask 982016   ;;  %v2290_v39 = vld [vmem:[#allocation5 + $0x5f0] sm:$0xff] }
 0x7d1   :  { %v5549_v44 = vpop.permute.xlu0 %4209  ;;  %v2066_v46 = vsel %vm2065_vm5, %v4196_v43, %v4197_v41  ;;  %v2287_v41 = vld [vmem:[#allocation5 + $0x5d8] sm:$0xff] }
 0x7d2   :  { %v4205_v48 = vpop.permute.xlu1 %4204  ;;  %v2097_v3 = vsel %vm2011_vm7, %v2066_v46, %v2076_v45  ;;  %v4212_v54 = vunpack.i.h.bf16 %v5549_v44  ;;  %v4211_v58 = vunpack.i.l.bf16 %v5549_v44  ;;  %v2286_v44 = vld [vmem:[#allocation5 + $0x5d0] sm:$0xff]  ;;  %v2131_v45 = vld [vmem:[#allocation5 + $0xf8] sm:$0xff] }
 0x7d3   :  { %v4207_v49 = vunpack.i.h.bf16 %v4205_v48  ;;  %v4206_v47 = vunpack.i.l.bf16 %v4205_v48  ;;  %v2283_v46 = vld [vmem:[#allocation5 + $0x5b8] sm:$0xff]  ;;  %v2130_v48 = vld [vmem:[#allocation5 + $0xf0] sm:$0xff] }
 0x7d4   :  { %v2038_v7 = vsel %vm731_vm0, %v4211_v58, %v4212_v54  ;;  %v2123_v54 = vld [vmem:[#allocation5 + $0xb8] sm:$0xff] }
 0x7d5   :  { %v2085_v50 = vsel %vm2084_vm6, %v4206_v47, %v4207_v49  ;;  %v4220_v51 = vpop.permute.xlu0 %4219  ;;  %v2282_v49 = vld [vmem:[#allocation5 + $0x5b0] sm:$0xff]  ;;  %v2127_v47 = vld [vmem:[#allocation5 + $0xd8] sm:$0xff] }
 0x7d6   :  { %v4215_v28 = vpop.permute.xlu1 %4214  ;;  %v2098_v31 = vsel %vm2020_vm8, %v2097_v3, %v2085_v50  ;;  %v4222_v14 = vunpack.i.h.bf16 %v4220_v51  ;;  %v4221_v15 = vunpack.i.l.bf16 %v4220_v51  ;;  %v2279_v50 = vld [vmem:[#allocation5 + $0x598] sm:$0xff]  ;;  %v2126_v51 = vld [vmem:[#allocation5 + $0xd0] sm:$0xff] }
 0x7d7   :  { %v4217_v59 = vunpack.i.h.bf16 %v4215_v28  ;;  %v4216_v60 = vunpack.i.l.bf16 %v4215_v28  ;;  %v5556_v61 = vsel %vm2029_vm10, %v2098_v31, %v4018_v29  ;;  %v2278_v3 = vld [vmem:[#allocation5 + $0x590] sm:$0xff]  ;;  %v2275_v28 = vld [vmem:[#allocation5 + $0x578] sm:$0xff] }
 0x7d8   :  { %2439 = vmatmul.mubr.f32.vlgmr.msra.gmra.mxu0 %v5556_v61  ;;  %v2012_v32 = vsel %vm2011_vm7, %v4221_v15, %v4222_v14  ;;  %v2122_v31 = vld [vmem:[#allocation5 + $0xb0] sm:$0xff]  ;;  %v2255_v14 = vld [vmem:[#allocation5 + $0x4d8] sm:$0xff] }
 0x7d9   :  { %v2048_v2 = vsel %vm2047_vm11, %v4216_v60, %v4217_v59  ;;  %2446 = vmatpush1.msra.mxu0 %v2162_v55  ;;  %v4230_v4 = vpop.permute.xlu0 %4229  ;;  %v2274_v55 = vld [vmem:[#allocation5 + $0x570] sm:$0xff] }
 0x7da   :  { %2447 = vmatprep.subr.mxu0 %v2159_v63  ;;  %v4225_v6 = vpop.permute.xlu1 %4224  ;;  %v4232_v8 = vunpack.i.h.bf16 %v4230_v4  ;;  %v4231_v9 = vunpack.i.l.bf16 %v4230_v4  ;;  %v2093_v19 = vsel %vm2092_vm13, %v2038_v7, %v2048_v2  ;;  %v2118_v59 = vld [vmem:[#allocation5 + $0x90] sm:$0xff]  ;;  %v2115_v63 = vld [vmem:[#allocation5 + $0x78] sm:$0xff] }
 0x7db   :  { %2448 = vmatpush1.msra.mxu0 %v2158_v0  ;;  %v4227_v11 = vunpack.i.h.bf16 %v4225_v6  ;;  %v4226_v12 = vunpack.i.l.bf16 %v4225_v6  ;;  %v2270_v60 = vld [vmem:[#allocation5 + $0x550] sm:$0xff]  ;;  %v2267_v0 = vld [vmem:[#allocation5 + $0x538] sm:$0xff] }
 0x7dc   :  { %v2057_v16 = vsel %vm2056_vm12, %v4231_v9, %v4232_v8  ;;  %2449 = vmatprep.subr.mxu0 %v2155_v5  ;;  %v2114_v2 = vld [vmem:[#allocation5 + $0x70] sm:$0xff]  ;;  %v2111_v5 = vld [vmem:[#allocation5 + $0x58] sm:$0xff] }
 0x7dd   :  { %2450 = vmatpush1.msra.mxu0 %v2154_v10  ;;  %v2094_v22 = vsel %vm1225_vm2, %v2093_v19, %v2057_v16  ;;  %v2021_v23 = vsel %vm2020_vm8, %v4226_v12, %v4227_v11  ;;  %v2266_v4 = vld [vmem:[#allocation5 + $0x530] sm:$0xff]  ;;  %v2263_v6 = vld [vmem:[#allocation5 + $0x518] sm:$0xff] }
 0x7de   :  { %2451 = vmatprep.subr.mxu0 %v2151_v13  ;;  %v4235_v24 = vpop.permute.xlu1 %4234  ;;  %v2096_v25 = vsel %vm2095_vm14, %v2094_v22, %v4196_v43  ;;  %v2087_v36 = vsel %vm1878_vm9, %v2012_v32, %v2021_v23  ;;  %v2134_v43 = vld [vmem:[#allocation5 + $0x110] sm:$0xff]  ;;  %v2107_v10 = vld [vmem:[#allocation5 + $0x38] sm:$0xff] }
 0x7df   :  { %2452 = vmatpush1.msra.mxu0 %v2150_v17  ;;  %v4237_v27 = vunpack.i.h.bf16 %v4235_v24  ;;  %v4236_v29 = vunpack.i.l.bf16 %v4235_v24  ;;  %2367 = vmatprep.mubr.f32.mxu1 %v2096_v25  ;;  %v2110_v8 = vld [vmem:[#allocation5 + $0x50] sm:$0xff]  ;;  %v2259_v7 = vld [vmem:[#allocation5 + $0x4f8] sm:$0xff] }
 0x7e0   :  { %2453 = vmatprep.subr.mxu0 %v2147_v21  ;;  %2509 = vmatprep.mubr.f32.mxu0 %v2096_v25  ;;  %v2262_v9 = vld [vmem:[#allocation5 + $0x510] sm:$0xff]  ;;  %v2103_v13 = vld [vmem:[#allocation5 + $0x18] sm:$0xff] }
 0x7e1   :  { %v2030_v34 = vsel %vm2029_vm10, %v4236_v29, %v4237_v27  ;;  %2454 = vmatpush1.msra.mxu0 %v2146_v26  ;;  %v2106_v11 = vld [vmem:[#allocation5 + $0x30] sm:$0xff]  ;;  %v2227_v17 = vld [vmem:[#allocation5 + $0x3f8] sm:$0xff] }
 0x7e2   :  { %2455 = vmatprep.subr.mxu0 %v2143_v30  ;;  %v2089_v37 = vsel %vm2088_vm15, %v2087_v36, %v2030_v34  ;;  %v2258_v12 = vld [vmem:[#allocation5 + $0x4f0] sm:$0xff]  ;;  %v2251_v19 = vld [vmem:[#allocation5 + $0x4b8] sm:$0xff] }
 0x7e3   :  { %2456 = vmatpush1.msra.mxu0 %v2142_v33  ;;  %v5567_v1 = vsel %vm2090_vm3, %v2089_v37, %v4211_v58  ;;  %v2119_v58 = vld [vmem:[#allocation5 + $0x98] sm:$0xff]  ;;  %v2102_v15 = vld [vmem:[#allocation5 + $0x10] sm:$0xff] }
 0x7e4   :  { %2457 = vmatprep.subr.mxu0 %v2139_v35  ;;  %2368 = vmatmul.mubr.f32.vlgmr.msra.gmra.mxu1 %v5567_v1  ;;  %v2254_v16 = vld [vmem:[#allocation5 + $0x4d0] sm:$0xff]  ;;  %v2223_v23 = vld [vmem:[#allocation5 + $0x3d8] sm:$0xff] }
 0x7e5   :  { %2458 = vmatpush1.msra.mxu0 %v2138_v38  ;;  %2517 = vmatpush1.msra.mxu1 %v2290_v39  ;;  %v2226_v21 = vld [vmem:[#allocation5 + $0x3f0] sm:$0xff]  ;;  %v2247_v24 = vld [vmem:[#allocation5 + $0x498] sm:$0xff] }
 0x7e6   :  { %2459 = vmatprep.subr.mxu0 %v2135_v40  ;;  %2518 = vmatprep.subr.mxu1 %v2287_v41  ;;  %v2250_v22 = vld [vmem:[#allocation5 + $0x4b0] sm:$0xff]  ;;  %v2219_v27 = vld [vmem:[#allocation5 + $0x3b8] sm:$0xff] }
 0x7e7   :  { %4021 = vmatprep.mubr.msk.f32.mxu1 %vm731_vm0, %v5501_v53  ;;  %2460 = vmatpush1.msra.mxu0 %v2134_v43  ;;  %v2271_v53 = vld [vmem:[#allocation5 + $0x558] sm:$0xff]  ;;  %v2222_v25 = vld [vmem:[#allocation5 + $0x3d0] sm:$0xff] }
 0x7e8   :  { %2519 = vmatpush1.msra.mxu1 %v2286_v44  ;;  %2461 = vmatprep.subr.mxu0 %v2131_v45  ;;  %v2246_v26 = vld [vmem:[#allocation5 + $0x490] sm:$0xff]  ;;  %v2243_v29 = vld [vmem:[#allocation5 + $0x478] sm:$0xff] }
 0x7e9   :  { %2520 = vmatprep.subr.mxu1 %v2283_v46  ;;  %2462 = vmatpush1.msra.mxu0 %v2130_v48  ;;  %v2218_v30 = vld [vmem:[#allocation5 + $0x3b0] sm:$0xff]  ;;  %v2215_v33 = vld [vmem:[#allocation5 + $0x398] sm:$0xff] }
 0x7ea   :  { %2521 = vmatpush1.msra.mxu1 %v2282_v49  ;;  %2463 = vmatprep.subr.mxu0 %v2127_v47  ;;  %v2242_v32 = vld [vmem:[#allocation5 + $0x470] sm:$0xff]  ;;  %v2239_v34 = vld [vmem:[#allocation5 + $0x458] sm:$0xff] }
 0x7eb   :  { %2522 = vmatprep.subr.mxu1 %v2279_v50  ;;  %2464 = vmatpush1.msra.mxu0 %v2126_v51  ;;  %v2214_v35 = vld [vmem:[#allocation5 + $0x390] sm:$0xff]  ;;  %v2211_v37 = vld [vmem:[#allocation5 + $0x378] sm:$0xff] }
 0x7ec   :  { %2523 = vmatpush1.msra.mxu1 %v2278_v3  ;;  %2465 = vmatprep.subr.mxu0 %v2123_v54  ;;  %v2238_v36 = vld [vmem:[#allocation5 + $0x450] sm:$0xff]  ;;  %v2235_v38 = vld [vmem:[#allocation5 + $0x438] sm:$0xff] }
 0x7ed   :  { %2524 = vmatprep.subr.mxu1 %v2275_v28  ;;  %2466 = vmatpush1.msra.mxu0 %v2122_v31  ;;  %v2210_v39 = vld [vmem:[#allocation5 + $0x370] sm:$0xff]  ;;  %v2207_v41 = vld [vmem:[#allocation5 + $0x358] sm:$0xff] }
 0x7ee   :  { %2525 = vmatpush1.msra.mxu1 %v2274_v55  ;;  %2467 = vmatprep.subr.mxu0 %v2119_v58  ;;  %v2234_v40 = vld [vmem:[#allocation5 + $0x430] sm:$0xff]  ;;  %v2231_v43 = vld [vmem:[#allocation5 + $0x418] sm:$0xff] }
 0x7ef   :  { %2526 = vmatprep.subr.mxu1 %v2271_v53  ;;  %2468 = vmatpush1.msra.mxu0 %v2118_v59  ;;  %v2206_v44 = vld [vmem:[#allocation5 + $0x350] sm:$0xff]  ;;  %v2203_v46 = vld [vmem:[#allocation5 + $0x338] sm:$0xff] }
 0x7f0   :  { %2527 = vmatpush1.msra.mxu1 %v2270_v60  ;;  %2469 = vmatprep.subr.mxu0 %v2115_v63  ;;  %v2230_v45 = vld [vmem:[#allocation5 + $0x410] sm:$0xff]  ;;  %v2299_v48 = vld [vmem:[#allocation5 + $0x638] sm:$0xff]  ;;  %v4468_v60 = vld [vmem:[#allocation7 + $0x64] ss:$8 sps:$4 sm:$0xff]  }
 0x7f1   :  { %2528 = vmatprep.subr.mxu1 %v2267_v0  ;;  %2470 = vmatpush1.msra.mxu0 %v2114_v2  ;;  %v2202_v49 = vld [vmem:[#allocation5 + $0x330] sm:$0xff]  ;;  %v2199_v50 = vld [vmem:[#allocation5 + $0x318] sm:$0xff] }
 0x7f2   :  { %2529 = vmatpush1.msra.mxu1 %v2266_v4  ;;  %2471 = vmatprep.subr.mxu0 %v2111_v5  ;;  %v2298_v47 = vld [vmem:[#allocation5 + $0x630] sm:$0xff]  ;;  %v2295_v51 = vld [vmem:[#allocation5 + $0x618] sm:$0xff]  ;;  %v4466_v4 = vld [vmem:[#allocation7 + $0x60] ss:$8 sps:$4 sm:$0xff]  }
 0x7f3   :  { %2530 = vmatprep.subr.mxu1 %v2263_v6  ;;  %2472 = vmatpush1.msra.mxu0 %v2110_v8  ;;  %v2198_v3 = vld [vmem:[#allocation5 + $0x310] sm:$0xff]  ;;  %v2195_v28 = vld [vmem:[#allocation5 + $0x2f8] sm:$0xff] }
 0x7f4   :  { %2531 = vmatpush1.msra.mxu1 %v2262_v9  ;;  %2473 = vmatprep.subr.mxu0 %v2107_v10  ;;  %v2294_v54 = vld [vmem:[#allocation5 + $0x610] sm:$0xff]  ;;  %v2191_v58 = vld [vmem:[#allocation5 + $0x2d8] sm:$0xff] }
 0x7f5   :  { %2532 = vmatprep.subr.mxu1 %v2259_v7  ;;  %2474 = vmatpush1.msra.mxu0 %v2106_v11  ;;  %v2194_v31 = vld [vmem:[#allocation5 + $0x2f0] sm:$0xff]  ;;  %v2187_v63 = vld [vmem:[#allocation5 + $0x2b8] sm:$0xff]  ;;  %v4474_v11 = vld [vmem:[#allocation7 + $0x44] ss:$8 sps:$4 sm:$0xff]  }
 0x7f6   :  { %2533 = vmatpush1.msra.mxu1 %v2258_v12  ;;  %2475 = vmatprep.subr.mxu0 %v2103_v13  ;;  %v4465_v55 = vld [vmem:[#allocation7 + $0x74] ss:$8 sps:$4 sm:$0xff]   ;;  %v4463_v53 = vld [vmem:[#allocation7 + $0x70] ss:$8 sps:$4 sm:$0xff]  }
 0x7f7   :  { %2534 = vmatprep.subr.mxu1 %v2255_v14  ;;  %2476 = vmatpush1.msra.mxu0 %v2102_v15  ;;  %v2190_v59 = vld [vmem:[#allocation5 + $0x2d0] sm:$0xff]  ;;  %v2183_v2 = vld [vmem:[#allocation5 + $0x298] sm:$0xff]  ;;  %v4472_v15 = vld [vmem:[#allocation7 + $0x40] ss:$8 sps:$4 sm:$0xff]  }
 0x7f8   :  { %2535 = vmatpush1.msra.mxu1 %v2254_v16  ;;  %2477 = vmatprep.subr.mxu0 %v2227_v17  ;;  %v2186_v0 = vld [vmem:[#allocation5 + $0x2b0] sm:$0xff]  ;;  %v2179_v8 = vld [vmem:[#allocation5 + $0x278] sm:$0xff] }
 0x7f9   :  { %2536 = vmatprep.subr.mxu1 %v2251_v19  ;;  %2478 = vmatpush2.msra.mxu0 %v2226_v21  ;;  %v2182_v5 = vld [vmem:[#allocation5 + $0x290] sm:$0xff]  ;;  %v2175_v10 = vld [vmem:[#allocation5 + $0x258] sm:$0xff]  ;;  %v4480_v21 = vld [vmem:[#allocation7 + $0x24] ss:$8 sps:$4 sm:$0xff]  }
 0x7fa   :  { %2537 = vmatpush1.msra.mxu1 %v2250_v22  ;;  %2479 = vmatprep.subr.mxu0 %v2223_v23  ;;  %v4471_v6 = vld [vmem:[#allocation7 + $0x54] ss:$8 sps:$4 sm:$0xff]   ;;  %v4475_v19 = vld [vmem:[#allocation7 + $0x30] ss:$8 sps:$4 sm:$0xff]   ;;  %v4478_v22 = vld [vmem:[#allocation7 + $0x20] ss:$8 sps:$4 sm:$0xff]  }
 0x7fb   :  { %2538 = vmatprep.subr.mxu1 %v2247_v24  ;;  %2480 = vmatpush2.msra.mxu0 %v2222_v25  ;;  %v2178_v9 = vld [vmem:[#allocation5 + $0x270] sm:$0xff]  ;;  %v2171_v12 = vld [vmem:[#allocation5 + $0x238] sm:$0xff]  ;;  %v4486_v25 = vld [vmem:[#allocation7 + $0x4] ss:$8 sps:$4 sm:$0xff]  }
 0x7fc   :  { %2539 = vmatpush1.msra.mxu1 %v2246_v26  ;;  %2481 = vmatprep.subr.mxu0 %v2219_v27  ;;  %v2174_v7 = vld [vmem:[#allocation5 + $0x250] sm:$0xff]  ;;  %v2167_v14 = vld [vmem:[#allocation5 + $0x218] sm:$0xff]  ;;  %v4484_v26 = vld [vmem:[#allocation7] ss:$8 sps:$4 sm:$0xff]  }
 0x7fd   :  { %2540 = vmatprep.subr.mxu1 %v2243_v29  ;;  %2482 = vmatpush2.msra.mxu0 %v2218_v30  ;;  %v2170_v13 = vld [vmem:[#allocation5 + $0x230] sm:$0xff]  ;;  %v4492_v30 = vld [vmem:[#allocation7 + $0xe4] ss:$8 sps:$4 sm:$0xff]  }
 0x7fe   :  { %2541 = vmatpush1.msra.mxu1 %v2242_v32  ;;  %2483 = vmatprep.subr.mxu0 %v2215_v33  ;;  %v2166_v16 = vld [vmem:[#allocation5 + $0x210] sm:$0xff] }
 0x7ff   :  { %2542 = vmatprep.subr.mxu1 %v2239_v34  ;;  %2484 = vmatpush2.msra.mxu0 %v2214_v35  ;;  %v4477_v17 = vld [vmem:[#allocation7 + $0x34] ss:$8 sps:$4 sm:$0xff]   ;;  %v4481_v24 = vld [vmem:[#allocation7 + $0x10] ss:$8 sps:$4 sm:$0xff]   ;;  %v4516_v35 = vld [vmem:[#allocation7 + $0x164] ss:$8 sps:$4 sm:$0xff]  }
 0x800   :  { %2543 = vmatpush1.msra.mxu1 %v2238_v36  ;;  %2485 = vmatprep.subr.mxu0 %v2211_v37  ;;  %v4483_v23 = vld [vmem:[#allocation7 + $0x14] ss:$8 sps:$4 sm:$0xff]   ;;  %v4487_v29 = vld [vmem:[#allocation7 + $0xf0] ss:$8 sps:$4 sm:$0xff]   ;;  %v4514_v37 = vld [vmem:[#allocation7 + $0x160] ss:$8 sps:$4 sm:$0xff]  }
 0x801   :  { %2544 = vmatprep.subr.mxu1 %v2235_v38  ;;  %2486 = vmatpush2.msra.mxu0 %v2210_v39  ;;  %v4489_v27 = vld [vmem:[#allocation7 + $0xf4] ss:$8 sps:$4 sm:$0xff]   ;;  %v4511_v33 = vld [vmem:[#allocation7 + $0x170] ss:$8 sps:$4 sm:$0xff]   ;;  %v4498_v38 = vld [vmem:[#allocation7 + $0xc4] ss:$8 sps:$4 sm:$0xff]  }
 0x802   :  { %2545 = vmatpush1.msra.mxu1 %v2234_v40  ;;  %2487 = vmatprep.subr.mxu0 %v2207_v41  ;;  %v4495_v32 = vld [vmem:[#allocation7 + $0xd4] ss:$8 sps:$4 sm:$0xff]   ;;  %v4493_v36 = vld [vmem:[#allocation7 + $0xd0] ss:$8 sps:$4 sm:$0xff]   ;;  %v4496_v40 = vld [vmem:[#allocation7 + $0xc0] ss:$8 sps:$4 sm:$0xff]  }
 0x803   :  { %2546 = vmatprep.subr.mxu1 %v2231_v43  ;;  %2488 = vmatpush2.msra.mxu0 %v2206_v44  ;;  %v4513_v34 = vld [vmem:[#allocation7 + $0x174] ss:$8 sps:$4 sm:$0xff]   ;;  %v4517_v41 = vld [vmem:[#allocation7 + $0x150] ss:$8 sps:$4 sm:$0xff]  }
 0x804   :  { %2547 = vmatpush1.msra.mxu1 %v2230_v45  ;;  %2489 = vmatprep.subr.mxu0 %v2203_v46  ;;  %v4519_v39 = vld [vmem:[#allocation7 + $0x154] ss:$8 sps:$4 sm:$0xff]   ;;  %v4499_v44 = vld [vmem:[#allocation7 + $0xb0] ss:$8 sps:$4 sm:$0xff]   ;;  %v4504_v45 = vld [vmem:[#allocation7 + $0xa4] ss:$8 sps:$4 sm:$0xff]  }
 0x805   :  { %2576 = vmatprep.subr.mxu1 %v2299_v48  ;;  %2490 = vmatpush2.msra.mxu0 %v2202_v49  ;;  %v4501_v43 = vld [vmem:[#allocation7 + $0xb4] ss:$8 sps:$4 sm:$0xff]   ;;  %v4502_v46 = vld [vmem:[#allocation7 + $0xa0] ss:$8 sps:$4 sm:$0xff]   ;;  %v4505_v49 = vld [vmem:[#allocation7 + $0x90] ss:$8 sps:$4 sm:$0xff]  }
 0x806   :  { %2577 = vmatpush2.msra.mxu1 %v2298_v47  ;;  %2491 = vmatprep.subr.mxu0 %v2199_v50  ;;  %v4507_v48 = vld [vmem:[#allocation7 + $0x94] ss:$8 sps:$4 sm:$0xff]   ;;  %v4510_v47 = vld [vmem:[#allocation7 + $0x84] ss:$8 sps:$4 sm:$0xff]   ;;  %v4508_v50 = vld [vmem:[#allocation7 + $0x80] ss:$8 sps:$4 sm:$0xff]  }
 0x807   :  { %2578 = vmatprep.subr.mxu1 %v2295_v51  ;;  %2492 = vmatpush2.msra.mxu0 %v2198_v3  ;;  %v4520_v51 = vld [vmem:[#allocation7 + $0x140] ss:$8 sps:$4 sm:$0xff]   ;;  %v4522_v3 = vld [vmem:[#allocation7 + $0x144] ss:$8 sps:$4 sm:$0xff]  }
 0x808   :  { %2579 = vmatpush2.msra.mxu1 %v2294_v54  ;;  %2493 = vmatprep.subr.mxu0 %v2195_v28  ;;  %v4525_v54 = vld [vmem:[#allocation7 + $0x134] ss:$8 sps:$4 sm:$0xff]   ;;  %v4523_v28 = vld [vmem:[#allocation7 + $0x130] ss:$8 sps:$4 sm:$0xff]  }
 0x809   :  { %2581 = vmatmul.mubr.f32.vlgmr.msra.gmra.mxu1 %v5556_v61  ;;  %2494 = vmatpush2.msra.mxu0 %v2194_v31  ;;  %v4469_v61 = vld [vmem:[#allocation7 + $0x50] ss:$8 sps:$4 sm:$0xff]   ;;  %v4528_v31 = vld [vmem:[#allocation7 + $0x124] ss:$8 sps:$4 sm:$0xff]  }
 0x80a   :  { %2495 = vmatprep.subr.mxu0 %v2191_v58  ;;  %2916 = vmatprep.subr.bf16.mxu1 %v4465_v55  ;;  %v4526_v55 = vld [vmem:[#allocation7 + $0x120] ss:$8 sps:$4 sm:$0xff]   ;;  %v4531_v58 = vld [vmem:[#allocation7 + $0x114] ss:$8 sps:$4 sm:$0xff]  }
 0x80b   :  { %2496 = vmatpush2.msra.mxu0 %v2190_v59  ;;  %2917 = vmatpush1.bf16.msra.mxu1 %v4463_v53  ;;  %v4529_v53 = vld [vmem:[#allocation7 + $0x110] ss:$8 sps:$4 sm:$0xff]   ;;  %v4532_v59 = vld [vmem:[#allocation7 + $0x100] ss:$8 sps:$4 sm:$0xff]  }
 0x80c   :  { %2497 = vmatprep.subr.mxu0 %v2187_v63  ;;  %2918 = vmatprep.subr.bf16.mxu1 %v4468_v60  ;;  %v4534_v60 = vld [vmem:[#allocation7 + $0x104] ss:$8 sps:$4 sm:$0xff]  }
 0x80d   :  { %2498 = vmatpush2.msra.mxu0 %v2186_v0  ;;  %v4537_v63 = vld [vmem:[#allocation7 + $0x184] ss:$8 sps:$4 sm:$0xff]   ;;  %v4535_v0 = vld [vmem:[#allocation7 + $0x180] ss:$8 sps:$4 sm:$0xff]  }
 0x80e   :  { %2499 = vmatprep.subr.mxu0 %v2183_v2 }
 0x80f   :  { %2500 = vmatpush2.msra.mxu0 %v2182_v5  ;;  %2919 = vmatpush1.bf16.msra.mxu1 %v4466_v4 }
 0x810   :  { %2501 = vmatprep.subr.mxu0 %v2179_v8  ;;  %2920 = vmatprep.subr.bf16.mxu1 %v4471_v6 }
 0x811   :  { %2502 = vmatpush2.msra.mxu0 %v2178_v9 }
 0x812   :  { %2503 = vmatprep.subr.mxu0 %v2175_v10 }
 0x813   :  { %2504 = vmatpush2.msra.mxu0 %v2174_v7  ;;  %2921 = vmatpush1.bf16.msra.mxu1 %v4469_v61 }
 0x814   :  { %2505 = vmatprep.subr.mxu0 %v2171_v12  ;;  %2922 = vmatprep.subr.bf16.mxu1 %v4474_v11 }
 0x815   :  { %2506 = vmatpush2.msra.mxu0 %v2170_v13 }
 0x816   :  { %2507 = vmatprep.subr.mxu0 %v2167_v14 }
 0x817   :  { %2508 = vmatpush2.msra.mxu0 %v2166_v16  ;;  %2923 = vmatpush1.bf16.msra.mxu1 %v4472_v15 }
 0x818   :  { %2510 = vmatmul.mubr.f32.vlgmr.msra.gmra.mxu0 %v5567_v1  ;;  %2924 = vmatprep.subr.bf16.mxu1 %v4477_v17  ;;  %v4490_v1 = vld [vmem:[#allocation7 + $0xe0] ss:$8 sps:$4 sm:$0xff]  }
 0x819   :  { %2957 = vmatprep.subr.bf16.mxu0 %v4513_v34  ;;  %v4558_v34 = vld [vmem:[%s5905_s10 + $0xe4] ss:$28 sps:$4 sm:$0xff]  }
 0x81a   :  { %2958 = vmatpush1.bf16.msra.mxu0 %v4511_v33  ;;  %v4553_v33 = vld [vmem:[%s5905_s10 + $0x120] ss:$28 sps:$4 sm:$0xff]  }
 0x81b   :  { %2925 = vmatpush1.bf16.msra.mxu1 %v4475_v19  ;;  %2959 = vmatprep.subr.bf16.mxu0 %v4516_v35  ;;  %v4561_v35 = vld [vmem:[%s5905_s10 + $0xec] ss:$28 sps:$4 sm:$0xff]  }
 0x81c   :  { %2926 = vmatprep.subr.bf16.mxu1 %v4480_v21 }
 0x81e   :  { %2960 = vmatpush1.bf16.msra.mxu0 %v4514_v37  ;;  %v4559_v37 = vld [vmem:[%s5905_s10 + $0xe8] ss:$28 sps:$4 sm:$0xff]  }
 0x81f   :  { %2927 = vmatpush1.bf16.msra.mxu1 %v4478_v22  ;;  %2961 = vmatprep.subr.bf16.mxu0 %v4519_v39  ;;  %v4538_v22 = vld [vmem:[%s5905_s10 + $0x188] ss:$28 sps:$4 sm:$0xff]   ;;  %v4567_v39 = vld [vmem:[%s5905_s10 + $0xb4] ss:$28 sps:$4 sm:$0xff]  }
 0x820   :  { %2928 = vmatprep.subr.bf16.mxu1 %v4483_v23  ;;  %v4540_v23 = vld [vmem:[%s5905_s10 + $0x18c] ss:$28 sps:$4 sm:$0xff]  }
 0x822   :  { %2962 = vmatpush1.bf16.msra.mxu0 %v4517_v41  ;;  %v4565_v41 = vld [vmem:[%s5905_s10 + $0xb0] ss:$28 sps:$4 sm:$0xff]  }
 0x823   :  { %2929 = vmatpush1.bf16.msra.mxu1 %v4481_v24  ;;  %2963 = vmatprep.subr.bf16.mxu0 %v4522_v3  ;;  %v4541_v24 = vld [vmem:[%s5905_s10 + $0x190] ss:$28 sps:$4 sm:$0xff]  }
 0x824   :  { %2930 = vmatprep.subr.bf16.mxu1 %v4486_v25  ;;  %v4543_v25 = vld [vmem:[%s5905_s10 + $0x194] ss:$28 sps:$4 sm:$0xff]   ;;  %v4585_v3 = vld [vmem:[%s5905_s10 + $0xc] ss:$28 sps:$4 sm:$0xff]  }
 0x826   :  { %2964 = vmatpush1.bf16.msra.mxu0 %v4520_v51  ;;  %v4582_v51 = vld [vmem:[%s5905_s10 + $0x4] ss:$28 sps:$4 sm:$0xff]  }
 0x827   :  { %2931 = vmatpush1.bf16.msra.mxu1 %v4484_v26  ;;  %2965 = vmatprep.subr.bf16.mxu0 %v4525_v54  ;;  %v4549_v26 = vld [vmem:[%s5905_s10 + $0x15c] ss:$28 sps:$4 sm:$0xff]   ;;  %v3098_v54 = vld [vmem:[%s5905_s10 + $0x2a0] sm:$0xff] }
 0x828   :  { %2932 = vmatprep.subr.bf16.mxu1 %v4489_v27  ;;  %v4544_v27 = vld [vmem:[%s5905_s10 + $0x150] ss:$28 sps:$4 sm:$0xff]  }
 0x82a   :  { %2966 = vmatpush1.bf16.msra.mxu0 %v4523_v28  ;;  %v3099_v28 = vld [vmem:[%s5905_s10 + $0x2a8] sm:$0xff] }
 0x82b   :  { %2933 = vmatpush2.bf16.msra.mxu1 %v4487_v29  ;;  %2967 = vmatprep.subr.bf16.mxu0 %v4528_v31  ;;  %v4547_v29 = vld [vmem:[%s5905_s10 + $0x158] ss:$28 sps:$4 sm:$0xff]   ;;  %v4580_v31 = vld [vmem:[%s5905_s10] ss:$28 sps:$4 sm:$0xff]  }
 0x82c   :  { %2934 = vmatprep.subr.bf16.mxu1 %v4492_v30  ;;  %v4552_v30 = vld [vmem:[%s5905_s10 + $0x11c] ss:$28 sps:$4 sm:$0xff]  }
 0x82e   :  { %2968 = vmatpush1.bf16.msra.mxu0 %v4526_v55  ;;  %v4583_v55 = vld [vmem:[%s5905_s10 + $0x8] ss:$28 sps:$4 sm:$0xff]  }
 0x82f   :  { %2935 = vmatpush2.bf16.msra.mxu1 %v4490_v1  ;;  %2969 = vmatprep.subr.bf16.mxu0 %v4531_v58  ;;  %v4555_v1 = vld [vmem:[%s5905_s10 + $0x124] ss:$28 sps:$4 sm:$0xff]   ;;  %v4158_v58 = vcombine.high %v3098_v54, %v3098_v54 }
 0x830   :  { %2936 = vmatprep.subr.bf16.mxu1 %v4495_v32  ;;  %v4550_v32 = vld [vmem:[%s5905_s10 + $0x118] ss:$28 sps:$4 sm:$0xff]  }
 0x832   :  { %2970 = vmatpush1.bf16.msra.mxu0 %v4529_v53  ;;  %v4157_v53 = vcombine.low %v3098_v54, %v3098_v54  ;;  %v4630_v54 = vld [vmem:[%s5905_s10 + $0xb8] ss:$28 sps:$4 sm:$0xff]  }
 0x833   :  { %2937 = vmatpush2.bf16.msra.mxu1 %v4493_v36  ;;  %2971 = vmatprep.subr.bf16.mxu0 %v4534_v60  ;;  %v4556_v36 = vld [vmem:[%s5905_s10 + $0xe0] ss:$28 sps:$4 sm:$0xff]   ;;  %v4159_v60 = vcombine.low %v3099_v28, %v3099_v28 }
 0x834   :  { %2938 = vmatprep.subr.bf16.mxu1 %v4498_v38  ;;  %v4564_v38 = vld [vmem:[%s5905_s10 + $0xac] ss:$28 sps:$4 sm:$0xff]  }
 0x836   :  { %2972 = vmatpush1.bf16.msra.mxu0 %v4532_v59  ;;  %v4160_v59 = vcombine.high %v3099_v28, %v3099_v28  ;;  %v4633_v28 = vld [vmem:[%s5905_s10 + $0xc0] ss:$28 sps:$4 sm:$0xff]  }
 0x837   :  { %2939 = vmatpush2.bf16.msra.mxu1 %v4496_v40  ;;  %2987 = vmatprep.subr.bf16.mxu0 %v4537_v63  ;;  %v4562_v40 = vld [vmem:[%s5905_s10 + $0xa8] ss:$28 sps:$4 sm:$0xff]   ;;  %v3593_v63 = vsel %vm1229_vm1, %v4157_v53, 0 }
 0x838   :  { %2940 = vmatprep.subr.bf16.mxu1 %v4501_v43  ;;  %v4570_v43 = vld [vmem:[%s5905_s10 + $0x74] ss:$28 sps:$4 sm:$0xff]   ;;  %v4640_v53 = vld [vmem:[%s5905_s10 + $0x4c] ss:$28 sps:$4 sm:$0xff]  }
 0x83a   :  { %2988 = vmatpush2.bf16.msra.mxu0 %v4535_v0  ;;  %v4592_v0 = vld [vmem:[%s5905_s10 + $0x26c] ss:$28 sps:$4 sm:$0xff]  }
 0x83b   :  { %2941 = vmatpush2.bf16.msra.mxu1 %v4499_v44  ;;  %3613 = vmatprep.subr.bf16.mxu0 %v4540_v23  ;;  %v4573_v44 = vld [vmem:[%s5905_s10 + $0x7c] ss:$28 sps:$4 sm:$0xff]  }
 0x83c   :  { %2942 = vmatprep.subr.bf16.mxu1 %v4504_v45  ;;  %v4568_v45 = vld [vmem:[%s5905_s10 + $0x70] ss:$28 sps:$4 sm:$0xff]  }
 0x83f   :  { %2943 = vmatpush2.bf16.msra.mxu1 %v4502_v46  ;;  %v4571_v46 = vld [vmem:[%s5905_s10 + $0x78] ss:$28 sps:$4 sm:$0xff]  }
 0x840   :  { %2944 = vmatprep.subr.bf16.mxu1 %v4507_v48  ;;  %v4576_v48 = vld [vmem:[%s5905_s10 + $0x3c] ss:$28 sps:$4 sm:$0xff]  }
 0x843   :  { %2945 = vmatpush2.bf16.msra.mxu1 %v4505_v49  ;;  %v4579_v49 = vld [vmem:[%s5905_s10 + $0x44] ss:$28 sps:$4 sm:$0xff]  }
 0x844   :  { %2946 = vmatprep.subr.bf16.mxu1 %v4510_v47  ;;  %v4574_v47 = vld [vmem:[%s5905_s10 + $0x38] ss:$28 sps:$4 sm:$0xff]  }
 0x847   :  { %2947 = vmatpush2.bf16.msra.mxu1 %v4508_v50  ;;  %v4577_v50 = vld [vmem:[%s5905_s10 + $0x40] ss:$28 sps:$4 sm:$0xff]  }
 0x848   :  { %3654 = vmatprep.subr.bf16.mxu1 %v4543_v25  ;;  %v2651_v25 = vld [vmem:[%s5904_s9] sm:$0x3] }
 0x898   :  { %v2440_v2 = vpop.f32.mrf.mxu0 }
 0x89a   :  { %v2442_v5 = vpop.f32.mrf.mxu0 }
 0x8a4   :  { %v2369_v4 = vpop.f32.mrf.mxu1 }
 0x8a5   :  { %v2441_v6 = vadd.f32 %v2440_v2, %v2369_v4  ;;  %v3599_v2 = vsel %vm1229_vm1, %v4159_v60, 0  ;;  %v4595_v4 = vld [vmem:[%s5905_s10 + $0x274] ss:$28 sps:$4 sm:$0xff]  }
 0x8a6   :  { %v2371_v8 = vpop.f32.mrf.mxu1  ;;  %v4641_v60 = vld [vmem:[%s5905_s10 + $0x50] ss:$28 sps:$4 sm:$0xff]  }
 0x8a7   :  { %v2443_v9 = vadd.f32 %v2442_v5, %v2371_v8  ;;  %v2597_v7 = vpack.c.bf16 %v2441_v6, %v2441_v6  ;;  %v4590_v5 = vld [vmem:[%s5905_s10 + $0x268] ss:$28 sps:$4 sm:$0xff]   ;;  %v4598_v8 = vld [vmem:[%s5905_s10 + $0x234] ss:$28 sps:$4 sm:$0xff]  }
 0x8a9   :  { %v2591_v10 = vcombine.low %v2441_v6, %v2443_v9  ;;  %v2598_v61 = vpack.c.bf16 %v2443_v9, %v2443_v9  ;;  %v4593_v6 = vld [vmem:[%s5905_s10 + $0x270] ss:$28 sps:$4 sm:$0xff]   ;;  %v4601_v9 = vld [vmem:[%s5905_s10 + $0x23c] ss:$28 sps:$4 sm:$0xff]  }
 0x8ab   :  { %2595 = vst [vmem:[#allocation11] sm:$0xff] %v2591_v10  ;;  %2948 = vmatprep.mubr.bf16.mxu1 %v2598_v61  ;;  %v4596_v10 = vld [vmem:[%s5905_s10 + $0x230] ss:$28 sps:$4 sm:$0xff]   ;;  %v4599_v61 = vld [vmem:[%s5905_s10 + $0x238] ss:$28 sps:$4 sm:$0xff]  }
 0x8ac   :  { %2949 = vmatmul.mubr.bf16.vlgmr.msra.gmra.mxu1 %v2597_v7  ;;  %v4602_v7 = vld [vmem:[%s5905_s10 + $0x1f8] ss:$28 sps:$4 sm:$0xff]  }
 0x8ad   :  { %3655 = vmatpush1.bf16.msra.mxu1 %v4541_v24 }
 0x8ae   :  { %3656 = vmatprep.subr.bf16.mxu1 %v4549_v26  ;;  %v2660_v26 = vrot.slane %v2651_v25, %v5320_v20 }
 0x8b1   :  { %3657 = vmatpush1.bf16.msra.mxu1 %v4547_v29 }
 0x8b2   :  { %3658 = vmatprep.subr.bf16.mxu1 %v4555_v1 }
 0x8b5   :  { %3659 = vmatpush1.bf16.msra.mxu1 %v4553_v33 }
 0x8b6   :  { %3660 = vmatprep.subr.bf16.mxu1 %v4561_v35 }
 0x8b9   :  { %3661 = vmatpush1.bf16.msra.mxu1 %v4559_v37 }
 0x8ba   :  { %3662 = vmatprep.subr.bf16.mxu1 %v4567_v39  ;;  %v4614_v39 = vld [vmem:[%s5905_s10 + $0x198] ss:$28 sps:$4 sm:$0xff]  }
 0x8bd   :  { %3663 = vmatpush1.bf16.msra.mxu1 %v4565_v41 }
 0x8be   :  { %3664 = vmatprep.subr.bf16.mxu1 %v4573_v44  ;;  %v4618_v44 = vld [vmem:[%s5905_s10 + $0x160] ss:$28 sps:$4 sm:$0xff]  }
 0x8c1   :  { %3665 = vmatpush1.bf16.msra.mxu1 %v4571_v46  ;;  %v4624_v46 = vld [vmem:[%s5905_s10 + $0x12c] ss:$28 sps:$4 sm:$0xff]  }
 0x8c2   :  { %3666 = vmatprep.subr.bf16.mxu1 %v4579_v49  ;;  %v4625_v49 = vld [vmem:[%s5905_s10 + $0x130] ss:$28 sps:$4 sm:$0xff]  }
 0x8c5   :  { %3667 = vmatpush1.bf16.msra.mxu1 %v4577_v50  ;;  %v4626_v50 = vld [vmem:[%s5905_s10 + $0xf0] ss:$28 sps:$4 sm:$0xff]  }
 0x8c6   :  { %3668 = vmatprep.subr.bf16.mxu1 %v4585_v3  ;;  %v4632_v3 = vld [vmem:[%s5905_s10 + $0xbc] ss:$28 sps:$4 sm:$0xff]  }
 0x8c9   :  { %v2582_v11 = vpop.f32.mrf.mxu1  ;;  %3669 = vmatpush1.bf16.msra.mxu1 %v4583_v55  ;;  %v4634_v55 = vld [vmem:[%s5905_s10 + $0x80] ss:$28 sps:$4 sm:$0xff]  }
 0x8ca   :  { %4166 = vmatprep.subr.msk.bf16.mxu1 %vm1229_vm1, %v4160_v59  ;;  %v4638_v59 = vld [vmem:[%s5905_s10 + $0x48] ss:$28 sps:$4 sm:$0xff]  }
 0x8cb   :  { %v2584_v13 = vpop.f32.mrf.mxu1 }
 0x8cd   :  { %3677 = vmatpush2.bf16.msra.mxu1 %v3599_v2  ;;  %v4642_v2 = vld [vmem:[%s5905_s10 + $0x10] ss:$28 sps:$4 sm:$0xff]  }
 0x8ce   :  { %3678 = vmatprep.subr.bf16.mxu1 %v4595_v4  ;;  %v4645_v4 = vld [vmem:[%s5905_s10 + $0x18] ss:$28 sps:$4 sm:$0xff]  }
 0x8d1   :  { %3679 = vmatpush2.bf16.msra.mxu1 %v4593_v6 }
 0x8d2   :  { %3680 = vmatprep.subr.bf16.mxu1 %v4601_v9 }
 0x8d5   :  { %3681 = vmatpush2.bf16.msra.mxu1 %v4599_v61  ;;  %v4651_v61 = vld [vmem:[%s5905_s10 + $0x27c] ss:$28 sps:$4 sm:$0xff]  }
 0x8d8   :  { %v2511_v12 = vpop.f32.mrf.mxu0 }
 0x8d9   :  { %v2583_v14 = vadd.f32 %v2582_v11, %v2511_v12  ;;  %v4604_v11 = vld [vmem:[%s5905_s10 + $0x1fc] ss:$28 sps:$4 sm:$0xff]  }
 0x8da   :  { %v2513_v15 = vpop.f32.mrf.mxu0  ;;  %v4605_v12 = vld [vmem:[%s5905_s10 + $0x200] ss:$28 sps:$4 sm:$0xff]  }
 0x8db   :  { %v2585_v16 = vadd.f32 %v2584_v13, %v2513_v15  ;;  %v2599_v21 = vpack.c.bf16 %v2583_v14, %v2583_v14  ;;  %v4607_v13 = vld [vmem:[%s5905_s10 + $0x204] ss:$28 sps:$4 sm:$0xff]  }
 0x8dc   :  { %3682 = vmatprep.subr.bf16.mxu1 %v4607_v13  ;;  %v4608_v15 = vld [vmem:[%s5905_s10 + $0x1c0] ss:$28 sps:$4 sm:$0xff]  }
 0x8dd   :  { %v2592_v17 = vcombine.low %v2583_v14, %v2585_v16  ;;  %v2600_v19 = vpack.c.bf16 %v2585_v16, %v2585_v16  ;;  %v4610_v14 = vld [vmem:[%s5905_s10 + $0x1c4] ss:$28 sps:$4 sm:$0xff]   ;;  %v4613_v16 = vld [vmem:[%s5905_s10 + $0x1cc] ss:$28 sps:$4 sm:$0xff]   ;;  %3683 = vmatpush2.bf16.msra.mxu1 %v4605_v12 }
 0x8de   :  { %3684 = vmatprep.subr.bf16.mxu1 %v4613_v16  ;;  %v4655_v12 = vld [vmem:[%s5905_s10 + $0x244] ss:$28 sps:$4 sm:$0xff]  }
 0x8df   :  { %4072 = vmatprep.mubr.msk.bf16.mxu0 %vm731_vm0, %v2600_v19  ;;  %2596 = vst.msk [vmem:[#allocation11 + $0x8] sm:$0xff] %vm5432_vm4, %v2592_v17  ;;  %v4611_v17 = vld [vmem:[%s5905_s10 + $0x1c8] ss:$28 sps:$4 sm:$0xff]   ;;  %v4616_v19 = vld [vmem:[%s5905_s10 + $0x19c] ss:$28 sps:$4 sm:$0xff]  }
 0x8e0   :  { %2990 = vmatmul.mubr.bf16.vlgmr.msra.gmra.mxu0 %v2599_v21  ;;  %v4653_v13 = vld [vmem:[%s5905_s10 + $0x240] ss:$28 sps:$4 sm:$0xff]   ;;  %v4657_v16 = vld [vmem:[%s5905_s10 + $0x208] ss:$28 sps:$4 sm:$0xff]  }
 0x8e1   :  { %3614 = vmatpush1.bf16.msra.mxu0 %v4538_v22  ;;  %3685 = vmatpush2.bf16.msra.mxu1 %v4611_v17  ;;  %v4660_v17 = vld [vmem:[%s5905_s10 + $0x210] ss:$28 sps:$4 sm:$0xff]  }
 0x8e2   :  { %3615 = vmatprep.subr.bf16.mxu0 %v4546_v62  ;;  %3736 = vmatprep.subr.bf16.mxu1 %v4815_v52  ;;  %v2656_v62 = vrot.slane %v2651_v25, %v5314_v18 }
 0x8e5   :  { %3616 = vmatpush1.bf16.msra.mxu0 %v4544_v27 }
 0x8e6   :  { %3617 = vmatprep.subr.bf16.mxu0 %v4552_v30 }
 0x8e9   :  { %3618 = vmatpush1.bf16.msra.mxu0 %v4550_v32 }
 0x8ea   :  { %3619 = vmatprep.subr.bf16.mxu0 %v4558_v34 }
 0x8ed   :  { %3620 = vmatpush1.bf16.msra.mxu0 %v4556_v36 }
 0x8ee   :  { %3621 = vmatprep.subr.bf16.mxu0 %v4564_v38 }
 0x8f1   :  { %3622 = vmatpush1.bf16.msra.mxu0 %v4562_v40  ;;  %v4617_v40 = vld [vmem:[%s5905_s10 + $0x1a0] ss:$28 sps:$4 sm:$0xff]  }
 0x8f2   :  { %3623 = vmatprep.subr.bf16.mxu0 %v4570_v43  ;;  %v4620_v43 = vld [vmem:[%s5905_s10 + $0x164] ss:$28 sps:$4 sm:$0xff]  }
 0x8f5   :  { %3624 = vmatpush1.bf16.msra.mxu0 %v4568_v45  ;;  %v4621_v45 = vld [vmem:[%s5905_s10 + $0x168] ss:$28 sps:$4 sm:$0xff]  }
 0x8f6   :  { %3625 = vmatprep.subr.bf16.mxu0 %v4576_v48  ;;  %v4622_v48 = vld [vmem:[%s5905_s10 + $0x128] ss:$28 sps:$4 sm:$0xff]  }
 0x8f9   :  { %3626 = vmatpush1.bf16.msra.mxu0 %v4574_v47  ;;  %v4628_v47 = vld [vmem:[%s5905_s10 + $0xf4] ss:$28 sps:$4 sm:$0xff]  }
 0x8fa   :  { %3627 = vmatprep.subr.bf16.mxu0 %v4582_v51  ;;  %v4629_v51 = vld [vmem:[%s5905_s10 + $0xf8] ss:$28 sps:$4 sm:$0xff]  }
 0x8fd   :  { %3628 = vmatpush1.bf16.msra.mxu0 %v4580_v31  ;;  %v4636_v31 = vld [vmem:[%s5905_s10 + $0x84] ss:$28 sps:$4 sm:$0xff]  }
 0x8fe   :  { %4164 = vmatprep.subr.msk.bf16.mxu0 %vm1229_vm1, %v4158_v58  ;;  %v4637_v58 = vld [vmem:[%s5905_s10 + $0x88] ss:$28 sps:$4 sm:$0xff]  }
 0x901   :  { %3636 = vmatpush2.bf16.msra.mxu0 %v3593_v63  ;;  %v4644_v63 = vld [vmem:[%s5905_s10 + $0x14] ss:$28 sps:$4 sm:$0xff]  }
 0x902   :  { %3637 = vmatprep.subr.bf16.mxu0 %v4592_v0  ;;  %v3100_v0 = vld [vmem:[%s5905_s10 + $0x2b0] sm:$0xff] }
 0x903   :  { %v4161_v6 = vcombine.low %v3100_v0, %v3100_v0 }
 0x905   :  { %3638 = vmatpush2.bf16.msra.mxu0 %v4590_v5  ;;  %v4162_v5 = vcombine.high %v3100_v0, %v3100_v0  ;;  %v3605_v9 = vsel %vm1229_vm1, %v4161_v6, 0 }
 0x906   :  { %3639 = vmatprep.subr.bf16.mxu0 %v4598_v8  ;;  %v4648_v8 = vld [vmem:[%s5905_s10 + $0x2b8] ss:$0 sps:$4 sm:$0xff]  }
 0x909   :  { %3640 = vmatpush2.bf16.msra.mxu0 %v4596_v10  ;;  %v3611_v10 = vsel %vm1229_vm1, %v4648_v8, 0 }
 0x90a   :  { %3641 = vmatprep.subr.bf16.mxu0 %v4604_v11  ;;  %v4652_v11 = vld [vmem:[%s5905_s10 + $0x280] ss:$28 sps:$4 sm:$0xff]  }
 0x90d   :  { %3642 = vmatpush2.bf16.msra.mxu0 %v4602_v7  ;;  %v4649_v7 = vld [vmem:[%s5905_s10 + $0x278] ss:$28 sps:$4 sm:$0xff]  }
 0x90e   :  { %3643 = vmatprep.subr.bf16.mxu0 %v4610_v14  ;;  %v4656_v14 = vld [vmem:[%s5905_s10 + $0x248] ss:$28 sps:$4 sm:$0xff]  }
 0x911   :  { %3644 = vmatpush2.bf16.msra.mxu0 %v4608_v15  ;;  %v4659_v15 = vld [vmem:[%s5905_s10 + $0x20c] ss:$28 sps:$4 sm:$0xff]  }
 0x912   :  { %3695 = vmatprep.subr.bf16.mxu0 %v4616_v19  ;;  %v4663_v19 = vld [vmem:[%s5905_s10 + $0x1d4] ss:$28 sps:$4 sm:$0xff]  }
 0x96c   :  { %v2950_v21 = vpop.f32.mrf.mxu1 }
 0x96d   :  { %v2951_v27 = vadd.f32 %v2950_v21, %v2656_v62  ;;  %v4661_v21 = vld [vmem:[%s5905_s10 + $0x1d0] ss:$28 sps:$4 sm:$0xff]  }
 0x96e   :  { %v2952_v22 = vpop.f32.mrf.mxu1 }
 0x96f   :  { %v2953_v30 = vadd.f32 %v2952_v22, %v2660_v26  ;;  %v4664_v22 = vld [vmem:[%s5905_s10 + $0x1d8] ss:$28 sps:$4 sm:$0xff]  }
 0x970   :  { %v2954_v23 = vpop.f32.mrf.mxu1 }
 0x972   :  { %v2955_v24 = vpop.f32.mrf.mxu1 }
 0x9a0   :  { %v2991_v29 = vpop.f32.mrf.mxu0 }
 0x9a1   :  { %v2992_v1 = vadd.f32 %v2991_v29, %v2951_v27 }
 0x9a2   :  { %v2993_v32 = vpop.f32.mrf.mxu0 }
 0x9a3   :  { %v2994_v33 = vadd.f32 %v2993_v32, %v2953_v30  ;;  %v2998_v34 = vmax.f32 %v2992_v1, 0.0 }
 0x9a4   :  { %v2995_v35 = vpop.f32.mrf.mxu0 }
 0x9a5   :  { %v2999_v36 = vmax.f32 %v2994_v33, 0.0  ;;  %v5746_v41 = vpack.c.bf16 %v2998_v34, %v2998_v34 }
 0x9a6   :  { %v2996_v37 = vpop.f32.mrf.mxu0 }
 0x9a7   :  { %v3001_v38 = vpack.c.bf16 %v2999_v36, %v2999_v36 }
 0x9a9   :  { %4165 = vmatprep.mubr.msk.bf16.mxu0 %vm1225_vm2, %v3001_v38  ;;  %4167 = vmatprep.mubr.msk.bf16.mxu1 %vm1225_vm2, %v3001_v38 }
 0x9aa   :  { %3646 = vmatmul.mubr.bf16.vlgmr.msra.gmra.mxu0 %v5746_v41  ;;  %3687 = vmatmul.mubr.bf16.vlgmr.msra.gmra.mxu1 %v5746_v41 }
 0x9ab   :  { %3696 = vmatpush1.bf16.msra.mxu0 %v4614_v39  ;;  %3737 = vmatpush1.bf16.msra.mxu1 %v4617_v40 }
 0x9ac   :  { %4169 = vmatprep.mubr.msk.bf16.mxu0 %vm1225_vm2, %v3001_v38  ;;  %4170 = vmatprep.mubr.msk.bf16.mxu1 %vm1225_vm2, %v3001_v38 }
 0x9ad   :  { %3697 = vmatprep.subr.bf16.mxu0 %v4620_v43  ;;  %3738 = vmatprep.subr.bf16.mxu1 %v4815_v52 }
 0x9af   :  { %3698 = vmatpush1.bf16.msra.mxu0 %v4618_v44  ;;  %3739 = vmatpush1.bf16.msra.mxu1 %v4621_v45 }
 0x9b0   :  { %3699 = vmatprep.subr.bf16.mxu0 %v4624_v46  ;;  %3740 = vmatprep.subr.bf16.mxu1 %v4815_v52 }
 0x9b3   :  { %3700 = vmatpush1.bf16.msra.mxu0 %v4622_v48  ;;  %3741 = vmatpush1.bf16.msra.mxu1 %v4625_v49 }
 0x9b4   :  { %3701 = vmatprep.subr.bf16.mxu0 %v4628_v47  ;;  %3742 = vmatprep.subr.bf16.mxu1 %v4815_v52 }
 0x9b7   :  { %3702 = vmatpush1.bf16.msra.mxu0 %v4626_v50  ;;  %3743 = vmatpush1.bf16.msra.mxu1 %v4629_v51 }
 0x9b8   :  { %3703 = vmatprep.subr.bf16.mxu0 %v4632_v3  ;;  %3744 = vmatprep.subr.bf16.mxu1 %v4815_v52 }
 0x9bb   :  { %3704 = vmatpush1.bf16.msra.mxu0 %v4630_v54  ;;  %3745 = vmatpush1.bf16.msra.mxu1 %v4633_v28 }
 0x9bc   :  { %3705 = vmatprep.subr.bf16.mxu0 %v4636_v31  ;;  %3746 = vmatprep.subr.bf16.mxu1 %v4815_v52 }
 0x9bf   :  { %3706 = vmatpush1.bf16.msra.mxu0 %v4634_v55  ;;  %3747 = vmatpush1.bf16.msra.mxu1 %v4637_v58 }
 0x9c0   :  { %3707 = vmatprep.subr.bf16.mxu0 %v4640_v53  ;;  %3748 = vmatprep.subr.bf16.mxu1 %v4815_v52 }
 0x9c3   :  { %3708 = vmatpush1.bf16.msra.mxu0 %v4638_v59  ;;  %3749 = vmatpush1.bf16.msra.mxu1 %v4641_v60 }
 0x9c4   :  { %3709 = vmatprep.subr.bf16.mxu0 %v4644_v63  ;;  %3750 = vmatprep.subr.bf16.mxu1 %v4815_v52 }
 0x9c7   :  { %3710 = vmatpush1.bf16.msra.mxu0 %v4642_v2  ;;  %3751 = vmatpush1.bf16.msra.mxu1 %v4645_v4 }
 0x9c8   :  { %4168 = vmatprep.subr.msk.bf16.mxu0 %vm1229_vm1, %v4162_v5  ;;  %3758 = vmatprep.subr.bf16.mxu1 %v4815_v52 }
 0x9cb   :  { %3718 = vmatpush2.bf16.msra.mxu0 %v3605_v9  ;;  %3759 = vmatpush2.bf16.msra.mxu1 %v3611_v10 }
 0x9cc   :  { %3719 = vmatprep.subr.bf16.mxu0 %v4651_v61  ;;  %3760 = vmatprep.subr.bf16.mxu1 %v4815_v52 }
 0x9cf   :  { %3720 = vmatpush2.bf16.msra.mxu0 %v4649_v7  ;;  %3761 = vmatpush2.bf16.msra.mxu1 %v4652_v11 }
 0x9d0   :  { %3721 = vmatprep.subr.bf16.mxu0 %v4655_v12  ;;  %3762 = vmatprep.subr.bf16.mxu1 %v4815_v52 }
 0x9d3   :  { %3722 = vmatpush2.bf16.msra.mxu0 %v4653_v13  ;;  %3763 = vmatpush2.bf16.msra.mxu1 %v4656_v14 }
 0x9d4   :  { %3723 = vmatprep.subr.bf16.mxu0 %v4659_v15  ;;  %3764 = vmatprep.subr.bf16.mxu1 %v4815_v52 }
 0x9d7   :  { %3724 = vmatpush2.bf16.msra.mxu0 %v4657_v16  ;;  %3765 = vmatpush2.bf16.msra.mxu1 %v4660_v17 }
 0x9d8   :  { %3725 = vmatprep.subr.bf16.mxu0 %v4663_v19  ;;  %3766 = vmatprep.subr.bf16.mxu1 %v4815_v52 }
 0x9db   :  { %3726 = vmatpush2.bf16.msra.mxu0 %v4661_v21  ;;  %3767 = vmatpush2.bf16.msra.mxu1 %v4664_v22 }
 0x9de   :  { %3728 = vmatmul.mubr.bf16.vlgmr.msra.gmra.mxu0 %v5746_v41  ;;  %3769 = vmatmul.mubr.bf16.vlgmr.msra.gmra.mxu1 %v5746_v41 }
 0x9df   :  { %4750 = shalt.err (!%p4747_p5)
}
 0x9e0   :  { %3819 = dma.vmem_to_hbm [thread:$0]  %s3817_s20, 256, %s5908_s13, [#allocation10]  }
 0x9e1   :  { %s4827_s22 = smov [#allocation11]  }
 0x9e2   :  { %s3826_s23 = sshll.u32 %s4827_s22, 4  ;;  %s3827_s23 = int_to_ptr.vmem [resolvable:$true] %s3826_s23 }
 0x9e3   :  { %s4759_s9 = scalar_lea.vmem %s3827_s23, 256  ;;  %p4764_p7 = scmp.lt.s32.totalorder %s3827_s23, %s3827_s23 }
 0x9e4   :  { %p4760_p6 = scmp.ne.s32.totalorder %s3827_s23, %s4759_s9  ;;  %p4765_p8 = scmp.lt.s32.totalorder %s4759_s9, %s4759_s9 }
 0x9e6   :  { %p4766_p9 = por %p4765_p8, %p4764_p7 }
 0x9e8   :  { %p4767_p10 = pnand %p4766_p9, %p4760_p6 }
 0x9ea   :  { %4770 = shalt.err (!%p4767_p10)
}
 0x9eb   :  { %3829 = dma.vmem_to_hbm [thread:$0]  %s3827_s23, 256, %s5909_s14, [#allocation10]   ;;  %v3102_v52 = vld [vmem:[%s5906_s11] sm:$0x7f]  ;;  %v3122_v41 = vsub.s32 4, %v5031_v42  ;;  %v3130_v43 = vsub.s32 6, %v5031_v42 }
 0x9ec   :  { %v3107_v23 = vrot.slane %v3102_v52, %v5314_v18  ;;  %v3115_v24 = vrot.slane %v3102_v52, %v5420_v56  ;;  %v3111_v25 = vrot.slane %v3102_v52, %v5320_v20  ;;  %v3119_v62 = vrot.slane %v3102_v52, %v5423_v57  ;;  %s4828_s11 = smov [#allocation8]  }
 0x9ed   :  { %v3126_v44 = vsub.s32 5, %v5031_v42  ;;  %v3123_v45 = vrot.slane %v3102_v52, %v3122_v41  ;;  %v3131_v46 = vrot.slane %v3102_v52, %v3130_v43  ;;  %vm3798_vm0 = vcmask 125952   ;;  %s3806_s13 = sshll.u32 %s4828_s11, 4  ;;  %s3807_s13 = int_to_ptr.vmem [resolvable:$true] %s3806_s13 }
 0x9ee   :  { %s4779_s14 = scalar_lea.vmem %s3807_s13, 448  ;;  %p4784_p12 = scmp.lt.s32.totalorder %s3807_s13, %s3807_s13 }
 0x9ef   :  { %v3127_v48 = vrot.slane %v3102_v52, %v3126_v44  ;;  %p4780_p11 = scmp.ne.s32.totalorder %s3807_s13, %s4779_s14  ;;  %p4785_p13 = scmp.lt.s32.totalorder %s4779_s14, %s4779_s14 }
 0x9f1   :  { %p4786_p0 = por %p4785_p13, %p4784_p12 }
 0x9f3   :  { %p4787_p1 = pnand %p4786_p0, %p4780_p11 }
 0xa6a   :  { %v3647_v26 = vpop.f32.mrf.mxu0  ;;  %v3688_v27 = vpop.f32.mrf.mxu1 }
 0xa6b   :  { %v3648_v29 = vadd.f32 %v3647_v26, %v3107_v23  ;;  %v3689_v30 = vadd.f32 %v3688_v27, %v3115_v24 }
 0xa6c   :  { %v3649_v1 = vpop.f32.mrf.mxu0  ;;  %v3690_v32 = vpop.f32.mrf.mxu1 }
 0xa6d   :  { %4665 = vtanh.f32 %v3648_v29  ;;  %v3650_v33 = vadd.f32 %v3649_v1, %v3111_v25  ;;  %v3691_v34 = vadd.f32 %v3690_v32, %v3119_v62 }
 0xa6e   :  { %4667 = vtanh.f32 %v3689_v30  ;;  %v3651_v35 = vpop.f32.mrf.mxu0  ;;  %v3692_v36 = vpop.f32.mrf.mxu1 }
 0xa6f   :  { %4669 = vtanh.f32 %v3650_v33 }
 0xa70   :  { %4671 = vtanh.f32 %v3691_v34  ;;  %v3652_v18 = vpop.f32.mrf.mxu0  ;;  %v3693_v56 = vpop.f32.mrf.mxu1 }
 0xa7a   :  { %v4666_v37 = vpop.eup %4665 }
 0xa7b   :  { %v4668_v20 = vpop.eup %4667 }
 0xa7c   :  { %v4670_v38 = vpop.eup %4669 }
 0xa7d   :  { %v4672_v57 = vpop.eup %4671  ;;  %v3789_v39 = vcombine.low %v4666_v37, %v4670_v38 }
 0xa7e   :  { %v3790_v40 = vcombine.low %v4668_v20, %v4672_v57 }
 0xa7f   :  { %3795 = vst [vmem:[#allocation8] sm:$0xff] %v3789_v39 }
 0xa80   :  { %3796 = vst [vmem:[#allocation8 + $0x8] sm:$0xff] %v3790_v40 }
 0xa9e   :  { %v3729_v49 = vpop.f32.mrf.mxu0  ;;  %v3770_v47 = vpop.f32.mrf.mxu1 }
 0xa9f   :  { %v3730_v50 = vadd.f32 %v3729_v49, %v3123_v45  ;;  %v3771_v51 = vadd.f32 %v3770_v47, %v3131_v46 }
 0xaa0   :  { %v3731_v3 = vpop.f32.mrf.mxu0  ;;  %v3772_v54 = vpop.f32.mrf.mxu1 }
 0xaa1   :  { %4673 = vtanh.f32 %v3730_v50  ;;  %v3732_v28 = vadd.f32 %v3731_v3, %v3127_v48 }
 0xaa2   :  { %4675 = vtanh.f32 %v3771_v51  ;;  %v3733_v31 = vpop.f32.mrf.mxu0  ;;  %v3773_v55 = vpop.f32.mrf.mxu1 }
 0xaa3   :  { %4677 = vtanh.f32 %v3732_v28 }
 0xaa4   :  { %v3734_v58 = vpop.f32.mrf.mxu0  ;;  %v3774_v53 = vpop.f32.mrf.mxu1 }
 0xaae   :  { %v4674_v59 = vpop.eup %4673 }
 0xaaf   :  { %v4676_v42 = vpop.eup %4675 }
 0xab0   :  { %v4678_v60 = vpop.eup %4677  ;;  %3799 = vst.msk [vmem:[#allocation8 + $0x18] sm:$0xf] %vm3798_vm0, %v4676_v42 }
 0xab1   :  { %v3791_v63 = vcombine.low %v4674_v59, %v4678_v60 }
 0xab3   :  { %3797 = vst [vmem:[#allocation8 + $0x10] sm:$0xff] %v3791_v63 }
 0xab4   :  { %4790 = shalt.err (!%p4787_p1)
}
 0xab5   :  { %3809 = dma.vmem_to_hbm [thread:$0]  %s3807_s13, 448, %s5907_s12, [#allocation4]  }
 0xab6   :  { %4803 = dma.done.wait [#allocation4], 448  }
 0xab7   :  { %4804 = vsyncadd [#allocation4], 4294966848 }
 0xab8   :  { %4805 = dma.done.wait [#allocation10], 512  }
 0xab9   :  { %4806 = vsyncadd [#allocation10], 4294966784 }
 0xaba   :  { %3839 = vsyncpa [#allocation3], 1 }
 0xabb   :  { %3840 = vsyncpa [#allocation6], 1 }
 0xabc   :  { %3841 = vsyncpa [#allocation4], 1 }
 0xabd   :  { %3842 = vsyncpa [#allocation10], 1 }

</bundles_post_ra>
